<compile_context>
chip_gen: v7x
topology: tpu7x:2x2x1
jax: 0.10.0
libtpu: 0.0.40
codegen_flags: <defaults>
</compile_context>

<pallas_src>
import functools
import math

import jax
import jax.numpy as jnp
from jax.experimental import pallas as pl
from jax.experimental.pallas import tpu as pltpu

EPS = 1e-5          # BatchNorm eps (PyTorch default)
NEG_SLOPE = 0.2     # LeakyReLU slope

_VMEM = pl.BlockSpec(memory_space=pltpu.MemorySpace.VMEM)
_VMEM_LIMIT = 32 * 1024 * 1024   # safe on v5e/v6e (128 MiB) and v7x (64 MiB)


def _pick_tile(n, max_tile=512):
    """Largest point-tile <= max_tile that divides n (prefer multiples of 8)."""
    if n <= max_tile:
        return n
    for t in range(max_tile, 7, -1):
        if n % t == 0 and t % 8 == 0:
            return t
    for t in range(max_tile, 0, -1):
        if n % t == 0:
            return t
    return n


# ----------------------------------------------------------------------------
# Fused per-point MLP chain (+ optional global sum over points)
# ----------------------------------------------------------------------------
def _chain_kernel(x_ref, *refs, n_layers, batched, acts, sum_pool):
    o_ref = refs[-1]
    h = x_ref[0]                                     # (tn, Cin) bf16
    for i in range(n_layers):
        w_ref = refs[2 * i]
        b_ref = refs[2 * i + 1]
        w = w_ref[0] if batched[i] else w_ref[...]
        y = jnp.dot(h, w, preferred_element_type=jnp.float32) + b_ref[...]
        if acts[i]:
            y = jnp.where(y > 0, y, NEG_SLOPE * y)
        h = y.astype(jnp.bfloat16) if i + 1 < n_layers else y   # keep last layer f32
    if sum_pool:
        @pl.when(pl.program_id(1) == 0)
        def _init():
            o_ref[...] = jnp.zeros_like(o_ref)
        o_ref[0] += jnp.sum(h, axis=0, keepdims=True)           # partial sum over points
    else:
        o_ref[0] = h.astype(o_ref.dtype)


def fused_point_chain(x, layers, acts, *, sum_pool, out_dtype=jnp.bfloat16,
                      max_tile=512):
    """x: [B, N, Cin] bf16.  layers: list of (w, b); w shared [Ci,Co] or batched
    [B, Ci, Co] (bf16), b [1, Co] f32 (BN already folded in).
    Returns [B, Cout] f32 (sum over points) or [B, N, Cout] out_dtype."""
    B, N, cin = x.shape
    tn = _pick_tile(N, max_tile)
    nt = N // tn
    n_layers = len(layers)
    batched = tuple(w.ndim == 3 for w, _ in layers)
    cout = layers[-1][0].shape[-1]

    in_specs = [pl.BlockSpec((1, tn, cin), lambda b, t: (b, t, 0))]
    args = [x]
    for (w, bias), is_b in zip(layers, batched):
        if is_b:
            in_specs.append(
                pl.BlockSpec((1, w.shape[1], w.shape[2]), lambda b, t: (b, 0, 0)))
        else:
            in_specs.append(
                pl.BlockSpec((w.shape[0], w.shape[1]), lambda b, t: (0, 0)))
        in_specs.append(pl.BlockSpec((1, bias.shape[-1]), lambda b, t: (0, 0)))
        args += [w, bias]

    if sum_pool:
        out_shape = jax.ShapeDtypeStruct((B, 1, cout), jnp.float32)
        out_spec = pl.BlockSpec((1, 1, cout), lambda b, t: (b, 0, 0))
        dim_sem = ("parallel", "arbitrary")     # tile axis accumulates into the output
    else:
        out_shape = jax.ShapeDtypeStruct((B, N, cout), out_dtype)
        out_spec = pl.BlockSpec((1, tn, cout), lambda b, t: (b, t, 0))
        dim_sem = ("parallel", "parallel")

    kern = functools.partial(_chain_kernel, n_layers=n_layers, batched=batched,
                             acts=tuple(acts), sum_pool=sum_pool)
    out = pl.pallas_call(
        kern,
        out_shape=out_shape,
        grid=(B, nt),
        in_specs=in_specs,
        out_specs=out_spec,
        compiler_params=pltpu.CompilerParams(
            dimension_semantics=dim_sem, vmem_limit_bytes=_VMEM_LIMIT),
    )(*args)
    if sum_pool:
        out = out.reshape(B, cout)
    return out


# ----------------------------------------------------------------------------
# Fused 3-linear FC head (STN seq2 and final FFN; BN folded, Dropout = identity)
# ----------------------------------------------------------------------------
def _head_kernel(g_ref, w1_ref, b1_ref, w2_ref, b2_ref, w3_ref, b3_ref, o_ref):
    h = g_ref[...].astype(jnp.bfloat16)
    h = jnp.dot(h, w1_ref[...], preferred_element_type=jnp.float32) + b1_ref[...]
    h = jnp.where(h > 0, h, NEG_SLOPE * h).astype(jnp.bfloat16)
    h = jnp.dot(h, w2_ref[...], preferred_element_type=jnp.float32) + b2_ref[...]
    h = jnp.where(h > 0, h, NEG_SLOPE * h).astype(jnp.bfloat16)
    o_ref[...] = jnp.dot(h, w3_ref[...], preferred_element_type=jnp.float32) + b3_ref[...]


def fused_head(g, l1, l2, l3):
    """g: [B, 1024] f32 -> [B, cout] f32 through Linear+LReLU, Linear+LReLU, Linear."""
    B = g.shape[0]
    cout = l3[0].shape[1]
    return pl.pallas_call(
        _head_kernel,
        out_shape=jax.ShapeDtypeStruct((B, cout), jnp.float32),
        in_specs=[_VMEM] * 7,
        out_specs=_VMEM,
        compiler_params=pltpu.CompilerParams(vmem_limit_bytes=_VMEM_LIMIT),
    )(g, l1[0], l1[1], l2[0], l2[1], l3[0], l3[1])


# ----------------------------------------------------------------------------
# Fold a per-batch transform into the next layer's weight:  W'_b = T_b @ W
# ----------------------------------------------------------------------------
def _fold_kernel(t_ref, w_ref, o_ref):
    o_ref[0] = jnp.dot(t_ref[0], w_ref[...],
                       preferred_element_type=jnp.float32).astype(o_ref.dtype)


def fold_transform(trans, w):
    """[B, K, K] @ [K, C] -> [B, K, C] bf16 (replaces torch.bmm over the point cloud)."""
    B, K, _ = trans.shape
    C = w.shape[1]
    return pl.pallas_call(
        _fold_kernel,
        out_shape=jax.ShapeDtypeStruct((B, K, C), jnp.bfloat16),
        grid=(B,),
        in_specs=[pl.BlockSpec((1, K, K), lambda b: (b, 0, 0)),
                  pl.BlockSpec((K, C), lambda b: (0, 0))],
        out_specs=pl.BlockSpec((1, K, C), lambda b: (b, 0, 0)),
        compiler_params=pltpu.CompilerParams(
            dimension_semantics=("parallel",), vmem_limit_bytes=_VMEM_LIMIT),
    )(trans.astype(jnp.bfloat16), w)


# ----------------------------------------------------------------------------
# Deterministic parameter init (PyTorch-style) + BN folding / bf16 conversion
# ----------------------------------------------------------------------------
def init_dense_params(key, cin, cout, bn=True):
    kw, kb, kg, kbe = jax.random.split(key, 4)
    bound = 1.0 / float(cin) ** 0.5
    w = jax.random.uniform(kw, (cin, cout), jnp.float32, -bound, bound)
    b = jax.random.uniform(kb, (1, cout), jnp.float32, -bound, bound)
    if bn:
        g = 1.0 + 0.1 * jax.random.normal(kg, (1, cout), jnp.float32)
        be = 0.1 * jax.random.normal(kbe, (1, cout), jnp.float32)
    else:
        g = jnp.ones((1, cout), jnp.float32)
        be = jnp.zeros((1, cout), jnp.float32)
    mu = jnp.zeros((1, cout), jnp.float32)     # running_mean
    var = jnp.ones((1, cout), jnp.float32)     # running_var
    return (w, b, g, be, mu, var)


def fold_dense(raw, bn=True, extra_bias=None):
    """Fold inference BatchNorm into (W, b); cast W to bf16, keep bias f32."""
    w, b, g, be, mu, var = raw
    if bn:
        scale = g * jax.lax.rsqrt(var + EPS)        # [1, cout]
        w = w * scale
        b = (b - mu) * scale + be
    if extra_bias is not None:
        b = b + extra_bias
    return (w.astype(jnp.bfloat16), b.astype(jnp.float32))


def init_stn_params(key, k):
    ks = jax.random.split(key, 6)
    iden = jnp.eye(k, dtype=jnp.float32).reshape(1, k * k)     # folded into last bias
    return dict(
        chain=[fold_dense(init_dense_params(ks[0], k, 64)),
               fold_dense(init_dense_params(ks[1], 64, 128)),
               fold_dense(init_dense_params(ks[2], 128, 1024))],
        head=[fold_dense(init_dense_params(ks[3], 1024, 512)),
              fold_dense(init_dense_params(ks[4], 512, 256)),
              fold_dense(init_dense_params(ks[5], 256, k * k, bn=False),
                         bn=False, extra_bias=iden)],
    )


def init_pointnetfeat_params(key, nf):
    ks = jax.random.split(key, 5)
    return dict(
        stn=init_stn_params(ks[0], nf),
        fstn=init_stn_params(ks[1], 64),
        s1=fold_dense(init_dense_params(ks[2], nf, 64)),
        s2a=fold_dense(init_dense_params(ks[3], 64, 128)),
        s2b=fold_dense(init_dense_params(ks[4], 128, 1024)),
    )


def init_model_params(key, nf):
    ks = jax.random.split(key, 4)
    return dict(
        feat=init_pointnetfeat_params(ks[0], nf),
        head=[fold_dense(init_dense_params(ks[1], 1024, 512)),
              fold_dense(init_dense_params(ks[2], 512, 256)),
              fold_dense(init_dense_params(ks[3], 256, 1), bn=False)],  # n_classes==2 -> 1
    )


# ----------------------------------------------------------------------------
# Model forward (thin glue; all hot compute in the Pallas kernels above)
# ----------------------------------------------------------------------------
def stn_forward(p, x_bf):
    """STNkd: x_bf [B, N, k] bf16 -> transform [B, k, k] f32 (identity already folded)."""
    B = x_bf.shape[0]
    kk = p['head'][2][0].shape[1]
    k = int(round(math.sqrt(kk)))
    g = fused_point_chain(x_bf, p['chain'], acts=(True, True, True), sum_pool=True)
    t = fused_head(g, *p['head'])
    return t.reshape(B, k, k)


def pointnetfeat_forward(p, x):
    """x: [B, N, nf] f32 -> (global_feat [B, 1024] f32, trans, trans_feat)."""
    x_bf = x.astype(jnp.bfloat16)
    trans = stn_forward(p['stn'], x_bf)                           # [B, nf, nf]
    # input transform folded into seq1's conv weight: x @ (T @ W)
    w_s1_b = fold_transform(trans, p['s1'][0])                    # [B, nf, 64]
    h1 = fused_point_chain(x_bf, [(w_s1_b, p['s1'][1])], acts=(True,),
                           sum_pool=False)                        # [B, N, 64] bf16
    trans_feat = stn_forward(p['fstn'], h1)                       # [B, 64, 64]
    # feature transform folded into seq2's first conv weight
    w_s2a_b = fold_transform(trans_feat, p['s2a'][0])             # [B, 64, 128]
    g = fused_point_chain(h1, [(w_s2a_b, p['s2a'][1]), p['s2b']],
                          acts=(True, False), sum_pool=True)      # [B, 1024] f32
    return g, trans, trans_feat


def model_forward(params, batch, n_features):
    # TODO(synk): to_stacked_mask depends on a torch_geometric Batch object; `batch`
    # here is already the dense [B, n_points, F_total] tensor it would produce.
    x = batch[..., :n_features]                                   # [B, N, nf]
    g, trans, trans_feat = pointnetfeat_forward(params['feat'], x)
    out = fused_head(g, *params['head'])                          # [B, 1]
    return jnp.squeeze(out)                                       # [B]


# ----------------------------------------------------------------------------
if __name__ == "__main__":
    BATCH, N_POINTS, N_FEATURES = 2, 16, 4
    key = jax.random.PRNGKey(0)
    kp, kx = jax.random.split(key)

    params = init_model_params(kp, N_FEATURES)
    # dense stand-in for to_stacked_mask(batch): features + 1 mask column
    batch = jax.random.normal(kx, (BATCH, N_POINTS, N_FEATURES + 1), jnp.float32)

    fwd = jax.jit(functools.partial(model_forward, n_features=N_FEATURES))
    out = jax.block_until_ready(fwd(params, batch))
    assert out.shape == (BATCH,), out.shape
    print("KERNEL_OK")
</pallas_src>

<mosaic_0001>
module attributes {stable_mosaic.version = 11 : i64} {
  func.func @_head_kernel(%arg0: memref<2x1024xf32, #tpu.memory_space<vmem>>, %arg1: memref<1024x512xbf16, #tpu.memory_space<vmem>>, %arg2: memref<1x512xf32, #tpu.memory_space<vmem>>, %arg3: memref<512x256xbf16, #tpu.memory_space<vmem>>, %arg4: memref<1x256xf32, #tpu.memory_space<vmem>>, %arg5: memref<256x16xbf16, #tpu.memory_space<vmem>>, %arg6: memref<1x16xf32, #tpu.memory_space<vmem>>, %arg7: memref<2x16xf32, #tpu.memory_space<vmem>>) attributes {dimension_semantics = [], scalar_prefetch = 0 : i64, scratch_operands = 0 : i64, tpu.core_type = #tpu.core_type<tc>} {
    %c0 = arith.constant 0 : index
    %c0_0 = arith.constant 0 : index
    %0 = vector.load %arg0[%c0, %c0_0] : memref<2x1024xf32, #tpu.memory_space<vmem>>, vector<2x1024xf32>
    %1 = arith.truncf %0 : vector<2x1024xf32> to vector<2x1024xbf16>
    %c0_1 = arith.constant 0 : index
    %c0_2 = arith.constant 0 : index
    %2 = vector.load %arg1[%c0_1, %c0_2] : memref<1024x512xbf16, #tpu.memory_space<vmem>>, vector<1024x512xbf16>
    %cst = arith.constant dense<0.000000e+00> : vector<2x512xf32>
    %3 = tpu.matmul %1, %2, %cst {dimension_numbers = #tpu.dot_dimension_numbers<[1], [0], [0], [1], [0, 0, 1, 1], [], []>} : vector<2x1024xbf16>, vector<1024x512xbf16>, vector<2x512xf32> -> vector<2x512xf32>
    %c0_3 = arith.constant 0 : index
    %c0_4 = arith.constant 0 : index
    %4 = vector.load %arg2[%c0_3, %c0_4] : memref<1x512xf32, #tpu.memory_space<vmem>>, vector<1x512xf32>
    %5 = vector.broadcast %4 : vector<1x512xf32> to vector<2x512xf32>
    %6 = arith.addf %3, %5 : vector<2x512xf32>
    %cst_5 = arith.constant 0.000000e+00 : f32
    %7 = vector.broadcast %cst_5 : f32 to vector<2x512xf32>
    %8 = arith.cmpf ogt, %6, %7 : vector<2x512xf32>
    %cst_6 = arith.constant 2.000000e-01 : f32
    %9 = vector.broadcast %cst_6 : f32 to vector<2x512xf32>
    %10 = arith.mulf %9, %6 : vector<2x512xf32>
    %11 = arith.select %8, %6, %10 : vector<2x512xi1>, vector<2x512xf32>
    %12 = arith.truncf %11 : vector<2x512xf32> to vector<2x512xbf16>
    %c0_7 = arith.constant 0 : index
    %c0_8 = arith.constant 0 : index
    %13 = vector.load %arg3[%c0_7, %c0_8] : memref<512x256xbf16, #tpu.memory_space<vmem>>, vector<512x256xbf16>
    %cst_9 = arith.constant dense<0.000000e+00> : vector<2x256xf32>
    %14 = tpu.matmul %12, %13, %cst_9 {dimension_numbers = #tpu.dot_dimension_numbers<[1], [0], [0], [1], [0, 0, 1, 1], [], []>} : vector<2x512xbf16>, vector<512x256xbf16>, vector<2x256xf32> -> vector<2x256xf32>
    %c0_10 = arith.constant 0 : index
    %c0_11 = arith.constant 0 : index
    %15 = vector.load %arg4[%c0_10, %c0_11] : memref<1x256xf32, #tpu.memory_space<vmem>>, vector<1x256xf32>
    %16 = vector.broadcast %15 : vector<1x256xf32> to vector<2x256xf32>
    %17 = arith.addf %14, %16 : vector<2x256xf32>
    %cst_12 = arith.constant 0.000000e+00 : f32
    %18 = vector.broadcast %cst_12 : f32 to vector<2x256xf32>
    %19 = arith.cmpf ogt, %17, %18 : vector<2x256xf32>
    %cst_13 = arith.constant 2.000000e-01 : f32
    %20 = vector.broadcast %cst_13 : f32 to vector<2x256xf32>
    %21 = arith.mulf %20, %17 : vector<2x256xf32>
    %22 = arith.select %19, %17, %21 : vector<2x256xi1>, vector<2x256xf32>
    %23 = arith.truncf %22 : vector<2x256xf32> to vector<2x256xbf16>
    %c0_14 = arith.constant 0 : index
    %c0_15 = arith.constant 0 : index
    %24 = vector.load %arg5[%c0_14, %c0_15] : memref<256x16xbf16, #tpu.memory_space<vmem>>, vector<256x16xbf16>
    %cst_16 = arith.constant dense<0.000000e+00> : vector<2x16xf32>
    %25 = tpu.matmul %23, %24, %cst_16 {dimension_numbers = #tpu.dot_dimension_numbers<[1], [0], [0], [1], [0, 0, 1, 1], [], []>} : vector<2x256xbf16>, vector<256x16xbf16>, vector<2x16xf32> -> vector<2x16xf32>
    %c0_17 = arith.constant 0 : index
    %c0_18 = arith.constant 0 : index
    %26 = vector.load %arg6[%c0_17, %c0_18] : memref<1x16xf32, #tpu.memory_space<vmem>>, vector<1x16xf32>
    %27 = vector.broadcast %26 : vector<1x16xf32> to vector<2x16xf32>
    %28 = arith.addf %25, %27 : vector<2x16xf32>
    %c0_19 = arith.constant 0 : index
    %c0_20 = arith.constant 0 : index
    %29 = vector.load %arg7[%c0_19, %c0_20] : memref<2x16xf32, #tpu.memory_space<vmem>>, vector<2x16xf32>
    tpu.vector_store %arg7[%c0_19, %c0_20], %28 {strides = array<i32>} : memref<2x16xf32, #tpu.memory_space<vmem>>, vector<2x16xf32>,
    return
  }
}

module attributes {stable_mosaic.version = 11 : i64} {
  func.func @_fold_kernel(%arg0: i32, %arg1: memref<1x4x4xbf16, #tpu.memory_space<vmem>>, %arg2: memref<4x64xbf16, #tpu.memory_space<vmem>>, %arg3: memref<1x4x64xbf16, #tpu.memory_space<vmem>>) attributes {dimension_semantics = [#tpu.dimension_semantics<parallel>], iteration_bounds = array<i64: 2>, scalar_prefetch = 0 : i64, scratch_operands = 0 : i64, tpu.core_type = #tpu.core_type<tc>, window_params = [{transform_indices = @transform_0, window_bounds = array<i64: 1, 4, 4>}, {pipeline_mode = #tpu.pipeline_mode<synchronous>, transform_indices = @transform_1, window_bounds = array<i64: 4, 64>}, {transform_indices = @transform_2, window_bounds = array<i64: 1, 4, 64>}]} {
    %c0 = arith.constant 0 : index
    %c0_0 = arith.constant 0 : index
    %c0_1 = arith.constant 0 : index
    %0 = vector.load %arg1[%c0, %c0_0, %c0_1] : memref<1x4x4xbf16, #tpu.memory_space<vmem>>, vector<1x4x4xbf16>
    %1 = vector.shape_cast %0 : vector<1x4x4xbf16> to vector<4x4xbf16>
    %c0_2 = arith.constant 0 : index
    %c0_3 = arith.constant 0 : index
    %2 = vector.load %arg2[%c0_2, %c0_3] : memref<4x64xbf16, #tpu.memory_space<vmem>>, vector<4x64xbf16>
    %cst = arith.constant dense<0.000000e+00> : vector<4x64xf32>
    %3 = tpu.matmul %1, %2, %cst {dimension_numbers = #tpu.dot_dimension_numbers<[1], [0], [0], [1], [0, 0, 1, 1], [], []>} : vector<4x4xbf16>, vector<4x64xbf16>, vector<4x64xf32> -> vector<4x64xf32>
    %4 = arith.truncf %3 : vector<4x64xf32> to vector<4x64xbf16>
    %c0_4 = arith.constant 0 : index
    %c0_5 = arith.constant 0 : index
    %c0_6 = arith.constant 0 : index
    %5 = vector.load %arg3[%c0_4, %c0_5, %c0_6] : memref<1x4x64xbf16, #tpu.memory_space<vmem>>, vector<1x4x64xbf16>
    %6 = vector.shape_cast %5 : vector<1x4x64xbf16> to vector<4x64xbf16>
    %7 = vector.shape_cast %4 : vector<4x64xbf16> to vector<1x4x64xbf16>
    tpu.vector_store %arg3[%c0_4, %c0_5, %c0_6], %7 {strides = array<i32>} : memref<1x4x64xbf16, #tpu.memory_space<vmem>>, vector<1x4x64xbf16>,
    return
  }
  func.func @transform_0(%arg0: i32) -> (i32, i32, i32) {
    %c0_i32 = arith.constant 0 : i32
    %c0_i32_0 = arith.constant 0 : i32
    %c0_i32_1 = arith.constant 0 : i32
    return %arg0, %c0_i32, %c0_i32_0 : i32, i32, i32
  }
  func.func @transform_1(%arg0: i32) -> (i32, i32) {
    %c0_i32 = arith.constant 0 : i32
    %c0_i32_0 = arith.constant 0 : i32
    %c0_i32_1 = arith.constant 0 : i32
    return %c0_i32, %c0_i32_0 : i32, i32
  }
  func.func @transform_2(%arg0: i32) -> (i32, i32, i32) {
    %c0_i32 = arith.constant 0 : i32
    %c0_i32_0 = arith.constant 0 : i32
    %c0_i32_1 = arith.constant 0 : i32
    return %arg0, %c0_i32, %c0_i32_0 : i32, i32, i32
  }
}

module attributes {stable_mosaic.version = 11 : i64} {
  func.func @_chain_kernel(%arg0: i32, %arg1: i32, %arg2: memref<1x16x4xbf16, #tpu.memory_space<vmem>>, %arg3: memref<4x64xbf16, #tpu.memory_space<vmem>>, %arg4: memref<1x64xf32, #tpu.memory_space<vmem>>, %arg5: memref<64x128xbf16, #tpu.memory_space<vmem>>, %arg6: memref<1x128xf32, #tpu.memory_space<vmem>>, %arg7: memref<128x1024xbf16, #tpu.memory_space<vmem>>, %arg8: memref<1x1024xf32, #tpu.memory_space<vmem>>, %arg9: memref<1x1x1024xf32, #tpu.memory_space<vmem>>) attributes {dimension_semantics = [#tpu.dimension_semantics<parallel>, #tpu.dimension_semantics<arbitrary>], iteration_bounds = array<i64: 2, 1>, scalar_prefetch = 0 : i64, scratch_operands = 0 : i64, tpu.core_type = #tpu.core_type<tc>, window_params = [{transform_indices = @transform_0, window_bounds = array<i64: 1, 16, 4>}, {pipeline_mode = #tpu.pipeline_mode<synchronous>, transform_indices = @transform_1, window_bounds = array<i64: 4, 64>}, {pipeline_mode = #tpu.pipeline_mode<synchronous>, transform_indices = @transform_2, window_bounds = array<i64: 1, 64>}, {pipeline_mode = #tpu.pipeline_mode<synchronous>, transform_indices = @transform_3, window_bounds = array<i64: 64, 128>}, {pipeline_mode = #tpu.pipeline_mode<synchronous>, transform_indices = @transform_4, window_bounds = array<i64: 1, 128>}, {pipeline_mode = #tpu.pipeline_mode<synchronous>, transform_indices = @transform_5, window_bounds = array<i64: 128, 1024>}, {pipeline_mode = #tpu.pipeline_mode<synchronous>, transform_indices = @transform_6, window_bounds = array<i64: 1, 1024>}, {transform_indices = @transform_7, window_bounds = array<i64: 1, 1, 1024>}]} {
    %c0 = arith.constant 0 : index
    %c0_0 = arith.constant 0 : index
    %c0_1 = arith.constant 0 : index
    %0 = vector.load %arg2[%c0, %c0_0, %c0_1] : memref<1x16x4xbf16, #tpu.memory_space<vmem>>, vector<1x16x4xbf16>
    %1 = vector.shape_cast %0 : vector<1x16x4xbf16> to vector<16x4xbf16>
    %c0_2 = arith.constant 0 : index
    %c0_3 = arith.constant 0 : index
    %2 = vector.load %arg3[%c0_2, %c0_3] : memref<4x64xbf16, #tpu.memory_space<vmem>>, vector<4x64xbf16>
    %cst = arith.constant dense<0.000000e+00> : vector<16x64xf32>
    %3 = tpu.matmul %1, %2, %cst {dimension_numbers = #tpu.dot_dimension_numbers<[1], [0], [0], [1], [0, 0, 1, 1], [], []>} : vector<16x4xbf16>, vector<4x64xbf16>, vector<16x64xf32> -> vector<16x64xf32>
    %c0_4 = arith.constant 0 : index
    %c0_5 = arith.constant 0 : index
    %4 = vector.load %arg4[%c0_4, %c0_5] : memref<1x64xf32, #tpu.memory_space<vmem>>, vector<1x64xf32>
    %5 = vector.broadcast %4 : vector<1x64xf32> to vector<16x64xf32>
    %6 = arith.addf %3, %5 : vector<16x64xf32>
    %cst_6 = arith.constant 0.000000e+00 : f32
    %7 = vector.broadcast %cst_6 : f32 to vector<16x64xf32>
    %8 = arith.cmpf ogt, %6, %7 : vector<16x64xf32>
    %cst_7 = arith.constant 2.000000e-01 : f32
    %9 = vector.broadcast %cst_7 : f32 to vector<16x64xf32>
    %10 = arith.mulf %9, %6 : vector<16x64xf32>
    %11 = arith.select %8, %6, %10 : vector<16x64xi1>, vector<16x64xf32>
    %12 = arith.truncf %11 : vector<16x64xf32> to vector<16x64xbf16>
    %c0_8 = arith.constant 0 : index
    %c0_9 = arith.constant 0 : index
    %13 = vector.load %arg5[%c0_8, %c0_9] : memref<64x128xbf16, #tpu.memory_space<vmem>>, vector<64x128xbf16>
    %cst_10 = arith.constant dense<0.000000e+00> : vector<16x128xf32>
    %14 = tpu.matmul %12, %13, %cst_10 {dimension_numbers = #tpu.dot_dimension_numbers<[1], [0], [0], [1], [0, 0, 1, 1], [], []>} : vector<16x64xbf16>, vector<64x128xbf16>, vector<16x128xf32> -> vector<16x128xf32>
    %c0_11 = arith.constant 0 : index
    %c0_12 = arith.constant 0 : index
    %15 = vector.load %arg6[%c0_11, %c0_12] : memref<1x128xf32, #tpu.memory_space<vmem>>, vector<1x128xf32>
    %16 = vector.broadcast %15 : vector<1x128xf32> to vector<16x128xf32>
    %17 = arith.addf %14, %16 : vector<16x128xf32>
    %cst_13 = arith.constant 0.000000e+00 : f32
    %18 = vector.broadcast %cst_13 : f32 to vector<16x128xf32>
    %19 = arith.cmpf ogt, %17, %18 : vector<16x128xf32>
    %cst_14 = arith.constant 2.000000e-01 : f32
    %20 = vector.broadcast %cst_14 : f32 to vector<16x128xf32>
    %21 = arith.mulf %20, %17 : vector<16x128xf32>
    %22 = arith.select %19, %17, %21 : vector<16x128xi1>, vector<16x128xf32>
    %23 = arith.truncf %22 : vector<16x128xf32> to vector<16x128xbf16>
    %c0_15 = arith.constant 0 : index
    %c0_16 = arith.constant 0 : index
    %24 = vector.load %arg7[%c0_15, %c0_16] : memref<128x1024xbf16, #tpu.memory_space<vmem>>, vector<128x1024xbf16>
    %cst_17 = arith.constant dense<0.000000e+00> : vector<16x1024xf32>
    %25 = tpu.matmul %23, %24, %cst_17 {dimension_numbers = #tpu.dot_dimension_numbers<[1], [0], [0], [1], [0, 0, 1, 1], [], []>} : vector<16x128xbf16>, vector<128x1024xbf16>, vector<16x1024xf32> -> vector<16x1024xf32>
    %c0_18 = arith.constant 0 : index
    %c0_19 = arith.constant 0 : index
    %26 = vector.load %arg8[%c0_18, %c0_19] : memref<1x1024xf32, #tpu.memory_space<vmem>>, vector<1x1024xf32>
    %27 = vector.broadcast %26 : vector<1x1024xf32> to vector<16x1024xf32>
    %28 = arith.addf %25, %27 : vector<16x1024xf32>
    %cst_20 = arith.constant 0.000000e+00 : f32
    %29 = vector.broadcast %cst_20 : f32 to vector<16x1024xf32>
    %30 = arith.cmpf ogt, %28, %29 : vector<16x1024xf32>
    %cst_21 = arith.constant 2.000000e-01 : f32
    %31 = vector.broadcast %cst_21 : f32 to vector<16x1024xf32>
    %32 = arith.mulf %31, %28 : vector<16x1024xf32>
    %33 = arith.select %30, %28, %32 : vector<16x1024xi1>, vector<16x1024xf32>
    %c0_i32 = arith.constant 0 : i32
    %34 = arith.cmpi eq, %arg1, %c0_i32 : i32
    %35 = arith.extui %34 : i1 to i32
    %c0_i32_22 = arith.constant 0 : i32
    %36 = arith.cmpi ne, %35, %c0_i32_22 : i32
    scf.if %36 {
      %cst_30 = arith.constant 0.000000e+00 : f32
      %45 = vector.broadcast %cst_30 : f32 to vector<1x1x1024xf32>
      %c0_31 = arith.constant 0 : index
      %c0_32 = arith.constant 0 : index
      %c0_33 = arith.constant 0 : index
      %46 = vector.load %arg9[%c0_31, %c0_32, %c0_33] : memref<1x1x1024xf32, #tpu.memory_space<vmem>>, vector<1x1x1024xf32>
      tpu.vector_store %arg9[%c0_31, %c0_32, %c0_33], %45 {strides = array<i32>} : memref<1x1x1024xf32, #tpu.memory_space<vmem>>, vector<1x1x1024xf32>,
    } else {
    }
    %c0_23 = arith.constant 0 : index
    %c0_24 = arith.constant 0 : index
    %c0_25 = arith.constant 0 : index
    %37 = vector.load %arg9[%c0_23, %c0_24, %c0_25] : memref<1x1x1024xf32, #tpu.memory_space<vmem>>, vector<1x1x1024xf32>
    %38 = vector.shape_cast %37 : vector<1x1x1024xf32> to vector<1x1024xf32>
    %cst_26 = arith.constant dense<0.000000e+00> : vector<1024xf32>
    %39 = vector.multi_reduction <add>, %33, %cst_26 [0] : vector<16x1024xf32> to vector<1024xf32>
    %40 = vector.shape_cast %39 : vector<1024xf32> to vector<1x1024xf32>
    %41 = arith.addf %38, %40 : vector<1x1024xf32>
    %c0_27 = arith.constant 0 : index
    %c0_28 = arith.constant 0 : index
    %c0_29 = arith.constant 0 : index
    %42 = vector.load %arg9[%c0_27, %c0_28, %c0_29] : memref<1x1x1024xf32, #tpu.memory_space<vmem>>, vector<1x1x1024xf32>
    %43 = vector.shape_cast %42 : vector<1x1x1024xf32> to vector<1x1024xf32>
    %44 = vector.shape_cast %41 : vector<1x1024xf32> to vector<1x1x1024xf32>
    tpu.vector_store %arg9[%c0_27, %c0_28, %c0_29], %44 {strides = array<i32>} : memref<1x1x1024xf32, #tpu.memory_space<vmem>>, vector<1x1x1024xf32>,
    return
  }
  func.func @transform_0(%arg0: i32, %arg1: i32) -> (i32, i32, i32) {
    %c0_i32 = arith.constant 0 : i32
    %c0_i32_0 = arith.constant 0 : i32
    return %arg0, %arg1, %c0_i32 : i32, i32, i32
  }
  func.func @transform_1(%arg0: i32, %arg1: i32) -> (i32, i32) {
    %c0_i32 = arith.constant 0 : i32
    %c0_i32_0 = arith.constant 0 : i32
    %c0_i32_1 = arith.constant 0 : i32
    return %c0_i32, %c0_i32_0 : i32, i32
  }
  func.func @transform_2(%arg0: i32, %arg1: i32) -> (i32, i32) {
    %c0_i32 = arith.constant 0 : i32
    %c0_i32_0 = arith.constant 0 : i32
    %c0_i32_1 = arith.constant 0 : i32
    return %c0_i32, %c0_i32_0 : i32, i32
  }
  func.func @transform_3(%arg0: i32, %arg1: i32) -> (i32, i32) {
    %c0_i32 = arith.constant 0 : i32
    %c0_i32_0 = arith.constant 0 : i32
    %c0_i32_1 = arith.constant 0 : i32
    return %c0_i32, %c0_i32_0 : i32, i32
  }
  func.func @transform_4(%arg0: i32, %arg1: i32) -> (i32, i32) {
    %c0_i32 = arith.constant 0 : i32
    %c0_i32_0 = arith.constant 0 : i32
    %c0_i32_1 = arith.constant 0 : i32
    return %c0_i32, %c0_i32_0 : i32, i32
  }
  func.func @transform_5(%arg0: i32, %arg1: i32) -> (i32, i32) {
    %c0_i32 = arith.constant 0 : i32
    %c0_i32_0 = arith.constant 0 : i32
    %c0_i32_1 = arith.constant 0 : i32
    return %c0_i32, %c0_i32_0 : i32, i32
  }
  func.func @transform_6(%arg0: i32, %arg1: i32) -> (i32, i32) {
    %c0_i32 = arith.constant 0 : i32
    %c0_i32_0 = arith.constant 0 : i32
    %c0_i32_1 = arith.constant 0 : i32
    return %c0_i32, %c0_i32_0 : i32, i32
  }
  func.func @transform_7(%arg0: i32, %arg1: i32) -> (i32, i32, i32) {
    %c0_i32 = arith.constant 0 : i32
    %c0_i32_0 = arith.constant 0 : i32
    %c0_i32_1 = arith.constant 0 : i32
    return %arg0, %c0_i32, %c0_i32_0 : i32, i32, i32
  }
}

module attributes {stable_mosaic.version = 11 : i64} {
  func.func @_chain_kernel(%arg0: i32, %arg1: i32, %arg2: memref<1x16x4xbf16, #tpu.memory_space<vmem>>, %arg3: memref<1x4x64xbf16, #tpu.memory_space<vmem>>, %arg4: memref<1x64xf32, #tpu.memory_space<vmem>>, %arg5: memref<1x16x64xbf16, #tpu.memory_space<vmem>>) attributes {dimension_semantics = [#tpu.dimension_semantics<parallel>, #tpu.dimension_semantics<parallel>], iteration_bounds = array<i64: 2, 1>, scalar_prefetch = 0 : i64, scratch_operands = 0 : i64, tpu.core_type = #tpu.core_type<tc>, window_params = [{transform_indices = @transform_0, window_bounds = array<i64: 1, 16, 4>}, {transform_indices = @transform_1, window_bounds = array<i64: 1, 4, 64>}, {pipeline_mode = #tpu.pipeline_mode<synchronous>, transform_indices = @transform_2, window_bounds = array<i64: 1, 64>}, {transform_indices = @transform_3, window_bounds = array<i64: 1, 16, 64>}]} {
    %c0 = arith.constant 0 : index
    %c0_0 = arith.constant 0 : index
    %c0_1 = arith.constant 0 : index
    %0 = vector.load %arg2[%c0, %c0_0, %c0_1] : memref<1x16x4xbf16, #tpu.memory_space<vmem>>, vector<1x16x4xbf16>
    %1 = vector.shape_cast %0 : vector<1x16x4xbf16> to vector<16x4xbf16>
    %c0_2 = arith.constant 0 : index
    %c0_3 = arith.constant 0 : index
    %c0_4 = arith.constant 0 : index
    %2 = vector.load %arg3[%c0_2, %c0_3, %c0_4] : memref<1x4x64xbf16, #tpu.memory_space<vmem>>, vector<1x4x64xbf16>
    %3 = vector.shape_cast %2 : vector<1x4x64xbf16> to vector<4x64xbf16>
    %cst = arith.constant dense<0.000000e+00> : vector<16x64xf32>
    %4 = tpu.matmul %1, %3, %cst {dimension_numbers = #tpu.dot_dimension_numbers<[1], [0], [0], [1], [0, 0, 1, 1], [], []>} : vector<16x4xbf16>, vector<4x64xbf16>, vector<16x64xf32> -> vector<16x64xf32>
    %c0_5 = arith.constant 0 : index
    %c0_6 = arith.constant 0 : index
    %5 = vector.load %arg4[%c0_5, %c0_6] : memref<1x64xf32, #tpu.memory_space<vmem>>, vector<1x64xf32>
    %6 = vector.broadcast %5 : vector<1x64xf32> to vector<16x64xf32>
    %7 = arith.addf %4, %6 : vector<16x64xf32>
    %cst_7 = arith.constant 0.000000e+00 : f32
    %8 = vector.broadcast %cst_7 : f32 to vector<16x64xf32>
    %9 = arith.cmpf ogt, %7, %8 : vector<16x64xf32>
    %cst_8 = arith.constant 2.000000e-01 : f32
    %10 = vector.broadcast %cst_8 : f32 to vector<16x64xf32>
    %11 = arith.mulf %10, %7 : vector<16x64xf32>
    %12 = arith.select %9, %7, %11 : vector<16x64xi1>, vector<16x64xf32>
    %13 = arith.truncf %12 : vector<16x64xf32> to vector<16x64xbf16>
    %c0_9 = arith.constant 0 : index
    %c0_10 = arith.constant 0 : index
    %c0_11 = arith.constant 0 : index
    %14 = vector.load %arg5[%c0_9, %c0_10, %c0_11] : memref<1x16x64xbf16, #tpu.memory_space<vmem>>, vector<1x16x64xbf16>
    %15 = vector.shape_cast %14 : vector<1x16x64xbf16> to vector<16x64xbf16>
    %16 = vector.shape_cast %13 : vector<16x64xbf16> to vector<1x16x64xbf16>
    tpu.vector_store %arg5[%c0_9, %c0_10, %c0_11], %16 {strides = array<i32>} : memref<1x16x64xbf16, #tpu.memory_space<vmem>>, vector<1x16x64xbf16>,
    return
  }
  func.func @transform_0(%arg0: i32, %arg1: i32) -> (i32, i32, i32) {
    %c0_i32 = arith.constant 0 : i32
    %c0_i32_0 = arith.constant 0 : i32
    return %arg0, %arg1, %c0_i32 : i32, i32, i32
  }
  func.func @transform_1(%arg0: i32, %arg1: i32) -> (i32, i32, i32) {
    %c0_i32 = arith.constant 0 : i32
    %c0_i32_0 = arith.constant 0 : i32
    %c0_i32_1 = arith.constant 0 : i32
    return %arg0, %c0_i32, %c0_i32_0 : i32, i32, i32
  }
  func.func @transform_2(%arg0: i32, %arg1: i32) -> (i32, i32) {
    %c0_i32 = arith.constant 0 : i32
    %c0_i32_0 = arith.constant 0 : i32
    %c0_i32_1 = arith.constant 0 : i32
    return %c0_i32, %c0_i32_0 : i32, i32
  }
  func.func @transform_3(%arg0: i32, %arg1: i32) -> (i32, i32, i32) {
    %c0_i32 = arith.constant 0 : i32
    %c0_i32_0 = arith.constant 0 : i32
    return %arg0, %arg1, %c0_i32 : i32, i32, i32
  }
}

module attributes {stable_mosaic.version = 11 : i64} {
  func.func @_chain_kernel(%arg0: i32, %arg1: i32, %arg2: memref<1x16x64xbf16, #tpu.memory_space<vmem>>, %arg3: memref<64x64xbf16, #tpu.memory_space<vmem>>, %arg4: memref<1x64xf32, #tpu.memory_space<vmem>>, %arg5: memref<64x128xbf16, #tpu.memory_space<vmem>>, %arg6: memref<1x128xf32, #tpu.memory_space<vmem>>, %arg7: memref<128x1024xbf16, #tpu.memory_space<vmem>>, %arg8: memref<1x1024xf32, #tpu.memory_space<vmem>>, %arg9: memref<1x1x1024xf32, #tpu.memory_space<vmem>>) attributes {dimension_semantics = [#tpu.dimension_semantics<parallel>, #tpu.dimension_semantics<arbitrary>], iteration_bounds = array<i64: 2, 1>, scalar_prefetch = 0 : i64, scratch_operands = 0 : i64, tpu.core_type = #tpu.core_type<tc>, window_params = [{transform_indices = @transform_0, window_bounds = array<i64: 1, 16, 64>}, {pipeline_mode = #tpu.pipeline_mode<synchronous>, transform_indices = @transform_1, window_bounds = array<i64: 64, 64>}, {pipeline_mode = #tpu.pipeline_mode<synchronous>, transform_indices = @transform_2, window_bounds = array<i64: 1, 64>}, {pipeline_mode = #tpu.pipeline_mode<synchronous>, transform_indices = @transform_3, window_bounds = array<i64: 64, 128>}, {pipeline_mode = #tpu.pipeline_mode<synchronous>, transform_indices = @transform_4, window_bounds = array<i64: 1, 128>}, {pipeline_mode = #tpu.pipeline_mode<synchronous>, transform_indices = @transform_5, window_bounds = array<i64: 128, 1024>}, {pipeline_mode = #tpu.pipeline_mode<synchronous>, transform_indices = @transform_6, window_bounds = array<i64: 1, 1024>}, {transform_indices = @transform_7, window_bounds = array<i64: 1, 1, 1024>}]} {
    %c0 = arith.constant 0 : index
    %c0_0 = arith.constant 0 : index
    %c0_1 = arith.constant 0 : index
    %0 = vector.load %arg2[%c0, %c0_0, %c0_1] : memref<1x16x64xbf16, #tpu.memory_space<vmem>>, vector<1x16x64xbf16>
    %1 = vector.shape_cast %0 : vector<1x16x64xbf16> to vector<16x64xbf16>
    %c0_2 = arith.constant 0 : index
    %c0_3 = arith.constant 0 : index
    %2 = vector.load %arg3[%c0_2, %c0_3] : memref<64x64xbf16, #tpu.memory_space<vmem>>, vector<64x64xbf16>
    %cst = arith.constant dense<0.000000e+00> : vector<16x64xf32>
    %3 = tpu.matmul %1, %2, %cst {dimension_numbers = #tpu.dot_dimension_numbers<[1], [0], [0], [1], [0, 0, 1, 1], [], []>} : vector<16x64xbf16>, vector<64x64xbf16>, vector<16x64xf32> -> vector<16x64xf32>
    %c0_4 = arith.constant 0 : index
    %c0_5 = arith.constant 0 : index
    %4 = vector.load %arg4[%c0_4, %c0_5] : memref<1x64xf32, #tpu.memory_space<vmem>>, vector<1x64xf32>
    %5 = vector.broadcast %4 : vector<1x64xf32> to vector<16x64xf32>
    %6 = arith.addf %3, %5 : vector<16x64xf32>
    %cst_6 = arith.constant 0.000000e+00 : f32
    %7 = vector.broadcast %cst_6 : f32 to vector<16x64xf32>
    %8 = arith.cmpf ogt, %6, %7 : vector<16x64xf32>
    %cst_7 = arith.constant 2.000000e-01 : f32
    %9 = vector.broadcast %cst_7 : f32 to vector<16x64xf32>
    %10 = arith.mulf %9, %6 : vector<16x64xf32>
    %11 = arith.select %8, %6, %10 : vector<16x64xi1>, vector<16x64xf32>
    %12 = arith.truncf %11 : vector<16x64xf32> to vector<16x64xbf16>
    %c0_8 = arith.constant 0 : index
    %c0_9 = arith.constant 0 : index
    %13 = vector.load %arg5[%c0_8, %c0_9] : memref<64x128xbf16, #tpu.memory_space<vmem>>, vector<64x128xbf16>
    %cst_10 = arith.constant dense<0.000000e+00> : vector<16x128xf32>
    %14 = tpu.matmul %12, %13, %cst_10 {dimension_numbers = #tpu.dot_dimension_numbers<[1], [0], [0], [1], [0, 0, 1, 1], [], []>} : vector<16x64xbf16>, vector<64x128xbf16>, vector<16x128xf32> -> vector<16x128xf32>
    %c0_11 = arith.constant 0 : index
    %c0_12 = arith.constant 0 : index
    %15 = vector.load %arg6[%c0_11, %c0_12] : memref<1x128xf32, #tpu.memory_space<vmem>>, vector<1x128xf32>
    %16 = vector.broadcast %15 : vector<1x128xf32> to vector<16x128xf32>
    %17 = arith.addf %14, %16 : vector<16x128xf32>
    %cst_13 = arith.constant 0.000000e+00 : f32
    %18 = vector.broadcast %cst_13 : f32 to vector<16x128xf32>
    %19 = arith.cmpf ogt, %17, %18 : vector<16x128xf32>
    %cst_14 = arith.constant 2.000000e-01 : f32
    %20 = vector.broadcast %cst_14 : f32 to vector<16x128xf32>
    %21 = arith.mulf %20, %17 : vector<16x128xf32>
    %22 = arith.select %19, %17, %21 : vector<16x128xi1>, vector<16x128xf32>
    %23 = arith.truncf %22 : vector<16x128xf32> to vector<16x128xbf16>
    %c0_15 = arith.constant 0 : index
    %c0_16 = arith.constant 0 : index
    %24 = vector.load %arg7[%c0_15, %c0_16] : memref<128x1024xbf16, #tpu.memory_space<vmem>>, vector<128x1024xbf16>
    %cst_17 = arith.constant dense<0.000000e+00> : vector<16x1024xf32>
    %25 = tpu.matmul %23, %24, %cst_17 {dimension_numbers = #tpu.dot_dimension_numbers<[1], [0], [0], [1], [0, 0, 1, 1], [], []>} : vector<16x128xbf16>, vector<128x1024xbf16>, vector<16x1024xf32> -> vector<16x1024xf32>
    %c0_18 = arith.constant 0 : index
    %c0_19 = arith.constant 0 : index
    %26 = vector.load %arg8[%c0_18, %c0_19] : memref<1x1024xf32, #tpu.memory_space<vmem>>, vector<1x1024xf32>
    %27 = vector.broadcast %26 : vector<1x1024xf32> to vector<16x1024xf32>
    %28 = arith.addf %25, %27 : vector<16x1024xf32>
    %cst_20 = arith.constant 0.000000e+00 : f32
    %29 = vector.broadcast %cst_20 : f32 to vector<16x1024xf32>
    %30 = arith.cmpf ogt, %28, %29 : vector<16x1024xf32>
    %cst_21 = arith.constant 2.000000e-01 : f32
    %31 = vector.broadcast %cst_21 : f32 to vector<16x1024xf32>
    %32 = arith.mulf %31, %28 : vector<16x1024xf32>
    %33 = arith.select %30, %28, %32 : vector<16x1024xi1>, vector<16x1024xf32>
    %c0_i32 = arith.constant 0 : i32
    %34 = arith.cmpi eq, %arg1, %c0_i32 : i32
    %35 = arith.extui %34 : i1 to i32
    %c0_i32_22 = arith.constant 0 : i32
    %36 = arith.cmpi ne, %35, %c0_i32_22 : i32
    scf.if %36 {
      %cst_30 = arith.constant 0.000000e+00 : f32
      %45 = vector.broadcast %cst_30 : f32 to vector<1x1x1024xf32>
      %c0_31 = arith.constant 0 : index
      %c0_32 = arith.constant 0 : index
      %c0_33 = arith.constant 0 : index
      %46 = vector.load %arg9[%c0_31, %c0_32, %c0_33] : memref<1x1x1024xf32, #tpu.memory_space<vmem>>, vector<1x1x1024xf32>
      tpu.vector_store %arg9[%c0_31, %c0_32, %c0_33], %45 {strides = array<i32>} : memref<1x1x1024xf32, #tpu.memory_space<vmem>>, vector<1x1x1024xf32>,
    } else {
    }
    %c0_23 = arith.constant 0 : index
    %c0_24 = arith.constant 0 : index
    %c0_25 = arith.constant 0 : index
    %37 = vector.load %arg9[%c0_23, %c0_24, %c0_25] : memref<1x1x1024xf32, #tpu.memory_space<vmem>>, vector<1x1x1024xf32>
    %38 = vector.shape_cast %37 : vector<1x1x1024xf32> to vector<1x1024xf32>
    %cst_26 = arith.constant dense<0.000000e+00> : vector<1024xf32>
    %39 = vector.multi_reduction <add>, %33, %cst_26 [0] : vector<16x1024xf32> to vector<1024xf32>
    %40 = vector.shape_cast %39 : vector<1024xf32> to vector<1x1024xf32>
    %41 = arith.addf %38, %40 : vector<1x1024xf32>
    %c0_27 = arith.constant 0 : index
    %c0_28 = arith.constant 0 : index
    %c0_29 = arith.constant 0 : index
    %42 = vector.load %arg9[%c0_27, %c0_28, %c0_29] : memref<1x1x1024xf32, #tpu.memory_space<vmem>>, vector<1x1x1024xf32>
    %43 = vector.shape_cast %42 : vector<1x1x1024xf32> to vector<1x1024xf32>
    %44 = vector.shape_cast %41 : vector<1x1024xf32> to vector<1x1x1024xf32>
    tpu.vector_store %arg9[%c0_27, %c0_28, %c0_29], %44 {strides = array<i32>} : memref<1x1x1024xf32, #tpu.memory_space<vmem>>, vector<1x1x1024xf32>,
    return
  }
  func.func @transform_0(%arg0: i32, %arg1: i32) -> (i32, i32, i32) {
    %c0_i32 = arith.constant 0 : i32
    %c0_i32_0 = arith.constant 0 : i32
    return %arg0, %arg1, %c0_i32 : i32, i32, i32
  }
  func.func @transform_1(%arg0: i32, %arg1: i32) -> (i32, i32) {
    %c0_i32 = arith.constant 0 : i32
    %c0_i32_0 = arith.constant 0 : i32
    %c0_i32_1 = arith.constant 0 : i32
    return %c0_i32, %c0_i32_0 : i32, i32
  }
  func.func @transform_2(%arg0: i32, %arg1: i32) -> (i32, i32) {
    %c0_i32 = arith.constant 0 : i32
    %c0_i32_0 = arith.constant 0 : i32
    %c0_i32_1 = arith.constant 0 : i32
    return %c0_i32, %c0_i32_0 : i32, i32
  }
  func.func @transform_3(%arg0: i32, %arg1: i32) -> (i32, i32) {
    %c0_i32 = arith.constant 0 : i32
    %c0_i32_0 = arith.constant 0 : i32
    %c0_i32_1 = arith.constant 0 : i32
    return %c0_i32, %c0_i32_0 : i32, i32
  }
  func.func @transform_4(%arg0: i32, %arg1: i32) -> (i32, i32) {
    %c0_i32 = arith.constant 0 : i32
    %c0_i32_0 = arith.constant 0 : i32
    %c0_i32_1 = arith.constant 0 : i32
    return %c0_i32, %c0_i32_0 : i32, i32
  }
  func.func @transform_5(%arg0: i32, %arg1: i32) -> (i32, i32) {
    %c0_i32 = arith.constant 0 : i32
    %c0_i32_0 = arith.constant 0 : i32
    %c0_i32_1 = arith.constant 0 : i32
    return %c0_i32, %c0_i32_0 : i32, i32
  }
  func.func @transform_6(%arg0: i32, %arg1: i32) -> (i32, i32) {
    %c0_i32 = arith.constant 0 : i32
    %c0_i32_0 = arith.constant 0 : i32
    %c0_i32_1 = arith.constant 0 : i32
    return %c0_i32, %c0_i32_0 : i32, i32
  }
  func.func @transform_7(%arg0: i32, %arg1: i32) -> (i32, i32, i32) {
    %c0_i32 = arith.constant 0 : i32
    %c0_i32_0 = arith.constant 0 : i32
    %c0_i32_1 = arith.constant 0 : i32
    return %arg0, %c0_i32, %c0_i32_0 : i32, i32, i32
  }
}

module attributes {stable_mosaic.version = 11 : i64} {
  func.func @_head_kernel(%arg0: memref<2x1024xf32, #tpu.memory_space<vmem>>, %arg1: memref<1024x512xbf16, #tpu.memory_space<vmem>>, %arg2: memref<1x512xf32, #tpu.memory_space<vmem>>, %arg3: memref<512x256xbf16, #tpu.memory_space<vmem>>, %arg4: memref<1x256xf32, #tpu.memory_space<vmem>>, %arg5: memref<256x4096xbf16, #tpu.memory_space<vmem>>, %arg6: memref<1x4096xf32, #tpu.memory_space<vmem>>, %arg7: memref<2x4096xf32, #tpu.memory_space<vmem>>) attributes {dimension_semantics = [], scalar_prefetch = 0 : i64, scratch_operands = 0 : i64, tpu.core_type = #tpu.core_type<tc>} {
    %c0 = arith.constant 0 : index
    %c0_0 = arith.constant 0 : index
    %0 = vector.load %arg0[%c0, %c0_0] : memref<2x1024xf32, #tpu.memory_space<vmem>>, vector<2x1024xf32>
    %1 = arith.truncf %0 : vector<2x1024xf32> to vector<2x1024xbf16>
    %c0_1 = arith.constant 0 : index
    %c0_2 = arith.constant 0 : index
    %2 = vector.load %arg1[%c0_1, %c0_2] : memref<1024x512xbf16, #tpu.memory_space<vmem>>, vector<1024x512xbf16>
    %cst = arith.constant dense<0.000000e+00> : vector<2x512xf32>
    %3 = tpu.matmul %1, %2, %cst {dimension_numbers = #tpu.dot_dimension_numbers<[1], [0], [0], [1], [0, 0, 1, 1], [], []>} : vector<2x1024xbf16>, vector<1024x512xbf16>, vector<2x512xf32> -> vector<2x512xf32>
    %c0_3 = arith.constant 0 : index
    %c0_4 = arith.constant 0 : index
    %4 = vector.load %arg2[%c0_3, %c0_4] : memref<1x512xf32, #tpu.memory_space<vmem>>, vector<1x512xf32>
    %5 = vector.broadcast %4 : vector<1x512xf32> to vector<2x512xf32>
    %6 = arith.addf %3, %5 : vector<2x512xf32>
    %cst_5 = arith.constant 0.000000e+00 : f32
    %7 = vector.broadcast %cst_5 : f32 to vector<2x512xf32>
    %8 = arith.cmpf ogt, %6, %7 : vector<2x512xf32>
    %cst_6 = arith.constant 2.000000e-01 : f32
    %9 = vector.broadcast %cst_6 : f32 to vector<2x512xf32>
    %10 = arith.mulf %9, %6 : vector<2x512xf32>
    %11 = arith.select %8, %6, %10 : vector<2x512xi1>, vector<2x512xf32>
    %12 = arith.truncf %11 : vector<2x512xf32> to vector<2x512xbf16>
    %c0_7 = arith.constant 0 : index
    %c0_8 = arith.constant 0 : index
    %13 = vector.load %arg3[%c0_7, %c0_8] : memref<512x256xbf16, #tpu.memory_space<vmem>>, vector<512x256xbf16>
    %cst_9 = arith.constant dense<0.000000e+00> : vector<2x256xf32>
    %14 = tpu.matmul %12, %13, %cst_9 {dimension_numbers = #tpu.dot_dimension_numbers<[1], [0], [0], [1], [0, 0, 1, 1], [], []>} : vector<2x512xbf16>, vector<512x256xbf16>, vector<2x256xf32> -> vector<2x256xf32>
    %c0_10 = arith.constant 0 : index
    %c0_11 = arith.constant 0 : index
    %15 = vector.load %arg4[%c0_10, %c0_11] : memref<1x256xf32, #tpu.memory_space<vmem>>, vector<1x256xf32>
    %16 = vector.broadcast %15 : vector<1x256xf32> to vector<2x256xf32>
    %17 = arith.addf %14, %16 : vector<2x256xf32>
    %cst_12 = arith.constant 0.000000e+00 : f32
    %18 = vector.broadcast %cst_12 : f32 to vector<2x256xf32>
    %19 = arith.cmpf ogt, %17, %18 : vector<2x256xf32>
    %cst_13 = arith.constant 2.000000e-01 : f32
    %20 = vector.broadcast %cst_13 : f32 to vector<2x256xf32>
    %21 = arith.mulf %20, %17 : vector<2x256xf32>
    %22 = arith.select %19, %17, %21 : vector<2x256xi1>, vector<2x256xf32>
    %23 = arith.truncf %22 : vector<2x256xf32> to vector<2x256xbf16>
    %c0_14 = arith.constant 0 : index
    %c0_15 = arith.constant 0 : index
    %24 = vector.load %arg5[%c0_14, %c0_15] : memref<256x4096xbf16, #tpu.memory_space<vmem>>, vector<256x4096xbf16>
    %cst_16 = arith.constant dense<0.000000e+00> : vector<2x4096xf32>
    %25 = tpu.matmul %23, %24, %cst_16 {dimension_numbers = #tpu.dot_dimension_numbers<[1], [0], [0], [1], [0, 0, 1, 1], [], []>} : vector<2x256xbf16>, vector<256x4096xbf16>, vector<2x4096xf32> -> vector<2x4096xf32>
    %c0_17 = arith.constant 0 : index
    %c0_18 = arith.constant 0 : index
    %26 = vector.load %arg6[%c0_17, %c0_18] : memref<1x4096xf32, #tpu.memory_space<vmem>>, vector<1x4096xf32>
    %27 = vector.broadcast %26 : vector<1x4096xf32> to vector<2x4096xf32>
    %28 = arith.addf %25, %27 : vector<2x4096xf32>
    %c0_19 = arith.constant 0 : index
    %c0_20 = arith.constant 0 : index
    %29 = vector.load %arg7[%c0_19, %c0_20] : memref<2x4096xf32, #tpu.memory_space<vmem>>, vector<2x4096xf32>
    tpu.vector_store %arg7[%c0_19, %c0_20], %28 {strides = array<i32>} : memref<2x4096xf32, #tpu.memory_space<vmem>>, vector<2x4096xf32>,
    return
  }
}

module attributes {stable_mosaic.version = 11 : i64} {
  func.func @_chain_kernel(%arg0: i32, %arg1: i32, %arg2: memref<1x16x64xbf16, #tpu.memory_space<vmem>>, %arg3: memref<1x64x128xbf16, #tpu.memory_space<vmem>>, %arg4: memref<1x128xf32, #tpu.memory_space<vmem>>, %arg5: memref<128x1024xbf16, #tpu.memory_space<vmem>>, %arg6: memref<1x1024xf32, #tpu.memory_space<vmem>>, %arg7: memref<1x1x1024xf32, #tpu.memory_space<vmem>>) attributes {dimension_semantics = [#tpu.dimension_semantics<parallel>, #tpu.dimension_semantics<arbitrary>], iteration_bounds = array<i64: 2, 1>, scalar_prefetch = 0 : i64, scratch_operands = 0 : i64, tpu.core_type = #tpu.core_type<tc>, window_params = [{transform_indices = @transform_0, window_bounds = array<i64: 1, 16, 64>}, {transform_indices = @transform_1, window_bounds = array<i64: 1, 64, 128>}, {pipeline_mode = #tpu.pipeline_mode<synchronous>, transform_indices = @transform_2, window_bounds = array<i64: 1, 128>}, {pipeline_mode = #tpu.pipeline_mode<synchronous>, transform_indices = @transform_3, window_bounds = array<i64: 128, 1024>}, {pipeline_mode = #tpu.pipeline_mode<synchronous>, transform_indices = @transform_4, window_bounds = array<i64: 1, 1024>}, {transform_indices = @transform_5, window_bounds = array<i64: 1, 1, 1024>}]} {
    %c0 = arith.constant 0 : index
    %c0_0 = arith.constant 0 : index
    %c0_1 = arith.constant 0 : index
    %0 = vector.load %arg2[%c0, %c0_0, %c0_1] : memref<1x16x64xbf16, #tpu.memory_space<vmem>>, vector<1x16x64xbf16>
    %1 = vector.shape_cast %0 : vector<1x16x64xbf16> to vector<16x64xbf16>
    %c0_2 = arith.constant 0 : index
    %c0_3 = arith.constant 0 : index
    %c0_4 = arith.constant 0 : index
    %2 = vector.load %arg3[%c0_2, %c0_3, %c0_4] : memref<1x64x128xbf16, #tpu.memory_space<vmem>>, vector<1x64x128xbf16>
    %3 = vector.shape_cast %2 : vector<1x64x128xbf16> to vector<64x128xbf16>
    %cst = arith.constant dense<0.000000e+00> : vector<16x128xf32>
    %4 = tpu.matmul %1, %3, %cst {dimension_numbers = #tpu.dot_dimension_numbers<[1], [0], [0], [1], [0, 0, 1, 1], [], []>} : vector<16x64xbf16>, vector<64x128xbf16>, vector<16x128xf32> -> vector<16x128xf32>
    %c0_5 = arith.constant 0 : index
    %c0_6 = arith.constant 0 : index
    %5 = vector.load %arg4[%c0_5, %c0_6] : memref<1x128xf32, #tpu.memory_space<vmem>>, vector<1x128xf32>
    %6 = vector.broadcast %5 : vector<1x128xf32> to vector<16x128xf32>
    %7 = arith.addf %4, %6 : vector<16x128xf32>
    %cst_7 = arith.constant 0.000000e+00 : f32
    %8 = vector.broadcast %cst_7 : f32 to vector<16x128xf32>
    %9 = arith.cmpf ogt, %7, %8 : vector<16x128xf32>
    %cst_8 = arith.constant 2.000000e-01 : f32
    %10 = vector.broadcast %cst_8 : f32 to vector<16x128xf32>
    %11 = arith.mulf %10, %7 : vector<16x128xf32>
    %12 = arith.select %9, %7, %11 : vector<16x128xi1>, vector<16x128xf32>
    %13 = arith.truncf %12 : vector<16x128xf32> to vector<16x128xbf16>
    %c0_9 = arith.constant 0 : index
    %c0_10 = arith.constant 0 : index
    %14 = vector.load %arg5[%c0_9, %c0_10] : memref<128x1024xbf16, #tpu.memory_space<vmem>>, vector<128x1024xbf16>
    %cst_11 = arith.constant dense<0.000000e+00> : vector<16x1024xf32>
    %15 = tpu.matmul %13, %14, %cst_11 {dimension_numbers = #tpu.dot_dimension_numbers<[1], [0], [0], [1], [0, 0, 1, 1], [], []>} : vector<16x128xbf16>, vector<128x1024xbf16>, vector<16x1024xf32> -> vector<16x1024xf32>
    %c0_12 = arith.constant 0 : index
    %c0_13 = arith.constant 0 : index
    %16 = vector.load %arg6[%c0_12, %c0_13] : memref<1x1024xf32, #tpu.memory_space<vmem>>, vector<1x1024xf32>
    %17 = vector.broadcast %16 : vector<1x1024xf32> to vector<16x1024xf32>
    %18 = arith.addf %15, %17 : vector<16x1024xf32>
    %c0_i32 = arith.constant 0 : i32
    %19 = arith.cmpi eq, %arg1, %c0_i32 : i32
    %20 = arith.extui %19 : i1 to i32
    %c0_i32_14 = arith.constant 0 : i32
    %21 = arith.cmpi ne, %20, %c0_i32_14 : i32
    scf.if %21 {
      %cst_22 = arith.constant 0.000000e+00 : f32
      %30 = vector.broadcast %cst_22 : f32 to vector<1x1x1024xf32>
      %c0_23 = arith.constant 0 : index
      %c0_24 = arith.constant 0 : index
      %c0_25 = arith.constant 0 : index
      %31 = vector.load %arg7[%c0_23, %c0_24, %c0_25] : memref<1x1x1024xf32, #tpu.memory_space<vmem>>, vector<1x1x1024xf32>
      tpu.vector_store %arg7[%c0_23, %c0_24, %c0_25], %30 {strides = array<i32>} : memref<1x1x1024xf32, #tpu.memory_space<vmem>>, vector<1x1x1024xf32>,
    } else {
    }
    %c0_15 = arith.constant 0 : index
    %c0_16 = arith.constant 0 : index
    %c0_17 = arith.constant 0 : index
    %22 = vector.load %arg7[%c0_15, %c0_16, %c0_17] : memref<1x1x1024xf32, #tpu.memory_space<vmem>>, vector<1x1x1024xf32>
    %23 = vector.shape_cast %22 : vector<1x1x1024xf32> to vector<1x1024xf32>
    %cst_18 = arith.constant dense<0.000000e+00> : vector<1024xf32>
    %24 = vector.multi_reduction <add>, %18, %cst_18 [0] : vector<16x1024xf32> to vector<1024xf32>
    %25 = vector.shape_cast %24 : vector<1024xf32> to vector<1x1024xf32>
    %26 = arith.addf %23, %25 : vector<1x1024xf32>
    %c0_19 = arith.constant 0 : index
    %c0_20 = arith.constant 0 : index
    %c0_21 = arith.constant 0 : index
    %27 = vector.load %arg7[%c0_19, %c0_20, %c0_21] : memref<1x1x1024xf32, #tpu.memory_space<vmem>>, vector<1x1x1024xf32>
    %28 = vector.shape_cast %27 : vector<1x1x1024xf32> to vector<1x1024xf32>
    %29 = vector.shape_cast %26 : vector<1x1024xf32> to vector<1x1x1024xf32>
    tpu.vector_store %arg7[%c0_19, %c0_20, %c0_21], %29 {strides = array<i32>} : memref<1x1x1024xf32, #tpu.memory_space<vmem>>, vector<1x1x1024xf32>,
    return
  }
  func.func @transform_0(%arg0: i32, %arg1: i32) -> (i32, i32, i32) {
    %c0_i32 = arith.constant 0 : i32
    %c0_i32_0 = arith.constant 0 : i32
    return %arg0, %arg1, %c0_i32 : i32, i32, i32
  }
  func.func @transform_1(%arg0: i32, %arg1: i32) -> (i32, i32, i32) {
    %c0_i32 = arith.constant 0 : i32
    %c0_i32_0 = arith.constant 0 : i32
    %c0_i32_1 = arith.constant 0 : i32
    return %arg0, %c0_i32, %c0_i32_0 : i32, i32, i32
  }
  func.func @transform_2(%arg0: i32, %arg1: i32) -> (i32, i32) {
    %c0_i32 = arith.constant 0 : i32
    %c0_i32_0 = arith.constant 0 : i32
    %c0_i32_1 = arith.constant 0 : i32
    return %c0_i32, %c0_i32_0 : i32, i32
  }
  func.func @transform_3(%arg0: i32, %arg1: i32) -> (i32, i32) {
    %c0_i32 = arith.constant 0 : i32
    %c0_i32_0 = arith.constant 0 : i32
    %c0_i32_1 = arith.constant 0 : i32
    return %c0_i32, %c0_i32_0 : i32, i32
  }
  func.func @transform_4(%arg0: i32, %arg1: i32) -> (i32, i32) {
    %c0_i32 = arith.constant 0 : i32
    %c0_i32_0 = arith.constant 0 : i32
    %c0_i32_1 = arith.constant 0 : i32
    return %c0_i32, %c0_i32_0 : i32, i32
  }
  func.func @transform_5(%arg0: i32, %arg1: i32) -> (i32, i32, i32) {
    %c0_i32 = arith.constant 0 : i32
    %c0_i32_0 = arith.constant 0 : i32
    %c0_i32_1 = arith.constant 0 : i32
    return %arg0, %c0_i32, %c0_i32_0 : i32, i32, i32
  }
}

module attributes {stable_mosaic.version = 11 : i64} {
  func.func @_fold_kernel(%arg0: i32, %arg1: memref<1x64x64xbf16, #tpu.memory_space<vmem>>, %arg2: memref<64x128xbf16, #tpu.memory_space<vmem>>, %arg3: memref<1x64x128xbf16, #tpu.memory_space<vmem>>) attributes {dimension_semantics = [#tpu.dimension_semantics<parallel>], iteration_bounds = array<i64: 2>, scalar_prefetch = 0 : i64, scratch_operands = 0 : i64, tpu.core_type = #tpu.core_type<tc>, window_params = [{transform_indices = @transform_0, window_bounds = array<i64: 1, 64, 64>}, {pipeline_mode = #tpu.pipeline_mode<synchronous>, transform_indices = @transform_1, window_bounds = array<i64: 64, 128>}, {transform_indices = @transform_2, window_bounds = array<i64: 1, 64, 128>}]} {
    %c0 = arith.constant 0 : index
    %c0_0 = arith.constant 0 : index
    %c0_1 = arith.constant 0 : index
    %0 = vector.load %arg1[%c0, %c0_0, %c0_1] : memref<1x64x64xbf16, #tpu.memory_space<vmem>>, vector<1x64x64xbf16>
    %1 = vector.shape_cast %0 : vector<1x64x64xbf16> to vector<64x64xbf16>
    %c0_2 = arith.constant 0 : index
    %c0_3 = arith.constant 0 : index
    %2 = vector.load %arg2[%c0_2, %c0_3] : memref<64x128xbf16, #tpu.memory_space<vmem>>, vector<64x128xbf16>
    %cst = arith.constant dense<0.000000e+00> : vector<64x128xf32>
    %3 = tpu.matmul %1, %2, %cst {dimension_numbers = #tpu.dot_dimension_numbers<[1], [0], [0], [1], [0, 0, 1, 1], [], []>} : vector<64x64xbf16>, vector<64x128xbf16>, vector<64x128xf32> -> vector<64x128xf32>
    %4 = arith.truncf %3 : vector<64x128xf32> to vector<64x128xbf16>
    %c0_4 = arith.constant 0 : index
    %c0_5 = arith.constant 0 : index
    %c0_6 = arith.constant 0 : index
    %5 = vector.load %arg3[%c0_4, %c0_5, %c0_6] : memref<1x64x128xbf16, #tpu.memory_space<vmem>>, vector<1x64x128xbf16>
    %6 = vector.shape_cast %5 : vector<1x64x128xbf16> to vector<64x128xbf16>
    %7 = vector.shape_cast %4 : vector<64x128xbf16> to vector<1x64x128xbf16>
    tpu.vector_store %arg3[%c0_4, %c0_5, %c0_6], %7 {strides = array<i32>} : memref<1x64x128xbf16, #tpu.memory_space<vmem>>, vector<1x64x128xbf16>,
    return
  }
  func.func @transform_0(%arg0: i32) -> (i32, i32, i32) {
    %c0_i32 = arith.constant 0 : i32
    %c0_i32_0 = arith.constant 0 : i32
    %c0_i32_1 = arith.constant 0 : i32
    return %arg0, %c0_i32, %c0_i32_0 : i32, i32, i32
  }
  func.func @transform_1(%arg0: i32) -> (i32, i32) {
    %c0_i32 = arith.constant 0 : i32
    %c0_i32_0 = arith.constant 0 : i32
    %c0_i32_1 = arith.constant 0 : i32
    return %c0_i32, %c0_i32_0 : i32, i32
  }
  func.func @transform_2(%arg0: i32) -> (i32, i32, i32) {
    %c0_i32 = arith.constant 0 : i32
    %c0_i32_0 = arith.constant 0 : i32
    %c0_i32_1 = arith.constant 0 : i32
    return %arg0, %c0_i32, %c0_i32_0 : i32, i32, i32
  }
}

module attributes {stable_mosaic.version = 11 : i64} {
  func.func @_head_kernel(%arg0: memref<2x1024xf32, #tpu.memory_space<vmem>>, %arg1: memref<1024x512xbf16, #tpu.memory_space<vmem>>, %arg2: memref<1x512xf32, #tpu.memory_space<vmem>>, %arg3: memref<512x256xbf16, #tpu.memory_space<vmem>>, %arg4: memref<1x256xf32, #tpu.memory_space<vmem>>, %arg5: memref<256x1xbf16, #tpu.memory_space<vmem>>, %arg6: memref<1x1xf32, #tpu.memory_space<vmem>>, %arg7: memref<2x1xf32, #tpu.memory_space<vmem>>) attributes {dimension_semantics = [], scalar_prefetch = 0 : i64, scratch_operands = 0 : i64, tpu.core_type = #tpu.core_type<tc>} {
    %c0 = arith.constant 0 : index
    %c0_0 = arith.constant 0 : index
    %0 = vector.load %arg0[%c0, %c0_0] : memref<2x1024xf32, #tpu.memory_space<vmem>>, vector<2x1024xf32>
    %1 = arith.truncf %0 : vector<2x1024xf32> to vector<2x1024xbf16>
    %c0_1 = arith.constant 0 : index
    %c0_2 = arith.constant 0 : index
    %2 = vector.load %arg1[%c0_1, %c0_2] : memref<1024x512xbf16, #tpu.memory_space<vmem>>, vector<1024x512xbf16>
    %cst = arith.constant dense<0.000000e+00> : vector<2x512xf32>
    %3 = tpu.matmul %1, %2, %cst {dimension_numbers = #tpu.dot_dimension_numbers<[1], [0], [0], [1], [0, 0, 1, 1], [], []>} : vector<2x1024xbf16>, vector<1024x512xbf16>, vector<2x512xf32> -> vector<2x512xf32>
    %c0_3 = arith.constant 0 : index
    %c0_4 = arith.constant 0 : index
    %4 = vector.load %arg2[%c0_3, %c0_4] : memref<1x512xf32, #tpu.memory_space<vmem>>, vector<1x512xf32>
    %5 = vector.broadcast %4 : vector<1x512xf32> to vector<2x512xf32>
    %6 = arith.addf %3, %5 : vector<2x512xf32>
    %cst_5 = arith.constant 0.000000e+00 : f32
    %7 = vector.broadcast %cst_5 : f32 to vector<2x512xf32>
    %8 = arith.cmpf ogt, %6, %7 : vector<2x512xf32>
    %cst_6 = arith.constant 2.000000e-01 : f32
    %9 = vector.broadcast %cst_6 : f32 to vector<2x512xf32>
    %10 = arith.mulf %9, %6 : vector<2x512xf32>
    %11 = arith.select %8, %6, %10 : vector<2x512xi1>, vector<2x512xf32>
    %12 = arith.truncf %11 : vector<2x512xf32> to vector<2x512xbf16>
    %c0_7 = arith.constant 0 : index
    %c0_8 = arith.constant 0 : index
    %13 = vector.load %arg3[%c0_7, %c0_8] : memref<512x256xbf16, #tpu.memory_space<vmem>>, vector<512x256xbf16>
    %cst_9 = arith.constant dense<0.000000e+00> : vector<2x256xf32>
    %14 = tpu.matmul %12, %13, %cst_9 {dimension_numbers = #tpu.dot_dimension_numbers<[1], [0], [0], [1], [0, 0, 1, 1], [], []>} : vector<2x512xbf16>, vector<512x256xbf16>, vector<2x256xf32> -> vector<2x256xf32>
    %c0_10 = arith.constant 0 : index
    %c0_11 = arith.constant 0 : index
    %15 = vector.load %arg4[%c0_10, %c0_11] : memref<1x256xf32, #tpu.memory_space<vmem>>, vector<1x256xf32>
    %16 = vector.broadcast %15 : vector<1x256xf32> to vector<2x256xf32>
    %17 = arith.addf %14, %16 : vector<2x256xf32>
    %cst_12 = arith.constant 0.000000e+00 : f32
    %18 = vector.broadcast %cst_12 : f32 to vector<2x256xf32>
    %19 = arith.cmpf ogt, %17, %18 : vector<2x256xf32>
    %cst_13 = arith.constant 2.000000e-01 : f32
    %20 = vector.broadcast %cst_13 : f32 to vector<2x256xf32>
    %21 = arith.mulf %20, %17 : vector<2x256xf32>
    %22 = arith.select %19, %17, %21 : vector<2x256xi1>, vector<2x256xf32>
    %23 = arith.truncf %22 : vector<2x256xf32> to vector<2x256xbf16>
    %c0_14 = arith.constant 0 : index
    %c0_15 = arith.constant 0 : index
    %24 = vector.load %arg5[%c0_14, %c0_15] : memref<256x1xbf16, #tpu.memory_space<vmem>>, vector<256x1xbf16>
    %cst_16 = arith.constant dense<0.000000e+00> : vector<2x1xf32>
    %25 = tpu.matmul %23, %24, %cst_16 {dimension_numbers = #tpu.dot_dimension_numbers<[1], [0], [0], [1], [0, 0, 1, 1], [], []>} : vector<2x256xbf16>, vector<256x1xbf16>, vector<2x1xf32> -> vector<2x1xf32>
    %c0_17 = arith.constant 0 : index
    %c0_18 = arith.constant 0 : index
    %26 = vector.load %arg6[%c0_17, %c0_18] : memref<1x1xf32, #tpu.memory_space<vmem>>, vector<1x1xf32>
    %27 = vector.broadcast %26 : vector<1x1xf32> to vector<2x1xf32>
    %28 = arith.addf %25, %27 : vector<2x1xf32>
    %c0_19 = arith.constant 0 : index
    %c0_20 = arith.constant 0 : index
    %29 = vector.load %arg7[%c0_19, %c0_20] : memref<2x1xf32, #tpu.memory_space<vmem>>, vector<2x1xf32>
    tpu.vector_store %arg7[%c0_19, %c0_20], %28 {strides = array<i32>} : memref<2x1xf32, #tpu.memory_space<vmem>>, vector<2x1xf32>,
    return
  }
}

</mosaic_0001>

<bundles_post_ra>
// kernel: model_forward.11
= control target key start
LH: loop header
LB: loop body
LE: loop exit
PB: predicated region body
PF: predicated region fallthrough
CT: control target
= control target key end

     0   :  { %7 = vsyncpa [#allocation3], 0  ;;  %s370_s9 = smov 0   ;;  %s426_s0 = inlined_call_operand.vmem [shape: bf16[2,4,4], index: 0, kind: input, shape index: {}]   ;;  %s427_s1 = inlined_call_operand.hbm [shape: bf16[4,64], index: 1, kind: input, shape index: {}]   ;;  %s428_s2 = inlined_call_operand.vmem [shape: bf16[2,4,64], index: 2, kind: output, shape index: {}]  }
   0x1 LB: > { %s376_s10 = sadd.s32 4294967295, %s350_s9   ;;  %p273_p0 = scmp.ge.s32.totalorder %s350_s9, 1  ;;  %s350_s9 = sphi %s370_s9, %s13_s9  }
   0x2   : > { %p91_p1 = scmp.lt.s32.totalorder %s350_s9, 3  ;;  %p429_p3 = scmp.eq.s32.totalorder %s376_s10, 0 }
   0x3   : > { %s352_s12 = smov [#allocation2]   ;;  %s312_s17 = scalar_lea.hbm %s427_s1, 32 }
   0x4   : > { %p380_p2 = pnand %p273_p0, %p91_p1  ;;  %s104_s13 = sshll.u32 %s352_s12, 4  ;;  %s105_s13 = int_to_ptr.vmem [resolvable:$true] %s104_s13 }
   0x5   : > { %p313_p6 = scmp.ne.s32.totalorder %s427_s1, %s312_s17  ;;  %p319_p10 = scmp.lt.u32.totalorder %s312_s17, %s427_s1 }
   0x6   : > { %s431_s11 = scalar_select %p380_p2, 1, 0 }
   0x7   : > { %p295_p4 = pneg %p380_p2 }
   0x9   : > { %p389_p5 = pnand %p429_p3, %p295_p4 }
   0xb   : > { %p314_p7 = pneg %p389_p5 }
   0xd   : > { %p315_p8 = pnand %p314_p7, %p313_p6 }
   0xf   : > { %p316_p9 = pneg %p315_p8 }
  0x11   : > { %p321_p11 = pnand %p319_p10, %p316_p9 }
  0x13   : > { %324 = shalt.err (!%p321_p11)
}
  0x14   : > { %s325_s22 = scalar_lea.vmem %s105_s13, 32  ;;  %p333_p1 = scmp.lt.s32.totalorder %s105_s13, %s105_s13 }
  0x15   : > { %p326_p12 = scmp.ne.s32.totalorder %s105_s13, %s325_s22  ;;  %p334_p4 = scmp.lt.s32.totalorder %s325_s22, %s325_s22 }
  0x17   : > { %p328_p13 = pnand %p326_p12, %p314_p7  ;;  %p335_p3 = por %p334_p4, %p333_p1 }
  0x19   : > { %p329_p0 = pneg %p328_p13 }
  0x1b   : > { %p336_p2 = pnand %p335_p3, %p329_p0 }
  0x1d   : > { %339 = shalt.err (!%p336_p2)
}
  0x1e   : > { %298 = dma.hbm_to_vmem [thread:$0]  (!%p389_p5), %s427_s1, 32, %s105_s13, [#allocation3]  }
  0x1f   : > { %p433_p6 = scmp.ne.s32.totalorder %s431_s11, 0 }
  0x20   : > { %p434_p8 = scmp.eq.s32.totalorder (!%p433_p6), %s376_s10, 0 }
  0x21   : > { %124 = sbr.rel (%p433_p6) target bundleno = 262 (0x106), region = 28 }
  0x28   : > { %345 = dma.done.wait (%p434_p8), [#allocation3], 32   ;;  %p435_p7 = pmov %p434_p8 }
  0x29   : > { %p144_p9 = scmp.lt.s32.totalorder %s376_s10, 1  ;;  %v353_v0 = vmov 0.0   ;;  %vm354_vm0 = vmmov 0   ;;  %vm159_vm1 = vcmask 1041408   ;;  %v154_v1 = vld [vmem:[#allocation2] sm:$0x3] }
  0x2a   : > { %347 = vsyncadd (%p435_p7), [#allocation3], 4294967264  ;;  %285 = vmatprep.subr.bf16.mxu0 %v353_v0  ;;  %287 = vmatprep.mubr.msk.bf16.mxu0 %vm354_vm0, %v353_v0  ;;  %v161_v2 = vsel %vm159_vm1, %v154_v1, 0  ;;  %vm155_vm2 = vcmask 31744   ;;  %vm204_vm3 = vcmask 517120  }
  0x2b   : > { %s437_s10 = smov (!%p144_p9, %s376_s10), 1  ;;  %286 = vmatpush3.bf16.msra.mxu0 %v161_v2 }
  0x2c   : > { %s278_s25 = sshll.u32 %s437_s10, 1 }
  0x2d   : > { %s147_s28 = scalar_lea.vmem %s426_s0, %s278_s25  ;;  %s151_s3 = scalar_lea.vmem %s428_s2, %s278_s25 }
  0x2e   : > { %v153_v3 = vld [vmem:[%s147_s28] sm:$0x3] }
  0x2f   : > { %288 = vmatmul.mubr.msk.bf16.vlgmr.msra.gmra.mrb[0].mxu0 %vm155_vm2, %v153_v3 }
 0x102   : > { %v197_v4 = vpop.f32.mrb[0].mxu0 }
 0x103   : > { %v203_v5 = vpack.c.bf16 %v197_v4, %v197_v4  ;;  %v289_v6 = vpop.f32.mrb[1].mxu0 }
 0x104   : > { %v200_v7 = vpop.f32.mrb[2].mxu0 }
 0x105   : > { %205 = vst.msk [vmem:[%s151_s3] sm:$0x3] %vm204_vm3, %v203_v5  ;;  %v290_v8 = vpop.f32.mrb[3].mxu0 }
 0x106 PF: > { %s13_s9 = sadd.s32 1, %s350_s9  }
 0x107   : > { %p10_p2 = scmp.ge.s32.totalorder %s13_s9, 4  }
 0x109   :  { %12 = sbr.rel (!%p10_p2) target bundleno = 1 (0x1), region = 63 }
 0x110   :  { %225 = vsyncpa [#allocation3], 1 }
 0x111   :  { %227 = vsyncpa [#allocation3 + $0x1], 1 }

// kernel: model_forward.12
= control target key start
LH: loop header
LB: loop body
LE: loop exit
PB: predicated region body
PF: predicated region fallthrough
CT: control target
= control target key end

     0   :  { %8 = vsyncpa [#allocation3], 0  ;;  %s581_s12 = smov 0   ;;  %s583_s13 = smov 0   ;;  %s660_s0 = inlined_call_operand.vmem [shape: bf16[2,16,4], index: 0, kind: input, shape index: {}]   ;;  %s661_s1 = inlined_call_operand.vmem [shape: bf16[2,4,64], index: 1, kind: input, shape index: {}]   ;;  %s662_s2 = inlined_call_operand.hbm [shape: f32[1,64], index: 2, kind: input, shape index: {}]   ;;  %s663_s3 = inlined_call_operand.vmem [shape: bf16[2,16,64], index: 3, kind: output, shape index: {}]  }
   0x1   :  { %s585_s14 = smov 0  }
   0x2 LB: > { %s433_s15 = sadd.s32 4294967295, %s556_s14   ;;  %s26_s16 = sadd.s32 1, %s552_s13  ;;  %s556_s14 = sphi %s585_s14, %s14_s14   ;;  %s552_s13 = sphi %s583_s13, %s673_s13   ;;  %s548_s12 = sphi %s581_s12, %s672_s12  }
   0x3   : > { %p28_p0 = scmp.ge.s32.totalorder %s26_s16, 2  ;;  %p435_p1 = scmp.ge.s32.totalorder %s556_s14, 1 }
   0x4   : > { %p134_p2 = scmp.lt.s32.totalorder %s556_s14, 3  ;;  %p606_p4 = scmp.eq.s32.totalorder %s433_s15, 0 }
   0x5   : > { %s675_s16 = smov (%p28_p0, %s26_s16), 0  ;;  %s558_s19 = smov [#allocation2]  }
   0x6   : > { %p602_p3 = pnand %p435_p1, %p134_p2  ;;  %s147_s20 = sshll.u32 %s558_s19, 4  ;;  %s148_s20 = int_to_ptr.vmem [resolvable:$true] %s147_s20 }
   0x7   : > { %s668_s18 = scalar_select %p606_p4, 1, 0 }
   0x8   : > { %s667_s17 = scalar_select %p602_p3, 1, 0 }
   0x9   : > { %p468_p5 = pneg %p602_p3  ;;  %s502_s24 = scalar_lea.hbm %s662_s2, 16 }
   0xa   : > { %p503_p7 = scmp.ne.s32.totalorder %s662_s2, %s502_s24  ;;  %p509_p11 = scmp.lt.u32.totalorder %s502_s24, %s662_s2 }
   0xb   : > { %p614_p6 = pnand %p606_p4, %p468_p5 }
   0xd   : > { %p504_p8 = pneg %p614_p6 }
   0xf   : > { %p505_p9 = pnand %p504_p8, %p503_p7 }
  0x11   : > { %p506_p10 = pneg %p505_p9 }
  0x13   : > { %p511_p12 = pnand %p509_p11, %p506_p10 }
  0x15   : > { %514 = shalt.err (!%p511_p12)
}
  0x16   : > { %s515_s29 = scalar_lea.vmem %s148_s20, 16  ;;  %s522_s30 = scalar_lea.vmem %s148_s20, 32 }
  0x17   : > { %p516_p13 = scmp.ne.s32.totalorder %s148_s20, %s515_s29  ;;  %p523_p2 = scmp.lt.s32.totalorder %s148_s20, %s148_s20 }
  0x18   : > { %p524_p5 = scmp.lt.s32.totalorder %s522_s30, %s515_s29 }
  0x19   : > { %p518_p0 = pnand %p516_p13, %p504_p8 }
  0x1a   : > { %p525_p4 = por %p524_p5, %p523_p2 }
  0x1b   : > { %p519_p1 = pneg %p518_p0 }
  0x1d   : > { %p526_p3 = pnand %p525_p4, %p519_p1 }
  0x1f   : > { %529 = shalt.err (!%p526_p3)
}
  0x20   : > { %471 = dma.hbm_to_vmem [thread:$0]  (!%p614_p6), %s662_s2, 16, %s148_s20, [#allocation3]  }
  0x21   : > { %p670_p7 = scmp.ne.s32.totalorder %s667_s17, 0 }
  0x22   : > { %p671_p9 = scmp.ne.s32.totalorder (!%p670_p7), %s668_s18, 0 }
  0x23   : > { %180 = sbr.rel (%p670_p7) target bundleno = 275 (0x113), region = 32 }
  0x2a   : > { %543 = dma.done.wait (%p671_p9), [#allocation3], 16  }
  0x2b   : > { %545 = vsyncadd (%p671_p9), [#allocation3], 4294967280  ;;  %p217_p8 = scmp.lt.s32.totalorder %s548_s12, 1  ;;  %v559_v0 = vmov 0.0   ;;  %vm560_vm0 = vmmov 0   ;;  %vm260_vm1 = vcmask 1041408  }
  0x2c   : > { %458 = vmatprep.subr.bf16.mxu0 %v559_v0  ;;  %460 = vmatprep.mubr.msk.bf16.mxu0 %vm560_vm0, %v559_v0  ;;  %vm256_vm2 = vcmask 31744   ;;  %v445_v4 = vld [vmem:[#allocation2] ss:$0 sm:$0xff]  ;;  %vm319_vm4 = vcmask 519168  }
  0x2d   : > { %s677_s12 = smov (!%p217_p8, %s548_s12), 1 }
  0x2e   : > { %s452_s6 = sshll.u32 %s677_s12, 3  ;;  %s442_s7 = sshll.u32 %s677_s12, 1 }
  0x2f   : > { %s224_s10 = scalar_lea.vmem %s660_s0, %s452_s6  ;;  %s229_s17 = scalar_lea.vmem %s661_s1, %s442_s7 }
  0x30   : > { %v243_v1 = vld [vmem:[%s229_s17] sm:$0x3]  ;;  %s238_s19 = scalar_lea.vmem %s663_s3, %s452_s6 }
  0x31   : > { %v262_v2 = vsel %vm260_vm1, %v243_v1, 0  ;;  %v501_v3 = vld [vmem:[%s224_s10] sm:$0xff]  }
  0x32   : > { %459 = vmatpush3.bf16.msra.mxu0 %v262_v2 }
  0x35   : > { %461 = vmatmul.mubr.msk.bf16.vlgmr.msra.gmra.mrb[0].mxu0 %vm256_vm2, %v501_v3 }
 0x108   : > { %v298_v5 = vpop.f32.mrb[0].mxu0 }
 0x109   : > { %v299_v6 = vadd.f32 %v445_v4, %v298_v5  ;;  %v462_v7 = vpop.f32.mrb[1].mxu0 }
 0x10a   : > { %v301_v8 = vpop.f32.mrb[2].mxu0 }
 0x10b   : > { %vm305_vm3 = vcmp.gt.f32.partialorder %v299_v6, 0.0  ;;  %v307_v9 = vmul.f32 0.2, %v299_v6  ;;  %v302_v10 = vadd.f32 %v445_v4, %v301_v8  ;;  %v463_v11 = vpop.f32.mrb[3].mxu0 }
 0x10d   : > { %v309_v12 = vsel %vm305_vm3, %v299_v6, %v307_v9  ;;  %vm306_vm5 = vcmp.gt.f32.partialorder %v302_v10, 0.0  ;;  %v308_v13 = vmul.f32 0.2, %v302_v10 }
 0x10e   : > { %v454_v14 = vpack.c.bf16 %v309_v12, %v309_v12 }
 0x10f   : > { %v310_v15 = vsel %vm306_vm5, %v302_v10, %v308_v13 }
 0x110   : > { %320 = vst.msk [vmem:[%s238_s19] sm:$0xf] %vm319_vm4, %v454_v14  ;;  %v455_v16 = vpack.c.bf16 %v310_v15, %v310_v15 }
 0x112   : > { %321 = vst.msk [vmem:[%s238_s19 + $0x4] sm:$0xf] %vm319_vm4, %v455_v16 }
 0x113 PF: > { %s14_s14 = sadd.s32 1, %s556_s14   ;;  %s672_s12 = smov %s552_s13 }
 0x114   : > { %p11_p3 = scmp.ge.s32.totalorder %s14_s14, 4   ;;  %s673_s13 = smov %s675_s16 }
 0x116   :  { %13 = sbr.rel (!%p11_p3) target bundleno = 2 (0x2), region = 70 }
 0x11d   :  { %352 = vsyncpa [#allocation3], 1 }
 0x11e   :  { %354 = vsyncpa [#allocation3 + $0x1], 1 }

// kernel: model_forward.9
= control target key start
LH: loop header
LB: loop body
LE: loop exit
PB: predicated region body
PF: predicated region fallthrough
CT: control target
= control target key end

     0   :  { %12 = vsyncpa [#allocation3], 0  ;;  %s2184_s0 = inlined_call_operand.vmem [shape: bf16[2,16,4], index: 0, kind: input, shape index: {}]   ;;  %s2185_s1 = inlined_call_operand.hbm [shape: bf16[4,64], index: 1, kind: input, shape index: {}]   ;;  %s2186_s2 = inlined_call_operand.hbm [shape: f32[1,64], index: 2, kind: input, shape index: {}]   ;;  %s2187_s3 = inlined_call_operand.hbm [shape: bf16[64,128], index: 3, kind: input, shape index: {}]   ;;  %s2188_s4 = inlined_call_operand.hbm [shape: f32[1,128], index: 4, kind: input, shape index: {}]   ;;  %s2189_s5 = inlined_call_operand.hbm [shape: bf16[128,1024], index: 5, kind: input, shape index: {}]   ;;  %s2190_s6 = inlined_call_operand.hbm [shape: f32[1,1024], index: 6, kind: input, shape index: {}]   ;;  %s2191_s7 = inlined_call_operand.vmem [shape: f32[2,1,1024], index: 7, kind: output, shape index: {}]  }
   0x1   :  { %13 = vsyncpa [#allocation5], 0 }
   0x2   :  { %14 = vsyncpa [#allocation8], 0 }
   0x3   :  { %15 = vsyncpa [#allocation11], 0  ;;  %s1925_s24 = smov 0   ;;  %s1927_s25 = smov 0  }
   0x4   :  { %s1929_s26 = smov 0  }
   0x5 LB: > { %s1871_s27 = smov [#allocation4]   ;;  %s1444_s29 = sadd.s32 4294967295, %s1869_s26   ;;  %s1869_s26 = sphi %s1929_s26, %s21_s26   ;;  %s1865_s25 = sphi %s1927_s25, %s2204_s25   ;;  %s1861_s24 = sphi %s1925_s24, %s2203_s24  }
   0x6   : > { %s242_s28 = sshll.u32 %s1871_s27, 4  ;;  %p1446_p0 = scmp.ge.s32.totalorder %s1869_s26, 1  ;;  %s243_s28 = int_to_ptr.vmem [resolvable:$true] %s242_s28 }
   0x7   : > { %p218_p1 = scmp.lt.s32.totalorder %s1869_s26, 3  ;;  %p1943_p2 = scmp.eq.s32.totalorder %s1444_s29, 0 }
   0x8   : > { %s1872_s9 = smov [#allocation7]   ;;  %s33_s12 = sadd.s32 1, %s1865_s25 }
   0x9   : > { %s2195_s30 = scalar_select %p1943_p2, 1, 0 }
   0xa   : > { %p1947_p3 = pnand %p1446_p0, %p218_p1  ;;  %s266_s10 = sshll.u32 %s1872_s9, 4  ;;  %s1953_s10 = int_to_ptr.vmem [resolvable:$true] %s266_s10 }
   0xb   : > { %p1964_p6 = scmp.ge.s32.totalorder %s33_s12, 2  ;;  %s1663_s16 = scalar_lea.hbm %s2186_s2, 16 }
   0xc   : > { %s2196_s8 = scalar_select %p1947_p3, 1, 0 }
   0xd   : > { %p1589_p4 = pneg %p1947_p3  ;;  %p1664_p7 = scmp.ne.s32.totalorder %s2186_s2, %s1663_s16 }
   0xe   : > { %s2198_s13 = scalar_select %p1964_p6, 1, 0 }
   0xf   : > { %p1957_p5 = pnand %p1943_p2, %p1589_p4  ;;  %p1670_p11 = scmp.lt.u32.totalorder %s1663_s16, %s2186_s2 }
  0x11   : > { %p1976_p8 = pneg %p1957_p5 }
  0x13   : > { %p1666_p9 = pnand %p1976_p8, %p1664_p7 }
  0x15   : > { %p1667_p10 = pneg %p1666_p9 }
  0x17   : > { %p1672_p12 = pnand %p1670_p11, %p1667_p10 }
  0x19   : > { %1675 = shalt.err (!%p1672_p12)
}
  0x1a   : > { %s1676_s22 = scalar_lea.vmem %s243_s28, 16  ;;  %s1683_s23 = scalar_lea.vmem %s243_s28, 32 }
  0x1b   : > { %p1677_p13 = scmp.ne.s32.totalorder %s243_s28, %s1676_s22  ;;  %p1684_p4 = scmp.lt.s32.totalorder %s243_s28, %s243_s28 }
  0x1c   : > { %p1685_p2 = scmp.lt.s32.totalorder %s1683_s23, %s1676_s22 }
  0x1d   : > { %p1679_p0 = pnand %p1677_p13, %p1976_p8 }
  0x1e   : > { %p1686_p3 = por %p1685_p2, %p1684_p4 }
  0x1f   : > { %p1680_p1 = pneg %p1679_p0 }
  0x21   : > { %p1687_p6 = pnand %p1686_p3, %p1680_p1 }
  0x23   : > { %1690 = shalt.err (!%p1687_p6)
}
  0x24   : > { %1595 = dma.hbm_to_vmem [thread:$0]  (!%p1957_p5), %s2186_s2, 16, %s243_s28, [#allocation5]  }
  0x25   : > { %s1691_s15 = scalar_lea.hbm %s2188_s4, 16 }
  0x26   : > { %p1692_p7 = scmp.ne.s32.totalorder %s2188_s4, %s1691_s15  ;;  %p1698_p3 = scmp.lt.u32.totalorder %s1691_s15, %s2188_s4 }
  0x28   : > { %p1694_p9 = pnand %p1692_p7, %p1976_p8 }
  0x2a   : > { %p1695_p2 = pneg %p1694_p9 }
  0x2c   : > { %p1700_p6 = pnand %p1698_p3, %p1695_p2 }
  0x2e   : > { %1703 = shalt.err (!%p1700_p6)
}
  0x2f   : > { %s1704_s28 = scalar_lea.vmem %s1953_s10, 16  ;;  %s1711_s21 = scalar_lea.vmem %s1953_s10, 32 }
  0x30   : > { %p1705_p10 = scmp.ne.s32.totalorder %s1953_s10, %s1704_s28  ;;  %p1712_p13 = scmp.lt.s32.totalorder %s1953_s10, %s1953_s10 }
  0x31   : > { %p1713_p0 = scmp.lt.s32.totalorder %s1711_s21, %s1704_s28 }
  0x32   : > { %p1707_p11 = pnand %p1705_p10, %p1976_p8 }
  0x33   : > { %p1714_p1 = por %p1713_p0, %p1712_p13 }
  0x34   : > { %p1708_p12 = pneg %p1707_p11 }
  0x36   : > { %p1715_p4 = pnand %p1714_p1, %p1708_p12 }
  0x38   : > { %1718 = shalt.err (!%p1715_p4)
}
  0x39   : > { %1601 = dma.hbm_to_vmem [thread:$0]  (!%p1957_p5), %s2188_s4, 16, %s1953_s10, [#allocation8]  }
  0x3a   : > { %p2200_p7 = scmp.ne.s32.totalorder %s2198_s13, 0  ;;  %s1873_s27 = smov [#allocation2]  }
  0x3b   : > { %s231_s29 = sshll.u32 %s1873_s27, 4  ;;  %s1874_s9 = smov [#allocation6]   ;;  %s232_s29 = int_to_ptr.vmem [resolvable:$true] %s231_s29 }
  0x3c   : > { %s2206_s12 = smov (%p2200_p7, %s33_s12), 0  ;;  %s252_s14 = sshll.u32 %s1874_s9, 4  ;;  %s253_s14 = int_to_ptr.vmem [resolvable:$true] %s252_s14 }
  0x3d   : > { %s1719_s17 = scalar_lea.hbm %s2185_s1, 32 }
  0x3e   : > { %p1720_p9 = scmp.ne.s32.totalorder %s2185_s1, %s1719_s17  ;;  %p1726_p6 = scmp.lt.u32.totalorder %s1719_s17, %s2185_s1 }
  0x40   : > { %p1722_p2 = pnand %p1720_p9, %p1976_p8 }
  0x42   : > { %p1723_p3 = pneg %p1722_p2 }
  0x44   : > { %p1728_p10 = pnand %p1726_p6, %p1723_p3 }
  0x46   : > { %1731 = shalt.err (!%p1728_p10)
}
  0x47   : > { %s1732_s28 = scalar_lea.vmem %s232_s29, 32  ;;  %p1740_p0 = scmp.lt.s32.totalorder %s232_s29, %s232_s29 }
  0x48   : > { %p1733_p11 = scmp.ne.s32.totalorder %s232_s29, %s1732_s28  ;;  %p1741_p1 = scmp.lt.s32.totalorder %s1732_s28, %s1732_s28 }
  0x4a   : > { %p1735_p12 = pnand %p1733_p11, %p1976_p8  ;;  %p1742_p4 = por %p1741_p1, %p1740_p0 }
  0x4c   : > { %p1736_p13 = pneg %p1735_p12 }
  0x4e   : > { %p1743_p7 = pnand %p1742_p4, %p1736_p13 }
  0x50   : > { %1746 = shalt.err (!%p1743_p7)
}
  0x51   : > { %1592 = dma.hbm_to_vmem [thread:$0]  (!%p1957_p5), %s2185_s1, 32, %s232_s29, [#allocation3]  }
  0x52   : > { %s1747_s9 = scalar_lea.hbm %s2187_s3, 512 }
  0x53   : > { %p1748_p9 = scmp.ne.s32.totalorder %s2187_s3, %s1747_s9  ;;  %p1754_p6 = scmp.lt.u32.totalorder %s1747_s9, %s2187_s3 }
  0x55   : > { %p1750_p2 = pnand %p1748_p9, %p1976_p8 }
  0x57   : > { %p1751_p3 = pneg %p1750_p2 }
  0x59   : > { %p1756_p10 = pnand %p1754_p6, %p1751_p3 }
  0x5b   : > { %1759 = shalt.err (!%p1756_p10)
}
  0x5c   : > { %s1760_s20 = scalar_lea.vmem %s253_s14, 512  ;;  %p1768_p0 = scmp.lt.s32.totalorder %s253_s14, %s253_s14 }
  0x5d   : > { %p1761_p11 = scmp.ne.s32.totalorder %s253_s14, %s1760_s20  ;;  %p1769_p1 = scmp.lt.s32.totalorder %s1760_s20, %s1760_s20 }
  0x5f   : > { %p1763_p12 = pnand %p1761_p11, %p1976_p8  ;;  %p1770_p4 = por %p1769_p1, %p1768_p0 }
  0x61   : > { %p1764_p13 = pneg %p1763_p12 }
  0x63   : > { %p1771_p7 = pnand %p1770_p4, %p1764_p13 }
  0x65   : > { %1774 = shalt.err (!%p1771_p7)
}
  0x66   : > { %s1875_s29 = smov 64   ;;  %s1876_s10 = smov 4  }
  0x67   : > { %1598 = dma.hbm_to_vmem [thread:$0]  (!%p1957_p5), %s2187_s3, 512, %s253_s14, [#allocation5], %s1875_s29, %s1875_s29, %s1876_s10  }
  0x68   : > { %s1877_s21 = smov [#allocation9]   ;;  %s1775_s9 = scalar_lea.hbm %s2189_s5, 8192 }
  0x69   : > { %s276_s22 = sshll.u32 %s1877_s21, 4  ;;  %p1776_p9 = scmp.ne.s32.totalorder %s2189_s5, %s1775_s9  ;;  %s277_s22 = int_to_ptr.vmem [resolvable:$true] %s276_s22 }
  0x6a   : > { %p1782_p6 = scmp.lt.u32.totalorder %s1775_s9, %s2189_s5 }
  0x6b   : > { %p1778_p2 = pnand %p1776_p9, %p1976_p8 }
  0x6d   : > { %p1779_p3 = pneg %p1778_p2 }
  0x6f   : > { %p1784_p10 = pnand %p1782_p6, %p1779_p3 }
  0x71   : > { %1787 = shalt.err (!%p1784_p10)
}
  0x72   : > { %s1788_s14 = scalar_lea.vmem %s277_s22, 8192  ;;  %p1796_p0 = scmp.lt.s32.totalorder %s277_s22, %s277_s22 }
  0x73   : > { %p1789_p11 = scmp.ne.s32.totalorder %s277_s22, %s1788_s14  ;;  %p1797_p1 = scmp.lt.s32.totalorder %s1788_s14, %s1788_s14 }
  0x75   : > { %p1791_p12 = pnand %p1789_p11, %p1976_p8  ;;  %p1798_p4 = por %p1797_p1, %p1796_p0 }
  0x77   : > { %p1792_p13 = pneg %p1791_p12 }
  0x79   : > { %p1799_p7 = pnand %p1798_p4, %p1792_p13 }
  0x7b   : > { %1802 = shalt.err (!%p1799_p7)
}
  0x7c   : > { %s1878_s20 = smov 512   ;;  %s1879_s29 = smov 32  }
  0x7d   : > { %1604 = dma.hbm_to_vmem [thread:$0]  (!%p1957_p5), %s2189_s5, 8192, %s277_s22, [#allocation8], %s1878_s20, %s1878_s20, %s1879_s29  }
  0x7e   : > { %s1880_s28 = smov [#allocation10]   ;;  %s1803_s9 = scalar_lea.hbm %s2190_s6, 128 }
  0x7f   : > { %s290_s21 = sshll.u32 %s1880_s28, 4  ;;  %p1804_p9 = scmp.ne.s32.totalorder %s2190_s6, %s1803_s9  ;;  %s291_s21 = int_to_ptr.vmem [resolvable:$true] %s290_s21 }
  0x80   : > { %p1810_p6 = scmp.lt.u32.totalorder %s1803_s9, %s2190_s6 }
  0x81   : > { %p1806_p2 = pnand %p1804_p9, %p1976_p8 }
  0x83   : > { %p1807_p3 = pneg %p1806_p2 }
  0x85   : > { %p1812_p10 = pnand %p1810_p6, %p1807_p3 }
  0x87   : > { %1815 = shalt.err (!%p1812_p10)
}
  0x88   : > { %s1816_s22 = scalar_lea.vmem %s291_s21, 128  ;;  %p1824_p0 = scmp.lt.s32.totalorder %s291_s21, %s291_s21 }
  0x89   : > { %p1817_p11 = scmp.ne.s32.totalorder %s291_s21, %s1816_s22  ;;  %p1825_p1 = scmp.lt.s32.totalorder %s1816_s22, %s1816_s22 }
  0x8b   : > { %p1819_p12 = pnand %p1817_p11, %p1976_p8  ;;  %p1826_p4 = por %p1825_p1, %p1824_p0 }
  0x8d   : > { %p1820_p13 = pneg %p1819_p12 }
  0x8f   : > { %p1827_p7 = pnand %p1826_p4, %p1820_p13 }
  0x91   : > { %1830 = shalt.err (!%p1827_p7)
}
  0x92   : > { %1607 = dma.hbm_to_vmem [thread:$0]  (!%p1957_p5), %s2190_s6, 128, %s291_s21, [#allocation11]  }
  0x93   : > { %p2201_p9 = scmp.ne.s32.totalorder %s2196_s8, 0 }
  0x94   : > { %p2202_p2 = scmp.ne.s32.totalorder (!%p2201_p9), %s2195_s30, 0 }
  0x95   : > { %316 = sbr.rel (%p2201_p9) target bundleno = 890 (0x37a), region = 48 }
  0x9c   : > { %1844 = dma.done.wait (%p2202_p2), [#allocation3], 32  }
  0x9d   : > { %1846 = vsyncadd (%p2202_p2), [#allocation3], 4294967264 }
  0x9e   : > { %1848 = dma.done.wait (%p2202_p2), [#allocation5], 528  }
  0x9f   : > { %1850 = vsyncadd (%p2202_p2), [#allocation5], 4294966768 }
  0xa0   : > { %1852 = dma.done.wait (%p2202_p2), [#allocation8], 8208  }
  0xa1   : > { %1854 = vsyncadd (%p2202_p2), [#allocation8], 4294959088 }
  0xa2   : > { %1856 = dma.done.wait (%p2202_p2), [#allocation11], 128  }
  0xa3   : > { %1858 = vsyncadd (%p2202_p2), [#allocation11], 4294967168  ;;  %p372_p5 = scmp.lt.s32.totalorder %s1861_s24, 1  ;;  %v1881_v0 = vmov 0.0   ;;  %vm1882_vm0 = vmmov 0   ;;  %vm405_vm1 = vcmask 1041408  }
  0xa4   : > { %1547 = vmatprep.subr.bf16.mxu0 %v1881_v0  ;;  %1549 = vmatprep.mubr.msk.bf16.mxu0 %vm1882_vm0, %v1881_v0  ;;  %v388_v1 = vld [vmem:[#allocation2] sm:$0x3]  ;;  %vm401_vm2 = vcmask 31744   ;;  %v1659_v4 = vld [vmem:[#allocation6] sm:$0xff]   ;;  %v1660_v5 = vld [vmem:[#allocation6 + $0x8] sm:$0xff]   ;;  %vm496_vm5 = vcmask 523264  }
  0xa5   : > { %s2208_s24 = smov (!%p372_p5, %s1861_s24), 1  ;;  %1553 = vmatprep.subr.bf16.mxu1 %v1881_v0  ;;  %1561 = vmatprep.mubr.msk.bf16.mxu1 %vm1882_vm0, %v1881_v0  ;;  %v407_v2 = vsel %vm405_vm1, %v388_v1, 0  ;;  %v1661_v6 = vld [vmem:[#allocation6 + $0x10] sm:$0xff]   ;;  %v1662_v7 = vld [vmem:[#allocation6 + $0x18] sm:$0xff]   ;;  %v548_v8 = vld [vmem:[#allocation9] sm:$0xff] }
  0xa6   : > { %s1539_s8 = sshll.u32 %s2208_s24, 3  ;;  %1548 = vmatpush3.bf16.msra.mxu0 %v407_v2  ;;  %1554 = vmatpush3.bf16.msra.mxu1 %v1659_v4  ;;  %v552_v9 = vld [vmem:[#allocation9 + $0x20] sm:$0xff]  ;;  %v549_v10 = vld [vmem:[#allocation9 + $0x8] sm:$0xff]  ;;  %v1464_v36 = vld [vmem:[#allocation4] ss:$0 sm:$0xff] }
  0xa7   : > { %s379_s30 = scalar_lea.vmem %s2184_s0, %s1539_s8  ;;  %1555 = vmatprep.subr.bf16.mxu1 %v1881_v0  ;;  %v1473_v11 = vcombine.low %v548_v8, %v552_v9  ;;  %v1474_v12 = vcombine.high %v548_v8, %v552_v9  ;;  %v553_v13 = vld [vmem:[#allocation9 + $0x28] sm:$0xff]  ;;  %v556_v14 = vld [vmem:[#allocation9 + $0x40] sm:$0xff]  ;;  %s384_s13 = scalar_lea.vmem %s2191_s7, %s1539_s8 }
  0xa8   : > { %v1658_v3 = vld [vmem:[%s379_s30] sm:$0xff]   ;;  %v1475_v16 = vcombine.low %v549_v10, %v553_v13  ;;  %v1476_v17 = vcombine.high %v549_v10, %v553_v13  ;;  %v557_v45 = vld [vmem:[#allocation9 + $0x48] sm:$0xff] }
  0xa9   : > { %1550 = vmatmul.mubr.msk.bf16.vlgmr.msra.gmra.mrb[0].mxu0 %vm401_vm2, %v1658_v3  ;;  %v560_v15 = vld [vmem:[#allocation9 + $0x60] sm:$0xff]  ;;  %974 = vmatprep.subr.bf16.mxu0 %v1474_v12  ;;  %v561_v46 = vld [vmem:[#allocation9 + $0x68] sm:$0xff] }
  0xaa   : > { %1556 = vmatpush3.bf16.msra.mxu1 %v1660_v5  ;;  %v1482_v18 = vcombine.high %v556_v14, %v560_v15  ;;  %975 = vmatpush1.bf16.msra.mxu0 %v1473_v11  ;;  %v1481_v19 = vcombine.low %v556_v14, %v560_v15  ;;  %v564_v20 = vld [vmem:[#allocation9 + $0x80] sm:$0xff]  ;;  %v1484_v50 = vcombine.high %v557_v45, %v561_v46  ;;  %v565_v51 = vld [vmem:[#allocation9 + $0x88] sm:$0xff] }
  0xab   : > { %1557 = vmatprep.subr.bf16.mxu1 %v1881_v0  ;;  %v568_v21 = vld [vmem:[#allocation9 + $0xa0] sm:$0xff]  ;;  %v569_v52 = vld [vmem:[#allocation9 + $0xa8] sm:$0xff]  ;;  %v1483_v53 = vcombine.low %v557_v45, %v561_v46 }
  0xac   : > { %976 = vmatprep.subr.bf16.mxu0 %v1482_v18  ;;  %v1490_v22 = vcombine.high %v564_v20, %v568_v21  ;;  %v1489_v23 = vcombine.low %v564_v20, %v568_v21  ;;  %v572_v24 = vld [vmem:[#allocation9 + $0xc0] sm:$0xff]  ;;  %v1492_v54 = vcombine.high %v565_v51, %v569_v52  ;;  %v573_v55 = vld [vmem:[#allocation9 + $0xc8] sm:$0xff]  ;;  %v1491_v57 = vcombine.low %v565_v51, %v569_v52  ;;  %v550_v20 = vld [vmem:[#allocation9 + $0x10] sm:$0xff] }
  0xad   : > { %v576_v25 = vld [vmem:[#allocation9 + $0xe0] sm:$0xff]  ;;  %v577_v56 = vld [vmem:[#allocation9 + $0xe8] sm:$0xff]  ;;  %v554_v21 = vld [vmem:[#allocation9 + $0x30] sm:$0xff] }
  0xae   : > { %1558 = vmatpush3.bf16.msra.mxu1 %v1661_v6  ;;  %977 = vmatpush1.bf16.msra.mxu0 %v1481_v19  ;;  %v1498_v26 = vcombine.high %v572_v24, %v576_v25  ;;  %v1497_v27 = vcombine.low %v572_v24, %v576_v25  ;;  %v580_v28 = vld [vmem:[#allocation9 + $0x100] sm:$0xff]  ;;  %v1500_v58 = vcombine.high %v573_v55, %v577_v56  ;;  %v581_v59 = vld [vmem:[#allocation9 + $0x108] sm:$0xff]  ;;  %v555_v24 = vld [vmem:[#allocation9 + $0x38] sm:$0xff] }
  0xaf   : > { %1559 = vmatprep.subr.bf16.mxu1 %v1881_v0  ;;  %978 = vmatprep.subr.bf16.mxu0 %v1490_v22  ;;  %v584_v29 = vld [vmem:[#allocation9 + $0x120] sm:$0xff]  ;;  %v585_v60 = vld [vmem:[#allocation9 + $0x128] sm:$0xff]  ;;  %v1499_v61 = vcombine.low %v573_v55, %v577_v56  ;;  %v551_v22 = vld [vmem:[#allocation9 + $0x18] sm:$0xff]  ;;  %v1477_v25 = vcombine.low %v550_v20, %v554_v21 }
  0xb0   : > { %v1506_v30 = vcombine.high %v580_v28, %v584_v29  ;;  %v1505_v31 = vcombine.low %v580_v28, %v584_v29  ;;  %v588_v32 = vld [vmem:[#allocation9 + $0x140] sm:$0xff]  ;;  %v1508_v62 = vcombine.high %v581_v59, %v585_v60  ;;  %v589_v63 = vld [vmem:[#allocation9 + $0x148] sm:$0xff]  ;;  %v1507_v1 = vcombine.low %v581_v59, %v585_v60  ;;  %v1467_v29 = vld [vmem:[#allocation7] ss:$0 sm:$0xff] }
  0xb1   : > { %v592_v33 = vld [vmem:[#allocation9 + $0x160] sm:$0xff]  ;;  %v593_v0 = vld [vmem:[#allocation9 + $0x168] sm:$0xff]  ;;  %v1883_v28 = vmov 0   ;;  %v574_v55 = vld [vmem:[#allocation9 + $0xd0] sm:$0xff] }
  0xb2   : > { %1560 = vmatpush3.bf16.msra.mxu1 %v1662_v7  ;;  %979 = vmatpush1.bf16.msra.mxu0 %v1489_v23  ;;  %v1514_v34 = vcombine.high %v588_v32, %v592_v33  ;;  %v1513_v35 = vcombine.low %v588_v32, %v592_v33  ;;  %v1516_v2 = vcombine.high %v589_v63, %v593_v0  ;;  %v596_v4 = vld [vmem:[#allocation9 + $0x180] sm:$0xff]  ;;  %v597_v6 = vld [vmem:[#allocation9 + $0x188] sm:$0xff]  ;;  %v578_v56 = vld [vmem:[#allocation9 + $0xf0] sm:$0xff] }
  0xb3   : > { %1017 = vmatprep.subr.bf16.mxu1 %v1476_v17  ;;  %980 = vmatprep.subr.bf16.mxu0 %v1498_v26  ;;  %v1515_v3 = vcombine.low %v589_v63, %v593_v0  ;;  %v600_v5 = vld [vmem:[#allocation9 + $0x1a0] sm:$0xff]  ;;  %v601_v8 = vld [vmem:[#allocation9 + $0x1a8] sm:$0xff]  ;;  %v1478_v23 = vcombine.high %v550_v20, %v554_v21  ;;  %v1479_v26 = vcombine.low %v551_v22, %v555_v24  ;;  %v582_v63 = vld [vmem:[#allocation9 + $0x110] sm:$0xff] }
  0xb4   : > { %v1522_v7 = vcombine.high %v596_v4, %v600_v5  ;;  %v1521_v9 = vcombine.low %v596_v4, %v600_v5  ;;  %v1523_v10 = vcombine.low %v597_v6, %v601_v8  ;;  %v1524_v11 = vcombine.high %v597_v6, %v601_v8  ;;  %v604_v12 = vld [vmem:[#allocation9 + $0x1c0] sm:$0xff]  ;;  %v605_v14 = vld [vmem:[#allocation9 + $0x1c8] sm:$0xff]  ;;  %1006 = vmatprep.mubr.bf16.mxu0 %v1883_v28  ;;  %v586_v0 = vld [vmem:[#allocation9 + $0x130] sm:$0xff] }
  0xb5   : > { %v608_v13 = vld [vmem:[#allocation9 + $0x1e0] sm:$0xff]  ;;  %v1510_v5 = vcombine.high %v582_v63, %v586_v0  ;;  %v594_v8 = vld [vmem:[#allocation9 + $0x170] sm:$0xff] }
  0xb6   : > { %981 = vmatpush1.bf16.msra.mxu0 %v1497_v27  ;;  %v1530_v15 = vcombine.high %v604_v12, %v608_v13  ;;  %v1529_v17 = vcombine.low %v604_v12, %v608_v13  ;;  %v1480_v27 = vcombine.high %v551_v22, %v555_v24  ;;  %v610_v24 = vld [vmem:[#allocation9 + $0x1f0] sm:$0xff] }
  0xb7   : > { %982 = vmatprep.subr.bf16.mxu0 %v1506_v30 }
  0xba   : > { %983 = vmatpush1.bf16.msra.mxu0 %v1505_v31 }
  0xbb   : > { %984 = vmatprep.subr.bf16.mxu0 %v1514_v34 }
  0xbe   : > { %985 = vmatpush1.bf16.msra.mxu0 %v1513_v35 }
  0xbf   : > { %986 = vmatprep.subr.bf16.mxu0 %v1522_v7  ;;  %v590_v7 = vld [vmem:[#allocation9 + $0x150] sm:$0xff] }
  0xc0   : > { %v1518_v13 = vcombine.high %v590_v7, %v594_v8 }
  0xc2   : > { %987 = vmatpush1.bf16.msra.mxu0 %v1521_v9  ;;  %v591_v9 = vld [vmem:[#allocation9 + $0x158] sm:$0xff] }
  0xc3   : > { %988 = vmatprep.subr.bf16.mxu0 %v1530_v15  ;;  %v598_v15 = vld [vmem:[#allocation9 + $0x190] sm:$0xff] }
  0xc6   : > { %989 = vmatpush1.bf16.msra.mxu0 %v1529_v17  ;;  %v599_v17 = vld [vmem:[#allocation9 + $0x198] sm:$0xff] }
  0xc7   : > { %1060 = vmatprep.subr.bf16.mxu0 %v1478_v23  ;;  %v606_v23 = vld [vmem:[#allocation9 + $0x1d0] sm:$0xff] }
 0x17c   : > { %v443_v37 = vpop.f32.mrb[0].mxu0 }
 0x17d   : > { %v444_v38 = vadd.f32 %v1464_v36, %v443_v37  ;;  %v1551_v39 = vpop.f32.mrb[1].mxu0  ;;  %v558_v37 = vld [vmem:[#allocation9 + $0x50] sm:$0xff] }
 0x17e   : > { %v446_v40 = vpop.f32.mrb[2].mxu0  ;;  %v562_v39 = vld [vmem:[#allocation9 + $0x70] sm:$0xff] }
 0x17f   : > { %v452_v41 = vmul.f32 0.2, %v444_v38  ;;  %v447_v42 = vadd.f32 %v1464_v36, %v446_v40  ;;  %v1552_v43 = vpop.f32.mrb[3].mxu0  ;;  %vm450_vm3 = vcmp.gt.f32.partialorder %v444_v38, 0.0  ;;  %v559_v40 = vld [vmem:[#allocation9 + $0x58] sm:$0xff]  ;;  %v1486_v45 = vcombine.high %v558_v37, %v562_v39 }
 0x180   : > { %v1485_v51 = vcombine.low %v558_v37, %v562_v39  ;;  %v2132_v37 = vld [vmem:[#allocation10] sm:$0xff] }
 0x181   : > { %vm451_vm4 = vcmp.gt.f32.partialorder %v447_v42, 0.0  ;;  %v453_v44 = vmul.f32 0.2, %v447_v42  ;;  %v454_v47 = vsel %vm450_vm3, %v444_v38, %v452_v41  ;;  %v563_v41 = vld [vmem:[#allocation9 + $0x78] sm:$0xff] }
 0x182   : > { %v1488_v46 = vcombine.high %v559_v40, %v563_v41  ;;  %v1487_v52 = vcombine.low %v559_v40, %v563_v41 }
 0x183   : > { %v455_v48 = vsel %vm451_vm4, %v447_v42, %v453_v44 }
 0x184   : > { %v456_v49 = vpack.c.bf16 %v455_v48, %v454_v47  ;;  %v566_v47 = vld [vmem:[#allocation9 + $0x90] sm:$0xff] }
 0x185   : > { %v570_v48 = vld [vmem:[#allocation9 + $0xb0] sm:$0xff] }
 0x186   : > { %1562 = vmatmul.mubr.msk.bf16.vlgmr.msra.gmra.mrb[0].mxu1 %vm496_vm5, %v456_v49  ;;  %v567_v49 = vld [vmem:[#allocation9 + $0x98] sm:$0xff]  ;;  %v1493_v59 = vcombine.low %v566_v47, %v570_v48 }
 0x187   : > { %1018 = vmatpush1.bf16.msra.mxu1 %v1475_v16  ;;  %v609_v16 = vld [vmem:[#allocation9 + $0x1e8] sm:$0xff]  ;;  %1049 = vmatprep.mubr.bf16.mxu1 %v1883_v28 }
 0x188   : > { %1019 = vmatprep.subr.bf16.mxu1 %v1484_v50  ;;  %v1531_v18 = vcombine.low %v605_v14, %v609_v16  ;;  %v1532_v19 = vcombine.high %v605_v14, %v609_v16  ;;  %v571_v50 = vld [vmem:[#allocation9 + $0xb8] sm:$0xff]  ;;  %v602_v16 = vld [vmem:[#allocation9 + $0x1b0] sm:$0xff] }
 0x189   : > { %v1495_v60 = vcombine.low %v567_v49, %v571_v50  ;;  %v1526_v21 = vcombine.high %v598_v15, %v602_v16 }
 0x18b   : > { %1020 = vmatpush1.bf16.msra.mxu1 %v1483_v53  ;;  %v1494_v53 = vcombine.high %v566_v47, %v570_v48 }
 0x18c   : > { %1021 = vmatprep.subr.bf16.mxu1 %v1492_v54  ;;  %v1496_v54 = vcombine.high %v567_v49, %v571_v50 }
 0x18f   : > { %1022 = vmatpush1.bf16.msra.mxu1 %v1491_v57  ;;  %v575_v57 = vld [vmem:[#allocation9 + $0xd8] sm:$0xff] }
 0x190   : > { %1023 = vmatprep.subr.bf16.mxu1 %v1500_v58  ;;  %v579_v58 = vld [vmem:[#allocation9 + $0xf8] sm:$0xff] }
 0x191   : > { %v1503_v4 = vcombine.low %v575_v57, %v579_v58 }
 0x193   : > { %1024 = vmatpush1.bf16.msra.mxu1 %v1499_v61  ;;  %v1502_v61 = vcombine.high %v574_v55, %v578_v56 }
 0x194   : > { %1025 = vmatprep.subr.bf16.mxu1 %v1508_v62  ;;  %v1504_v62 = vcombine.high %v575_v57, %v579_v58 }
 0x197   : > { %1026 = vmatpush1.bf16.msra.mxu1 %v1507_v1  ;;  %v583_v1 = vld [vmem:[#allocation9 + $0x118] sm:$0xff] }
 0x198   : > { %1027 = vmatprep.subr.bf16.mxu1 %v1516_v2  ;;  %v587_v2 = vld [vmem:[#allocation9 + $0x138] sm:$0xff] }
 0x199   : > { %v1512_v6 = vcombine.high %v583_v1, %v587_v2  ;;  %v1511_v12 = vcombine.low %v583_v1, %v587_v2 }
 0x19b   : > { %1028 = vmatpush1.bf16.msra.mxu1 %v1515_v3  ;;  %v1501_v3 = vcombine.low %v574_v55, %v578_v56 }
 0x19c   : > { %1029 = vmatprep.subr.bf16.mxu1 %v1524_v11  ;;  %v1509_v11 = vcombine.low %v582_v63, %v586_v0 }
 0x19f   : > { %1030 = vmatpush1.bf16.msra.mxu1 %v1523_v10  ;;  %v595_v10 = vld [vmem:[#allocation9 + $0x178] sm:$0xff] }
 0x1a0   : > { %1031 = vmatprep.subr.bf16.mxu1 %v1532_v19  ;;  %v1520_v14 = vcombine.high %v591_v9, %v595_v10  ;;  %v1517_v19 = vcombine.low %v590_v7, %v594_v8  ;;  %v1519_v20 = vcombine.low %v591_v9, %v595_v10 }
 0x1a3   : > { %1032 = vmatpush1.bf16.msra.mxu1 %v1531_v18  ;;  %v603_v18 = vld [vmem:[#allocation9 + $0x1b8] sm:$0xff] }
 0x1a4   : > { %1103 = vmatprep.subr.bf16.mxu1 %v1480_v27  ;;  %v1528_v22 = vcombine.high %v599_v17, %v603_v18  ;;  %v1525_v27 = vcombine.low %v598_v15, %v602_v16 }
 0x259   : > { %v534_v30 = vpop.f32.mrb[0].mxu1 }
 0x25a   : > { %v535_v31 = vadd.f32 %v1467_v29, %v534_v30  ;;  %v1563_v32 = vpop.f32.mrb[1].mxu1 }
 0x25b   : > { %v537_v33 = vpop.f32.mrb[2].mxu1 }
 0x25c   : > { %v543_v34 = vmul.f32 0.2, %v535_v31  ;;  %v538_v35 = vadd.f32 %v1467_v29, %v537_v33  ;;  %v1564_v36 = vpop.f32.mrb[3].mxu1  ;;  %vm541_vm6 = vcmp.gt.f32.partialorder %v535_v31, 0.0  ;;  %v1534_v29 = vcombine.high %v606_v23, %v610_v24 }
 0x25d   : > { %v614_v33 = vlaneseq }
 0x25e   : > { %vm542_vm7 = vcmp.gt.f32.partialorder %v538_v35, 0.0  ;;  %v544_v38 = vmul.f32 0.2, %v538_v35  ;;  %v545_v42 = vsel %vm541_vm6, %v535_v31, %v543_v34  ;;  %v1533_v31 = vcombine.low %v606_v23, %v610_v24 }
 0x25f   : > { %v2128_v34 = vshrl.u32 %v614_v33, 7  ;;  %v1884_v23 = vmov 1966171168  }
 0x260   : > { %v546_v43 = vsel %vm542_vm7, %v538_v35, %v544_v38  ;;  %v1269_v24 = vunpack.c.l.s4 %v1884_v23 }
 0x261   : > { %v2122_v44 = vpack.c.bf16 %v546_v43, %v545_v42  ;;  %v616_v35 = vsub.s32 0, %v2128_v34  ;;  %v624_v36 = vsub.s32 2, %v2128_v34  ;;  %v620_v38 = vsub.s32 1, %v2128_v34 }
 0x262   : > { %v628_v39 = vsub.s32 3, %v2128_v34  ;;  %v1270_v33 = vunpack.c.0.s8 %v1269_v24 }
 0x263   : > { %1007 = vmatmul.mubr.bf16.vlgmr.msra.gmra.mrb[4].mxu0 %v2122_v44  ;;  %1050 = vmatmul.mubr.bf16.vlgmr.msra.gmra.mrb[4].mxu1 %v2122_v44  ;;  %v617_v40 = vrot.slane %v2132_v37, %v616_v35  ;;  %v625_v41 = vrot.slane %v2132_v37, %v624_v36  ;;  %v621_v42 = vrot.slane %v2132_v37, %v620_v38 }
 0x264   : > { %1061 = vmatpush1.bf16.msra.mxu0 %v1477_v25  ;;  %1104 = vmatpush1.bf16.msra.mxu1 %v1479_v26  ;;  %v607_v25 = vld [vmem:[#allocation9 + $0x1d8] sm:$0xff]  ;;  %v629_v43 = vrot.slane %v2132_v37, %v628_v39 }
 0x265   : > { %1062 = vmatprep.subr.bf16.mxu0 %v1486_v45  ;;  %1105 = vmatprep.subr.bf16.mxu1 %v1488_v46  ;;  %v611_v26 = vld [vmem:[#allocation9 + $0x1f8] sm:$0xff] }
 0x266   : > { %1092 = vmatprep.mubr.bf16.mxu0 %v1883_v28  ;;  %1135 = vmatprep.mubr.bf16.mxu1 %v1883_v28  ;;  %v1527_v28 = vcombine.low %v599_v17, %v603_v18  ;;  %v1536_v30 = vcombine.high %v607_v25, %v611_v26  ;;  %v1535_v32 = vcombine.low %v607_v25, %v611_v26 }
 0x268   : > { %1063 = vmatpush1.bf16.msra.mxu0 %v1485_v51  ;;  %1106 = vmatpush1.bf16.msra.mxu1 %v1487_v52 }
 0x269   : > { %1064 = vmatprep.subr.bf16.mxu0 %v1494_v53  ;;  %1107 = vmatprep.subr.bf16.mxu1 %v1496_v54 }
 0x26c   : > { %1065 = vmatpush1.bf16.msra.mxu0 %v1493_v59  ;;  %1108 = vmatpush1.bf16.msra.mxu1 %v1495_v60 }
 0x26d   : > { %1066 = vmatprep.subr.bf16.mxu0 %v1502_v61  ;;  %1109 = vmatprep.subr.bf16.mxu1 %v1504_v62 }
 0x270   : > { %1067 = vmatpush1.bf16.msra.mxu0 %v1501_v3  ;;  %1110 = vmatpush1.bf16.msra.mxu1 %v1503_v4 }
 0x271   : > { %1068 = vmatprep.subr.bf16.mxu0 %v1510_v5  ;;  %1111 = vmatprep.subr.bf16.mxu1 %v1512_v6 }
 0x274   : > { %1069 = vmatpush1.bf16.msra.mxu0 %v1509_v11  ;;  %1112 = vmatpush1.bf16.msra.mxu1 %v1511_v12 }
 0x275   : > { %1070 = vmatprep.subr.bf16.mxu0 %v1518_v13  ;;  %1113 = vmatprep.subr.bf16.mxu1 %v1520_v14 }
 0x278   : > { %1071 = vmatpush1.bf16.msra.mxu0 %v1517_v19  ;;  %1114 = vmatpush1.bf16.msra.mxu1 %v1519_v20 }
 0x279   : > { %1072 = vmatprep.subr.bf16.mxu0 %v1526_v21  ;;  %1115 = vmatprep.subr.bf16.mxu1 %v1528_v22 }
 0x27c   : > { %1073 = vmatpush1.bf16.msra.mxu0 %v1525_v27  ;;  %1116 = vmatpush1.bf16.msra.mxu1 %v1527_v28 }
 0x27d   : > { %1074 = vmatprep.subr.bf16.mxu0 %v1534_v29  ;;  %1117 = vmatprep.subr.bf16.mxu1 %v1536_v30 }
 0x280   : > { %1075 = vmatpush1.bf16.msra.mxu0 %v1533_v31  ;;  %1118 = vmatpush1.bf16.msra.mxu1 %v1535_v32 }
 0x283   : > { %1093 = vmatmul.mubr.bf16.vlgmr.msra.gmra.mrb[8].mxu0 %v2122_v44  ;;  %1136 = vmatmul.mubr.bf16.vlgmr.msra.gmra.mrb[8].mxu1 %v2122_v44 }
 0x336   : > { %v1008_v44 = vpop.f32.mrb[4].mxu0  ;;  %v1051_v45 = vpop.f32.mrb[4].mxu1 }
 0x337   : > { %v1009_v46 = vadd.f32 %v1008_v44, %v617_v40  ;;  %v1052_v47 = vadd.f32 %v1051_v45, %v625_v41  ;;  %v1010_v48 = vpop.f32.mrb[5].mxu0  ;;  %v1053_v49 = vpop.f32.mrb[5].mxu1  ;;  %v2143_v44 = vsub.s32 %v1270_v33, %v2128_v34 }
 0x338   : > { %v1011_v50 = vadd.f32 %v1010_v48, %v621_v42  ;;  %v1054_v51 = vadd.f32 %v1053_v49, %v629_v43  ;;  %v1012_v52 = vpop.f32.mrb[6].mxu0  ;;  %v1055_v53 = vpop.f32.mrb[6].mxu1  ;;  %v632_v48 = vsub.s32 4, %v2128_v34  ;;  %v640_v49 = vsub.s32 6, %v2128_v34 }
 0x339   : > { %vm1146_vm8 = vcmp.gt.f32.partialorder %v1009_v46, 0.0  ;;  %v1162_v54 = vmul.f32 0.2, %v1009_v46  ;;  %vm1148_vm9 = vcmp.gt.f32.partialorder %v1052_v47, 0.0  ;;  %v1164_v55 = vmul.f32 0.2, %v1052_v47 }
 0x33a   : > { %vm1147_vm10 = vcmp.gt.f32.partialorder %v1011_v50, 0.0  ;;  %v1163_v56 = vmul.f32 0.2, %v1011_v50  ;;  %vm1149_vm11 = vcmp.gt.f32.partialorder %v1054_v51, 0.0  ;;  %v1165_v57 = vmul.f32 0.2, %v1054_v51 }
 0x33b   : > { %v1013_v58 = vadd.f32 %v1012_v52, %v617_v40  ;;  %v1056_v59 = vadd.f32 %v1055_v53, %v625_v41  ;;  %v1014_v60 = vpop.f32.mrb[7].mxu0  ;;  %v1057_v61 = vpop.f32.mrb[7].mxu1  ;;  %v1178_v62 = vsel %vm1146_vm8, %v1009_v46, %v1162_v54  ;;  %v1180_v63 = vsel %vm1148_vm9, %v1052_v47, %v1164_v55 }
 0x33c   : > { %v1015_v0 = vadd.f32 %v1014_v60, %v621_v42  ;;  %v1058_v1 = vadd.f32 %v1057_v61, %v629_v43  ;;  %v1179_v6 = vsel %vm1147_vm10, %v1011_v50, %v1163_v56  ;;  %v1181_v7 = vsel %vm1149_vm11, %v1054_v51, %v1165_v57 }
 0x33d   : > { %vm1154_vm12 = vcmp.gt.f32.partialorder %v1013_v58, 0.0  ;;  %v1170_v2 = vmul.f32 0.2, %v1013_v58  ;;  %vm1156_vm13 = vcmp.gt.f32.partialorder %v1056_v59, 0.0  ;;  %v1172_v3 = vmul.f32 0.2, %v1056_v59 }
 0x33e   : > { %vm1155_vm14 = vcmp.gt.f32.partialorder %v1015_v0, 0.0  ;;  %v1171_v4 = vmul.f32 0.2, %v1015_v0  ;;  %vm1157_vm15 = vcmp.gt.f32.partialorder %v1058_v1, 0.0  ;;  %v1173_v5 = vmul.f32 0.2, %v1058_v1 }
 0x33f   : > { %v1186_v8 = vsel %vm1154_vm12, %v1013_v58, %v1170_v2  ;;  %v1188_v9 = vsel %vm1156_vm13, %v1056_v59, %v1172_v3  ;;  %v636_v50 = vsub.s32 5, %v2128_v34  ;;  %v644_v51 = vsub.s32 7, %v2128_v34 }
 0x340   : > { %v1200_v10 = vadd.f32 %v1186_v8, %v1178_v62  ;;  %v1214_v11 = vadd.f32 %v1188_v9, %v1180_v63  ;;  %v1187_v12 = vsel %vm1155_vm14, %v1015_v0, %v1171_v4  ;;  %v1189_v13 = vsel %vm1157_vm15, %v1058_v1, %v1173_v5 }
 0x341   : > { %v1207_v14 = vadd.f32 %v1187_v12, %v1179_v6  ;;  %v1221_v15 = vadd.f32 %v1189_v13, %v1181_v7  ;;  %v633_v55 = vrot.slane %v2132_v37, %v632_v48  ;;  %v641_v56 = vrot.slane %v2132_v37, %v640_v49 }
 0x342   : > { %v1201_v16 = vrot.slane %v1200_v10, 4  ;;  %v1215_v17 = vrot.slane %v1214_v11, 4  ;;  %v637_v57 = vrot.slane %v2132_v37, %v636_v50  ;;  %v645_v58 = vrot.slane %v2132_v37, %v644_v51 }
 0x343   : > { %v1208_v18 = vrot.slane %v1207_v14, 4  ;;  %v1222_v19 = vrot.slane %v1221_v15, 4 }
 0x344   : > { %v1202_v20 = vadd.f32 %v1201_v16, %v1200_v10  ;;  %v1216_v21 = vadd.f32 %v1215_v17, %v1214_v11 }
 0x345   : > { %v1209_v22 = vadd.f32 %v1208_v18, %v1207_v14  ;;  %v1223_v25 = vadd.f32 %v1222_v19, %v1221_v15 }
 0x346   : > { %v1203_v26 = vrot.slane %v1202_v20, 2  ;;  %v1217_v27 = vrot.slane %v1216_v21, 2 }
 0x347   : > { %v1210_v28 = vrot.slane %v1209_v22, 2  ;;  %v1224_v29 = vrot.slane %v1223_v25, 2 }
 0x348   : > { %v1204_v30 = vadd.f32 %v1203_v26, %v1202_v20  ;;  %v1218_v31 = vadd.f32 %v1217_v27, %v1216_v21 }
 0x349   : > { %v1211_v32 = vadd.f32 %v1210_v28, %v1209_v22  ;;  %v1225_v35 = vadd.f32 %v1224_v29, %v1223_v25 }
 0x34a   : > { %v1205_v36 = vrot.slane %v1204_v30, 1  ;;  %v1219_v38 = vrot.slane %v1218_v31, 1 }
 0x34b   : > { %v1212_v39 = vrot.slane %v1211_v32, 1  ;;  %v1226_v40 = vrot.slane %v1225_v35, 1 }
 0x34c   : > { %v1206_v41 = vadd.f32 %v1205_v36, %v1204_v30  ;;  %v1220_v42 = vadd.f32 %v1219_v38, %v1218_v31 }
 0x34d   : > { %v1213_v43 = vadd.f32 %v1212_v39, %v1211_v32  ;;  %v1227_v45 = vadd.f32 %v1226_v40, %v1225_v35 }
 0x34f   : > { %v1264_v46 = vcombine.low %v1206_v41, %v1213_v43  ;;  %v1265_v47 = vcombine.low %v1220_v42, %v1227_v45 }
 0x351   : > { %v2150_v52 = vrot.slane %v1264_v46, %v2143_v44  ;;  %v2153_v53 = vrot.slane %v1265_v47, %v2143_v44 }
 0x353   : > { %v1296_v54 = vcombine.low %v2150_v52, %v2153_v53 }
 0x356   : > { %v1094_v59 = vpop.f32.mrb[8].mxu0  ;;  %v1137_v60 = vpop.f32.mrb[8].mxu1 }
 0x357   : > { %v1095_v34 = vadd.f32 %v1094_v59, %v633_v55  ;;  %v1138_v61 = vadd.f32 %v1137_v60, %v641_v56  ;;  %v1096_v62 = vpop.f32.mrb[9].mxu0  ;;  %v1139_v63 = vpop.f32.mrb[9].mxu1 }
 0x358   : > { %v1097_v0 = vadd.f32 %v1096_v62, %v637_v57  ;;  %v1140_v1 = vadd.f32 %v1139_v63, %v645_v58  ;;  %v1098_v2 = vpop.f32.mrb[10].mxu0  ;;  %v1141_v3 = vpop.f32.mrb[10].mxu1  ;;  %v1304_v63 = vrot.slane %v1296_v54, %v2143_v44 }
 0x359   : > { %vm1150_vm0 = vcmp.gt.f32.partialorder %v1095_v34, 0.0  ;;  %v1166_v4 = vmul.f32 0.2, %v1095_v34  ;;  %vm1152_vm1 = vcmp.gt.f32.partialorder %v1138_v61, 0.0  ;;  %v1168_v5 = vmul.f32 0.2, %v1138_v61 }
 0x35a   : > { %vm1151_vm2 = vcmp.gt.f32.partialorder %v1097_v0, 0.0  ;;  %v1167_v6 = vmul.f32 0.2, %v1097_v0  ;;  %vm1153_vm3 = vcmp.gt.f32.partialorder %v1140_v1, 0.0  ;;  %v1169_v7 = vmul.f32 0.2, %v1140_v1 }
 0x35b   : > { %v1099_v8 = vadd.f32 %v1098_v2, %v633_v55  ;;  %v1142_v37 = vadd.f32 %v1141_v3, %v641_v56  ;;  %v1100_v9 = vpop.f32.mrb[11].mxu0  ;;  %v1143_v10 = vpop.f32.mrb[11].mxu1  ;;  %v1182_v11 = vsel %vm1150_vm0, %v1095_v34, %v1166_v4  ;;  %v1184_v12 = vsel %vm1152_vm1, %v1138_v61, %v1168_v5 }
 0x35c   : > { %v1101_v13 = vadd.f32 %v1100_v9, %v637_v57  ;;  %v1144_v14 = vadd.f32 %v1143_v10, %v645_v58  ;;  %v1183_v19 = vsel %vm1151_vm2, %v1097_v0, %v1167_v6  ;;  %v1185_v20 = vsel %vm1153_vm3, %v1140_v1, %v1169_v7 }
 0x35d   : > { %vm1158_vm4 = vcmp.gt.f32.partialorder %v1099_v8, 0.0  ;;  %v1174_v15 = vmul.f32 0.2, %v1099_v8  ;;  %vm1160_vm5 = vcmp.gt.f32.partialorder %v1142_v37, 0.0  ;;  %v1176_v16 = vmul.f32 0.2, %v1142_v37 }
 0x35e   : > { %vm1159_vm6 = vcmp.gt.f32.partialorder %v1101_v13, 0.0  ;;  %v1175_v17 = vmul.f32 0.2, %v1101_v13  ;;  %vm1161_vm7 = vcmp.gt.f32.partialorder %v1144_v14, 0.0  ;;  %v1177_v18 = vmul.f32 0.2, %v1144_v14 }
 0x35f   : > { %v1190_v21 = vsel %vm1158_vm4, %v1099_v8, %v1174_v15  ;;  %v1192_v22 = vsel %vm1160_vm5, %v1142_v37, %v1176_v16 }
 0x360   : > { %v1228_v23 = vadd.f32 %v1190_v21, %v1182_v11  ;;  %v1242_v24 = vadd.f32 %v1192_v22, %v1184_v12  ;;  %v1191_v25 = vsel %vm1159_vm6, %v1101_v13, %v1175_v17  ;;  %v1193_v26 = vsel %vm1161_vm7, %v1144_v14, %v1177_v18 }
 0x361   : > { %v1235_v27 = vadd.f32 %v1191_v25, %v1183_v19  ;;  %v1249_v28 = vadd.f32 %v1193_v26, %v1185_v20 }
 0x362   : > { %v1229_v29 = vrot.slane %v1228_v23, 4  ;;  %v1243_v30 = vrot.slane %v1242_v24, 4 }
 0x363   : > { %v1236_v31 = vrot.slane %v1235_v27, 4  ;;  %v1250_v32 = vrot.slane %v1249_v28, 4 }
 0x364   : > { %v1230_v33 = vadd.f32 %v1229_v29, %v1228_v23  ;;  %v1244_v35 = vadd.f32 %v1243_v30, %v1242_v24 }
 0x365   : > { %v1237_v36 = vadd.f32 %v1236_v31, %v1235_v27  ;;  %v1251_v38 = vadd.f32 %v1250_v32, %v1249_v28 }
 0x366   : > { %v1231_v39 = vrot.slane %v1230_v33, 2  ;;  %v1245_v40 = vrot.slane %v1244_v35, 2 }
 0x367   : > { %v1238_v41 = vrot.slane %v1237_v36, 2  ;;  %v1252_v42 = vrot.slane %v1251_v38, 2 }
 0x368   : > { %v1232_v43 = vadd.f32 %v1231_v39, %v1230_v33  ;;  %v1246_v45 = vadd.f32 %v1245_v40, %v1244_v35 }
 0x369   : > { %v1239_v46 = vadd.f32 %v1238_v41, %v1237_v36  ;;  %v1253_v47 = vadd.f32 %v1252_v42, %v1251_v38 }
 0x36a   : > { %v1233_v48 = vrot.slane %v1232_v43, 1  ;;  %v1247_v49 = vrot.slane %v1246_v45, 1 }
 0x36b   : > { %v1240_v50 = vrot.slane %v1239_v46, 1  ;;  %v1254_v51 = vrot.slane %v1253_v47, 1 }
 0x36c   : > { %v1234_v55 = vadd.f32 %v1233_v48, %v1232_v43  ;;  %v1248_v56 = vadd.f32 %v1247_v49, %v1246_v45 }
 0x36d   : > { %v1241_v57 = vadd.f32 %v1240_v50, %v1239_v46  ;;  %v1255_v58 = vadd.f32 %v1254_v51, %v1253_v47 }
 0x36f   : > { %v1266_v59 = vcombine.low %v1234_v55, %v1241_v57  ;;  %v1267_v60 = vcombine.low %v1248_v56, %v1255_v58 }
 0x371   : > { %v1288_v34 = vrot.slane %v1266_v59, %v2143_v44  ;;  %v1295_v61 = vrot.slane %v1267_v60, %v2143_v44 }
 0x373   : > { %v1297_v62 = vcombine.low %v1288_v34, %v1295_v61 }
 0x375   : > { %v1311_v0 = vrot.slane %v1297_v62, %v2143_v44 }
 0x377   : > { %v1312_v1 = vcombine.low %v1304_v63, %v1311_v0 }
 0x379   : > { %1315 = vst [vmem:[%s384_s13] sm:$0xff] %v1312_v1 }
 0x37a PF: > { %s21_s26 = sadd.s32 1, %s1869_s26   ;;  %s2203_s24 = smov %s1865_s25 }
 0x37b   : > { %p18_p8 = scmp.ge.s32.totalorder %s21_s26, 4   ;;  %s2204_s25 = smov %s2206_s12 }
 0x37d   :  { %20 = sbr.rel (!%p18_p8) target bundleno = 5 (0x5), region = 107 }
 0x384   :  { %1335 = vsyncpa [#allocation3], 1 }
 0x385   :  { %1337 = vsyncpa [#allocation3 + $0x1], 1 }
 0x386   :  { %1338 = vsyncpa [#allocation5], 1 }
 0x387   :  { %1339 = vsyncpa [#allocation8], 1 }
 0x388   :  { %1340 = vsyncpa [#allocation11], 1 }

// kernel: model_forward.10
= control target key start
LH: loop header
LB: loop body
LE: loop exit
PB: predicated region body
PF: predicated region fallthrough
CT: control target
= control target key end

     0   :  { %12 = vsyncpa [#allocation3], 0  ;;  %s3969_s0 = inlined_call_operand.vmem [shape: f32[2,1024], index: 0, kind: input, shape index: {}]   ;;  %s3970_s1 = inlined_call_operand.hbm [shape: bf16[1024,512], index: 1, kind: input, shape index: {}]   ;;  %s3971_s2 = inlined_call_operand.hbm [shape: f32[1,512], index: 2, kind: input, shape index: {}]   ;;  %s3972_s3 = inlined_call_operand.hbm [shape: bf16[512,256], index: 3, kind: input, shape index: {}]   ;;  %s3973_s4 = inlined_call_operand.hbm [shape: f32[1,256], index: 4, kind: input, shape index: {}]   ;;  %s3974_s5 = inlined_call_operand.vmem [shape: bf16[256,16], index: 5, kind: input, shape index: {}]   ;;  %s3975_s6 = inlined_call_operand.hbm [shape: f32[1,16], index: 6, kind: input, shape index: {}]   ;;  %s3976_s7 = inlined_call_operand.vmem [shape: f32[2,16], index: 7, kind: output, shape index: {}]  }
   0x1   :  { %13 = vsyncpa [#allocation5], 0 }
   0x2   :  { %14 = vsyncpa [#allocation8], 0  ;;  %s3730_s24 = smov [#allocation4]   ;;  %s3731_s26 = smov [#allocation7]  }
   0x3   :  { %s35_s25 = sshll.u32 %s3730_s24, 4  ;;  %s57_s27 = sshll.u32 %s3731_s26, 4  ;;  %s36_s25 = int_to_ptr.vmem [resolvable:$true] %s35_s25  ;;  %s58_s27 = int_to_ptr.vmem [resolvable:$true] %s57_s27 }
   0x4   :  { %s3614_s30 = scalar_lea.hbm %s3971_s2, 64 }
   0x5   :  { %p3615_p0 = scmp.ne.s32.totalorder %s3971_s2, %s3614_s30  ;;  %p3618_p1 = scmp.lt.u32.totalorder %s3614_s30, %s3971_s2 }
   0x7   :  { %p3620_p2 = pnand %p3618_p1, %p3615_p0 }
   0x9   :  { %3623 = shalt.err (!%p3620_p2)
}
   0xa   :  { %s3624_s12 = scalar_lea.vmem %s36_s25, 64  ;;  %p3629_p4 = scmp.lt.s32.totalorder %s36_s25, %s36_s25 }
   0xb   :  { %p3625_p3 = scmp.ne.s32.totalorder %s36_s25, %s3624_s12  ;;  %p3630_p5 = scmp.lt.s32.totalorder %s3624_s12, %s3624_s12 }
   0xd   :  { %p3631_p6 = por %p3630_p5, %p3629_p4 }
   0xf   :  { %p3632_p7 = pnand %p3631_p6, %p3625_p3 }
  0x11   :  { %3635 = shalt.err (!%p3632_p7)
}
  0x12   :  { %38 = dma.hbm_to_vmem [thread:$0]  %s3971_s2, 64, %s36_s25, [#allocation5]  }
  0x13   :  { %s3636_s17 = scalar_lea.hbm %s3973_s4, 32 }
  0x14   :  { %p3637_p8 = scmp.ne.s32.totalorder %s3973_s4, %s3636_s17  ;;  %p3640_p9 = scmp.lt.u32.totalorder %s3636_s17, %s3973_s4 }
  0x16   :  { %p3642_p10 = pnand %p3640_p9, %p3637_p8 }
  0x18   :  { %3645 = shalt.err (!%p3642_p10)
}
  0x19   :  { %s3646_s22 = scalar_lea.vmem %s58_s27, 32  ;;  %p3651_p12 = scmp.lt.s32.totalorder %s58_s27, %s58_s27 }
  0x1a   :  { %p3647_p11 = scmp.ne.s32.totalorder %s58_s27, %s3646_s22  ;;  %p3652_p13 = scmp.lt.s32.totalorder %s3646_s22, %s3646_s22 }
  0x1c   :  { %p3653_p0 = por %p3652_p13, %p3651_p12 }
  0x1e   :  { %p3654_p1 = pnand %p3653_p0, %p3647_p11 }
  0x20   :  { %3657 = shalt.err (!%p3654_p1)
}
  0x21   :  { %60 = dma.hbm_to_vmem [thread:$0]  %s3973_s4, 32, %s58_s27, [#allocation8]  }
  0x22   :  { %s3732_s24 = smov [#allocation2]   ;;  %s3658_s29 = scalar_lea.hbm %s3970_s1, 32768 }
  0x23   :  { %s22_s25 = sshll.u32 %s3732_s24, 4  ;;  %p3659_p2 = scmp.ne.s32.totalorder %s3970_s1, %s3658_s29  ;;  %s23_s25 = int_to_ptr.vmem [resolvable:$true] %s22_s25 }
  0x24   :  { %p3662_p3 = scmp.lt.u32.totalorder %s3658_s29, %s3970_s1 }
  0x26   :  { %p3664_p4 = pnand %p3662_p3, %p3659_p2 }
  0x28   :  { %3667 = shalt.err (!%p3664_p4)
}
  0x29   :  { %s3668_s11 = scalar_lea.vmem %s23_s25, 32768  ;;  %p3673_p6 = scmp.lt.s32.totalorder %s23_s25, %s23_s25 }
  0x2a   :  { %p3669_p5 = scmp.ne.s32.totalorder %s23_s25, %s3668_s11  ;;  %p3674_p7 = scmp.lt.s32.totalorder %s3668_s11, %s3668_s11 }
  0x2c   :  { %p3675_p8 = por %p3674_p7, %p3673_p6 }
  0x2e   :  { %p3676_p9 = pnand %p3675_p8, %p3669_p5 }
  0x30   :  { %3679 = shalt.err (!%p3676_p9)
}
  0x31   :  { %s3733_s4 = smov 256   ;;  %s3734_s27 = smov 16  }
  0x32   :  { %28 = dma.hbm_to_vmem [thread:$0]  %s3970_s1, 32768, %s23_s25, [#allocation3], %s3733_s4, %s3733_s4, %s3734_s27  }
  0x33   :  { %s3735_s14 = smov [#allocation6]   ;;  %s3680_s18 = scalar_lea.hbm %s3972_s3, 8192 }
  0x34   :  { %s44_s15 = sshll.u32 %s3735_s14, 4  ;;  %p3681_p10 = scmp.ne.s32.totalorder %s3972_s3, %s3680_s18  ;;  %s45_s15 = int_to_ptr.vmem [resolvable:$true] %s44_s15 }
  0x35   :  { %p3684_p11 = scmp.lt.u32.totalorder %s3680_s18, %s3972_s3 }
  0x37   :  { %p3686_p12 = pnand %p3684_p11, %p3681_p10 }
  0x39   :  { %3689 = shalt.err (!%p3686_p12)
}
  0x3a   :  { %s3690_s2 = scalar_lea.vmem %s45_s15, 8192  ;;  %p3695_p0 = scmp.lt.s32.totalorder %s45_s15, %s45_s15 }
  0x3b   :  { %p3691_p13 = scmp.ne.s32.totalorder %s45_s15, %s3690_s2  ;;  %p3696_p1 = scmp.lt.s32.totalorder %s3690_s2, %s3690_s2 }
  0x3d   :  { %p3697_p2 = por %p3696_p1, %p3695_p0 }
  0x3f   :  { %p3698_p3 = pnand %p3697_p2, %p3691_p13 }
  0x41   :  { %3701 = shalt.err (!%p3698_p3)
}
  0x42   :  { %s3736_s1 = smov 128   ;;  %s3737_s23 = smov 8  }
  0x43   :  { %50 = dma.hbm_to_vmem [thread:$0]  %s3972_s3, 8192, %s45_s15, [#allocation5], %s3736_s1, %s3736_s1, %s3737_s23  }
  0x44   :  { %s3738_s26 = smov [#allocation9]   ;;  %s3702_s8 = scalar_lea.hbm %s3975_s6, 16 }
  0x45   :  { %s69_s28 = sshll.u32 %s3738_s26, 4  ;;  %p3703_p4 = scmp.ne.s32.totalorder %s3975_s6, %s3702_s8  ;;  %s70_s28 = int_to_ptr.vmem [resolvable:$true] %s69_s28 }
  0x46   :  { %p3706_p5 = scmp.lt.u32.totalorder %s3702_s8, %s3975_s6 }
  0x48   :  { %p3708_p6 = pnand %p3706_p5, %p3703_p4 }
  0x4a   :  { %3711 = shalt.err (!%p3708_p6)
}
  0x4b   :  { %s3712_s27 = scalar_lea.vmem %s70_s28, 16  ;;  %s3716_s3 = scalar_lea.vmem %s70_s28, 32 }
  0x4c   :  { %p3713_p7 = scmp.ne.s32.totalorder %s70_s28, %s3712_s27  ;;  %p3717_p8 = scmp.lt.s32.totalorder %s70_s28, %s70_s28 }
  0x4d   :  { %p3718_p9 = scmp.lt.s32.totalorder %s3716_s3, %s3712_s27 }
  0x4f   :  { %p3719_p10 = por %p3718_p9, %p3717_p8 }
  0x51   :  { %p3720_p11 = pnand %p3719_p10, %p3713_p7 }
  0x53   :  { %3723 = shalt.err (!%p3720_p11)
}
  0x54   :  { %72 = dma.hbm_to_vmem [thread:$0]  %s3975_s6, 16, %s70_s28, [#allocation8]  }
  0x55   :  { %3724 = dma.done.wait [#allocation3], 32768  }
  0x56   :  { %3725 = vsyncadd [#allocation3], 4294934528 }
  0x57   :  { %3726 = dma.done.wait [#allocation5], 8256  }
  0x58   :  { %3727 = vsyncadd [#allocation5], 4294959040 }
  0x59   :  { %3728 = dma.done.wait [#allocation8], 48  }
  0x5a   :  { %3729 = vsyncadd [#allocation8], 4294967248  ;;  %v3116_v0 = vld [vmem:[#allocation2 + $0x4] ss:$16 sps:$4 sm:$0xff]   ;;  %v3120_v2 = vld [vmem:[#allocation2] ss:$16 sps:$4 sm:$0xff]   ;;  %v97_v38 = vlaneseq }
  0x5b   :  { %v3118_v1 = vld [vmem:[#allocation2 + $0x204] ss:$16 sps:$4 sm:$0xff]   ;;  %1701 = vmatprep.subr.bf16.mxu1 %v3116_v0  ;;  %v3121_v3 = vld [vmem:[#allocation2 + $0x200] ss:$16 sps:$4 sm:$0xff]   ;;  %v3739_v36 = vmov 1983009808  }
  0x5c   :  { %1742 = vmatprep.subr.bf16.mxu0 %v3118_v1  ;;  %v3122_v4 = vld [vmem:[#allocation2 + $0x24] ss:$16 sps:$4 sm:$0xff]   ;;  %1702 = vmatpush1.bf16.msra.mxu1 %v3120_v2  ;;  %v3126_v6 = vld [vmem:[#allocation2 + $0x20] ss:$16 sps:$4 sm:$0xff]   ;;  %v95_v37 = vunpack.c.l.s4 %v3739_v36  ;;  %v3840_v43 = vshrl.u32 %v97_v38, 7  ;;  %vm2706_vm6 = vcmask 123904  }
  0x5d   :  { %1743 = vmatpush1.bf16.msra.mxu0 %v3121_v3  ;;  %v3124_v5 = vld [vmem:[#allocation2 + $0x224] ss:$16 sps:$4 sm:$0xff]   ;;  %1703 = vmatprep.subr.bf16.mxu1 %v3122_v4  ;;  %v3127_v7 = vld [vmem:[#allocation2 + $0x220] ss:$16 sps:$4 sm:$0xff]  }
  0x5e   :  { %1744 = vmatprep.subr.bf16.mxu0 %v3124_v5  ;;  %v3128_v8 = vld [vmem:[#allocation2 + $0x44] ss:$16 sps:$4 sm:$0xff]   ;;  %v3132_v10 = vld [vmem:[#allocation2 + $0x40] ss:$16 sps:$4 sm:$0xff]   ;;  %v96_v42 = vunpack.c.0.s8 %v95_v37  ;;  %v3248_v37 = vld [vmem:[#allocation2 + $0xac] ss:$16 sps:$4 sm:$0xff]  }
  0x5f   :  { %v3130_v9 = vld [vmem:[#allocation2 + $0x244] ss:$16 sps:$4 sm:$0xff]   ;;  %v3133_v11 = vld [vmem:[#allocation2 + $0x240] ss:$16 sps:$4 sm:$0xff]  }
  0x60   :  { %1704 = vmatpush1.bf16.msra.mxu1 %v3126_v6  ;;  %v3134_v12 = vld [vmem:[#allocation2 + $0x64] ss:$16 sps:$4 sm:$0xff]   ;;  %v3138_v14 = vld [vmem:[#allocation2 + $0x60] ss:$16 sps:$4 sm:$0xff]   ;;  %v3843_v49 = vsub.s32 %v96_v42, %v3840_v43  ;;  %v3862_v42 = vld [vmem:[%s3969_s0 + $0x8] sm:$0xff] }
  0x61   :  { %1745 = vmatpush1.bf16.msra.mxu0 %v3127_v7  ;;  %1705 = vmatprep.subr.bf16.mxu1 %v3128_v8  ;;  %v3136_v13 = vld [vmem:[#allocation2 + $0x264] ss:$16 sps:$4 sm:$0xff]   ;;  %v3139_v15 = vld [vmem:[#allocation2 + $0x260] ss:$16 sps:$4 sm:$0xff]  }
  0x62   :  { %1746 = vmatprep.subr.bf16.mxu0 %v3130_v9  ;;  %v3140_v16 = vld [vmem:[#allocation2 + $0x84] ss:$16 sps:$4 sm:$0xff]   ;;  %v3144_v18 = vld [vmem:[#allocation2 + $0x80] ss:$16 sps:$4 sm:$0xff]  }
  0x63   :  { %v3142_v17 = vld [vmem:[#allocation2 + $0x284] ss:$16 sps:$4 sm:$0xff]   ;;  %v3145_v19 = vld [vmem:[#allocation2 + $0x280] ss:$16 sps:$4 sm:$0xff]  }
  0x64   :  { %1706 = vmatpush1.bf16.msra.mxu1 %v3132_v10  ;;  %v3146_v20 = vld [vmem:[#allocation2 + $0xa4] ss:$16 sps:$4 sm:$0xff]   ;;  %v3150_v22 = vld [vmem:[#allocation2 + $0xa0] ss:$16 sps:$4 sm:$0xff]  }
  0x65   :  { %1747 = vmatpush1.bf16.msra.mxu0 %v3133_v11  ;;  %1707 = vmatprep.subr.bf16.mxu1 %v3134_v12  ;;  %v3148_v21 = vld [vmem:[#allocation2 + $0x2a4] ss:$16 sps:$4 sm:$0xff]   ;;  %v3151_v23 = vld [vmem:[#allocation2 + $0x2a0] ss:$16 sps:$4 sm:$0xff]  }
  0x66   :  { %1748 = vmatprep.subr.bf16.mxu0 %v3136_v13  ;;  %v3152_v24 = vld [vmem:[#allocation2 + $0xc4] ss:$16 sps:$4 sm:$0xff]   ;;  %v3156_v26 = vld [vmem:[#allocation2 + $0xc0] ss:$16 sps:$4 sm:$0xff]  }
  0x67   :  { %v3154_v25 = vld [vmem:[#allocation2 + $0x2c4] ss:$16 sps:$4 sm:$0xff]   ;;  %v3157_v27 = vld [vmem:[#allocation2 + $0x2c0] ss:$16 sps:$4 sm:$0xff]  }
  0x68   :  { %1708 = vmatpush1.bf16.msra.mxu1 %v3138_v14  ;;  %v3158_v28 = vld [vmem:[#allocation2 + $0xe4] ss:$16 sps:$4 sm:$0xff]   ;;  %v3162_v30 = vld [vmem:[#allocation2 + $0xe0] ss:$16 sps:$4 sm:$0xff]  }
  0x69   :  { %1749 = vmatpush1.bf16.msra.mxu0 %v3139_v15  ;;  %1709 = vmatprep.subr.bf16.mxu1 %v3140_v16  ;;  %v3160_v29 = vld [vmem:[#allocation2 + $0x2e4] ss:$16 sps:$4 sm:$0xff]   ;;  %v3163_v31 = vld [vmem:[#allocation2 + $0x2e0] ss:$16 sps:$4 sm:$0xff]   ;;  %v3218_v15 = vld [vmem:[#allocation2 + $0xc] ss:$16 sps:$4 sm:$0xff]  }
  0x6a   :  { %1750 = vmatprep.subr.bf16.mxu0 %v3142_v17  ;;  %v3164_v32 = vld [vmem:[#allocation2 + $0x104] ss:$16 sps:$4 sm:$0xff]   ;;  %v3168_v34 = vld [vmem:[#allocation2 + $0x100] ss:$16 sps:$4 sm:$0xff]  }
  0x6b   :  { %v3166_v33 = vld [vmem:[#allocation2 + $0x304] ss:$16 sps:$4 sm:$0xff]   ;;  %v3169_v35 = vld [vmem:[#allocation2 + $0x300] ss:$16 sps:$4 sm:$0xff]  }
  0x6c   :  { %1710 = vmatpush1.bf16.msra.mxu1 %v3144_v18  ;;  %v3170_v39 = vld [vmem:[#allocation2 + $0x124] ss:$16 sps:$4 sm:$0xff]   ;;  %v3174_v41 = vld [vmem:[#allocation2 + $0x120] ss:$16 sps:$4 sm:$0xff]  }
  0x6d   :  { %1751 = vmatpush1.bf16.msra.mxu0 %v3145_v19  ;;  %1711 = vmatprep.subr.bf16.mxu1 %v3146_v20  ;;  %v3172_v40 = vld [vmem:[#allocation2 + $0x324] ss:$16 sps:$4 sm:$0xff]   ;;  %v3175_v44 = vld [vmem:[#allocation2 + $0x320] ss:$16 sps:$4 sm:$0xff]   ;;  %v3216_v19 = vld [vmem:[#allocation2 + $0x8] ss:$16 sps:$4 sm:$0xff]  }
  0x6e   :  { %1752 = vmatprep.subr.bf16.mxu0 %v3148_v21  ;;  %v3176_v45 = vld [vmem:[#allocation2 + $0x144] ss:$16 sps:$4 sm:$0xff]   ;;  %v3180_v47 = vld [vmem:[#allocation2 + $0x140] ss:$16 sps:$4 sm:$0xff]   ;;  %v3224_v21 = vld [vmem:[#allocation2 + $0x2c] ss:$16 sps:$4 sm:$0xff]  }
  0x6f   :  { %v3178_v46 = vld [vmem:[#allocation2 + $0x344] ss:$16 sps:$4 sm:$0xff]   ;;  %v3181_v48 = vld [vmem:[#allocation2 + $0x340] ss:$16 sps:$4 sm:$0xff]  }
  0x70   :  { %1712 = vmatpush1.bf16.msra.mxu1 %v3150_v22  ;;  %v3182_v50 = vld [vmem:[#allocation2 + $0x164] ss:$16 sps:$4 sm:$0xff]   ;;  %v3186_v53 = vld [vmem:[#allocation2 + $0x160] ss:$16 sps:$4 sm:$0xff]  }
  0x71   :  { %1753 = vmatpush1.bf16.msra.mxu0 %v3151_v23  ;;  %1713 = vmatprep.subr.bf16.mxu1 %v3152_v24  ;;  %v3184_v51 = vld [vmem:[#allocation2 + $0x364] ss:$16 sps:$4 sm:$0xff]   ;;  %v3187_v56 = vld [vmem:[#allocation2 + $0x360] ss:$16 sps:$4 sm:$0xff]   ;;  %v3222_v23 = vld [vmem:[#allocation2 + $0x28] ss:$16 sps:$4 sm:$0xff]  }
  0x72   :  { %1754 = vmatprep.subr.bf16.mxu0 %v3154_v25  ;;  %v89_v52 = vld [vmem:[%s3969_s0] sm:$0xff]  ;;  %v3230_v25 = vld [vmem:[#allocation2 + $0x4c] ss:$16 sps:$4 sm:$0xff]  }
  0x73   :  { %v100_v54 = vrot.slane %v89_v52, %v3843_v49  ;;  %v93_v55 = vcombine.high %v89_v52, %v89_v52  ;;  %v3188_v57 = vld [vmem:[#allocation2 + $0x184] ss:$16 sps:$4 sm:$0xff]   ;;  %v3192_v61 = vld [vmem:[#allocation2 + $0x180] ss:$16 sps:$4 sm:$0xff]  }
  0x74   :  { %1714 = vmatpush1.bf16.msra.mxu1 %v3156_v26  ;;  %v3190_v58 = vld [vmem:[#allocation2 + $0x384] ss:$16 sps:$4 sm:$0xff]   ;;  %v3193_v0 = vld [vmem:[#allocation2 + $0x380] ss:$16 sps:$4 sm:$0xff]  }
  0x75   :  { %1755 = vmatpush1.bf16.msra.mxu0 %v3157_v27  ;;  %1715 = vmatprep.subr.bf16.mxu1 %v3158_v28  ;;  %v108_v59 = vcombine.high %v100_v54, %v100_v54  ;;  %v107_v60 = vrot.slane %v93_v55, %v3843_v49  ;;  %v3194_v1 = vld [vmem:[#allocation2 + $0x1a4] ss:$16 sps:$4 sm:$0xff]   ;;  %v3198_v4 = vld [vmem:[#allocation2 + $0x1a0] ss:$16 sps:$4 sm:$0xff]   ;;  %v3853_v16 = vpack.c.bf16 %v100_v54, %v100_v54  ;;  %v3228_v27 = vld [vmem:[#allocation2 + $0x48] ss:$16 sps:$4 sm:$0xff]  }
  0x76   :  { %1756 = vmatprep.subr.bf16.mxu0 %v3160_v29  ;;  %v3196_v2 = vld [vmem:[#allocation2 + $0x3a4] ss:$16 sps:$4 sm:$0xff]   ;;  %v3199_v5 = vld [vmem:[#allocation2 + $0x3a0] ss:$16 sps:$4 sm:$0xff]   ;;  %v3236_v29 = vld [vmem:[#allocation2 + $0x6c] ss:$16 sps:$4 sm:$0xff]  }
  0x77   :  { %v136_v62 = vpack.c.bf16 %v108_v59, %v108_v59  ;;  %v109_v63 = vcombine.high %v107_v60, %v107_v60  ;;  %v3200_v6 = vld [vmem:[#allocation2 + $0x1c4] ss:$16 sps:$4 sm:$0xff]   ;;  %v3204_v8 = vld [vmem:[#allocation2 + $0x1c0] ss:$16 sps:$4 sm:$0xff]   ;;  %v3855_v18 = vpack.c.bf16 %v107_v60, %v107_v60  ;;  %v3266_v55 = vld [vmem:[#allocation2 + $0x10c] ss:$16 sps:$4 sm:$0xff]  }
  0x78   :  { %1716 = vmatpush1.bf16.msra.mxu1 %v3162_v30  ;;  %v3202_v7 = vld [vmem:[#allocation2 + $0x3c4] ss:$16 sps:$4 sm:$0xff]   ;;  %v3205_v9 = vld [vmem:[#allocation2 + $0x3c0] ss:$16 sps:$4 sm:$0xff]   ;;  %v3272_v59 = vld [vmem:[#allocation2 + $0x12c] ss:$16 sps:$4 sm:$0xff]  }
  0x79   :  { %1757 = vmatpush1.bf16.msra.mxu0 %v3163_v31  ;;  %1717 = vmatprep.subr.bf16.mxu1 %v3164_v32  ;;  %v3850_v3 = vpack.c.bf16 %v109_v63, %v109_v63  ;;  %v3206_v10 = vld [vmem:[#allocation2 + $0x1e4] ss:$16 sps:$4 sm:$0xff]   ;;  %v3210_v12 = vld [vmem:[#allocation2 + $0x1e0] ss:$16 sps:$4 sm:$0xff]   ;;  %v3234_v31 = vld [vmem:[#allocation2 + $0x68] ss:$16 sps:$4 sm:$0xff]  }
  0x7a   :  { %1758 = vmatprep.subr.bf16.mxu0 %v3166_v33  ;;  %1733 = vmatprep.mubr.bf16.mxu1 %v136_v62  ;;  %v3208_v11 = vld [vmem:[#allocation2 + $0x3e4] ss:$16 sps:$4 sm:$0xff]   ;;  %v3211_v13 = vld [vmem:[#allocation2 + $0x3e0] ss:$16 sps:$4 sm:$0xff]   ;;  %v3242_v33 = vld [vmem:[#allocation2 + $0x8c] ss:$16 sps:$4 sm:$0xff]  }
  0x7b   :  { %1774 = vmatprep.mubr.bf16.mxu0 %v3850_v3  ;;  %v3215_v14 = vld [vmem:[#allocation2 + $0x404] ss:$16 sps:$4 sm:$0xff]   ;;  %v3213_v17 = vld [vmem:[#allocation2 + $0x400] ss:$16 sps:$4 sm:$0xff]   ;;  %v3278_v63 = vld [vmem:[#allocation2 + $0x14c] ss:$16 sps:$4 sm:$0xff]  }
  0x7c   :  { %1718 = vmatpush1.bf16.msra.mxu1 %v3168_v34  ;;  %v3221_v20 = vld [vmem:[#allocation2 + $0x424] ss:$16 sps:$4 sm:$0xff]   ;;  %v3219_v22 = vld [vmem:[#allocation2 + $0x420] ss:$16 sps:$4 sm:$0xff]  }
  0x7d   :  { %1759 = vmatpush1.bf16.msra.mxu0 %v3169_v35  ;;  %1719 = vmatprep.subr.bf16.mxu1 %v3170_v39  ;;  %v3227_v24 = vld [vmem:[#allocation2 + $0x444] ss:$16 sps:$4 sm:$0xff]   ;;  %v3225_v26 = vld [vmem:[#allocation2 + $0x440] ss:$16 sps:$4 sm:$0xff]   ;;  %v3240_v35 = vld [vmem:[#allocation2 + $0x88] ss:$16 sps:$4 sm:$0xff]  }
  0x7e   :  { %1760 = vmatprep.subr.bf16.mxu0 %v3172_v40  ;;  %v3233_v28 = vld [vmem:[#allocation2 + $0x464] ss:$16 sps:$4 sm:$0xff]   ;;  %v3231_v30 = vld [vmem:[#allocation2 + $0x460] ss:$16 sps:$4 sm:$0xff]   ;;  %v3246_v39 = vld [vmem:[#allocation2 + $0xa8] ss:$16 sps:$4 sm:$0xff]  }
  0x7f   :  { %v3239_v32 = vld [vmem:[#allocation2 + $0x484] ss:$16 sps:$4 sm:$0xff]   ;;  %v3237_v34 = vld [vmem:[#allocation2 + $0x480] ss:$16 sps:$4 sm:$0xff]  }
  0x80   :  { %1720 = vmatpush1.bf16.msra.mxu1 %v3174_v41  ;;  %v3245_v36 = vld [vmem:[#allocation2 + $0x4a4] ss:$16 sps:$4 sm:$0xff]   ;;  %v3243_v38 = vld [vmem:[#allocation2 + $0x4a0] ss:$16 sps:$4 sm:$0xff]   ;;  %v3254_v41 = vld [vmem:[#allocation2 + $0xcc] ss:$16 sps:$4 sm:$0xff]  }
  0x81   :  { %1761 = vmatpush1.bf16.msra.mxu0 %v3175_v44  ;;  %1721 = vmatprep.subr.bf16.mxu1 %v3176_v45  ;;  %v3251_v40 = vld [vmem:[#allocation2 + $0x4c4] ss:$16 sps:$4 sm:$0xff]   ;;  %v3866_v44 = vrot.slane %v3862_v42, %v3843_v49  ;;  %v3249_v45 = vld [vmem:[#allocation2 + $0x4c0] ss:$16 sps:$4 sm:$0xff]  }
  0x82   :  { %1762 = vmatprep.subr.bf16.mxu0 %v3178_v46  ;;  %v3252_v46 = vld [vmem:[#allocation2 + $0xc8] ss:$16 sps:$4 sm:$0xff]   ;;  %v3255_v52 = vld [vmem:[#allocation2 + $0x4e0] ss:$16 sps:$4 sm:$0xff]   ;;  %v3263_v54 = vld [vmem:[#allocation2 + $0x504] ss:$16 sps:$4 sm:$0xff]  }
  0x83   :  { %v3267_v60 = vld [vmem:[#allocation2 + $0x520] ss:$16 sps:$4 sm:$0xff]  }
  0x84   :  { %1722 = vmatpush1.bf16.msra.mxu1 %v3180_v47  ;;  %v125_v47 = vcombine.high %v3866_v44, %v3866_v44 }
  0x85   :  { %1763 = vmatpush1.bf16.msra.mxu0 %v3181_v48  ;;  %1723 = vmatprep.subr.bf16.mxu1 %v3182_v50  ;;  %v3257_v48 = vld [vmem:[#allocation2 + $0x4e4] ss:$16 sps:$4 sm:$0xff]   ;;  %v3260_v50 = vld [vmem:[#allocation2 + $0xec] ss:$16 sps:$4 sm:$0xff]  }
  0x86   :  { %1764 = vmatprep.subr.bf16.mxu0 %v3184_v51  ;;  %v3870_v51 = vpack.c.bf16 %v125_v47, %v125_v47  ;;  %v3333_v47 = vld [vmem:[#allocation2 + $0x680] ss:$16 sps:$4 sm:$0xff]  }
  0x88   :  { %1724 = vmatpush1.bf16.msra.mxu1 %v3186_v53  ;;  %v3258_v53 = vld [vmem:[#allocation2 + $0xe8] ss:$16 sps:$4 sm:$0xff]  }
  0x89   :  { %1765 = vmatpush1.bf16.msra.mxu0 %v3187_v56  ;;  %1725 = vmatprep.subr.bf16.mxu1 %v3188_v57  ;;  %v3261_v56 = vld [vmem:[#allocation2 + $0x500] ss:$16 sps:$4 sm:$0xff]   ;;  %v3264_v57 = vld [vmem:[#allocation2 + $0x108] ss:$16 sps:$4 sm:$0xff]  }
  0x8a   :  { %1766 = vmatprep.subr.bf16.mxu0 %v3190_v58  ;;  %v3269_v58 = vld [vmem:[#allocation2 + $0x524] ss:$16 sps:$4 sm:$0xff]  }
  0x8c   :  { %1726 = vmatpush1.bf16.msra.mxu1 %v3192_v61  ;;  %v3270_v61 = vld [vmem:[#allocation2 + $0x128] ss:$16 sps:$4 sm:$0xff]  }
  0x8d   :  { %1767 = vmatpush1.bf16.msra.mxu0 %v3193_v0  ;;  %1727 = vmatprep.subr.bf16.mxu1 %v3194_v1  ;;  %v3273_v0 = vld [vmem:[#allocation2 + $0x540] ss:$16 sps:$4 sm:$0xff]   ;;  %v3276_v1 = vld [vmem:[#allocation2 + $0x148] ss:$16 sps:$4 sm:$0xff]  }
  0x8e   :  { %1768 = vmatprep.subr.bf16.mxu0 %v3196_v2  ;;  %v3281_v2 = vld [vmem:[#allocation2 + $0x564] ss:$16 sps:$4 sm:$0xff]  }
  0x90   :  { %1728 = vmatpush1.bf16.msra.mxu1 %v3198_v4  ;;  %v3284_v4 = vld [vmem:[#allocation2 + $0x16c] ss:$16 sps:$4 sm:$0xff]  }
  0x91   :  { %1769 = vmatpush1.bf16.msra.mxu0 %v3199_v5  ;;  %1729 = vmatprep.subr.bf16.mxu1 %v3200_v6  ;;  %v3279_v5 = vld [vmem:[#allocation2 + $0x560] ss:$16 sps:$4 sm:$0xff]   ;;  %v3282_v6 = vld [vmem:[#allocation2 + $0x168] ss:$16 sps:$4 sm:$0xff]  }
  0x92   :  { %1770 = vmatprep.subr.bf16.mxu0 %v3202_v7  ;;  %v3287_v7 = vld [vmem:[#allocation2 + $0x584] ss:$16 sps:$4 sm:$0xff]  }
  0x94   :  { %1730 = vmatpush1.bf16.msra.mxu1 %v3204_v8  ;;  %v3290_v8 = vld [vmem:[#allocation2 + $0x18c] ss:$16 sps:$4 sm:$0xff]  }
  0x95   :  { %1771 = vmatpush1.bf16.msra.mxu0 %v3205_v9  ;;  %1731 = vmatprep.subr.bf16.mxu1 %v3206_v10  ;;  %v3285_v9 = vld [vmem:[#allocation2 + $0x580] ss:$16 sps:$4 sm:$0xff]   ;;  %v3288_v10 = vld [vmem:[#allocation2 + $0x188] ss:$16 sps:$4 sm:$0xff]  }
  0x96   :  { %1772 = vmatprep.subr.bf16.mxu0 %v3208_v11  ;;  %v3293_v11 = vld [vmem:[#allocation2 + $0x5a4] ss:$16 sps:$4 sm:$0xff]  }
  0x98   :  { %1732 = vmatpush1.bf16.msra.mxu1 %v3210_v12  ;;  %v3296_v12 = vld [vmem:[#allocation2 + $0x1ac] ss:$16 sps:$4 sm:$0xff]  }
  0x99   :  { %1773 = vmatpush1.bf16.msra.mxu0 %v3211_v13  ;;  %1865 = vmatprep.subr.bf16.mxu1 %v3218_v15  ;;  %v3291_v13 = vld [vmem:[#allocation2 + $0x5a0] ss:$16 sps:$4 sm:$0xff]   ;;  %v3299_v15 = vld [vmem:[#allocation2 + $0x5c4] ss:$16 sps:$4 sm:$0xff]  }
  0x9a   :  { %1783 = vmatprep.subr.bf16.mxu0 %v3215_v14  ;;  %v3294_v14 = vld [vmem:[#allocation2 + $0x1a8] ss:$16 sps:$4 sm:$0xff]  }
  0x9b   :  { %1734 = vmatmul.mubr.bf16.vlgmr.msra.gmra.mrb[0].mxu1 %v3853_v16 }
  0x9c   :  { %1775 = vmatmul.mubr.bf16.vlgmr.msra.gmra.mrb[0].mxu0 %v3855_v18  ;;  %1866 = vmatpush1.bf16.msra.mxu1 %v3216_v19  ;;  %v110_v19 = vcombine.high %v3862_v42, %v3862_v42  ;;  %v3327_v42 = vld [vmem:[#allocation2 + $0x660] ss:$16 sps:$4 sm:$0xff]  }
  0x9d   :  { %1784 = vmatpush1.bf16.msra.mxu0 %v3213_v17  ;;  %1867 = vmatprep.subr.bf16.mxu1 %v3224_v21  ;;  %v3302_v17 = vld [vmem:[#allocation2 + $0x1cc] ss:$16 sps:$4 sm:$0xff]   ;;  %v3300_v21 = vld [vmem:[#allocation2 + $0x1c8] ss:$16 sps:$4 sm:$0xff]  }
  0x9e   :  { %1785 = vmatprep.subr.bf16.mxu0 %v3221_v20  ;;  %1897 = vmatprep.mubr.bf16.mxu1 %v136_v62  ;;  %v3275_v62 = vld [vmem:[#allocation2 + $0x544] ss:$16 sps:$4 sm:$0xff]   ;;  %v3297_v20 = vld [vmem:[#allocation2 + $0x5c0] ss:$16 sps:$4 sm:$0xff]  }
  0x9f   :  { %1815 = vmatprep.mubr.bf16.mxu0 %v3870_v51 }
  0xa0   :  { %1868 = vmatpush1.bf16.msra.mxu1 %v3222_v23  ;;  %v3308_v23 = vld [vmem:[#allocation2 + $0x1ec] ss:$16 sps:$4 sm:$0xff]  }
  0xa1   :  { %1786 = vmatpush1.bf16.msra.mxu0 %v3219_v22  ;;  %1869 = vmatprep.subr.bf16.mxu1 %v3230_v25  ;;  %v3305_v22 = vld [vmem:[#allocation2 + $0x5e4] ss:$16 sps:$4 sm:$0xff]   ;;  %v3303_v25 = vld [vmem:[#allocation2 + $0x5e0] ss:$16 sps:$4 sm:$0xff]  }
  0xa2   :  { %1787 = vmatprep.subr.bf16.mxu0 %v3227_v24  ;;  %v3876_v24 = vrot.slane %v110_v19, %v3843_v49  ;;  %v3312_v49 = vld [vmem:[#allocation2 + $0x208] ss:$16 sps:$4 sm:$0xff]   ;;  %v3381_v19 = vld [vmem:[#allocation2 + $0x780] ss:$16 sps:$4 sm:$0xff]  }
  0xa4   :  { %1870 = vmatpush1.bf16.msra.mxu1 %v3228_v27  ;;  %v3311_v27 = vld [vmem:[#allocation2 + $0x604] ss:$16 sps:$4 sm:$0xff]  }
  0xa5   :  { %1788 = vmatpush1.bf16.msra.mxu0 %v3225_v26  ;;  %1871 = vmatprep.subr.bf16.mxu1 %v3236_v29  ;;  %v3306_v26 = vld [vmem:[#allocation2 + $0x1e8] ss:$16 sps:$4 sm:$0xff]   ;;  %v126_v29 = vcombine.high %v3876_v24, %v3876_v24 }
  0xa6   :  { %1789 = vmatprep.subr.bf16.mxu0 %v3233_v28  ;;  %v3314_v28 = vld [vmem:[#allocation2 + $0x20c] ss:$16 sps:$4 sm:$0xff]  }
  0xa8   :  { %1872 = vmatpush1.bf16.msra.mxu1 %v3234_v31  ;;  %v3309_v31 = vld [vmem:[#allocation2 + $0x600] ss:$16 sps:$4 sm:$0xff]  }
  0xa9   :  { %1790 = vmatpush1.bf16.msra.mxu0 %v3231_v30  ;;  %1873 = vmatprep.subr.bf16.mxu1 %v3242_v33  ;;  %v3882_v30 = vpack.c.bf16 %v3866_v44, %v3866_v44  ;;  %v3320_v33 = vld [vmem:[#allocation2 + $0x22c] ss:$16 sps:$4 sm:$0xff]   ;;  %v3330_v44 = vld [vmem:[#allocation2 + $0x268] ss:$16 sps:$4 sm:$0xff]  }
  0xaa   :  { %1791 = vmatprep.subr.bf16.mxu0 %v3239_v32  ;;  %v3317_v32 = vld [vmem:[#allocation2 + $0x624] ss:$16 sps:$4 sm:$0xff]  }
  0xac   :  { %1874 = vmatpush1.bf16.msra.mxu1 %v3240_v35  ;;  %v3315_v35 = vld [vmem:[#allocation2 + $0x620] ss:$16 sps:$4 sm:$0xff]  }
  0xad   :  { %1792 = vmatpush1.bf16.msra.mxu0 %v3237_v34  ;;  %1875 = vmatprep.subr.bf16.mxu1 %v3248_v37  ;;  %v3884_v34 = vpack.c.bf16 %v126_v29, %v126_v29  ;;  %v3323_v37 = vld [vmem:[#allocation2 + $0x644] ss:$16 sps:$4 sm:$0xff]   ;;  %v3396_v29 = vld [vmem:[#allocation2 + $0x3c8] ss:$16 sps:$4 sm:$0xff]  }
  0xae   :  { %1793 = vmatprep.subr.bf16.mxu0 %v3245_v36  ;;  %v3318_v36 = vld [vmem:[#allocation2 + $0x228] ss:$16 sps:$4 sm:$0xff]  }
  0xb0   :  { %1876 = vmatpush1.bf16.msra.mxu1 %v3246_v39  ;;  %v3321_v39 = vld [vmem:[#allocation2 + $0x640] ss:$16 sps:$4 sm:$0xff]  }
  0xb1   :  { %1794 = vmatpush1.bf16.msra.mxu0 %v3243_v38  ;;  %1877 = vmatprep.subr.bf16.mxu1 %v3254_v41  ;;  %v3326_v38 = vld [vmem:[#allocation2 + $0x24c] ss:$16 sps:$4 sm:$0xff]   ;;  %v3329_v41 = vld [vmem:[#allocation2 + $0x664] ss:$16 sps:$4 sm:$0xff]  }
  0xb2   :  { %1795 = vmatprep.subr.bf16.mxu0 %v3251_v40  ;;  %v3324_v40 = vld [vmem:[#allocation2 + $0x248] ss:$16 sps:$4 sm:$0xff]  }
  0xb4   :  { %1878 = vmatpush1.bf16.msra.mxu1 %v3252_v46  ;;  %v3338_v46 = vld [vmem:[#allocation2 + $0x28c] ss:$16 sps:$4 sm:$0xff]  }
  0xb5   :  { %1796 = vmatpush1.bf16.msra.mxu0 %v3249_v45  ;;  %1879 = vmatprep.subr.bf16.mxu1 %v3260_v50  ;;  %v3335_v45 = vld [vmem:[#allocation2 + $0x684] ss:$16 sps:$4 sm:$0xff]   ;;  %v3344_v50 = vld [vmem:[#allocation2 + $0x2ac] ss:$16 sps:$4 sm:$0xff]  }
  0xb6   :  { %1797 = vmatprep.subr.bf16.mxu0 %v3257_v48  ;;  %v3341_v48 = vld [vmem:[#allocation2 + $0x6a4] ss:$16 sps:$4 sm:$0xff]  }
  0xb8   :  { %1880 = vmatpush1.bf16.msra.mxu1 %v3258_v53  ;;  %v3342_v53 = vld [vmem:[#allocation2 + $0x2a8] ss:$16 sps:$4 sm:$0xff]  }
  0xb9   :  { %1798 = vmatpush1.bf16.msra.mxu0 %v3255_v52  ;;  %1881 = vmatprep.subr.bf16.mxu1 %v3266_v55  ;;  %v3339_v52 = vld [vmem:[#allocation2 + $0x6a0] ss:$16 sps:$4 sm:$0xff]   ;;  %v3350_v55 = vld [vmem:[#allocation2 + $0x2cc] ss:$16 sps:$4 sm:$0xff]  }
  0xba   :  { %1799 = vmatprep.subr.bf16.mxu0 %v3263_v54  ;;  %v3347_v54 = vld [vmem:[#allocation2 + $0x6c4] ss:$16 sps:$4 sm:$0xff]  }
  0xbc   :  { %1882 = vmatpush1.bf16.msra.mxu1 %v3264_v57  ;;  %v3348_v57 = vld [vmem:[#allocation2 + $0x2c8] ss:$16 sps:$4 sm:$0xff]  }
  0xbd   :  { %1800 = vmatpush1.bf16.msra.mxu0 %v3261_v56  ;;  %1883 = vmatprep.subr.bf16.mxu1 %v3272_v59  ;;  %v3345_v56 = vld [vmem:[#allocation2 + $0x6c0] ss:$16 sps:$4 sm:$0xff]   ;;  %v3356_v59 = vld [vmem:[#allocation2 + $0x2ec] ss:$16 sps:$4 sm:$0xff]  }
  0xbe   :  { %1801 = vmatprep.subr.bf16.mxu0 %v3269_v58  ;;  %v3353_v58 = vld [vmem:[#allocation2 + $0x6e4] ss:$16 sps:$4 sm:$0xff]  }
  0xc0   :  { %1884 = vmatpush1.bf16.msra.mxu1 %v3270_v61  ;;  %v3354_v61 = vld [vmem:[#allocation2 + $0x2e8] ss:$16 sps:$4 sm:$0xff]  }
  0xc1   :  { %1802 = vmatpush1.bf16.msra.mxu0 %v3267_v60  ;;  %1885 = vmatprep.subr.bf16.mxu1 %v3278_v63  ;;  %v3351_v60 = vld [vmem:[#allocation2 + $0x6e0] ss:$16 sps:$4 sm:$0xff]   ;;  %v3362_v63 = vld [vmem:[#allocation2 + $0x30c] ss:$16 sps:$4 sm:$0xff]  }
  0xc2   :  { %1803 = vmatprep.subr.bf16.mxu0 %v3275_v62  ;;  %v3359_v62 = vld [vmem:[#allocation2 + $0x704] ss:$16 sps:$4 sm:$0xff]  }
  0xc4   :  { %1886 = vmatpush1.bf16.msra.mxu1 %v3276_v1  ;;  %v3360_v1 = vld [vmem:[#allocation2 + $0x308] ss:$16 sps:$4 sm:$0xff]  }
  0xc5   :  { %1804 = vmatpush1.bf16.msra.mxu0 %v3273_v0  ;;  %1887 = vmatprep.subr.bf16.mxu1 %v3284_v4  ;;  %v3357_v0 = vld [vmem:[#allocation2 + $0x700] ss:$16 sps:$4 sm:$0xff]   ;;  %v3368_v4 = vld [vmem:[#allocation2 + $0x32c] ss:$16 sps:$4 sm:$0xff]  }
  0xc6   :  { %1805 = vmatprep.subr.bf16.mxu0 %v3281_v2  ;;  %v3365_v2 = vld [vmem:[#allocation2 + $0x724] ss:$16 sps:$4 sm:$0xff]  }
  0xc8   :  { %1888 = vmatpush1.bf16.msra.mxu1 %v3282_v6  ;;  %v3366_v6 = vld [vmem:[#allocation2 + $0x328] ss:$16 sps:$4 sm:$0xff]  }
  0xc9   :  { %1806 = vmatpush1.bf16.msra.mxu0 %v3279_v5  ;;  %1889 = vmatprep.subr.bf16.mxu1 %v3290_v8  ;;  %v3363_v5 = vld [vmem:[#allocation2 + $0x720] ss:$16 sps:$4 sm:$0xff]   ;;  %v3374_v8 = vld [vmem:[#allocation2 + $0x34c] ss:$16 sps:$4 sm:$0xff]  }
  0xca   :  { %1807 = vmatprep.subr.bf16.mxu0 %v3287_v7  ;;  %v3371_v7 = vld [vmem:[#allocation2 + $0x744] ss:$16 sps:$4 sm:$0xff]  }
  0xcc   :  { %1890 = vmatpush1.bf16.msra.mxu1 %v3288_v10  ;;  %v3372_v10 = vld [vmem:[#allocation2 + $0x348] ss:$16 sps:$4 sm:$0xff]  }
  0xcd   :  { %1808 = vmatpush1.bf16.msra.mxu0 %v3285_v9  ;;  %1891 = vmatprep.subr.bf16.mxu1 %v3296_v12  ;;  %v3369_v9 = vld [vmem:[#allocation2 + $0x740] ss:$16 sps:$4 sm:$0xff]   ;;  %v3380_v12 = vld [vmem:[#allocation2 + $0x36c] ss:$16 sps:$4 sm:$0xff]  }
  0xce   :  { %1809 = vmatprep.subr.bf16.mxu0 %v3293_v11  ;;  %v3377_v11 = vld [vmem:[#allocation2 + $0x764] ss:$16 sps:$4 sm:$0xff]  }
  0xd0   :  { %1892 = vmatpush1.bf16.msra.mxu1 %v3294_v14  ;;  %v3378_v14 = vld [vmem:[#allocation2 + $0x368] ss:$16 sps:$4 sm:$0xff]  }
  0xd1   :  { %1810 = vmatpush1.bf16.msra.mxu0 %v3291_v13  ;;  %1893 = vmatprep.subr.bf16.mxu1 %v3302_v17  ;;  %v3375_v13 = vld [vmem:[#allocation2 + $0x760] ss:$16 sps:$4 sm:$0xff]   ;;  %v3386_v17 = vld [vmem:[#allocation2 + $0x38c] ss:$16 sps:$4 sm:$0xff]  }
  0xd2   :  { %1811 = vmatprep.subr.bf16.mxu0 %v3299_v15  ;;  %v3383_v15 = vld [vmem:[#allocation2 + $0x784] ss:$16 sps:$4 sm:$0xff]  }
  0xd4   :  { %1894 = vmatpush1.bf16.msra.mxu1 %v3300_v21  ;;  %v3389_v21 = vld [vmem:[#allocation2 + $0x7a4] ss:$16 sps:$4 sm:$0xff]  }
  0xd5   :  { %1812 = vmatpush1.bf16.msra.mxu0 %v3297_v20  ;;  %1895 = vmatprep.subr.bf16.mxu1 %v3308_v23  ;;  %v3384_v20 = vld [vmem:[#allocation2 + $0x388] ss:$16 sps:$4 sm:$0xff]   ;;  %v3387_v23 = vld [vmem:[#allocation2 + $0x7a0] ss:$16 sps:$4 sm:$0xff]  }
  0xd6   :  { %1813 = vmatprep.subr.bf16.mxu0 %v3305_v22  ;;  %v3392_v22 = vld [vmem:[#allocation2 + $0x3ac] ss:$16 sps:$4 sm:$0xff]  }
  0xd8   :  { %1896 = vmatpush1.bf16.msra.mxu1 %v3306_v26  ;;  %v3395_v26 = vld [vmem:[#allocation2 + $0x7c4] ss:$16 sps:$4 sm:$0xff]  }
  0xd9   :  { %1814 = vmatpush1.bf16.msra.mxu0 %v3303_v25  ;;  %1906 = vmatprep.subr.bf16.mxu1 %v3314_v28  ;;  %v3390_v25 = vld [vmem:[#allocation2 + $0x3a8] ss:$16 sps:$4 sm:$0xff]   ;;  %v3393_v28 = vld [vmem:[#allocation2 + $0x7c0] ss:$16 sps:$4 sm:$0xff]  }
  0xda   :  { %1824 = vmatprep.subr.bf16.mxu0 %v3311_v27  ;;  %v3398_v27 = vld [vmem:[#allocation2 + $0x3cc] ss:$16 sps:$4 sm:$0xff]  }
  0xdb   :  { %1898 = vmatmul.mubr.bf16.vlgmr.msra.gmra.mrb[4].mxu1 %v3853_v16  ;;  %v3332_v16 = vld [vmem:[#allocation2 + $0x26c] ss:$16 sps:$4 sm:$0xff]  }
  0xdc   :  { %1816 = vmatmul.mubr.bf16.vlgmr.msra.gmra.mrb[0].mxu0 %v3882_v30  ;;  %1907 = vmatpush1.bf16.msra.mxu1 %v3312_v49  ;;  %v3404_v49 = vld [vmem:[#allocation2 + $0x3ec] ss:$16 sps:$4 sm:$0xff]  }
  0xdd   :  { %1825 = vmatpush1.bf16.msra.mxu0 %v3309_v31  ;;  %1908 = vmatprep.subr.bf16.mxu1 %v3320_v33  ;;  %v3401_v31 = vld [vmem:[#allocation2 + $0x7e4] ss:$16 sps:$4 sm:$0xff]   ;;  %v3402_v33 = vld [vmem:[#allocation2 + $0x3e8] ss:$16 sps:$4 sm:$0xff]  }
  0xde   :  { %1826 = vmatprep.subr.bf16.mxu0 %v3317_v32  ;;  %1856 = vmatprep.mubr.bf16.mxu0 %v3884_v34  ;;  %v3399_v32 = vld [vmem:[#allocation2 + $0x7e0] ss:$16 sps:$4 sm:$0xff]  }
  0xdf   :  { %1938 = vmatprep.mubr.bf16.mxu1 %v3850_v3  ;;  %v3336_v3 = vld [vmem:[#allocation2 + $0x288] ss:$16 sps:$4 sm:$0xff]  }
  0xe0   :  { %1909 = vmatpush1.bf16.msra.mxu1 %v3318_v36  ;;  %v3406_v36 = vld [vmem:[#allocation2 + $0x408] ss:$16 sps:$4 sm:$0xff]  }
  0xe1   :  { %1827 = vmatpush1.bf16.msra.mxu0 %v3315_v35  ;;  %1910 = vmatprep.subr.bf16.mxu1 %v3326_v38  ;;  %v3408_v35 = vld [vmem:[#allocation2 + $0x40c] ss:$16 sps:$4 sm:$0xff]  }
  0xe2   :  { %1828 = vmatprep.subr.bf16.mxu0 %v3323_v37  ;;  %v3892_v37 = vpack.c.bf16 %v3876_v24, %v3876_v24  ;;  %v3411_v38 = vld [vmem:[#allocation2 + $0x42c] ss:$16 sps:$4 sm:$0xff]  }
  0xe3   :  { %v3505_v24 = vld [vmem:[#allocation6 + $0x10] ss:$8 sps:$4 sm:$0xff]  }
  0xe4   :  { %1911 = vmatpush1.bf16.msra.mxu1 %v3324_v40  ;;  %v3504_v40 = vld [vmem:[#allocation6 + $0x4] ss:$8 sps:$4 sm:$0xff]  }
  0xe5   :  { %1829 = vmatpush1.bf16.msra.mxu0 %v3321_v39  ;;  %1912 = vmatprep.subr.bf16.mxu1 %v3332_v16  ;;  %v3502_v39 = vld [vmem:[#allocation6] ss:$8 sps:$4 sm:$0xff]   ;;  %v3507_v16 = vld [vmem:[#allocation6 + $0x14] ss:$8 sps:$4 sm:$0xff]  }
  0xe6   :  { %1830 = vmatprep.subr.bf16.mxu0 %v3329_v41  ;;  %v3409_v41 = vld [vmem:[#allocation2 + $0x428] ss:$16 sps:$4 sm:$0xff]  }
  0xe8   :  { %1913 = vmatpush1.bf16.msra.mxu1 %v3330_v44  ;;  %v3510_v44 = vld [vmem:[#allocation6 + $0x24] ss:$8 sps:$4 sm:$0xff]  }
  0xe9   :  { %1831 = vmatpush1.bf16.msra.mxu0 %v3327_v42  ;;  %1914 = vmatprep.subr.bf16.mxu1 %v3338_v46  ;;  %v3414_v42 = vld [vmem:[#allocation2 + $0x44c] ss:$16 sps:$4 sm:$0xff]  }
  0xea   :  { %1832 = vmatprep.subr.bf16.mxu0 %v3335_v45  ;;  %v3412_v45 = vld [vmem:[#allocation2 + $0x448] ss:$16 sps:$4 sm:$0xff]   ;;  %v3417_v46 = vld [vmem:[#allocation2 + $0x46c] ss:$16 sps:$4 sm:$0xff]  }
  0xec   :  { %1915 = vmatpush1.bf16.msra.mxu1 %v3336_v3  ;;  %v3420_v3 = vld [vmem:[#allocation2 + $0x48c] ss:$16 sps:$4 sm:$0xff]  }
  0xed   :  { %1833 = vmatpush1.bf16.msra.mxu0 %v3333_v47  ;;  %1916 = vmatprep.subr.bf16.mxu1 %v3344_v50  ;;  %v3415_v47 = vld [vmem:[#allocation2 + $0x468] ss:$16 sps:$4 sm:$0xff]  }
  0xee   :  { %1834 = vmatprep.subr.bf16.mxu0 %v3341_v48  ;;  %v3513_v48 = vld [vmem:[#allocation6 + $0x34] ss:$8 sps:$4 sm:$0xff]   ;;  %v3516_v50 = vld [vmem:[#allocation6 + $0x44] ss:$8 sps:$4 sm:$0xff]  }
  0xf0   :  { %1917 = vmatpush1.bf16.msra.mxu1 %v3342_v53  ;;  %v3423_v53 = vld [vmem:[#allocation2 + $0x4ac] ss:$16 sps:$4 sm:$0xff]  }
  0xf1   :  { %1835 = vmatpush1.bf16.msra.mxu0 %v3339_v52  ;;  %1918 = vmatprep.subr.bf16.mxu1 %v3350_v55  ;;  %v3418_v52 = vld [vmem:[#allocation2 + $0x488] ss:$16 sps:$4 sm:$0xff]  }
  0xf2   :  { %1836 = vmatprep.subr.bf16.mxu0 %v3347_v54  ;;  %v3514_v54 = vld [vmem:[#allocation6 + $0x40] ss:$8 sps:$4 sm:$0xff]   ;;  %v3519_v55 = vld [vmem:[#allocation6 + $0x54] ss:$8 sps:$4 sm:$0xff]  }
  0xf4   :  { %1919 = vmatpush1.bf16.msra.mxu1 %v3348_v57  ;;  %v3426_v57 = vld [vmem:[#allocation2 + $0x4cc] ss:$16 sps:$4 sm:$0xff]  }
  0xf5   :  { %1837 = vmatpush1.bf16.msra.mxu0 %v3345_v56  ;;  %1920 = vmatprep.subr.bf16.mxu1 %v3356_v59  ;;  %v3421_v56 = vld [vmem:[#allocation2 + $0x4a8] ss:$16 sps:$4 sm:$0xff]  }
  0xf6   :  { %1838 = vmatprep.subr.bf16.mxu0 %v3353_v58  ;;  %v3517_v58 = vld [vmem:[#allocation6 + $0x50] ss:$8 sps:$4 sm:$0xff]   ;;  %v3522_v59 = vld [vmem:[#allocation6 + $0x64] ss:$8 sps:$4 sm:$0xff]  }
  0xf8   :  { %1921 = vmatpush1.bf16.msra.mxu1 %v3354_v61  ;;  %v3429_v61 = vld [vmem:[#allocation2 + $0x4ec] ss:$16 sps:$4 sm:$0xff]  }
  0xf9   :  { %1839 = vmatpush1.bf16.msra.mxu0 %v3351_v60  ;;  %1922 = vmatprep.subr.bf16.mxu1 %v3362_v63  ;;  %v3424_v60 = vld [vmem:[#allocation2 + $0x4c8] ss:$16 sps:$4 sm:$0xff]  }
  0xfa   :  { %1840 = vmatprep.subr.bf16.mxu0 %v3359_v62  ;;  %v3520_v62 = vld [vmem:[#allocation6 + $0x60] ss:$8 sps:$4 sm:$0xff]   ;;  %v3525_v63 = vld [vmem:[#allocation6 + $0x74] ss:$8 sps:$4 sm:$0xff]  }
  0xfc   :  { %1923 = vmatpush1.bf16.msra.mxu1 %v3360_v1  ;;  %v3432_v1 = vld [vmem:[#allocation2 + $0x50c] ss:$16 sps:$4 sm:$0xff]  }
  0xfd   :  { %1841 = vmatpush1.bf16.msra.mxu0 %v3357_v0  ;;  %1924 = vmatprep.subr.bf16.mxu1 %v3368_v4  ;;  %v3427_v0 = vld [vmem:[#allocation2 + $0x4e8] ss:$16 sps:$4 sm:$0xff]  }
  0xfe   :  { %1842 = vmatprep.subr.bf16.mxu0 %v3365_v2  ;;  %v3523_v2 = vld [vmem:[#allocation6 + $0x70] ss:$8 sps:$4 sm:$0xff]   ;;  %v3528_v4 = vld [vmem:[#allocation6 + $0x84] ss:$8 sps:$4 sm:$0xff]  }
 0x100   :  { %1925 = vmatpush1.bf16.msra.mxu1 %v3366_v6  ;;  %v3435_v6 = vld [vmem:[#allocation2 + $0x52c] ss:$16 sps:$4 sm:$0xff]  }
 0x101   :  { %1843 = vmatpush1.bf16.msra.mxu0 %v3363_v5  ;;  %1926 = vmatprep.subr.bf16.mxu1 %v3374_v8  ;;  %v3430_v5 = vld [vmem:[#allocation2 + $0x508] ss:$16 sps:$4 sm:$0xff]  }
 0x102   :  { %1844 = vmatprep.subr.bf16.mxu0 %v3371_v7  ;;  %v3526_v7 = vld [vmem:[#allocation6 + $0x80] ss:$8 sps:$4 sm:$0xff]   ;;  %v3531_v8 = vld [vmem:[#allocation6 + $0x94] ss:$8 sps:$4 sm:$0xff]  }
 0x104   :  { %1927 = vmatpush1.bf16.msra.mxu1 %v3372_v10  ;;  %v3438_v10 = vld [vmem:[#allocation2 + $0x54c] ss:$16 sps:$4 sm:$0xff]  }
 0x105   :  { %1845 = vmatpush1.bf16.msra.mxu0 %v3369_v9  ;;  %1928 = vmatprep.subr.bf16.mxu1 %v3380_v12  ;;  %v3433_v9 = vld [vmem:[#allocation2 + $0x528] ss:$16 sps:$4 sm:$0xff]  }
 0x106   :  { %1846 = vmatprep.subr.bf16.mxu0 %v3377_v11  ;;  %v3529_v11 = vld [vmem:[#allocation6 + $0x90] ss:$8 sps:$4 sm:$0xff]   ;;  %v3534_v12 = vld [vmem:[#allocation6 + $0xa4] ss:$8 sps:$4 sm:$0xff]  }
 0x108   :  { %1929 = vmatpush1.bf16.msra.mxu1 %v3378_v14  ;;  %v3441_v14 = vld [vmem:[#allocation2 + $0x56c] ss:$16 sps:$4 sm:$0xff]  }
 0x109   :  { %1847 = vmatpush1.bf16.msra.mxu0 %v3375_v13  ;;  %1930 = vmatprep.subr.bf16.mxu1 %v3386_v17  ;;  %v3436_v13 = vld [vmem:[#allocation2 + $0x548] ss:$16 sps:$4 sm:$0xff]  }
 0x10a   :  { %1848 = vmatprep.subr.bf16.mxu0 %v3383_v15  ;;  %v3532_v15 = vld [vmem:[#allocation6 + $0xa0] ss:$8 sps:$4 sm:$0xff]   ;;  %v3537_v17 = vld [vmem:[#allocation6 + $0xb4] ss:$8 sps:$4 sm:$0xff]  }
 0x10c   :  { %1931 = vmatpush1.bf16.msra.mxu1 %v3384_v20  ;;  %v3444_v20 = vld [vmem:[#allocation2 + $0x58c] ss:$16 sps:$4 sm:$0xff]  }
 0x10d   :  { %1849 = vmatpush1.bf16.msra.mxu0 %v3381_v19  ;;  %1932 = vmatprep.subr.bf16.mxu1 %v3392_v22  ;;  %v3439_v19 = vld [vmem:[#allocation2 + $0x568] ss:$16 sps:$4 sm:$0xff]  }
 0x10e   :  { %1850 = vmatprep.subr.bf16.mxu0 %v3389_v21  ;;  %v3535_v21 = vld [vmem:[#allocation6 + $0xb0] ss:$8 sps:$4 sm:$0xff]   ;;  %v3540_v22 = vld [vmem:[#allocation6 + $0xc4] ss:$8 sps:$4 sm:$0xff]  }
 0x110   :  { %1933 = vmatpush1.bf16.msra.mxu1 %v3390_v25  ;;  %v3447_v25 = vld [vmem:[#allocation2 + $0x5ac] ss:$16 sps:$4 sm:$0xff]  }
 0x111   :  { %1851 = vmatpush1.bf16.msra.mxu0 %v3387_v23  ;;  %1934 = vmatprep.subr.bf16.mxu1 %v3398_v27  ;;  %v3442_v23 = vld [vmem:[#allocation2 + $0x588] ss:$16 sps:$4 sm:$0xff]  }
 0x112   :  { %1852 = vmatprep.subr.bf16.mxu0 %v3395_v26  ;;  %v3538_v26 = vld [vmem:[#allocation6 + $0xc0] ss:$8 sps:$4 sm:$0xff]   ;;  %v3543_v27 = vld [vmem:[#allocation6 + $0xd4] ss:$8 sps:$4 sm:$0xff]  }
 0x114   :  { %1935 = vmatpush1.bf16.msra.mxu1 %v3396_v29  ;;  %v3450_v29 = vld [vmem:[#allocation2 + $0x5cc] ss:$16 sps:$4 sm:$0xff]  }
 0x115   :  { %1853 = vmatpush1.bf16.msra.mxu0 %v3393_v28  ;;  %1936 = vmatprep.subr.bf16.mxu1 %v3404_v49  ;;  %v3445_v28 = vld [vmem:[#allocation2 + $0x5a8] ss:$16 sps:$4 sm:$0xff]  }
 0x116   :  { %1854 = vmatprep.subr.bf16.mxu0 %v3401_v31  ;;  %v3541_v31 = vld [vmem:[#allocation6 + $0xd0] ss:$8 sps:$4 sm:$0xff]   ;;  %v3448_v49 = vld [vmem:[#allocation2 + $0x5c8] ss:$16 sps:$4 sm:$0xff]  }
 0x118   :  { %1937 = vmatpush1.bf16.msra.mxu1 %v3402_v33  ;;  %v3451_v33 = vld [vmem:[#allocation2 + $0x5e8] ss:$16 sps:$4 sm:$0xff]  }
 0x119   :  { %1855 = vmatpush1.bf16.msra.mxu0 %v3399_v32  ;;  %1947 = vmatprep.subr.bf16.mxu1 %v3408_v35  ;;  %v3453_v32 = vld [vmem:[#allocation2 + $0x5ec] ss:$16 sps:$4 sm:$0xff]  }
 0x11a   :  { %2441 = vmatprep.subr.bf16.mxu0 %v3504_v40  ;;  %v3456_v35 = vld [vmem:[#allocation2 + $0x60c] ss:$16 sps:$4 sm:$0xff]  }
 0x11b   :  { %1939 = vmatmul.mubr.bf16.vlgmr.msra.gmra.mrb[4].mxu1 %v3855_v18  ;;  %v3508_v18 = vld [vmem:[#allocation6 + $0x20] ss:$8 sps:$4 sm:$0xff]  }
 0x11c   :  { %1857 = vmatmul.mubr.bf16.vlgmr.msra.gmra.mrb[0].mxu0 %v3892_v37  ;;  %1948 = vmatpush1.bf16.msra.mxu1 %v3406_v36  ;;  %v3454_v36 = vld [vmem:[#allocation2 + $0x608] ss:$16 sps:$4 sm:$0xff]   ;;  %v3462_v40 = vld [vmem:[#allocation2 + $0x64c] ss:$16 sps:$4 sm:$0xff]  }
 0x11d   :  { %1979 = vmatprep.mubr.bf16.mxu1 %v3870_v51  ;;  %1949 = vmatprep.subr.bf16.mxu1 %v3411_v38  ;;  %v3511_v51 = vld [vmem:[#allocation6 + $0x30] ss:$8 sps:$4 sm:$0xff]  }
 0x11e   :  { %2442 = vmatpush1.bf16.msra.mxu0 %v3502_v39  ;;  %v3459_v38 = vld [vmem:[#allocation2 + $0x62c] ss:$16 sps:$4 sm:$0xff]   ;;  %v3457_v39 = vld [vmem:[#allocation2 + $0x628] ss:$16 sps:$4 sm:$0xff]  }
 0x11f   :  { %2443 = vmatprep.subr.bf16.mxu0 %v3507_v16  ;;  %v3465_v16 = vld [vmem:[#allocation2 + $0x66c] ss:$16 sps:$4 sm:$0xff]  }
 0x120   :  { %1950 = vmatpush1.bf16.msra.mxu1 %v3409_v41  ;;  %v3460_v41 = vld [vmem:[#allocation2 + $0x648] ss:$16 sps:$4 sm:$0xff]  }
 0x121   :  { %1951 = vmatprep.subr.bf16.mxu1 %v3414_v42  ;;  %v3463_v42 = vld [vmem:[#allocation2 + $0x668] ss:$16 sps:$4 sm:$0xff]  }
 0x122   :  { %2444 = vmatpush1.bf16.msra.mxu0 %v3505_v24  ;;  %v3468_v24 = vld [vmem:[#allocation2 + $0x68c] ss:$16 sps:$4 sm:$0xff]  }
 0x123   :  { %2445 = vmatprep.subr.bf16.mxu0 %v3510_v44  ;;  %v3466_v44 = vld [vmem:[#allocation2 + $0x688] ss:$16 sps:$4 sm:$0xff]  }
 0x124   :  { %1952 = vmatpush1.bf16.msra.mxu1 %v3412_v45  ;;  %v3471_v45 = vld [vmem:[#allocation2 + $0x6ac] ss:$16 sps:$4 sm:$0xff]  }
 0x125   :  { %1953 = vmatprep.subr.bf16.mxu1 %v3417_v46  ;;  %v3474_v46 = vld [vmem:[#allocation2 + $0x6cc] ss:$16 sps:$4 sm:$0xff]  }
 0x126   :  { %2446 = vmatpush1.bf16.msra.mxu0 %v3508_v18 }
 0x127   :  { %2447 = vmatprep.subr.bf16.mxu0 %v3513_v48 }
 0x128   :  { %1954 = vmatpush1.bf16.msra.mxu1 %v3415_v47 }
 0x129   :  { %1955 = vmatprep.subr.bf16.mxu1 %v3420_v3  ;;  %v3544_v3 = vld [vmem:[#allocation6 + $0xe0] ss:$8 sps:$4 sm:$0xff]  }
 0x12a   :  { %2448 = vmatpush1.bf16.msra.mxu0 %v3511_v51  ;;  %v3472_v51 = vld [vmem:[#allocation2 + $0x6c8] ss:$16 sps:$4 sm:$0xff]  }
 0x12b   :  { %2449 = vmatprep.subr.bf16.mxu0 %v3516_v50 }
 0x12c   :  { %1956 = vmatpush1.bf16.msra.mxu1 %v3418_v52  ;;  %v3477_v52 = vld [vmem:[#allocation2 + $0x6ec] ss:$16 sps:$4 sm:$0xff]  }
 0x12d   :  { %1957 = vmatprep.subr.bf16.mxu1 %v3423_v53  ;;  %v3549_v53 = vld [vmem:[#allocation6 + $0xf4] ss:$8 sps:$4 sm:$0xff]  }
 0x12e   :  { %2450 = vmatpush1.bf16.msra.mxu0 %v3514_v54  ;;  %v3547_v54 = vld [vmem:[#allocation6 + $0xf0] ss:$8 sps:$4 sm:$0xff]  }
 0x12f   :  { %2451 = vmatprep.subr.bf16.mxu0 %v3519_v55  ;;  %v3475_v55 = vld [vmem:[#allocation2 + $0x6e8] ss:$16 sps:$4 sm:$0xff]  }
 0x130   :  { %1958 = vmatpush1.bf16.msra.mxu1 %v3421_v56  ;;  %v3480_v56 = vld [vmem:[#allocation2 + $0x70c] ss:$16 sps:$4 sm:$0xff]  }
 0x131   :  { %1959 = vmatprep.subr.bf16.mxu1 %v3426_v57  ;;  %v3478_v57 = vld [vmem:[#allocation2 + $0x708] ss:$16 sps:$4 sm:$0xff]  }
 0x132   :  { %2452 = vmatpush1.bf16.msra.mxu0 %v3517_v58  ;;  %v3552_v58 = vld [vmem:[#allocation6 + $0x104] ss:$8 sps:$4 sm:$0xff]  }
 0x133   :  { %2453 = vmatprep.subr.bf16.mxu0 %v3522_v59  ;;  %v3483_v59 = vld [vmem:[#allocation2 + $0x72c] ss:$16 sps:$4 sm:$0xff]  }
 0x134   :  { %1960 = vmatpush1.bf16.msra.mxu1 %v3424_v60  ;;  %v3481_v60 = vld [vmem:[#allocation2 + $0x728] ss:$16 sps:$4 sm:$0xff]  }
 0x135   :  { %1961 = vmatprep.subr.bf16.mxu1 %v3429_v61  ;;  %v3486_v61 = vld [vmem:[#allocation2 + $0x74c] ss:$16 sps:$4 sm:$0xff]  }
 0x136   :  { %2454 = vmatpush1.bf16.msra.mxu0 %v3520_v62  ;;  %v3484_v62 = vld [vmem:[#allocation2 + $0x748] ss:$16 sps:$4 sm:$0xff]  }
 0x137   :  { %2455 = vmatprep.subr.bf16.mxu0 %v3525_v63  ;;  %v3489_v63 = vld [vmem:[#allocation2 + $0x76c] ss:$16 sps:$4 sm:$0xff]  }
 0x138   :  { %1962 = vmatpush1.bf16.msra.mxu1 %v3427_v0  ;;  %v3487_v0 = vld [vmem:[#allocation2 + $0x768] ss:$16 sps:$4 sm:$0xff]  }
 0x139   :  { %1963 = vmatprep.subr.bf16.mxu1 %v3432_v1  ;;  %v3492_v1 = vld [vmem:[#allocation2 + $0x78c] ss:$16 sps:$4 sm:$0xff]  }
 0x13a   :  { %2456 = vmatpush1.bf16.msra.mxu0 %v3523_v2  ;;  %v3490_v2 = vld [vmem:[#allocation2 + $0x788] ss:$16 sps:$4 sm:$0xff]  }
 0x13b   :  { %2457 = vmatprep.subr.bf16.mxu0 %v3528_v4  ;;  %v3495_v4 = vld [vmem:[#allocation2 + $0x7ac] ss:$16 sps:$4 sm:$0xff]  }
 0x13c   :  { %1964 = vmatpush1.bf16.msra.mxu1 %v3430_v5  ;;  %v3493_v5 = vld [vmem:[#allocation2 + $0x7a8] ss:$16 sps:$4 sm:$0xff]  }
 0x13d   :  { %1965 = vmatprep.subr.bf16.mxu1 %v3435_v6  ;;  %v3498_v6 = vld [vmem:[#allocation2 + $0x7cc] ss:$16 sps:$4 sm:$0xff]  }
 0x13e   :  { %2458 = vmatpush1.bf16.msra.mxu0 %v3526_v7  ;;  %v3496_v7 = vld [vmem:[#allocation2 + $0x7c8] ss:$16 sps:$4 sm:$0xff]  }
 0x13f   :  { %2459 = vmatprep.subr.bf16.mxu0 %v3531_v8  ;;  %v3501_v8 = vld [vmem:[#allocation2 + $0x7ec] ss:$16 sps:$4 sm:$0xff]  }
 0x140   :  { %1966 = vmatpush1.bf16.msra.mxu1 %v3433_v9  ;;  %v3499_v9 = vld [vmem:[#allocation2 + $0x7e8] ss:$16 sps:$4 sm:$0xff]  }
 0x141   :  { %1967 = vmatprep.subr.bf16.mxu1 %v3438_v10  ;;  %v403_v10 = vsub.s32 0, %v3840_v43 }
 0x142   :  { %2460 = vmatpush1.bf16.msra.mxu0 %v3529_v11  ;;  %v3901_v11 = vld [vmem:[#allocation4] sm:$0xf] }
 0x143   :  { %2461 = vmatprep.subr.bf16.mxu0 %v3534_v12  ;;  %v407_v12 = vsub.s32 1, %v3840_v43 }
 0x144   :  { %1968 = vmatpush1.bf16.msra.mxu1 %v3436_v13  ;;  %v404_v13 = vrot.slane %v3901_v11, %v403_v10 }
 0x145   :  { %1969 = vmatprep.subr.bf16.mxu1 %v3441_v14  ;;  %v408_v14 = vrot.slane %v3901_v11, %v407_v12 }
 0x146   :  { %2462 = vmatpush1.bf16.msra.mxu0 %v3532_v15 }
 0x147   :  { %2463 = vmatprep.subr.bf16.mxu0 %v3537_v17 }
 0x148   :  { %1970 = vmatpush1.bf16.msra.mxu1 %v3439_v19 }
 0x149   :  { %1971 = vmatprep.subr.bf16.mxu1 %v3444_v20 }
 0x14a   :  { %2464 = vmatpush1.bf16.msra.mxu0 %v3535_v21 }
 0x14b   :  { %2465 = vmatprep.subr.bf16.mxu0 %v3540_v22 }
 0x14c   :  { %1972 = vmatpush1.bf16.msra.mxu1 %v3442_v23 }
 0x14d   :  { %1973 = vmatprep.subr.bf16.mxu1 %v3447_v25 }
 0x14e   :  { %2466 = vmatpush1.bf16.msra.mxu0 %v3538_v26 }
 0x14f   :  { %2467 = vmatprep.subr.bf16.mxu0 %v3543_v27 }
 0x150   :  { %1974 = vmatpush1.bf16.msra.mxu1 %v3445_v28 }
 0x151   :  { %1975 = vmatprep.subr.bf16.mxu1 %v3450_v29 }
 0x152   :  { %2468 = vmatpush1.bf16.msra.mxu0 %v3541_v31  ;;  %v3550_v31 = vld [vmem:[#allocation6 + $0x100] ss:$8 sps:$4 sm:$0xff]  }
 0x154   :  { %1976 = vmatpush1.bf16.msra.mxu1 %v3448_v49 }
 0x155   :  { %1977 = vmatprep.subr.bf16.mxu1 %v3453_v32  ;;  %v3555_v32 = vld [vmem:[#allocation6 + $0x114] ss:$8 sps:$4 sm:$0xff]  }
 0x158   :  { %1978 = vmatpush1.bf16.msra.mxu1 %v3451_v33  ;;  %v3598_v33 = vld [vmem:[%s3974_s5 + $0x40] sm:$0xff]  }
 0x159   :  { %1988 = vmatprep.subr.bf16.mxu1 %v3456_v35  ;;  %v3599_v35 = vld [vmem:[%s3974_s5] sm:$0xff]  }
 0x15b   :  { %1980 = vmatmul.mubr.bf16.vlgmr.msra.gmra.mrb[4].mxu1 %v3882_v30  ;;  %v3469_v30 = vld [vmem:[#allocation2 + $0x6a8] ss:$16 sps:$4 sm:$0xff]  }
 0x15c   :  { %1989 = vmatpush1.bf16.msra.mxu1 %v3454_v36  ;;  %2020 = vmatprep.mubr.bf16.mxu1 %v3884_v34  ;;  %v3546_v34 = vld [vmem:[#allocation6 + $0xe4] ss:$8 sps:$4 sm:$0xff]  }
 0x15d   :  { %1990 = vmatprep.subr.bf16.mxu1 %v3459_v38  ;;  %2469 = vmatprep.subr.bf16.mxu0 %v3546_v34  ;;  %v3600_v36 = vld [vmem:[%s3974_s5 + $0x48] sm:$0xff]   ;;  %v3553_v38 = vld [vmem:[#allocation6 + $0x110] ss:$8 sps:$4 sm:$0xff]  }
 0x15e   :  { %2470 = vmatpush1.bf16.msra.mxu0 %v3544_v3  ;;  %v3562_v34 = vld [vmem:[#allocation6 + $0x140] ss:$8 sps:$4 sm:$0xff]  }
 0x15f   :  { %2471 = vmatprep.subr.bf16.mxu0 %v3549_v53  ;;  %v3607_v3 = vld [vmem:[%s3974_s5 + $0x20] sm:$0xff]  }
 0x160   :  { %1991 = vmatpush1.bf16.msra.mxu1 %v3457_v39  ;;  %v3558_v39 = vld [vmem:[#allocation6 + $0x124] ss:$8 sps:$4 sm:$0xff]   ;;  %v3568_v53 = vld [vmem:[#allocation6 + $0x160] ss:$8 sps:$4 sm:$0xff]  }
 0x161   :  { %1992 = vmatprep.subr.bf16.mxu1 %v3462_v40  ;;  %v3601_v40 = vld [vmem:[%s3974_s5 + $0x8] sm:$0xff]  }
 0x162   :  { %2472 = vmatpush1.bf16.msra.mxu0 %v3547_v54  ;;  %v3573_v54 = vld [vmem:[#allocation6 + $0x174] ss:$8 sps:$4 sm:$0xff]  }
 0x163   :  { %2482 = vmatprep.subr.bf16.mxu0 %v3552_v58  ;;  %v3579_v58 = vld [vmem:[#allocation6 + $0x194] ss:$8 sps:$4 sm:$0xff]  }
 0x164   :  { %1993 = vmatpush1.bf16.msra.mxu1 %v3460_v41  ;;  %v3602_v41 = vld [vmem:[%s3974_s5 + $0x50] sm:$0xff]  }
 0x165   :  { %1994 = vmatprep.subr.bf16.mxu1 %v3465_v16  ;;  %v3556_v16 = vld [vmem:[#allocation6 + $0x120] ss:$8 sps:$4 sm:$0xff]  }
 0x168   :  { %1995 = vmatpush1.bf16.msra.mxu1 %v3463_v42  ;;  %v3561_v42 = vld [vmem:[#allocation6 + $0x134] ss:$8 sps:$4 sm:$0xff]  }
 0x169   :  { %1996 = vmatprep.subr.bf16.mxu1 %v3468_v24  ;;  %v3603_v24 = vld [vmem:[%s3974_s5 + $0x10] sm:$0xff]  }
 0x16c   :  { %1997 = vmatpush1.bf16.msra.mxu1 %v3466_v44  ;;  %v3604_v44 = vld [vmem:[%s3974_s5 + $0x58] sm:$0xff]  }
 0x16d   :  { %1998 = vmatprep.subr.bf16.mxu1 %v3471_v45  ;;  %v3559_v45 = vld [vmem:[#allocation6 + $0x130] ss:$8 sps:$4 sm:$0xff]  }
 0x16e   :  { %v1735_v18 = vpop.f32.mrb[0].mxu1 }
 0x16f   :  { %v1737_v47 = vpop.f32.mrb[1].mxu1  ;;  %v1736_v15 = vadd.f32 %v1735_v18, %v404_v13  ;;  %v3606_v18 = vld [vmem:[%s3974_s5 + $0x60] sm:$0xff]   ;;  %v415_v13 = vsub.s32 3, %v3840_v43 }
 0x170   :  { %v1739_v48 = vpop.f32.mrb[2].mxu1  ;;  %1999 = vmatpush1.bf16.msra.mxu1 %v3469_v30  ;;  %v1738_v17 = vadd.f32 %v1737_v47, %v408_v14  ;;  %v3564_v30 = vld [vmem:[#allocation6 + $0x144] ss:$8 sps:$4 sm:$0xff]   ;;  %v3567_v47 = vld [vmem:[#allocation6 + $0x154] ss:$8 sps:$4 sm:$0xff]  }
 0x171   :  { %v1740_v50 = vpop.f32.mrb[3].mxu1  ;;  %2000 = vmatprep.subr.bf16.mxu1 %v3474_v46  ;;  %v3605_v46 = vld [vmem:[%s3974_s5 + $0x18] sm:$0xff]   ;;  %v3608_v48 = vld [vmem:[%s3974_s5 + $0x68] sm:$0xff]  }
 0x172   :  { %v3570_v50 = vld [vmem:[#allocation6 + $0x164] ss:$8 sps:$4 sm:$0xff]  }
 0x174   :  { %2001 = vmatpush1.bf16.msra.mxu1 %v3472_v51  ;;  %v3565_v51 = vld [vmem:[#allocation6 + $0x150] ss:$8 sps:$4 sm:$0xff]  }
 0x175   :  { %2002 = vmatprep.subr.bf16.mxu1 %v3477_v52  ;;  %v3609_v52 = vld [vmem:[%s3974_s5 + $0x28] sm:$0xff]  }
 0x178   :  { %2003 = vmatpush1.bf16.msra.mxu1 %v3475_v55  ;;  %v3571_v55 = vld [vmem:[#allocation6 + $0x170] ss:$8 sps:$4 sm:$0xff]  }
 0x179   :  { %2004 = vmatprep.subr.bf16.mxu1 %v3480_v56  ;;  %v3576_v56 = vld [vmem:[#allocation6 + $0x184] ss:$8 sps:$4 sm:$0xff]  }
 0x17c   :  { %2005 = vmatpush1.bf16.msra.mxu1 %v3478_v57  ;;  %v3574_v57 = vld [vmem:[#allocation6 + $0x180] ss:$8 sps:$4 sm:$0xff]  }
 0x17d   :  { %2006 = vmatprep.subr.bf16.mxu1 %v3483_v59  ;;  %v3577_v59 = vld [vmem:[#allocation6 + $0x190] ss:$8 sps:$4 sm:$0xff]  }
 0x180   :  { %2007 = vmatpush1.bf16.msra.mxu1 %v3481_v60  ;;  %v3582_v60 = vld [vmem:[#allocation6 + $0x1a4] ss:$8 sps:$4 sm:$0xff]  }
 0x181   :  { %2008 = vmatprep.subr.bf16.mxu1 %v3486_v61  ;;  %v3580_v61 = vld [vmem:[#allocation6 + $0x1a0] ss:$8 sps:$4 sm:$0xff]  }
 0x184   :  { %2009 = vmatpush1.bf16.msra.mxu1 %v3484_v62  ;;  %v3585_v62 = vld [vmem:[#allocation6 + $0x1b4] ss:$8 sps:$4 sm:$0xff]  }
 0x185   :  { %2010 = vmatprep.subr.bf16.mxu1 %v3489_v63  ;;  %v3583_v63 = vld [vmem:[#allocation6 + $0x1b0] ss:$8 sps:$4 sm:$0xff]  }
 0x188   :  { %2011 = vmatpush1.bf16.msra.mxu1 %v3487_v0  ;;  %v3588_v0 = vld [vmem:[#allocation6 + $0x1c4] ss:$8 sps:$4 sm:$0xff]  }
 0x189   :  { %2012 = vmatprep.subr.bf16.mxu1 %v3492_v1  ;;  %v3586_v1 = vld [vmem:[#allocation6 + $0x1c0] ss:$8 sps:$4 sm:$0xff]  }
 0x18c   :  { %2013 = vmatpush1.bf16.msra.mxu1 %v3490_v2  ;;  %v3591_v2 = vld [vmem:[#allocation6 + $0x1d4] ss:$8 sps:$4 sm:$0xff]  }
 0x18d   :  { %2014 = vmatprep.subr.bf16.mxu1 %v3495_v4  ;;  %v3589_v4 = vld [vmem:[#allocation6 + $0x1d0] ss:$8 sps:$4 sm:$0xff]  }
 0x190   :  { %2015 = vmatpush1.bf16.msra.mxu1 %v3493_v5  ;;  %v3594_v5 = vld [vmem:[#allocation6 + $0x1e4] ss:$8 sps:$4 sm:$0xff]  }
 0x191   :  { %2016 = vmatprep.subr.bf16.mxu1 %v3498_v6  ;;  %v3592_v6 = vld [vmem:[#allocation6 + $0x1e0] ss:$8 sps:$4 sm:$0xff]  }
 0x194   :  { %2017 = vmatpush1.bf16.msra.mxu1 %v3496_v7  ;;  %v3597_v7 = vld [vmem:[#allocation6 + $0x1f4] ss:$8 sps:$4 sm:$0xff]  }
 0x195   :  { %2018 = vmatprep.subr.bf16.mxu1 %v3501_v8  ;;  %v3595_v8 = vld [vmem:[#allocation6 + $0x1f0] ss:$8 sps:$4 sm:$0xff]  }
 0x198   :  { %2019 = vmatpush1.bf16.msra.mxu1 %v3499_v9  ;;  %v411_v9 = vsub.s32 2, %v3840_v43 }
 0x199   :  { %3052 = vmatprep.subr.bf16.mxu1 %v3598_v33  ;;  %v2109_v33 = vld [vmem:[#allocation7] sm:$0x3] }
 0x19a   :  { %v412_v14 = vrot.slane %v3901_v11, %v411_v9 }
 0x19b   :  { %2021 = vmatmul.mubr.bf16.vlgmr.msra.gmra.mrb[4].mxu1 %v3892_v37 }
 0x19c   :  { %3053 = vmatpush3.bf16.msra.mxu1 %v3599_v35  ;;  %v2114_v35 = vrot.slane %v2109_v33, %v403_v10 }
 0x19d   :  { %3054 = vmatprep.subr.bf16.mxu1 %v3600_v36  ;;  %v2118_v36 = vrot.slane %v2109_v33, %v407_v12 }
 0x1a0   :  { %3055 = vmatpush3.bf16.msra.mxu1 %v3601_v40 }
 0x1a1   :  { %3056 = vmatprep.subr.bf16.mxu1 %v3602_v41 }
 0x1a4   :  { %3057 = vmatpush3.bf16.msra.mxu1 %v3603_v24 }
 0x1a5   :  { %3058 = vmatprep.subr.bf16.mxu1 %v3604_v44 }
 0x1a8   :  { %3059 = vmatpush3.bf16.msra.mxu1 %v3605_v46 }
 0x1a9   :  { %3060 = vmatprep.subr.bf16.mxu1 %v3606_v18 }
 0x1ac   :  { %3061 = vmatpush3.bf16.msra.mxu1 %v3607_v3 }
 0x1ad   :  { %3062 = vmatprep.subr.bf16.mxu1 %v3608_v48 }
 0x1b0   :  { %3063 = vmatpush3.bf16.msra.mxu1 %v3609_v52 }
 0x1ef   :  { %v1858_v19 = vpop.f32.mrb[0].mxu0 }
 0x1f0   :  { %v3075_v20 = vadd.f32 %v1858_v19, %v1736_v15  ;;  %v1860_v21 = vpop.f32.mrb[1].mxu0  ;;  %v416_v15 = vrot.slane %v3901_v11, %v415_v13  ;;  %v3610_v11 = vld [vmem:[%s3974_s5 + $0x70] sm:$0xff]  }
 0x1f1   :  { %v3077_v37 = vadd.f32 %v1860_v21, %v1738_v17  ;;  %v1862_v22 = vpop.f32.mrb[2].mxu0  ;;  %3064 = vmatprep.subr.bf16.mxu1 %v3610_v11 }
 0x1f2   :  { %vm2029_vm0 = vcmp.gt.f32.partialorder %v3075_v20, 0.0  ;;  %v2033_v23 = vmul.f32 0.2, %v3075_v20  ;;  %v1863_v25 = vpop.f32.mrb[3].mxu0 }
 0x1f3   :  { %vm2030_vm1 = vcmp.gt.f32.partialorder %v3077_v37, 0.0  ;;  %v2034_v26 = vmul.f32 0.2, %v3077_v37 }
 0x1f4   :  { %v2037_v27 = vsel %vm2029_vm0, %v3075_v20, %v2033_v23 }
 0x1f5   :  { %v2038_v28 = vsel %vm2030_vm1, %v3077_v37, %v2034_v26  ;;  %v2041_v49 = vpack.c.bf16 %v2037_v27, %v2037_v27 }
 0x1f6   :  { %v2042_v29 = vpack.c.bf16 %v2038_v28, %v2038_v28 }
 0x1f8   :  { %2473 = vmatprep.mubr.bf16.mxu0 %v2042_v29 }
 0x1f9   :  { %2474 = vmatmul.mubr.bf16.vlgmr.msra.gmra.mrb[4].mxu0 %v2041_v49  ;;  %v3612_v49 = vld [vmem:[%s3974_s5 + $0x78] sm:$0xff]  }
 0x1fa   :  { %2483 = vmatpush1.bf16.msra.mxu0 %v3550_v31  ;;  %v3611_v31 = vld [vmem:[%s3974_s5 + $0x30] sm:$0xff]  }
 0x1fb   :  { %2484 = vmatprep.subr.bf16.mxu0 %v3555_v32  ;;  %3065 = vmatpush3.bf16.msra.mxu1 %v3611_v31  ;;  %v3613_v32 = vld [vmem:[%s3974_s5 + $0x38] sm:$0xff]  }
 0x1fc   :  { %3066 = vmatprep.subr.bf16.mxu1 %v3612_v49 }
 0x1fe   :  { %2485 = vmatpush1.bf16.msra.mxu0 %v3553_v38 }
 0x1ff   :  { %2486 = vmatprep.subr.bf16.mxu0 %v3558_v39  ;;  %3067 = vmatpush3.bf16.msra.mxu1 %v3613_v32 }
 0x202   :  { %2487 = vmatpush1.bf16.msra.mxu0 %v3556_v16 }
 0x203   :  { %2488 = vmatprep.subr.bf16.mxu0 %v3561_v42 }
 0x206   :  { %2489 = vmatpush1.bf16.msra.mxu0 %v3559_v45 }
 0x207   :  { %2490 = vmatprep.subr.bf16.mxu0 %v3564_v30 }
 0x20a   :  { %2491 = vmatpush1.bf16.msra.mxu0 %v3562_v34  ;;  %v3035_v34 = vld [vmem:[#allocation9] ss:$0 sm:$0xff] }
 0x20b   :  { %2492 = vmatprep.subr.bf16.mxu0 %v3567_v47 }
 0x20e   :  { %2493 = vmatpush1.bf16.msra.mxu0 %v3565_v51 }
 0x20f   :  { %2494 = vmatprep.subr.bf16.mxu0 %v3570_v50 }
 0x212   :  { %2495 = vmatpush1.bf16.msra.mxu0 %v3568_v53 }
 0x213   :  { %2496 = vmatprep.subr.bf16.mxu0 %v3573_v54 }
 0x216   :  { %2497 = vmatpush1.bf16.msra.mxu0 %v3571_v55 }
 0x217   :  { %2498 = vmatprep.subr.bf16.mxu0 %v3576_v56 }
 0x21a   :  { %2499 = vmatpush1.bf16.msra.mxu0 %v3574_v57 }
 0x21b   :  { %2500 = vmatprep.subr.bf16.mxu0 %v3579_v58 }
 0x21e   :  { %2501 = vmatpush1.bf16.msra.mxu0 %v3577_v59 }
 0x21f   :  { %2502 = vmatprep.subr.bf16.mxu0 %v3582_v60 }
 0x222   :  { %2503 = vmatpush1.bf16.msra.mxu0 %v3580_v61 }
 0x223   :  { %2504 = vmatprep.subr.bf16.mxu0 %v3585_v62 }
 0x226   :  { %2505 = vmatpush1.bf16.msra.mxu0 %v3583_v63 }
 0x227   :  { %2506 = vmatprep.subr.bf16.mxu0 %v3588_v0 }
 0x22a   :  { %2507 = vmatpush1.bf16.msra.mxu0 %v3586_v1 }
 0x22b   :  { %2508 = vmatprep.subr.bf16.mxu0 %v3591_v2 }
 0x22e   :  { %2509 = vmatpush1.bf16.msra.mxu0 %v3589_v4 }
 0x22f   :  { %2510 = vmatprep.subr.bf16.mxu0 %v3594_v5 }
 0x232   :  { %2511 = vmatpush1.bf16.msra.mxu0 %v3592_v6 }
 0x233   :  { %2512 = vmatprep.subr.bf16.mxu0 %v3597_v7 }
 0x236   :  { %2513 = vmatpush1.bf16.msra.mxu0 %v3595_v8 }
 0x26e   :  { %v2022_v17 = vpop.f32.mrb[4].mxu1 }
 0x26f   :  { %v3078_v19 = vadd.f32 %v2022_v17, %v412_v14  ;;  %v2024_v20 = vpop.f32.mrb[5].mxu1 }
 0x270   :  { %v3079_v21 = vadd.f32 %v2024_v20, %v416_v15  ;;  %v2026_v37 = vpop.f32.mrb[6].mxu1 }
 0x271   :  { %vm2031_vm2 = vcmp.gt.f32.partialorder %v3078_v19, 0.0  ;;  %v2035_v22 = vmul.f32 0.2, %v3078_v19  ;;  %v2027_v23 = vpop.f32.mrb[7].mxu1 }
 0x272   :  { %vm2032_vm3 = vcmp.gt.f32.partialorder %v3079_v21, 0.0  ;;  %v2036_v25 = vmul.f32 0.2, %v3079_v21 }
 0x273   :  { %v2039_v26 = vsel %vm2031_vm2, %v3078_v19, %v2035_v22 }
 0x274   :  { %v2040_v27 = vsel %vm2032_vm3, %v3079_v21, %v2036_v25  ;;  %v2043_v29 = vpack.c.bf16 %v2039_v26, %v2039_v26 }
 0x275   :  { %v2044_v28 = vpack.c.bf16 %v2040_v27, %v2040_v27 }
 0x277   :  { %2514 = vmatprep.mubr.bf16.mxu0 %v2044_v28 }
 0x278   :  { %2515 = vmatmul.mubr.bf16.vlgmr.msra.gmra.mrb[4].mxu0 %v2043_v29 }
 0x34b   :  { %v2516_v38 = vpop.f32.mrb[4].mxu0 }
 0x34c   :  { %v3080_v39 = vadd.f32 %v2516_v38, %v2114_v35  ;;  %v2518_v40 = vpop.f32.mrb[5].mxu0 }
 0x34d   :  { %v3081_v41 = vadd.f32 %v2518_v40, %v2118_v36  ;;  %v2520_v16 = vpop.f32.mrb[6].mxu0 }
 0x34e   :  { %vm2523_vm4 = vcmp.gt.f32.partialorder %v3080_v39, 0.0  ;;  %v2525_v42 = vmul.f32 0.2, %v3080_v39  ;;  %v2521_v24 = vpop.f32.mrb[7].mxu0 }
 0x34f   :  { %vm2524_vm5 = vcmp.gt.f32.partialorder %v3081_v41, 0.0  ;;  %v2526_v44 = vmul.f32 0.2, %v3081_v41 }
 0x350   :  { %v2527_v45 = vsel %vm2523_vm4, %v3080_v39, %v2525_v42 }
 0x351   :  { %v2528_v30 = vsel %vm2524_vm5, %v3081_v41, %v2526_v44  ;;  %v2529_v18 = vpack.c.bf16 %v2527_v45, %v2527_v45 }
 0x352   :  { %v2530_v46 = vpack.c.bf16 %v2528_v30, %v2528_v30 }
 0x354   :  { %2698 = vmatprep.mubr.bf16.mxu1 %v2530_v46 }
 0x355   :  { %2699 = vmatmul.mubr.bf16.vlgmr.msra.gmra.mrb[8].mxu1 %v2529_v18 }
 0x428   :  { %v3068_v10 = vpop.f32.mrb[8].mxu1 }
 0x429   :  { %v3069_v43 = vpop.f32.mrb[9].mxu1 }
 0x42a   :  { %v3070_v12 = vadd.f32 %v3069_v43, %v3068_v10  ;;  %v3071_v47 = vpop.f32.mrb[10].mxu1 }
 0x42b   :  { %v3072_v3 = vpop.f32.mrb[11].mxu1 }
 0x42c   :  { %v2701_v48 = vadd.f32 %v3070_v12, %v3035_v34 }
 0x42e   :  { %2707 = vst.msk [vmem:[%s3976_s7] sm:$0x3] %vm2706_vm6, %v2701_v48 }
 0x42f   :  { %2712 = vsyncpa [#allocation3], 1 }
 0x430   :  { %2713 = vsyncpa [#allocation5], 1 }
 0x431   :  { %2714 = vsyncpa [#allocation8], 1 }

// kernel: model_forward.16
= control target key start
LH: loop header
LB: loop body
LE: loop exit
PB: predicated region body
PF: predicated region fallthrough
CT: control target
= control target key end

     0   :  { %s1362_s18 = smov 0   ;;  %s1364_s19 = smov 0   ;;  %s1639_s0 = inlined_call_operand.vmem [shape: bf16[2,16,64], index: 0, kind: input, shape index: {}]   ;;  %s1640_s1 = inlined_call_operand.vmem [shape: bf16[2,64,128], index: 1, kind: input, shape index: {}]   ;;  %s1641_s2 = inlined_call_operand.vmem [shape: f32[1,128], index: 2, kind: input, shape index: {}]   ;;  %s1642_s3 = inlined_call_operand.vmem [shape: bf16[128,1024], index: 3, kind: input, shape index: {}]   ;;  %s1643_s4 = inlined_call_operand.vmem [shape: f32[1,1024], index: 4, kind: input, shape index: {}]   ;;  %s1644_s5 = inlined_call_operand.vmem [shape: f32[2,1,1024], index: 5, kind: output, shape index: {}]  }
   0x1   :  { %s1366_s20 = smov 0  }
   0x2 LB: > { %s27_s21 = sadd.s32 1, %s1322_s19  ;;  %p1173_p0 = scmp.ge.s32.totalorder %s1326_s20, 1  ;;  %s1326_s20 = sphi %s1366_s20, %s15_s20   ;;  %s1322_s19 = sphi %s1364_s19, %s1646_s19   ;;  %s1318_s18 = sphi %s1362_s18, %s1645_s18  }
   0x3   : > { %p29_p1 = scmp.ge.s32.totalorder %s27_s21, 2  ;;  %p216_p2 = scmp.lt.s32.totalorder %s1326_s20, 3 }
   0x5   : > { %s1648_s21 = smov (%p29_p1, %s27_s21), 0  ;;  %p217_p3 = pnand %p1173_p0, %p216_p2 }
   0x6   : > { %p253_p4 = scmp.lt.s32.totalorder (!%p217_p3), %s1318_s18, 1  ;;  %v370_v0 = vld [vmem:[%s1642_s3] sm:$0xff] (!%p217_p3)  ;;  %v1328_v2 = vmov (!%p217_p3), 0.0   ;;  %vm1329_vm0 = vmmov (!%p217_p3), 0   ;;  %v371_v22 = vld [vmem:[%s1642_s3 + $0x8] sm:$0xff] (!%p217_p3)  ;;  %vm318_vm1 = vcmask (!%p217_p3), 523264  }
   0x7   : > { %220 = sbr.rel (%p217_p3) target bundleno = 528 (0x210), region = 40  ;;  %v374_v1 = vld [vmem:[%s1642_s3 + $0x20] sm:$0xff] (!%p217_p3)  ;;  %1259 = vmatprep.subr.bf16.mxu0 (!%p217_p3), %v1328_v2  ;;  %1267 = vmatprep.mubr.msk.bf16.mxu0 (!%p217_p3), %vm1329_vm0, %v1328_v2  ;;  %v375_v24 = vld [vmem:[%s1642_s3 + $0x28] sm:$0xff] (!%p217_p3) }
   0x8   : > { %v1187_v3 = vcombine.high (!%p217_p3), %v370_v0, %v374_v1  ;;  %v1186_v4 = vcombine.low (!%p217_p3), %v370_v0, %v374_v1  ;;  %v378_v5 = vld [vmem:[%s1642_s3 + $0x40] sm:$0xff] (!%p217_p3)  ;;  %v1189_v29 = vcombine.high (!%p217_p3), %v371_v22, %v375_v24  ;;  %v379_v31 = vld [vmem:[%s1642_s3 + $0x48] sm:$0xff] (!%p217_p3)  ;;  %v1188_v34 = vcombine.low (!%p217_p3), %v371_v22, %v375_v24 }
   0x9   : > { %v382_v6 = vld [vmem:[%s1642_s3 + $0x60] sm:$0xff] (!%p217_p3)  ;;  %v383_v32 = vld [vmem:[%s1642_s3 + $0x68] sm:$0xff] (!%p217_p3) }
   0xa   : > { %796 = vmatprep.subr.bf16.mxu1 (!%p217_p3), %v1187_v3  ;;  %v1195_v7 = vcombine.high (!%p217_p3), %v378_v5, %v382_v6  ;;  %v386_v8 = vld [vmem:[%s1642_s3 + $0x80] sm:$0xff] (!%p217_p3)  ;;  %v1194_v10 = vcombine.low (!%p217_p3), %v378_v5, %v382_v6  ;;  %v1197_v36 = vcombine.high (!%p217_p3), %v379_v31, %v383_v32  ;;  %v387_v37 = vld [vmem:[%s1642_s3 + $0x88] sm:$0xff] (!%p217_p3)  ;;  %v1196_v39 = vcombine.low (!%p217_p3), %v379_v31, %v383_v32  ;;  %v372_v6 = vld [vmem:[%s1642_s3 + $0x10] sm:$0xff] (!%p217_p3) }
   0xb   : > { %v390_v9 = vld [vmem:[%s1642_s3 + $0xa0] sm:$0xff] (!%p217_p3)  ;;  %797 = vmatpush1.bf16.msra.mxu1 (!%p217_p3), %v1186_v4  ;;  %v391_v38 = vld [vmem:[%s1642_s3 + $0xa8] sm:$0xff] (!%p217_p3) }
   0xc   : > { %798 = vmatprep.subr.bf16.mxu1 (!%p217_p3), %v1195_v7  ;;  %v1203_v11 = vcombine.high (!%p217_p3), %v386_v8, %v390_v9  ;;  %v394_v12 = vld [vmem:[%s1642_s3 + $0xc0] sm:$0xff] (!%p217_p3)  ;;  %v1202_v16 = vcombine.low (!%p217_p3), %v386_v8, %v390_v9  ;;  %v1205_v40 = vcombine.high (!%p217_p3), %v387_v37, %v391_v38  ;;  %v395_v41 = vld [vmem:[%s1642_s3 + $0xc8] sm:$0xff] (!%p217_p3)  ;;  %v1204_v43 = vcombine.low (!%p217_p3), %v387_v37, %v391_v38  ;;  %v376_v7 = vld [vmem:[%s1642_s3 + $0x30] sm:$0xff] (!%p217_p3) }
   0xd   : > { %v398_v13 = vld [vmem:[%s1642_s3 + $0xe0] sm:$0xff] (!%p217_p3)  ;;  %v399_v42 = vld [vmem:[%s1642_s3 + $0xe8] sm:$0xff] (!%p217_p3)  ;;  %v373_v8 = vld [vmem:[%s1642_s3 + $0x18] sm:$0xff] (!%p217_p3)  ;;  %v1191_v9 = vcombine.high (!%p217_p3), %v372_v6, %v376_v7 }
   0xe   : > { %s1650_s18 = smov (!%p253_p4, %s1318_s18), 1  ;;  %v1211_v17 = vcombine.high %v394_v12, %v398_v13  ;;  %v402_v18 = vld [vmem:[%s1642_s3 + $0x100] sm:$0xff]  ;;  %v1210_v21 = vcombine.low %v394_v12, %v398_v13  ;;  %v1213_v44 = vcombine.high %v395_v41, %v399_v42  ;;  %v403_v45 = vld [vmem:[%s1642_s3 + $0x108] sm:$0xff]  ;;  %v1212_v47 = vcombine.low %v395_v41, %v399_v42  ;;  %v396_v41 = vld [vmem:[%s1642_s3 + $0xd0] sm:$0xff] }
   0xf   : > { %s1253_s9 = sshll.u32 %s1650_s18, 5  ;;  %s1252_s17 = sshll.u32 %s1650_s18, 3  ;;  %799 = vmatpush1.bf16.msra.mxu1 %v1194_v10  ;;  %v406_v19 = vld [vmem:[%s1642_s3 + $0x120] sm:$0xff]  ;;  %v407_v46 = vld [vmem:[%s1642_s3 + $0x128] sm:$0xff]  ;;  %v377_v10 = vld [vmem:[%s1642_s3 + $0x38] sm:$0xff] }
  0x10   : > { %s266_s12 = scalar_lea.vmem %s1640_s1, %s1253_s9  ;;  %s260_s24 = scalar_lea.vmem %s1639_s0, %s1252_s17  ;;  %800 = vmatprep.subr.bf16.mxu1 %v1203_v11  ;;  %v1219_v23 = vcombine.high %v402_v18, %v406_v19  ;;  %v410_v25 = vld [vmem:[%s1642_s3 + $0x140] sm:$0xff]  ;;  %v1218_v28 = vcombine.low %v402_v18, %v406_v19  ;;  %v1221_v48 = vcombine.high %v403_v45, %v407_v46  ;;  %v411_v49 = vld [vmem:[%s1642_s3 + $0x148] sm:$0xff]  ;;  %v1220_v51 = vcombine.low %v403_v45, %v407_v46  ;;  %v400_v42 = vld [vmem:[%s1642_s3 + $0xf0] sm:$0xff] }
  0x11   : > { %v1299_v14 = vld [vmem:[%s266_s12] sm:$0xff]   ;;  %v1300_v15 = vld [vmem:[%s266_s12 + $0x8] sm:$0xff]   ;;  %v1301_v20 = vld [vmem:[%s266_s12 + $0x10] sm:$0xff]   ;;  %v1190_v11 = vcombine.low %v372_v6, %v376_v7  ;;  %v1192_v12 = vcombine.low %v373_v8, %v377_v10  ;;  %v1193_v13 = vcombine.high %v373_v8, %v377_v10  ;;  %s270_s23 = scalar_lea.vmem %s1644_s5, %s1252_s17 }
  0x12   : > { %1260 = vmatpush3.bf16.msra.mxu0 %v1299_v14  ;;  %v414_v26 = vld [vmem:[%s1642_s3 + $0x160] sm:$0xff]  ;;  %v1302_v27 = vld [vmem:[%s266_s12 + $0x18] sm:$0xff]   ;;  %v415_v50 = vld [vmem:[%s1642_s3 + $0x168] sm:$0xff]  ;;  %v1330_v14 = vmov 0  }
  0x13   : > { %1261 = vmatprep.subr.bf16.mxu0 %v1328_v2  ;;  %801 = vmatpush1.bf16.msra.mxu1 %v1202_v16  ;;  %v1227_v30 = vcombine.high %v410_v25, %v414_v26  ;;  %v1303_v33 = vld [vmem:[%s260_s24] sm:$0xff]   ;;  %v1226_v35 = vcombine.low %v410_v25, %v414_v26  ;;  %v1229_v52 = vcombine.high %v411_v49, %v415_v50  ;;  %v419_v56 = vld [vmem:[%s1642_s3 + $0x188] sm:$0xff]  ;;  %v384_v25 = vld [vmem:[%s1642_s3 + $0x70] sm:$0xff] }
  0x14   : > { %802 = vmatprep.subr.bf16.mxu1 %v1211_v17  ;;  %v1228_v53 = vcombine.low %v411_v49, %v415_v50  ;;  %v418_v54 = vld [vmem:[%s1642_s3 + $0x180] sm:$0xff]  ;;  %v423_v58 = vld [vmem:[%s1642_s3 + $0x1a8] sm:$0xff]  ;;  %828 = vmatprep.mubr.bf16.mxu1 %v1330_v14  ;;  %v381_v26 = vld [vmem:[%s1642_s3 + $0x58] sm:$0xff] }
  0x15   : > { %v422_v55 = vld [vmem:[%s1642_s3 + $0x1a0] sm:$0xff]  ;;  %v1236_v59 = vcombine.low %v419_v56, %v423_v58  ;;  %v1237_v60 = vcombine.high %v419_v56, %v423_v58  ;;  %v427_v0 = vld [vmem:[%s1642_s3 + $0x1c8] sm:$0xff]  ;;  %v404_v49 = vld [vmem:[%s1642_s3 + $0x110] sm:$0xff] }
  0x16   : > { %1262 = vmatpush3.bf16.msra.mxu0 %v1300_v15  ;;  %v1235_v57 = vcombine.high %v418_v54, %v422_v55  ;;  %v1234_v61 = vcombine.low %v418_v54, %v422_v55  ;;  %v426_v62 = vld [vmem:[%s1642_s3 + $0x1c0] sm:$0xff]  ;;  %v408_v50 = vld [vmem:[%s1642_s3 + $0x130] sm:$0xff] }
  0x17   : > { %1263 = vmatprep.subr.bf16.mxu0 %v1328_v2  ;;  %803 = vmatpush1.bf16.msra.mxu1 %v1210_v21  ;;  %v430_v63 = vld [vmem:[%s1642_s3 + $0x1e0] sm:$0xff]  ;;  %v1223_v55 = vcombine.high %v404_v49, %v408_v50  ;;  %v416_v58 = vld [vmem:[%s1642_s3 + $0x170] sm:$0xff] }
  0x18   : > { %804 = vmatprep.subr.bf16.mxu1 %v1219_v23  ;;  %v1243_v1 = vcombine.high %v426_v62, %v430_v63  ;;  %v1242_v5 = vcombine.low %v426_v62, %v430_v63  ;;  %v1179_v15 = vld [vmem:[%s1641_s2] ss:$0 sm:$0xff]  ;;  %v380_v23 = vld [vmem:[%s1642_s3 + $0x50] sm:$0xff] }
  0x19   : > { %v1199_v31 = vcombine.high %v380_v23, %v384_v25  ;;  %v1198_v37 = vcombine.low %v380_v23, %v384_v25  ;;  %v432_v10 = vld [vmem:[%s1642_s3 + $0x1f0] sm:$0xff]  ;;  %v1600_v23 = vld [vmem:[%s1643_s4] sm:$0xff] }
  0x1a   : > { %1264 = vmatpush3.bf16.msra.mxu0 %v1301_v20 }
  0x1b   : > { %1265 = vmatprep.subr.bf16.mxu0 %v1328_v2  ;;  %805 = vmatpush1.bf16.msra.mxu1 %v1218_v28  ;;  %v431_v2 = vld [vmem:[%s1642_s3 + $0x1e8] sm:$0xff] }
  0x1c   : > { %806 = vmatprep.subr.bf16.mxu1 %v1227_v30  ;;  %v1244_v3 = vcombine.low %v427_v0, %v431_v2  ;;  %v1245_v4 = vcombine.high %v427_v0, %v431_v2  ;;  %v424_v2 = vld [vmem:[%s1642_s3 + $0x1b0] sm:$0xff] }
  0x1e   : > { %1266 = vmatpush3.bf16.msra.mxu0 %v1302_v27  ;;  %v385_v27 = vld [vmem:[%s1642_s3 + $0x78] sm:$0xff] }
  0x1f   : > { %839 = vmatprep.subr.bf16.mxu0 %v1189_v29  ;;  %807 = vmatpush1.bf16.msra.mxu1 %v1226_v35  ;;  %v1201_v32 = vcombine.high %v381_v26, %v385_v27  ;;  %v389_v35 = vld [vmem:[%s1642_s3 + $0x98] sm:$0xff]  ;;  %v1200_v38 = vcombine.low %v381_v26, %v385_v27 }
  0x20   : > { %808 = vmatprep.subr.bf16.mxu1 %v1235_v57  ;;  %v412_v57 = vld [vmem:[%s1642_s3 + $0x150] sm:$0xff] }
  0x21   : > { %1268 = vmatmul.mubr.msk.bf16.vlgmr.msra.gmra.mrb[0].mxu0 %vm318_vm1, %v1303_v33  ;;  %v388_v33 = vld [vmem:[%s1642_s3 + $0x90] sm:$0xff]  ;;  %v1231_v63 = vcombine.high %v412_v57, %v416_v58 }
  0x22   : > { %840 = vmatpush1.bf16.msra.mxu0 %v1188_v34  ;;  %871 = vmatprep.mubr.bf16.mxu0 %v1330_v14  ;;  %v392_v34 = vld [vmem:[%s1642_s3 + $0xb0] sm:$0xff] }
  0x23   : > { %841 = vmatprep.subr.bf16.mxu0 %v1197_v36  ;;  %809 = vmatpush1.bf16.msra.mxu1 %v1234_v61  ;;  %v393_v36 = vld [vmem:[%s1642_s3 + $0xb8] sm:$0xff]  ;;  %v1206_v45 = vcombine.low %v388_v33, %v392_v34  ;;  %v1222_v61 = vcombine.low %v404_v49, %v408_v50 }
  0x24   : > { %810 = vmatprep.subr.bf16.mxu1 %v1243_v1  ;;  %v1208_v46 = vcombine.low %v389_v35, %v393_v36  ;;  %v420_v1 = vld [vmem:[%s1642_s3 + $0x190] sm:$0xff] }
  0x25   : > { %v1239_v7 = vcombine.high %v420_v1, %v424_v2 }
  0x26   : > { %842 = vmatpush1.bf16.msra.mxu0 %v1196_v39  ;;  %v1207_v39 = vcombine.high %v388_v33, %v392_v34 }
  0x27   : > { %843 = vmatprep.subr.bf16.mxu0 %v1205_v40  ;;  %811 = vmatpush1.bf16.msra.mxu1 %v1242_v5  ;;  %v1209_v40 = vcombine.high %v389_v35, %v393_v36  ;;  %v1230_v5 = vcombine.low %v412_v57, %v416_v58  ;;  %v1331_v57 = vmov 1966171168  }
  0x28   : > { %882 = vmatprep.subr.bf16.mxu1 %v1191_v9  ;;  %v428_v9 = vld [vmem:[%s1642_s3 + $0x1d0] sm:$0xff]  ;;  %v1043_v58 = vunpack.c.l.s4 %v1331_v57 }
  0x2a   : > { %844 = vmatpush1.bf16.msra.mxu0 %v1204_v43  ;;  %v397_v43 = vld [vmem:[%s1642_s3 + $0xd8] sm:$0xff] }
  0x2b   : > { %845 = vmatprep.subr.bf16.mxu0 %v1213_v44  ;;  %v401_v44 = vld [vmem:[%s1642_s3 + $0xf8] sm:$0xff] }
  0x2c   : > { %v1216_v54 = vcombine.low %v397_v43, %v401_v44 }
  0x2e   : > { %846 = vmatpush1.bf16.msra.mxu0 %v1212_v47  ;;  %v1215_v47 = vcombine.high %v396_v41, %v400_v42 }
  0x2f   : > { %847 = vmatprep.subr.bf16.mxu0 %v1221_v48  ;;  %v1217_v48 = vcombine.high %v397_v43, %v401_v44 }
  0x32   : > { %848 = vmatpush1.bf16.msra.mxu0 %v1220_v51  ;;  %v405_v51 = vld [vmem:[%s1642_s3 + $0x118] sm:$0xff] }
  0x33   : > { %849 = vmatprep.subr.bf16.mxu0 %v1229_v52  ;;  %v409_v52 = vld [vmem:[%s1642_s3 + $0x138] sm:$0xff] }
  0x34   : > { %v1225_v56 = vcombine.high %v405_v51, %v409_v52  ;;  %v1224_v62 = vcombine.low %v405_v51, %v409_v52 }
  0x36   : > { %850 = vmatpush1.bf16.msra.mxu0 %v1228_v53  ;;  %v1214_v53 = vcombine.low %v396_v41, %v400_v42 }
  0x37   : > { %851 = vmatprep.subr.bf16.mxu0 %v1237_v60  ;;  %v417_v60 = vld [vmem:[%s1642_s3 + $0x178] sm:$0xff] }
  0x3a   : > { %852 = vmatpush1.bf16.msra.mxu0 %v1236_v59  ;;  %v413_v59 = vld [vmem:[%s1642_s3 + $0x158] sm:$0xff] }
  0x3b   : > { %853 = vmatprep.subr.bf16.mxu0 %v1245_v4  ;;  %v1233_v0 = vcombine.high %v413_v59, %v417_v60  ;;  %v425_v4 = vld [vmem:[%s1642_s3 + $0x1b8] sm:$0xff]  ;;  %v1232_v6 = vcombine.low %v413_v59, %v417_v60 }
  0x3e   : > { %854 = vmatpush1.bf16.msra.mxu0 %v1244_v3  ;;  %v421_v3 = vld [vmem:[%s1642_s3 + $0x198] sm:$0xff] }
  0x3f   : > { %925 = vmatprep.subr.bf16.mxu0 %v1193_v13  ;;  %v1241_v8 = vcombine.high %v421_v3, %v425_v4  ;;  %v1238_v13 = vcombine.low %v420_v1, %v424_v2 }
  0xf4   : > { %v356_v16 = vpop.f32.mrb[0].mxu0 }
  0xf5   : > { %v357_v17 = vadd.f32 %v1179_v15, %v356_v16  ;;  %v1269_v18 = vpop.f32.mrb[1].mxu0 }
  0xf6   : > { %v359_v19 = vpop.f32.mrb[2].mxu0 }
  0xf7   : > { %v365_v20 = vmul.f32 0.2, %v357_v17  ;;  %v360_v21 = vadd.f32 %v1179_v15, %v359_v19  ;;  %v1270_v22 = vpop.f32.mrb[3].mxu0  ;;  %vm363_vm2 = vcmp.gt.f32.partialorder %v357_v17, 0.0  ;;  %v1247_v15 = vcombine.high %v428_v9, %v432_v10 }
  0xf8   : > { %v436_v19 = vlaneseq }
  0xf9   : > { %vm364_vm3 = vcmp.gt.f32.partialorder %v360_v21, 0.0  ;;  %v366_v24 = vmul.f32 0.2, %v360_v21  ;;  %v367_v28 = vsel %vm363_vm2, %v357_v17, %v365_v20  ;;  %v1246_v17 = vcombine.low %v428_v9, %v432_v10 }
  0xfa   : > { %v1593_v20 = vshrl.u32 %v436_v19, 7 }
  0xfb   : > { %v368_v29 = vsel %vm364_vm3, %v360_v21, %v366_v24 }
  0xfc   : > { %v1515_v30 = vpack.c.bf16 %v368_v29, %v367_v28  ;;  %v438_v21 = vsub.s32 0, %v1593_v20  ;;  %v446_v22 = vsub.s32 2, %v1593_v20  ;;  %v442_v24 = vsub.s32 1, %v1593_v20 }
  0xfd   : > { %v450_v25 = vsub.s32 3, %v1593_v20  ;;  %v454_v19 = vsub.s32 4, %v1593_v20 }
  0xfe   : > { %829 = vmatmul.mubr.bf16.vlgmr.msra.gmra.mrb[0].mxu1 %v1515_v30  ;;  %872 = vmatmul.mubr.bf16.vlgmr.msra.gmra.mrb[4].mxu0 %v1515_v30  ;;  %v439_v26 = vrot.slane %v1600_v23, %v438_v21  ;;  %v447_v27 = vrot.slane %v1600_v23, %v446_v22  ;;  %v462_v21 = vsub.s32 6, %v1593_v20  ;;  %v458_v22 = vsub.s32 5, %v1593_v20 }
  0xff   : > { %883 = vmatpush1.bf16.msra.mxu1 %v1190_v11  ;;  %926 = vmatpush1.bf16.msra.mxu0 %v1192_v12  ;;  %v429_v11 = vld [vmem:[%s1642_s3 + $0x1d8] sm:$0xff] }
 0x100   : > { %884 = vmatprep.subr.bf16.mxu1 %v1199_v31  ;;  %927 = vmatprep.subr.bf16.mxu0 %v1201_v32  ;;  %v433_v12 = vld [vmem:[%s1642_s3 + $0x1f8] sm:$0xff]  ;;  %v451_v31 = vrot.slane %v1600_v23, %v450_v25  ;;  %v455_v25 = vrot.slane %v1600_v23, %v454_v19 }
 0x101   : > { %914 = vmatprep.mubr.bf16.mxu1 %v1330_v14  ;;  %957 = vmatprep.mubr.bf16.mxu0 %v1330_v14  ;;  %v1240_v14 = vcombine.low %v421_v3, %v425_v4  ;;  %v1249_v16 = vcombine.high %v429_v11, %v433_v12  ;;  %v1248_v18 = vcombine.low %v429_v11, %v433_v12  ;;  %v1044_v3 = vunpack.c.0.s8 %v1043_v58 }
 0x103   : > { %885 = vmatpush1.bf16.msra.mxu1 %v1198_v37  ;;  %928 = vmatpush1.bf16.msra.mxu0 %v1200_v38  ;;  %v1609_v12 = vsub.s32 %v1044_v3, %v1593_v20 }
 0x104   : > { %886 = vmatprep.subr.bf16.mxu1 %v1207_v39  ;;  %929 = vmatprep.subr.bf16.mxu0 %v1209_v40 }
 0x107   : > { %887 = vmatpush1.bf16.msra.mxu1 %v1206_v45  ;;  %930 = vmatpush1.bf16.msra.mxu0 %v1208_v46 }
 0x108   : > { %888 = vmatprep.subr.bf16.mxu1 %v1215_v47  ;;  %931 = vmatprep.subr.bf16.mxu0 %v1217_v48 }
 0x10b   : > { %889 = vmatpush1.bf16.msra.mxu1 %v1214_v53  ;;  %932 = vmatpush1.bf16.msra.mxu0 %v1216_v54 }
 0x10c   : > { %890 = vmatprep.subr.bf16.mxu1 %v1223_v55  ;;  %933 = vmatprep.subr.bf16.mxu0 %v1225_v56 }
 0x10f   : > { %891 = vmatpush1.bf16.msra.mxu1 %v1222_v61  ;;  %934 = vmatpush1.bf16.msra.mxu0 %v1224_v62 }
 0x110   : > { %892 = vmatprep.subr.bf16.mxu1 %v1231_v63  ;;  %935 = vmatprep.subr.bf16.mxu0 %v1233_v0 }
 0x113   : > { %893 = vmatpush1.bf16.msra.mxu1 %v1230_v5  ;;  %936 = vmatpush1.bf16.msra.mxu0 %v1232_v6 }
 0x114   : > { %894 = vmatprep.subr.bf16.mxu1 %v1239_v7  ;;  %937 = vmatprep.subr.bf16.mxu0 %v1241_v8 }
 0x117   : > { %895 = vmatpush1.bf16.msra.mxu1 %v1238_v13  ;;  %938 = vmatpush1.bf16.msra.mxu0 %v1240_v14 }
 0x118   : > { %896 = vmatprep.subr.bf16.mxu1 %v1247_v15  ;;  %939 = vmatprep.subr.bf16.mxu0 %v1249_v16 }
 0x11b   : > { %897 = vmatpush1.bf16.msra.mxu1 %v1246_v17  ;;  %940 = vmatpush1.bf16.msra.mxu0 %v1248_v18 }
 0x11e   : > { %915 = vmatmul.mubr.bf16.vlgmr.msra.gmra.mrb[4].mxu1 %v1515_v30  ;;  %958 = vmatmul.mubr.bf16.vlgmr.msra.gmra.mrb[8].mxu0 %v1515_v30  ;;  %v443_v30 = vrot.slane %v1600_v23, %v442_v24  ;;  %v466_v24 = vsub.s32 7, %v1593_v20 }
 0x1d1   : > { %v830_v28 = vpop.f32.mrb[0].mxu1  ;;  %v873_v29 = vpop.f32.mrb[4].mxu0 }
 0x1d2   : > { %v832_v32 = vpop.f32.mrb[1].mxu1  ;;  %v875_v33 = vpop.f32.mrb[5].mxu0  ;;  %v831_v36 = vadd.f32 %v830_v28, %v439_v26  ;;  %v874_v37 = vadd.f32 %v873_v29, %v447_v27  ;;  %v459_v29 = vrot.slane %v1600_v23, %v458_v22 }
 0x1d3   : > { %v834_v34 = vpop.f32.mrb[2].mxu1  ;;  %v877_v35 = vpop.f32.mrb[6].mxu0  ;;  %v833_v42 = vadd.f32 %v832_v32, %v443_v30  ;;  %v876_v43 = vadd.f32 %v875_v33, %v451_v31 }
 0x1d4   : > { %v835_v38 = vadd.f32 %v834_v34, %v439_v26  ;;  %v878_v39 = vadd.f32 %v877_v35, %v447_v27  ;;  %v836_v40 = vpop.f32.mrb[3].mxu1  ;;  %v879_v41 = vpop.f32.mrb[7].mxu0  ;;  %v463_v26 = vrot.slane %v1600_v23, %v462_v21 }
 0x1d5   : > { %v837_v44 = vadd.f32 %v836_v40, %v443_v30  ;;  %v880_v45 = vadd.f32 %v879_v41, %v451_v31  ;;  %v467_v30 = vrot.slane %v1600_v23, %v466_v24 }
 0x1d6   : > { %v974_v46 = vadd.f32 %v835_v38, %v831_v36  ;;  %v988_v47 = vadd.f32 %v878_v39, %v874_v37 }
 0x1d7   : > { %v981_v48 = vadd.f32 %v837_v44, %v833_v42  ;;  %v995_v49 = vadd.f32 %v880_v45, %v876_v43 }
 0x1d8   : > { %v975_v50 = vrot.slane %v974_v46, 4  ;;  %v989_v51 = vrot.slane %v988_v47, 4 }
 0x1d9   : > { %v982_v52 = vrot.slane %v981_v48, 4  ;;  %v996_v53 = vrot.slane %v995_v49, 4 }
 0x1da   : > { %v976_v54 = vadd.f32 %v975_v50, %v974_v46  ;;  %v990_v55 = vadd.f32 %v989_v51, %v988_v47 }
 0x1db   : > { %v983_v56 = vadd.f32 %v982_v52, %v981_v48  ;;  %v997_v59 = vadd.f32 %v996_v53, %v995_v49 }
 0x1dc   : > { %v977_v60 = vrot.slane %v976_v54, 2  ;;  %v991_v61 = vrot.slane %v990_v55, 2 }
 0x1dd   : > { %v984_v62 = vrot.slane %v983_v56, 2  ;;  %v998_v63 = vrot.slane %v997_v59, 2 }
 0x1de   : > { %v978_v0 = vadd.f32 %v977_v60, %v976_v54  ;;  %v992_v1 = vadd.f32 %v991_v61, %v990_v55 }
 0x1df   : > { %v985_v2 = vadd.f32 %v984_v62, %v983_v56  ;;  %v999_v4 = vadd.f32 %v998_v63, %v997_v59 }
 0x1e0   : > { %v979_v5 = vrot.slane %v978_v0, 1  ;;  %v993_v6 = vrot.slane %v992_v1, 1 }
 0x1e1   : > { %v986_v7 = vrot.slane %v985_v2, 1  ;;  %v1000_v8 = vrot.slane %v999_v4, 1 }
 0x1e2   : > { %v980_v9 = vadd.f32 %v979_v5, %v978_v0  ;;  %v994_v10 = vadd.f32 %v993_v6, %v992_v1 }
 0x1e3   : > { %v987_v11 = vadd.f32 %v986_v7, %v985_v2  ;;  %v1001_v13 = vadd.f32 %v1000_v8, %v999_v4 }
 0x1e5   : > { %v1038_v14 = vcombine.low %v980_v9, %v987_v11  ;;  %v1039_v15 = vcombine.low %v994_v10, %v1001_v13 }
 0x1e7   : > { %v1048_v16 = vrot.slane %v1038_v14, %v1609_v12  ;;  %v1055_v17 = vrot.slane %v1039_v15, %v1609_v12 }
 0x1e9   : > { %v1070_v18 = vcombine.low %v1048_v16, %v1055_v17 }
 0x1eb   : > { %v1078_v13 = vrot.slane %v1070_v18, %v1609_v12 }
 0x1f1   : > { %v916_v27 = vpop.f32.mrb[4].mxu1  ;;  %v959_v28 = vpop.f32.mrb[8].mxu0 }
 0x1f2   : > { %v918_v31 = vpop.f32.mrb[5].mxu1  ;;  %v961_v32 = vpop.f32.mrb[9].mxu0  ;;  %v917_v35 = vadd.f32 %v916_v27, %v455_v25  ;;  %v960_v36 = vadd.f32 %v959_v28, %v463_v26 }
 0x1f3   : > { %v920_v33 = vpop.f32.mrb[6].mxu1  ;;  %v963_v34 = vpop.f32.mrb[10].mxu0  ;;  %v919_v40 = vadd.f32 %v918_v31, %v459_v29  ;;  %v962_v41 = vadd.f32 %v961_v32, %v467_v30 }
 0x1f4   : > { %v921_v37 = vadd.f32 %v920_v33, %v455_v25  ;;  %v964_v38 = vadd.f32 %v963_v34, %v463_v26  ;;  %v922_v39 = vpop.f32.mrb[7].mxu1  ;;  %v965_v20 = vpop.f32.mrb[11].mxu0 }
 0x1f5   : > { %v923_v42 = vadd.f32 %v922_v39, %v459_v29  ;;  %v966_v43 = vadd.f32 %v965_v20, %v467_v30 }
 0x1f6   : > { %v1002_v44 = vadd.f32 %v921_v37, %v917_v35  ;;  %v1016_v45 = vadd.f32 %v964_v38, %v960_v36 }
 0x1f7   : > { %v1009_v46 = vadd.f32 %v923_v42, %v919_v40  ;;  %v1023_v47 = vadd.f32 %v966_v43, %v962_v41 }
 0x1f8   : > { %v1003_v48 = vrot.slane %v1002_v44, 4  ;;  %v1017_v23 = vrot.slane %v1016_v45, 4 }
 0x1f9   : > { %v1010_v49 = vrot.slane %v1009_v46, 4  ;;  %v1024_v50 = vrot.slane %v1023_v47, 4 }
 0x1fa   : > { %v1004_v51 = vadd.f32 %v1003_v48, %v1002_v44  ;;  %v1018_v52 = vadd.f32 %v1017_v23, %v1016_v45 }
 0x1fb   : > { %v1011_v53 = vadd.f32 %v1010_v49, %v1009_v46  ;;  %v1025_v54 = vadd.f32 %v1024_v50, %v1023_v47 }
 0x1fc   : > { %v1005_v55 = vrot.slane %v1004_v51, 2  ;;  %v1019_v56 = vrot.slane %v1018_v52, 2 }
 0x1fd   : > { %v1012_v57 = vrot.slane %v1011_v53, 2  ;;  %v1026_v58 = vrot.slane %v1025_v54, 2 }
 0x1fe   : > { %v1006_v59 = vadd.f32 %v1005_v55, %v1004_v51  ;;  %v1020_v60 = vadd.f32 %v1019_v56, %v1018_v52 }
 0x1ff   : > { %v1013_v61 = vadd.f32 %v1012_v57, %v1011_v53  ;;  %v1027_v62 = vadd.f32 %v1026_v58, %v1025_v54 }
 0x200   : > { %v1007_v63 = vrot.slane %v1006_v59, 1  ;;  %v1021_v0 = vrot.slane %v1020_v60, 1 }
 0x201   : > { %v1014_v1 = vrot.slane %v1013_v61, 1  ;;  %v1028_v2 = vrot.slane %v1027_v62, 1 }
 0x202   : > { %v1008_v3 = vadd.f32 %v1007_v63, %v1006_v59  ;;  %v1022_v4 = vadd.f32 %v1021_v0, %v1020_v60 }
 0x203   : > { %v1015_v5 = vadd.f32 %v1014_v1, %v1013_v61  ;;  %v1029_v6 = vadd.f32 %v1028_v2, %v1027_v62 }
 0x205   : > { %v1040_v7 = vcombine.low %v1008_v3, %v1015_v5  ;;  %v1041_v8 = vcombine.low %v1022_v4, %v1029_v6 }
 0x207   : > { %v1062_v9 = vrot.slane %v1040_v7, %v1609_v12  ;;  %v1069_v10 = vrot.slane %v1041_v8, %v1609_v12 }
 0x209   : > { %v1071_v11 = vcombine.low %v1062_v9, %v1069_v10 }
 0x20b   : > { %v1085_v14 = vrot.slane %v1071_v11, %v1609_v12 }
 0x20d   : > { %v1086_v15 = vcombine.low %v1078_v13, %v1085_v14 }
 0x20f   : > { %1089 = vst [vmem:[%s270_s23] sm:$0xff] %v1086_v15 }
 0x210 PF: > { %s15_s20 = sadd.s32 1, %s1326_s20   ;;  %s1645_s18 = smov %s1322_s19 }
 0x211   : > { %p12_p5 = scmp.ge.s32.totalorder %s15_s20, 4   ;;  %s1646_s19 = smov %s1648_s21 }
 0x213   :  { %14 = sbr.rel (!%p12_p5) target bundleno = 2 (0x2), region = 77 }

// kernel: model_forward.13
= control target key start
LH: loop header
LB: loop body
LE: loop exit
PB: predicated region body
PF: predicated region fallthrough
CT: control target
= control target key end

     0   :  { %12 = vsyncpa [#allocation3], 0  ;;  %s2238_s0 = inlined_call_operand.vmem [shape: bf16[2,16,64], index: 0, kind: input, shape index: {}]   ;;  %s2239_s1 = inlined_call_operand.hbm [shape: bf16[64,64], index: 1, kind: input, shape index: {}]   ;;  %s2240_s2 = inlined_call_operand.hbm [shape: f32[1,64], index: 2, kind: input, shape index: {}]   ;;  %s2241_s3 = inlined_call_operand.hbm [shape: bf16[64,128], index: 3, kind: input, shape index: {}]   ;;  %s2242_s4 = inlined_call_operand.hbm [shape: f32[1,128], index: 4, kind: input, shape index: {}]   ;;  %s2243_s5 = inlined_call_operand.hbm [shape: bf16[128,1024], index: 5, kind: input, shape index: {}]   ;;  %s2244_s6 = inlined_call_operand.hbm [shape: f32[1,1024], index: 6, kind: input, shape index: {}]   ;;  %s2245_s7 = inlined_call_operand.vmem [shape: f32[2,1,1024], index: 7, kind: output, shape index: {}]  }
   0x1   :  { %13 = vsyncpa [#allocation5], 0 }
   0x2   :  { %14 = vsyncpa [#allocation8], 0 }
   0x3   :  { %15 = vsyncpa [#allocation11], 0  ;;  %s1970_s24 = smov 0   ;;  %s1972_s25 = smov 0  }
   0x4   :  { %s1974_s26 = smov 0  }
   0x5 LB: > { %s1916_s27 = smov [#allocation4]   ;;  %s1472_s29 = sadd.s32 4294967295, %s1914_s26   ;;  %s1914_s26 = sphi %s1974_s26, %s21_s26   ;;  %s1910_s25 = sphi %s1972_s25, %s2258_s25   ;;  %s1906_s24 = sphi %s1970_s24, %s2257_s24  }
   0x6   : > { %s244_s28 = sshll.u32 %s1916_s27, 4  ;;  %p1474_p0 = scmp.ge.s32.totalorder %s1914_s26, 1  ;;  %s245_s28 = int_to_ptr.vmem [resolvable:$true] %s244_s28 }
   0x7   : > { %p218_p1 = scmp.lt.s32.totalorder %s1914_s26, 3  ;;  %p1988_p2 = scmp.eq.s32.totalorder %s1472_s29, 0 }
   0x8   : > { %s1917_s9 = smov [#allocation7]   ;;  %s33_s12 = sadd.s32 1, %s1910_s25 }
   0x9   : > { %s2249_s30 = scalar_select %p1988_p2, 1, 0 }
   0xa   : > { %p1992_p3 = pnand %p1474_p0, %p218_p1  ;;  %s268_s10 = sshll.u32 %s1917_s9, 4  ;;  %s1998_s10 = int_to_ptr.vmem [resolvable:$true] %s268_s10 }
   0xb   : > { %p2009_p6 = scmp.ge.s32.totalorder %s33_s12, 2  ;;  %s1708_s16 = scalar_lea.hbm %s2240_s2, 16 }
   0xc   : > { %s2250_s8 = scalar_select %p1992_p3, 1, 0 }
   0xd   : > { %p1630_p4 = pneg %p1992_p3  ;;  %p1709_p7 = scmp.ne.s32.totalorder %s2240_s2, %s1708_s16 }
   0xe   : > { %s2252_s13 = scalar_select %p2009_p6, 1, 0 }
   0xf   : > { %p2002_p5 = pnand %p1988_p2, %p1630_p4  ;;  %p1715_p11 = scmp.lt.u32.totalorder %s1708_s16, %s2240_s2 }
  0x11   : > { %p2021_p8 = pneg %p2002_p5 }
  0x13   : > { %p1711_p9 = pnand %p2021_p8, %p1709_p7 }
  0x15   : > { %p1712_p10 = pneg %p1711_p9 }
  0x17   : > { %p1717_p12 = pnand %p1715_p11, %p1712_p10 }
  0x19   : > { %1720 = shalt.err (!%p1717_p12)
}
  0x1a   : > { %s1721_s22 = scalar_lea.vmem %s245_s28, 16  ;;  %s1728_s23 = scalar_lea.vmem %s245_s28, 32 }
  0x1b   : > { %p1722_p13 = scmp.ne.s32.totalorder %s245_s28, %s1721_s22  ;;  %p1729_p4 = scmp.lt.s32.totalorder %s245_s28, %s245_s28 }
  0x1c   : > { %p1730_p2 = scmp.lt.s32.totalorder %s1728_s23, %s1721_s22 }
  0x1d   : > { %p1724_p0 = pnand %p1722_p13, %p2021_p8 }
  0x1e   : > { %p1731_p3 = por %p1730_p2, %p1729_p4 }
  0x1f   : > { %p1725_p1 = pneg %p1724_p0 }
  0x21   : > { %p1732_p6 = pnand %p1731_p3, %p1725_p1 }
  0x23   : > { %1735 = shalt.err (!%p1732_p6)
}
  0x24   : > { %1636 = dma.hbm_to_vmem [thread:$0]  (!%p2002_p5), %s2240_s2, 16, %s245_s28, [#allocation5]  }
  0x25   : > { %s1736_s15 = scalar_lea.hbm %s2242_s4, 16 }
  0x26   : > { %p1737_p7 = scmp.ne.s32.totalorder %s2242_s4, %s1736_s15  ;;  %p1743_p3 = scmp.lt.u32.totalorder %s1736_s15, %s2242_s4 }
  0x28   : > { %p1739_p9 = pnand %p1737_p7, %p2021_p8 }
  0x2a   : > { %p1740_p2 = pneg %p1739_p9 }
  0x2c   : > { %p1745_p6 = pnand %p1743_p3, %p1740_p2 }
  0x2e   : > { %1748 = shalt.err (!%p1745_p6)
}
  0x2f   : > { %s1749_s28 = scalar_lea.vmem %s1998_s10, 16  ;;  %s1756_s21 = scalar_lea.vmem %s1998_s10, 32 }
  0x30   : > { %p1750_p10 = scmp.ne.s32.totalorder %s1998_s10, %s1749_s28  ;;  %p1757_p13 = scmp.lt.s32.totalorder %s1998_s10, %s1998_s10 }
  0x31   : > { %p1758_p0 = scmp.lt.s32.totalorder %s1756_s21, %s1749_s28 }
  0x32   : > { %p1752_p11 = pnand %p1750_p10, %p2021_p8 }
  0x33   : > { %p1759_p1 = por %p1758_p0, %p1757_p13 }
  0x34   : > { %p1753_p12 = pneg %p1752_p11 }
  0x36   : > { %p1760_p4 = pnand %p1759_p1, %p1753_p12 }
  0x38   : > { %1763 = shalt.err (!%p1760_p4)
}
  0x39   : > { %1642 = dma.hbm_to_vmem [thread:$0]  (!%p2002_p5), %s2242_s4, 16, %s1998_s10, [#allocation8]  }
  0x3a   : > { %p2254_p7 = scmp.ne.s32.totalorder %s2252_s13, 0  ;;  %s1918_s27 = smov [#allocation2]  }
  0x3b   : > { %s230_s29 = sshll.u32 %s1918_s27, 4  ;;  %s1764_s15 = scalar_lea.hbm %s2239_s1, 512  ;;  %s231_s29 = int_to_ptr.vmem [resolvable:$true] %s230_s29 }
  0x3c   : > { %s2260_s12 = smov (%p2254_p7, %s33_s12), 0  ;;  %p1765_p9 = scmp.ne.s32.totalorder %s2239_s1, %s1764_s15 }
  0x3d   : > { %p1771_p6 = scmp.lt.u32.totalorder %s1764_s15, %s2239_s1 }
  0x3e   : > { %p1767_p2 = pnand %p1765_p9, %p2021_p8 }
  0x40   : > { %p1768_p3 = pneg %p1767_p2 }
  0x42   : > { %p1773_p10 = pnand %p1771_p6, %p1768_p3 }
  0x44   : > { %1776 = shalt.err (!%p1773_p10)
}
  0x45   : > { %s1777_s13 = scalar_lea.vmem %s231_s29, 512  ;;  %p1785_p0 = scmp.lt.s32.totalorder %s231_s29, %s231_s29 }
  0x46   : > { %p1778_p11 = scmp.ne.s32.totalorder %s231_s29, %s1777_s13  ;;  %p1786_p1 = scmp.lt.s32.totalorder %s1777_s13, %s1777_s13 }
  0x48   : > { %p1780_p12 = pnand %p1778_p11, %p2021_p8  ;;  %p1787_p4 = por %p1786_p1, %p1785_p0 }
  0x4a   : > { %p1781_p13 = pneg %p1780_p12 }
  0x4c   : > { %p1788_p7 = pnand %p1787_p4, %p1781_p13 }
  0x4e   : > { %1791 = shalt.err (!%p1788_p7)
}
  0x4f   : > { %s1919_s20 = smov 64   ;;  %s1920_s28 = smov 4  }
  0x50   : > { %1633 = dma.hbm_to_vmem [thread:$0]  (!%p2002_p5), %s2239_s1, 512, %s231_s29, [#allocation3], %s1919_s20, %s1919_s20, %s1920_s28  }
  0x51   : > { %s1921_s23 = smov [#allocation6]   ;;  %s1922_s9 = smov [#allocation9]  }
  0x52   : > { %s254_s27 = sshll.u32 %s1921_s23, 4  ;;  %s278_s14 = sshll.u32 %s1922_s9, 4  ;;  %s255_s27 = int_to_ptr.vmem [resolvable:$true] %s254_s27  ;;  %s2085_s14 = int_to_ptr.vmem [resolvable:$true] %s278_s14 }
  0x53   : > { %s1792_s17 = scalar_lea.hbm %s2241_s3, 512 }
  0x54   : > { %p1793_p9 = scmp.ne.s32.totalorder %s2241_s3, %s1792_s17  ;;  %p1799_p6 = scmp.lt.u32.totalorder %s1792_s17, %s2241_s3 }
  0x56   : > { %p1795_p2 = pnand %p1793_p9, %p2021_p8 }
  0x58   : > { %p1796_p3 = pneg %p1795_p2 }
  0x5a   : > { %p1801_p10 = pnand %p1799_p6, %p1796_p3 }
  0x5c   : > { %1804 = shalt.err (!%p1801_p10)
}
  0x5d   : > { %s1805_s21 = scalar_lea.vmem %s255_s27, 512  ;;  %p1813_p0 = scmp.lt.s32.totalorder %s255_s27, %s255_s27 }
  0x5e   : > { %p1806_p11 = scmp.ne.s32.totalorder %s255_s27, %s1805_s21  ;;  %p1814_p1 = scmp.lt.s32.totalorder %s1805_s21, %s1805_s21 }
  0x60   : > { %p1808_p12 = pnand %p1806_p11, %p2021_p8  ;;  %p1815_p4 = por %p1814_p1, %p1813_p0 }
  0x62   : > { %p1809_p13 = pneg %p1808_p12 }
  0x64   : > { %p1816_p7 = pnand %p1815_p4, %p1809_p13 }
  0x66   : > { %1819 = shalt.err (!%p1816_p7)
}
  0x67   : > { %1639 = dma.hbm_to_vmem [thread:$0]  (!%p2002_p5), %s2241_s3, 512, %s255_s27, [#allocation5], %s1919_s20, %s1919_s20, %s1920_s28  }
  0x68   : > { %s1820_s16 = scalar_lea.hbm %s2243_s5, 8192 }
  0x69   : > { %p1821_p9 = scmp.ne.s32.totalorder %s2243_s5, %s1820_s16  ;;  %p1827_p6 = scmp.lt.u32.totalorder %s1820_s16, %s2243_s5 }
  0x6b   : > { %p1823_p2 = pnand %p1821_p9, %p2021_p8 }
  0x6d   : > { %p1824_p3 = pneg %p1823_p2 }
  0x6f   : > { %p1829_p10 = pnand %p1827_p6, %p1824_p3 }
  0x71   : > { %1832 = shalt.err (!%p1829_p10)
}
  0x72   : > { %s1833_s20 = scalar_lea.vmem %s2085_s14, 8192  ;;  %p1841_p0 = scmp.lt.s32.totalorder %s2085_s14, %s2085_s14 }
  0x73   : > { %p1834_p11 = scmp.ne.s32.totalorder %s2085_s14, %s1833_s20  ;;  %p1842_p1 = scmp.lt.s32.totalorder %s1833_s20, %s1833_s20 }
  0x75   : > { %p1836_p12 = pnand %p1834_p11, %p2021_p8  ;;  %p1843_p4 = por %p1842_p1, %p1841_p0 }
  0x77   : > { %p1837_p13 = pneg %p1836_p12 }
  0x79   : > { %p1844_p7 = pnand %p1843_p4, %p1837_p13 }
  0x7b   : > { %1847 = shalt.err (!%p1844_p7)
}
  0x7c   : > { %s1923_s28 = smov 512   ;;  %s1924_s27 = smov 32  }
  0x7d   : > { %1645 = dma.hbm_to_vmem [thread:$0]  (!%p2002_p5), %s2243_s5, 8192, %s2085_s14, [#allocation8], %s1923_s28, %s1923_s28, %s1924_s27  }
  0x7e   : > { %s1925_s22 = smov [#allocation10]   ;;  %s1848_s16 = scalar_lea.hbm %s2244_s6, 128 }
  0x7f   : > { %s292_s23 = sshll.u32 %s1925_s22, 4  ;;  %p1849_p9 = scmp.ne.s32.totalorder %s2244_s6, %s1848_s16  ;;  %s293_s23 = int_to_ptr.vmem [resolvable:$true] %s292_s23 }
  0x80   : > { %p1855_p6 = scmp.lt.u32.totalorder %s1848_s16, %s2244_s6 }
  0x81   : > { %p1851_p2 = pnand %p1849_p9, %p2021_p8 }
  0x83   : > { %p1852_p3 = pneg %p1851_p2 }
  0x85   : > { %p1857_p10 = pnand %p1855_p6, %p1852_p3 }
  0x87   : > { %1860 = shalt.err (!%p1857_p10)
}
  0x88   : > { %s1861_s14 = scalar_lea.vmem %s293_s23, 128  ;;  %p1869_p0 = scmp.lt.s32.totalorder %s293_s23, %s293_s23 }
  0x89   : > { %p1862_p11 = scmp.ne.s32.totalorder %s293_s23, %s1861_s14  ;;  %p1870_p1 = scmp.lt.s32.totalorder %s1861_s14, %s1861_s14 }
  0x8b   : > { %p1864_p12 = pnand %p1862_p11, %p2021_p8  ;;  %p1871_p4 = por %p1870_p1, %p1869_p0 }
  0x8d   : > { %p1865_p13 = pneg %p1864_p12 }
  0x8f   : > { %p1872_p7 = pnand %p1871_p4, %p1865_p13 }
  0x91   : > { %1875 = shalt.err (!%p1872_p7)
}
  0x92   : > { %1648 = dma.hbm_to_vmem [thread:$0]  (!%p2002_p5), %s2244_s6, 128, %s293_s23, [#allocation11]  }
  0x93   : > { %p2255_p9 = scmp.ne.s32.totalorder %s2250_s8, 0 }
  0x94   : > { %p2256_p2 = scmp.ne.s32.totalorder (!%p2255_p9), %s2249_s30, 0 }
  0x95   : > { %318 = sbr.rel (%p2255_p9) target bundleno = 902 (0x386), region = 48 }
  0x9c   : > { %1889 = dma.done.wait (%p2256_p2), [#allocation3], 512  }
  0x9d   : > { %1891 = vsyncadd (%p2256_p2), [#allocation3], 4294966784 }
  0x9e   : > { %1893 = dma.done.wait (%p2256_p2), [#allocation5], 528  }
  0x9f   : > { %1895 = vsyncadd (%p2256_p2), [#allocation5], 4294966768 }
  0xa0   : > { %1897 = dma.done.wait (%p2256_p2), [#allocation8], 8208  }
  0xa1   : > { %1899 = vsyncadd (%p2256_p2), [#allocation8], 4294959088 }
  0xa2   : > { %1901 = dma.done.wait (%p2256_p2), [#allocation11], 128  }
  0xa3   : > { %1903 = vsyncadd (%p2256_p2), [#allocation11], 4294967168  ;;  %p374_p5 = scmp.lt.s32.totalorder %s1906_s24, 1  ;;  %v1926_v0 = vmov 0.0   ;;  %vm1927_vm0 = vmmov 0   ;;  %v1699_v1 = vld [vmem:[#allocation2] sm:$0xff]  }
  0xa4   : > { %1582 = vmatprep.subr.bf16.mxu0 %v1926_v0  ;;  %1590 = vmatprep.mubr.msk.bf16.mxu0 %vm1927_vm0, %v1926_v0  ;;  %v1700_v2 = vld [vmem:[#allocation2 + $0x8] sm:$0xff]   ;;  %v1701_v4 = vld [vmem:[#allocation2 + $0x10] sm:$0xff]   ;;  %v1702_v6 = vld [vmem:[#allocation2 + $0x18] sm:$0xff]   ;;  %vm434_vm1 = vcmask 523264  }
  0xa5   : > { %1594 = vmatprep.subr.bf16.mxu1 %v1926_v0  ;;  %1602 = vmatprep.mubr.msk.bf16.mxu1 %vm1927_vm0, %v1926_v0  ;;  %s2262_s24 = smov (!%p374_p5, %s1906_s24), 1  ;;  %v1704_v3 = vld [vmem:[#allocation6] sm:$0xff]   ;;  %v1705_v5 = vld [vmem:[#allocation6 + $0x8] sm:$0xff]   ;;  %v1706_v8 = vld [vmem:[#allocation6 + $0x10] sm:$0xff]  }
  0xa6   : > { %s1571_s8 = sshll.u32 %s2262_s24, 3  ;;  %1583 = vmatpush3.bf16.msra.mxu0 %v1699_v1  ;;  %1595 = vmatpush3.bf16.msra.mxu1 %v1704_v3  ;;  %v1707_v9 = vld [vmem:[#allocation6 + $0x18] sm:$0xff]   ;;  %v576_v10 = vld [vmem:[#allocation9] sm:$0xff]  ;;  %v577_v12 = vld [vmem:[#allocation9 + $0x8] sm:$0xff] }
  0xa7   : > { %1584 = vmatprep.subr.bf16.mxu0 %v1926_v0  ;;  %s381_s19 = scalar_lea.vmem %s2238_s0, %s1571_s8  ;;  %1596 = vmatprep.subr.bf16.mxu1 %v1926_v0  ;;  %v580_v11 = vld [vmem:[#allocation9 + $0x20] sm:$0xff]  ;;  %v581_v15 = vld [vmem:[#allocation9 + $0x28] sm:$0xff]  ;;  %v1492_v38 = vld [vmem:[#allocation4] ss:$0 sm:$0xff]  ;;  %s386_s21 = scalar_lea.vmem %s2245_s7, %s1571_s8 }
  0xa8   : > { %v1703_v7 = vld [vmem:[%s381_s19] sm:$0xff]   ;;  %v1505_v13 = vcombine.low %v576_v10, %v580_v11  ;;  %v1506_v14 = vcombine.high %v576_v10, %v580_v11  ;;  %v1507_v18 = vcombine.low %v577_v12, %v581_v15  ;;  %v1508_v19 = vcombine.high %v577_v12, %v581_v15  ;;  %v585_v47 = vld [vmem:[#allocation9 + $0x48] sm:$0xff] }
  0xa9   : > { %v584_v16 = vld [vmem:[#allocation9 + $0x40] sm:$0xff]  ;;  %v589_v48 = vld [vmem:[#allocation9 + $0x68] sm:$0xff] }
  0xaa   : > { %1585 = vmatpush3.bf16.msra.mxu0 %v1700_v2  ;;  %1597 = vmatpush3.bf16.msra.mxu1 %v1705_v5  ;;  %v588_v17 = vld [vmem:[#allocation9 + $0x60] sm:$0xff]  ;;  %v1516_v52 = vcombine.high %v585_v47, %v589_v48  ;;  %v593_v53 = vld [vmem:[#allocation9 + $0x88] sm:$0xff]  ;;  %v1515_v55 = vcombine.low %v585_v47, %v589_v48 }
  0xab   : > { %1586 = vmatprep.subr.bf16.mxu0 %v1926_v0  ;;  %1598 = vmatprep.subr.bf16.mxu1 %v1926_v0  ;;  %v1514_v20 = vcombine.high %v584_v16, %v588_v17  ;;  %v1513_v21 = vcombine.low %v584_v16, %v588_v17  ;;  %v592_v22 = vld [vmem:[#allocation9 + $0x80] sm:$0xff]  ;;  %v597_v54 = vld [vmem:[#allocation9 + $0xa8] sm:$0xff] }
  0xac   : > { %v596_v23 = vld [vmem:[#allocation9 + $0xa0] sm:$0xff]  ;;  %v1524_v56 = vcombine.high %v593_v53, %v597_v54  ;;  %v601_v57 = vld [vmem:[#allocation9 + $0xc8] sm:$0xff]  ;;  %v1523_v59 = vcombine.low %v593_v53, %v597_v54 }
  0xad   : > { %v1522_v24 = vcombine.high %v592_v22, %v596_v23  ;;  %v1521_v25 = vcombine.low %v592_v22, %v596_v23  ;;  %v600_v26 = vld [vmem:[#allocation9 + $0xc0] sm:$0xff]  ;;  %v605_v58 = vld [vmem:[#allocation9 + $0xe8] sm:$0xff]  ;;  %v578_v22 = vld [vmem:[#allocation9 + $0x10] sm:$0xff] }
  0xae   : > { %1587 = vmatpush3.bf16.msra.mxu0 %v1701_v4  ;;  %1599 = vmatpush3.bf16.msra.mxu1 %v1706_v8  ;;  %v604_v27 = vld [vmem:[#allocation9 + $0xe0] sm:$0xff]  ;;  %v1532_v60 = vcombine.high %v601_v57, %v605_v58  ;;  %v609_v61 = vld [vmem:[#allocation9 + $0x108] sm:$0xff]  ;;  %v1531_v63 = vcombine.low %v601_v57, %v605_v58  ;;  %v582_v23 = vld [vmem:[#allocation9 + $0x30] sm:$0xff] }
  0xaf   : > { %1588 = vmatprep.subr.bf16.mxu0 %v1926_v0  ;;  %1600 = vmatprep.subr.bf16.mxu1 %v1926_v0  ;;  %v1530_v28 = vcombine.high %v600_v26, %v604_v27  ;;  %v1529_v29 = vcombine.low %v600_v26, %v604_v27  ;;  %v608_v30 = vld [vmem:[#allocation9 + $0x100] sm:$0xff]  ;;  %v613_v62 = vld [vmem:[#allocation9 + $0x128] sm:$0xff]  ;;  %v583_v26 = vld [vmem:[#allocation9 + $0x38] sm:$0xff]  ;;  %v1509_v27 = vcombine.low %v578_v22, %v582_v23 }
  0xb0   : > { %v612_v31 = vld [vmem:[#allocation9 + $0x120] sm:$0xff]  ;;  %v1540_v0 = vcombine.high %v609_v61, %v613_v62  ;;  %v617_v1 = vld [vmem:[#allocation9 + $0x148] sm:$0xff]  ;;  %v1539_v3 = vcombine.low %v609_v61, %v613_v62  ;;  %v602_v57 = vld [vmem:[#allocation9 + $0xd0] sm:$0xff] }
  0xb1   : > { %v1538_v32 = vcombine.high %v608_v30, %v612_v31  ;;  %v1537_v33 = vcombine.low %v608_v30, %v612_v31  ;;  %v616_v34 = vld [vmem:[#allocation9 + $0x140] sm:$0xff]  ;;  %v621_v2 = vld [vmem:[#allocation9 + $0x168] sm:$0xff]  ;;  %v1928_v30 = vmov 0   ;;  %v1499_v31 = vld [vmem:[#allocation7] ss:$0 sm:$0xff] }
  0xb2   : > { %1589 = vmatpush3.bf16.msra.mxu0 %v1702_v6  ;;  %1601 = vmatpush3.bf16.msra.mxu1 %v1707_v9  ;;  %v620_v35 = vld [vmem:[#allocation9 + $0x160] sm:$0xff]  ;;  %v1548_v4 = vcombine.high %v617_v1, %v621_v2  ;;  %v1547_v5 = vcombine.low %v617_v1, %v621_v2  ;;  %v625_v8 = vld [vmem:[#allocation9 + $0x188] sm:$0xff]  ;;  %v606_v58 = vld [vmem:[#allocation9 + $0xf0] sm:$0xff] }
  0xb3   : > { %1002 = vmatprep.subr.bf16.mxu0 %v1506_v14  ;;  %1045 = vmatprep.subr.bf16.mxu1 %v1508_v19  ;;  %v1546_v36 = vcombine.high %v616_v34, %v620_v35  ;;  %v1545_v37 = vcombine.low %v616_v34, %v620_v35  ;;  %v624_v6 = vld [vmem:[#allocation9 + $0x180] sm:$0xff]  ;;  %v629_v10 = vld [vmem:[#allocation9 + $0x1a8] sm:$0xff]  ;;  %v610_v1 = vld [vmem:[#allocation9 + $0x110] sm:$0xff] }
  0xb4   : > { %v1555_v12 = vcombine.low %v625_v8, %v629_v10  ;;  %v632_v14 = vld [vmem:[#allocation9 + $0x1c0] sm:$0xff]  ;;  %v633_v16 = vld [vmem:[#allocation9 + $0x1c8] sm:$0xff]  ;;  %v614_v2 = vld [vmem:[#allocation9 + $0x130] sm:$0xff] }
  0xb5   : > { %1591 = vmatmul.mubr.msk.bf16.vlgmr.msra.gmra.mrb[0].mxu0 %vm434_vm1, %v1703_v7  ;;  %v628_v7 = vld [vmem:[#allocation9 + $0x1a0] sm:$0xff] }
  0xb6   : > { %1003 = vmatpush1.bf16.msra.mxu0 %v1505_v13  ;;  %v1554_v9 = vcombine.high %v624_v6, %v628_v7  ;;  %v1553_v11 = vcombine.low %v624_v6, %v628_v7  ;;  %v1556_v13 = vcombine.high %v625_v8, %v629_v10  ;;  %v636_v15 = vld [vmem:[#allocation9 + $0x1e0] sm:$0xff]  ;;  %1034 = vmatprep.mubr.bf16.mxu0 %v1928_v30  ;;  %v622_v10 = vld [vmem:[#allocation9 + $0x170] sm:$0xff] }
  0xb7   : > { %1004 = vmatprep.subr.bf16.mxu0 %v1514_v20  ;;  %v1562_v17 = vcombine.high %v632_v14, %v636_v15  ;;  %v1561_v19 = vcombine.low %v632_v14, %v636_v15  ;;  %v1542_v7 = vcombine.high %v610_v1, %v614_v2 }
  0xba   : > { %1005 = vmatpush1.bf16.msra.mxu0 %v1513_v21 }
  0xbb   : > { %1006 = vmatprep.subr.bf16.mxu0 %v1522_v24  ;;  %v579_v24 = vld [vmem:[#allocation9 + $0x18] sm:$0xff] }
  0xbe   : > { %1007 = vmatpush1.bf16.msra.mxu0 %v1521_v25  ;;  %v1510_v25 = vcombine.high %v578_v22, %v582_v23 }
  0xbf   : > { %1008 = vmatprep.subr.bf16.mxu0 %v1530_v28  ;;  %v1511_v28 = vcombine.low %v579_v24, %v583_v26 }
  0xc2   : > { %1009 = vmatpush1.bf16.msra.mxu0 %v1529_v29  ;;  %v1512_v29 = vcombine.high %v579_v24, %v583_v26  ;;  %v638_v26 = vld [vmem:[#allocation9 + $0x1f0] sm:$0xff] }
  0xc3   : > { %1010 = vmatprep.subr.bf16.mxu0 %v1538_v32 }
  0xc6   : > { %1011 = vmatpush1.bf16.msra.mxu0 %v1537_v33 }
  0xc7   : > { %1012 = vmatprep.subr.bf16.mxu0 %v1546_v36 }
  0xca   : > { %1013 = vmatpush1.bf16.msra.mxu0 %v1545_v37 }
  0xcb   : > { %1014 = vmatprep.subr.bf16.mxu0 %v1554_v9  ;;  %v618_v9 = vld [vmem:[#allocation9 + $0x150] sm:$0xff] }
  0xcc   : > { %v1550_v15 = vcombine.high %v618_v9, %v622_v10 }
  0xce   : > { %1015 = vmatpush1.bf16.msra.mxu0 %v1553_v11  ;;  %v619_v11 = vld [vmem:[#allocation9 + $0x158] sm:$0xff] }
  0xcf   : > { %1016 = vmatprep.subr.bf16.mxu0 %v1562_v17  ;;  %v626_v17 = vld [vmem:[#allocation9 + $0x190] sm:$0xff] }
  0xd2   : > { %1017 = vmatpush1.bf16.msra.mxu0 %v1561_v19  ;;  %v627_v19 = vld [vmem:[#allocation9 + $0x198] sm:$0xff] }
  0xd3   : > { %1088 = vmatprep.subr.bf16.mxu0 %v1510_v25  ;;  %v634_v25 = vld [vmem:[#allocation9 + $0x1d0] sm:$0xff] }
 0x188   : > { %v472_v39 = vpop.f32.mrb[0].mxu0 }
 0x189   : > { %v473_v40 = vadd.f32 %v1492_v38, %v472_v39  ;;  %v1592_v41 = vpop.f32.mrb[1].mxu0  ;;  %v586_v39 = vld [vmem:[#allocation9 + $0x50] sm:$0xff] }
 0x18a   : > { %v475_v42 = vpop.f32.mrb[2].mxu0  ;;  %v590_v41 = vld [vmem:[#allocation9 + $0x70] sm:$0xff] }
 0x18b   : > { %v481_v43 = vmul.f32 0.2, %v473_v40  ;;  %v476_v44 = vadd.f32 %v1492_v38, %v475_v42  ;;  %v1593_v45 = vpop.f32.mrb[3].mxu0  ;;  %vm479_vm2 = vcmp.gt.f32.partialorder %v473_v40, 0.0  ;;  %v587_v42 = vld [vmem:[#allocation9 + $0x58] sm:$0xff]  ;;  %v1518_v47 = vcombine.high %v586_v39, %v590_v41 }
 0x18c   : > { %v1517_v53 = vcombine.low %v586_v39, %v590_v41  ;;  %v2186_v39 = vld [vmem:[#allocation10] sm:$0xff] }
 0x18d   : > { %vm480_vm3 = vcmp.gt.f32.partialorder %v476_v44, 0.0  ;;  %v482_v46 = vmul.f32 0.2, %v476_v44  ;;  %v483_v49 = vsel %vm479_vm2, %v473_v40, %v481_v43  ;;  %v591_v43 = vld [vmem:[#allocation9 + $0x78] sm:$0xff] }
 0x18e   : > { %v1520_v48 = vcombine.high %v587_v42, %v591_v43  ;;  %v1519_v54 = vcombine.low %v587_v42, %v591_v43 }
 0x18f   : > { %v484_v50 = vsel %vm480_vm3, %v476_v44, %v482_v46 }
 0x190   : > { %v485_v51 = vpack.c.bf16 %v484_v50, %v483_v49  ;;  %v594_v49 = vld [vmem:[#allocation9 + $0x90] sm:$0xff] }
 0x191   : > { %v598_v50 = vld [vmem:[#allocation9 + $0xb0] sm:$0xff] }
 0x192   : > { %1603 = vmatmul.mubr.msk.bf16.vlgmr.msra.gmra.mrb[0].mxu1 %vm434_vm1, %v485_v51  ;;  %v595_v51 = vld [vmem:[#allocation9 + $0x98] sm:$0xff]  ;;  %v1525_v61 = vcombine.low %v594_v49, %v598_v50 }
 0x193   : > { %1046 = vmatpush1.bf16.msra.mxu1 %v1507_v18  ;;  %v637_v18 = vld [vmem:[#allocation9 + $0x1e8] sm:$0xff]  ;;  %1077 = vmatprep.mubr.bf16.mxu1 %v1928_v30 }
 0x194   : > { %1047 = vmatprep.subr.bf16.mxu1 %v1516_v52  ;;  %v1563_v20 = vcombine.low %v633_v16, %v637_v18  ;;  %v1564_v21 = vcombine.high %v633_v16, %v637_v18  ;;  %v599_v52 = vld [vmem:[#allocation9 + $0xb8] sm:$0xff]  ;;  %v630_v18 = vld [vmem:[#allocation9 + $0x1b0] sm:$0xff] }
 0x195   : > { %v1527_v62 = vcombine.low %v595_v51, %v599_v52  ;;  %v1558_v23 = vcombine.high %v626_v17, %v630_v18 }
 0x197   : > { %1048 = vmatpush1.bf16.msra.mxu1 %v1515_v55  ;;  %v1526_v55 = vcombine.high %v594_v49, %v598_v50 }
 0x198   : > { %1049 = vmatprep.subr.bf16.mxu1 %v1524_v56  ;;  %v1528_v56 = vcombine.high %v595_v51, %v599_v52 }
 0x19b   : > { %1050 = vmatpush1.bf16.msra.mxu1 %v1523_v59  ;;  %v603_v59 = vld [vmem:[#allocation9 + $0xd8] sm:$0xff] }
 0x19c   : > { %1051 = vmatprep.subr.bf16.mxu1 %v1532_v60  ;;  %v607_v60 = vld [vmem:[#allocation9 + $0xf8] sm:$0xff] }
 0x19d   : > { %v1535_v6 = vcombine.low %v603_v59, %v607_v60 }
 0x19f   : > { %1052 = vmatpush1.bf16.msra.mxu1 %v1531_v63  ;;  %v1534_v63 = vcombine.high %v602_v57, %v606_v58 }
 0x1a0   : > { %1053 = vmatprep.subr.bf16.mxu1 %v1540_v0  ;;  %v1536_v0 = vcombine.high %v603_v59, %v607_v60 }
 0x1a3   : > { %1054 = vmatpush1.bf16.msra.mxu1 %v1539_v3  ;;  %v611_v3 = vld [vmem:[#allocation9 + $0x118] sm:$0xff] }
 0x1a4   : > { %1055 = vmatprep.subr.bf16.mxu1 %v1548_v4  ;;  %v615_v4 = vld [vmem:[#allocation9 + $0x138] sm:$0xff] }
 0x1a5   : > { %v1544_v8 = vcombine.high %v611_v3, %v615_v4  ;;  %v1543_v14 = vcombine.low %v611_v3, %v615_v4 }
 0x1a7   : > { %1056 = vmatpush1.bf16.msra.mxu1 %v1547_v5  ;;  %v1533_v5 = vcombine.low %v602_v57, %v606_v58 }
 0x1a8   : > { %1057 = vmatprep.subr.bf16.mxu1 %v1556_v13  ;;  %v1541_v13 = vcombine.low %v610_v1, %v614_v2 }
 0x1ab   : > { %1058 = vmatpush1.bf16.msra.mxu1 %v1555_v12  ;;  %v623_v12 = vld [vmem:[#allocation9 + $0x178] sm:$0xff] }
 0x1ac   : > { %1059 = vmatprep.subr.bf16.mxu1 %v1564_v21  ;;  %v1552_v16 = vcombine.high %v619_v11, %v623_v12  ;;  %v1549_v21 = vcombine.low %v618_v9, %v622_v10  ;;  %v1551_v22 = vcombine.low %v619_v11, %v623_v12 }
 0x1af   : > { %1060 = vmatpush1.bf16.msra.mxu1 %v1563_v20  ;;  %v631_v20 = vld [vmem:[#allocation9 + $0x1b8] sm:$0xff] }
 0x1b0   : > { %1131 = vmatprep.subr.bf16.mxu1 %v1512_v29  ;;  %v1560_v24 = vcombine.high %v627_v19, %v631_v20  ;;  %v1557_v29 = vcombine.low %v626_v17, %v630_v18 }
 0x265   : > { %v562_v32 = vpop.f32.mrb[0].mxu1 }
 0x266   : > { %v563_v33 = vadd.f32 %v1499_v31, %v562_v32  ;;  %v1604_v34 = vpop.f32.mrb[1].mxu1 }
 0x267   : > { %v565_v35 = vpop.f32.mrb[2].mxu1 }
 0x268   : > { %v571_v36 = vmul.f32 0.2, %v563_v33  ;;  %v566_v37 = vadd.f32 %v1499_v31, %v565_v35  ;;  %v1605_v38 = vpop.f32.mrb[3].mxu1  ;;  %vm569_vm4 = vcmp.gt.f32.partialorder %v563_v33, 0.0  ;;  %v1566_v31 = vcombine.high %v634_v25, %v638_v26 }
 0x269   : > { %v642_v35 = vlaneseq }
 0x26a   : > { %vm570_vm5 = vcmp.gt.f32.partialorder %v566_v37, 0.0  ;;  %v572_v40 = vmul.f32 0.2, %v566_v37  ;;  %v573_v44 = vsel %vm569_vm4, %v563_v33, %v571_v36  ;;  %v1565_v33 = vcombine.low %v634_v25, %v638_v26 }
 0x26b   : > { %v2182_v36 = vshrl.u32 %v642_v35, 7  ;;  %v1929_v25 = vmov 1966171168  }
 0x26c   : > { %v574_v45 = vsel %vm570_vm5, %v566_v37, %v572_v40  ;;  %v1297_v26 = vunpack.c.l.s4 %v1929_v25 }
 0x26d   : > { %v2176_v46 = vpack.c.bf16 %v574_v45, %v573_v44  ;;  %v644_v37 = vsub.s32 0, %v2182_v36  ;;  %v652_v38 = vsub.s32 2, %v2182_v36  ;;  %v648_v40 = vsub.s32 1, %v2182_v36 }
 0x26e   : > { %v656_v41 = vsub.s32 3, %v2182_v36  ;;  %v1298_v35 = vunpack.c.0.s8 %v1297_v26 }
 0x26f   : > { %1035 = vmatmul.mubr.bf16.vlgmr.msra.gmra.mrb[4].mxu0 %v2176_v46  ;;  %1078 = vmatmul.mubr.bf16.vlgmr.msra.gmra.mrb[4].mxu1 %v2176_v46  ;;  %v645_v42 = vrot.slane %v2186_v39, %v644_v37  ;;  %v653_v43 = vrot.slane %v2186_v39, %v652_v38  ;;  %v649_v44 = vrot.slane %v2186_v39, %v648_v40 }
 0x270   : > { %1089 = vmatpush1.bf16.msra.mxu0 %v1509_v27  ;;  %1132 = vmatpush1.bf16.msra.mxu1 %v1511_v28  ;;  %v635_v27 = vld [vmem:[#allocation9 + $0x1d8] sm:$0xff]  ;;  %v657_v45 = vrot.slane %v2186_v39, %v656_v41 }
 0x271   : > { %1090 = vmatprep.subr.bf16.mxu0 %v1518_v47  ;;  %1133 = vmatprep.subr.bf16.mxu1 %v1520_v48  ;;  %v639_v28 = vld [vmem:[#allocation9 + $0x1f8] sm:$0xff] }
 0x272   : > { %1120 = vmatprep.mubr.bf16.mxu0 %v1928_v30  ;;  %1163 = vmatprep.mubr.bf16.mxu1 %v1928_v30  ;;  %v1559_v30 = vcombine.low %v627_v19, %v631_v20  ;;  %v1568_v32 = vcombine.high %v635_v27, %v639_v28  ;;  %v1567_v34 = vcombine.low %v635_v27, %v639_v28 }
 0x274   : > { %1091 = vmatpush1.bf16.msra.mxu0 %v1517_v53  ;;  %1134 = vmatpush1.bf16.msra.mxu1 %v1519_v54 }
 0x275   : > { %1092 = vmatprep.subr.bf16.mxu0 %v1526_v55  ;;  %1135 = vmatprep.subr.bf16.mxu1 %v1528_v56 }
 0x278   : > { %1093 = vmatpush1.bf16.msra.mxu0 %v1525_v61  ;;  %1136 = vmatpush1.bf16.msra.mxu1 %v1527_v62 }
 0x279   : > { %1094 = vmatprep.subr.bf16.mxu0 %v1534_v63  ;;  %1137 = vmatprep.subr.bf16.mxu1 %v1536_v0 }
 0x27c   : > { %1095 = vmatpush1.bf16.msra.mxu0 %v1533_v5  ;;  %1138 = vmatpush1.bf16.msra.mxu1 %v1535_v6 }
 0x27d   : > { %1096 = vmatprep.subr.bf16.mxu0 %v1542_v7  ;;  %1139 = vmatprep.subr.bf16.mxu1 %v1544_v8 }
 0x280   : > { %1097 = vmatpush1.bf16.msra.mxu0 %v1541_v13  ;;  %1140 = vmatpush1.bf16.msra.mxu1 %v1543_v14 }
 0x281   : > { %1098 = vmatprep.subr.bf16.mxu0 %v1550_v15  ;;  %1141 = vmatprep.subr.bf16.mxu1 %v1552_v16 }
 0x284   : > { %1099 = vmatpush1.bf16.msra.mxu0 %v1549_v21  ;;  %1142 = vmatpush1.bf16.msra.mxu1 %v1551_v22 }
 0x285   : > { %1100 = vmatprep.subr.bf16.mxu0 %v1558_v23  ;;  %1143 = vmatprep.subr.bf16.mxu1 %v1560_v24 }
 0x288   : > { %1101 = vmatpush1.bf16.msra.mxu0 %v1557_v29  ;;  %1144 = vmatpush1.bf16.msra.mxu1 %v1559_v30 }
 0x289   : > { %1102 = vmatprep.subr.bf16.mxu0 %v1566_v31  ;;  %1145 = vmatprep.subr.bf16.mxu1 %v1568_v32 }
 0x28c   : > { %1103 = vmatpush1.bf16.msra.mxu0 %v1565_v33  ;;  %1146 = vmatpush1.bf16.msra.mxu1 %v1567_v34 }
 0x28f   : > { %1121 = vmatmul.mubr.bf16.vlgmr.msra.gmra.mrb[8].mxu0 %v2176_v46  ;;  %1164 = vmatmul.mubr.bf16.vlgmr.msra.gmra.mrb[8].mxu1 %v2176_v46 }
 0x342   : > { %v1036_v46 = vpop.f32.mrb[4].mxu0  ;;  %v1079_v47 = vpop.f32.mrb[4].mxu1 }
 0x343   : > { %v1037_v48 = vadd.f32 %v1036_v46, %v645_v42  ;;  %v1080_v49 = vadd.f32 %v1079_v47, %v653_v43  ;;  %v1038_v50 = vpop.f32.mrb[5].mxu0  ;;  %v1081_v51 = vpop.f32.mrb[5].mxu1  ;;  %v2197_v46 = vsub.s32 %v1298_v35, %v2182_v36 }
 0x344   : > { %v1039_v52 = vadd.f32 %v1038_v50, %v649_v44  ;;  %v1082_v53 = vadd.f32 %v1081_v51, %v657_v45  ;;  %v1040_v54 = vpop.f32.mrb[6].mxu0  ;;  %v1083_v55 = vpop.f32.mrb[6].mxu1  ;;  %v660_v50 = vsub.s32 4, %v2182_v36  ;;  %v668_v51 = vsub.s32 6, %v2182_v36 }
 0x345   : > { %vm1174_vm6 = vcmp.gt.f32.partialorder %v1037_v48, 0.0  ;;  %v1190_v56 = vmul.f32 0.2, %v1037_v48  ;;  %vm1176_vm7 = vcmp.gt.f32.partialorder %v1080_v49, 0.0  ;;  %v1192_v57 = vmul.f32 0.2, %v1080_v49 }
 0x346   : > { %vm1175_vm8 = vcmp.gt.f32.partialorder %v1039_v52, 0.0  ;;  %v1191_v58 = vmul.f32 0.2, %v1039_v52  ;;  %vm1177_vm9 = vcmp.gt.f32.partialorder %v1082_v53, 0.0  ;;  %v1193_v59 = vmul.f32 0.2, %v1082_v53 }
 0x347   : > { %v1041_v60 = vadd.f32 %v1040_v54, %v645_v42  ;;  %v1084_v61 = vadd.f32 %v1083_v55, %v653_v43  ;;  %v1042_v62 = vpop.f32.mrb[7].mxu0  ;;  %v1085_v63 = vpop.f32.mrb[7].mxu1  ;;  %v1206_v0 = vsel %vm1174_vm6, %v1037_v48, %v1190_v56  ;;  %v1208_v1 = vsel %vm1176_vm7, %v1080_v49, %v1192_v57 }
 0x348   : > { %v1043_v2 = vadd.f32 %v1042_v62, %v649_v44  ;;  %v1086_v3 = vadd.f32 %v1085_v63, %v657_v45  ;;  %v1207_v8 = vsel %vm1175_vm8, %v1039_v52, %v1191_v58  ;;  %v1209_v9 = vsel %vm1177_vm9, %v1082_v53, %v1193_v59 }
 0x349   : > { %vm1182_vm10 = vcmp.gt.f32.partialorder %v1041_v60, 0.0  ;;  %v1198_v4 = vmul.f32 0.2, %v1041_v60  ;;  %vm1184_vm11 = vcmp.gt.f32.partialorder %v1084_v61, 0.0  ;;  %v1200_v5 = vmul.f32 0.2, %v1084_v61 }
 0x34a   : > { %vm1183_vm12 = vcmp.gt.f32.partialorder %v1043_v2, 0.0  ;;  %v1199_v6 = vmul.f32 0.2, %v1043_v2  ;;  %vm1185_vm13 = vcmp.gt.f32.partialorder %v1086_v3, 0.0  ;;  %v1201_v7 = vmul.f32 0.2, %v1086_v3 }
 0x34b   : > { %v1214_v10 = vsel %vm1182_vm10, %v1041_v60, %v1198_v4  ;;  %v1216_v11 = vsel %vm1184_vm11, %v1084_v61, %v1200_v5  ;;  %v664_v52 = vsub.s32 5, %v2182_v36  ;;  %v672_v53 = vsub.s32 7, %v2182_v36 }
 0x34c   : > { %v1228_v12 = vadd.f32 %v1214_v10, %v1206_v0  ;;  %v1242_v13 = vadd.f32 %v1216_v11, %v1208_v1  ;;  %v1215_v14 = vsel %vm1183_vm12, %v1043_v2, %v1199_v6  ;;  %v1217_v15 = vsel %vm1185_vm13, %v1086_v3, %v1201_v7 }
 0x34d   : > { %v1235_v16 = vadd.f32 %v1215_v14, %v1207_v8  ;;  %v1249_v17 = vadd.f32 %v1217_v15, %v1209_v9  ;;  %v661_v57 = vrot.slane %v2186_v39, %v660_v50  ;;  %v669_v58 = vrot.slane %v2186_v39, %v668_v51 }
 0x34e   : > { %v1229_v18 = vrot.slane %v1228_v12, 4  ;;  %v1243_v19 = vrot.slane %v1242_v13, 4  ;;  %v665_v59 = vrot.slane %v2186_v39, %v664_v52  ;;  %v673_v60 = vrot.slane %v2186_v39, %v672_v53 }
 0x34f   : > { %v1236_v20 = vrot.slane %v1235_v16, 4  ;;  %v1250_v21 = vrot.slane %v1249_v17, 4 }
 0x350   : > { %v1230_v22 = vadd.f32 %v1229_v18, %v1228_v12  ;;  %v1244_v23 = vadd.f32 %v1243_v19, %v1242_v13 }
 0x351   : > { %v1237_v24 = vadd.f32 %v1236_v20, %v1235_v16  ;;  %v1251_v27 = vadd.f32 %v1250_v21, %v1249_v17 }
 0x352   : > { %v1231_v28 = vrot.slane %v1230_v22, 2  ;;  %v1245_v29 = vrot.slane %v1244_v23, 2 }
 0x353   : > { %v1238_v30 = vrot.slane %v1237_v24, 2  ;;  %v1252_v31 = vrot.slane %v1251_v27, 2 }
 0x354   : > { %v1232_v32 = vadd.f32 %v1231_v28, %v1230_v22  ;;  %v1246_v33 = vadd.f32 %v1245_v29, %v1244_v23 }
 0x355   : > { %v1239_v34 = vadd.f32 %v1238_v30, %v1237_v24  ;;  %v1253_v37 = vadd.f32 %v1252_v31, %v1251_v27 }
 0x356   : > { %v1233_v38 = vrot.slane %v1232_v32, 1  ;;  %v1247_v40 = vrot.slane %v1246_v33, 1 }
 0x357   : > { %v1240_v41 = vrot.slane %v1239_v34, 1  ;;  %v1254_v42 = vrot.slane %v1253_v37, 1 }
 0x358   : > { %v1234_v43 = vadd.f32 %v1233_v38, %v1232_v32  ;;  %v1248_v44 = vadd.f32 %v1247_v40, %v1246_v33 }
 0x359   : > { %v1241_v45 = vadd.f32 %v1240_v41, %v1239_v34  ;;  %v1255_v47 = vadd.f32 %v1254_v42, %v1253_v37 }
 0x35b   : > { %v1292_v48 = vcombine.low %v1234_v43, %v1241_v45  ;;  %v1293_v49 = vcombine.low %v1248_v44, %v1255_v47 }
 0x35d   : > { %v2204_v54 = vrot.slane %v1292_v48, %v2197_v46  ;;  %v2207_v55 = vrot.slane %v1293_v49, %v2197_v46 }
 0x35f   : > { %v1324_v56 = vcombine.low %v2204_v54, %v2207_v55 }
 0x362   : > { %v1122_v61 = vpop.f32.mrb[8].mxu0  ;;  %v1165_v62 = vpop.f32.mrb[8].mxu1 }
 0x363   : > { %v1123_v36 = vadd.f32 %v1122_v61, %v661_v57  ;;  %v1166_v63 = vadd.f32 %v1165_v62, %v669_v58  ;;  %v1124_v0 = vpop.f32.mrb[9].mxu0  ;;  %v1167_v1 = vpop.f32.mrb[9].mxu1 }
 0x364   : > { %v1125_v2 = vadd.f32 %v1124_v0, %v665_v59  ;;  %v1168_v3 = vadd.f32 %v1167_v1, %v673_v60  ;;  %v1126_v4 = vpop.f32.mrb[10].mxu0  ;;  %v1169_v5 = vpop.f32.mrb[10].mxu1  ;;  %v1332_v1 = vrot.slane %v1324_v56, %v2197_v46 }
 0x365   : > { %vm1178_vm14 = vcmp.gt.f32.partialorder %v1123_v36, 0.0  ;;  %v1194_v6 = vmul.f32 0.2, %v1123_v36  ;;  %vm1180_vm15 = vcmp.gt.f32.partialorder %v1166_v63, 0.0  ;;  %v1196_v7 = vmul.f32 0.2, %v1166_v63 }
 0x366   : > { %vm1179_vm0 = vcmp.gt.f32.partialorder %v1125_v2, 0.0  ;;  %v1195_v8 = vmul.f32 0.2, %v1125_v2  ;;  %vm1181_vm1 = vcmp.gt.f32.partialorder %v1168_v3, 0.0  ;;  %v1197_v9 = vmul.f32 0.2, %v1168_v3 }
 0x367   : > { %v1127_v10 = vadd.f32 %v1126_v4, %v661_v57  ;;  %v1170_v39 = vadd.f32 %v1169_v5, %v669_v58  ;;  %v1128_v11 = vpop.f32.mrb[11].mxu0  ;;  %v1171_v12 = vpop.f32.mrb[11].mxu1  ;;  %v1210_v13 = vsel %vm1178_vm14, %v1123_v36, %v1194_v6  ;;  %v1212_v14 = vsel %vm1180_vm15, %v1166_v63, %v1196_v7 }
 0x368   : > { %v1129_v15 = vadd.f32 %v1128_v11, %v665_v59  ;;  %v1172_v16 = vadd.f32 %v1171_v12, %v673_v60  ;;  %v1211_v21 = vsel %vm1179_vm0, %v1125_v2, %v1195_v8  ;;  %v1213_v22 = vsel %vm1181_vm1, %v1168_v3, %v1197_v9 }
 0x369   : > { %vm1186_vm2 = vcmp.gt.f32.partialorder %v1127_v10, 0.0  ;;  %v1202_v17 = vmul.f32 0.2, %v1127_v10  ;;  %vm1188_vm3 = vcmp.gt.f32.partialorder %v1170_v39, 0.0  ;;  %v1204_v18 = vmul.f32 0.2, %v1170_v39 }
 0x36a   : > { %vm1187_vm4 = vcmp.gt.f32.partialorder %v1129_v15, 0.0  ;;  %v1203_v19 = vmul.f32 0.2, %v1129_v15  ;;  %vm1189_vm5 = vcmp.gt.f32.partialorder %v1172_v16, 0.0  ;;  %v1205_v20 = vmul.f32 0.2, %v1172_v16 }
 0x36b   : > { %v1218_v23 = vsel %vm1186_vm2, %v1127_v10, %v1202_v17  ;;  %v1220_v24 = vsel %vm1188_vm3, %v1170_v39, %v1204_v18 }
 0x36c   : > { %v1256_v25 = vadd.f32 %v1218_v23, %v1210_v13  ;;  %v1270_v26 = vadd.f32 %v1220_v24, %v1212_v14  ;;  %v1219_v27 = vsel %vm1187_vm4, %v1129_v15, %v1203_v19  ;;  %v1221_v28 = vsel %vm1189_vm5, %v1172_v16, %v1205_v20 }
 0x36d   : > { %v1263_v29 = vadd.f32 %v1219_v27, %v1211_v21  ;;  %v1277_v30 = vadd.f32 %v1221_v28, %v1213_v22 }
 0x36e   : > { %v1257_v31 = vrot.slane %v1256_v25, 4  ;;  %v1271_v32 = vrot.slane %v1270_v26, 4 }
 0x36f   : > { %v1264_v33 = vrot.slane %v1263_v29, 4  ;;  %v1278_v34 = vrot.slane %v1277_v30, 4 }
 0x370   : > { %v1258_v35 = vadd.f32 %v1257_v31, %v1256_v25  ;;  %v1272_v37 = vadd.f32 %v1271_v32, %v1270_v26 }
 0x371   : > { %v1265_v38 = vadd.f32 %v1264_v33, %v1263_v29  ;;  %v1279_v40 = vadd.f32 %v1278_v34, %v1277_v30 }
 0x372   : > { %v1259_v41 = vrot.slane %v1258_v35, 2  ;;  %v1273_v42 = vrot.slane %v1272_v37, 2 }
 0x373   : > { %v1266_v43 = vrot.slane %v1265_v38, 2  ;;  %v1280_v44 = vrot.slane %v1279_v40, 2 }
 0x374   : > { %v1260_v45 = vadd.f32 %v1259_v41, %v1258_v35  ;;  %v1274_v47 = vadd.f32 %v1273_v42, %v1272_v37 }
 0x375   : > { %v1267_v48 = vadd.f32 %v1266_v43, %v1265_v38  ;;  %v1281_v49 = vadd.f32 %v1280_v44, %v1279_v40 }
 0x376   : > { %v1261_v50 = vrot.slane %v1260_v45, 1  ;;  %v1275_v51 = vrot.slane %v1274_v47, 1 }
 0x377   : > { %v1268_v52 = vrot.slane %v1267_v48, 1  ;;  %v1282_v53 = vrot.slane %v1281_v49, 1 }
 0x378   : > { %v1262_v57 = vadd.f32 %v1261_v50, %v1260_v45  ;;  %v1276_v58 = vadd.f32 %v1275_v51, %v1274_v47 }
 0x379   : > { %v1269_v59 = vadd.f32 %v1268_v52, %v1267_v48  ;;  %v1283_v60 = vadd.f32 %v1282_v53, %v1281_v49 }
 0x37b   : > { %v1294_v61 = vcombine.low %v1262_v57, %v1269_v59  ;;  %v1295_v62 = vcombine.low %v1276_v58, %v1283_v60 }
 0x37d   : > { %v1316_v36 = vrot.slane %v1294_v61, %v2197_v46  ;;  %v1323_v63 = vrot.slane %v1295_v62, %v2197_v46 }
 0x37f   : > { %v1325_v0 = vcombine.low %v1316_v36, %v1323_v63 }
 0x381   : > { %v1339_v2 = vrot.slane %v1325_v0, %v2197_v46 }
 0x383   : > { %v1340_v3 = vcombine.low %v1332_v1, %v1339_v2 }
 0x385   : > { %1343 = vst [vmem:[%s386_s21] sm:$0xff] %v1340_v3 }
 0x386 PF: > { %s21_s26 = sadd.s32 1, %s1914_s26   ;;  %s2257_s24 = smov %s1910_s25 }
 0x387   : > { %p18_p8 = scmp.ge.s32.totalorder %s21_s26, 4   ;;  %s2258_s25 = smov %s2260_s12 }
 0x389   :  { %20 = sbr.rel (!%p18_p8) target bundleno = 5 (0x5), region = 107 }
 0x390   :  { %1363 = vsyncpa [#allocation3], 1 }
 0x391   :  { %1365 = vsyncpa [#allocation3 + $0x1], 1 }
 0x392   :  { %1366 = vsyncpa [#allocation5], 1 }
 0x393   :  { %1367 = vsyncpa [#allocation8], 1 }
 0x394   :  { %1368 = vsyncpa [#allocation11], 1 }

// kernel: model_forward.15
= control target key start
LH: loop header
LB: loop body
LE: loop exit
PB: predicated region body
PF: predicated region fallthrough
CT: control target
= control target key end

     0   :  { %s513_s9 = smov 0   ;;  %s549_s0 = inlined_call_operand.vmem [shape: bf16[2,64,64], index: 0, kind: input, shape index: {}]   ;;  %s550_s1 = inlined_call_operand.vmem [shape: bf16[64,128], index: 1, kind: input, shape index: {}]   ;;  %s551_s2 = inlined_call_operand.vmem [shape: bf16[2,64,128], index: 2, kind: output, shape index: {}]  }
   0x1 LB: > { %s378_s10 = sadd.s32 4294967295, %s496_s9   ;;  %p382_p0 = scmp.ge.s32.totalorder %s496_s9, 1  ;;  %s496_s9 = sphi %s513_s9, %s12_s9  }
   0x2   : > { %p112_p1 = scmp.lt.s32.totalorder %s496_s9, 3 }
   0x4   : > { %p113_p2 = pnand %p382_p0, %p112_p1 }
   0x5   : > { %v482_v0 = vld [vmem:[%s550_s1] sm:$0xff] (!%p113_p2)   ;;  %p134_p3 = scmp.lt.s32.totalorder (!%p113_p2), %s378_s10, 1  ;;  %v483_v1 = vld [vmem:[%s550_s1 + $0x8] sm:$0xff] (!%p113_p2)   ;;  %v484_v2 = vld [vmem:[%s550_s1 + $0x10] sm:$0xff] (!%p113_p2)   ;;  %vm205_vm0 = vcmask (!%p113_p2), 523264  }
   0x6   : > { %116 = sbr.rel (%p113_p2) target bundleno = 240 (0xf0), region = 28  ;;  %450 = vmatprep.subr.bf16.mxu0 (!%p113_p2), %v482_v0  ;;  %466 = vmatprep.subr.bf16.mxu1 (!%p113_p2), %v482_v0  ;;  %v485_v5 = vld [vmem:[%s550_s1 + $0x18] sm:$0xff] (!%p113_p2)  }
   0x7   : > { %451 = vmatpush3.bf16.msra.mxu0 (!%p113_p2), %v482_v0  ;;  %470 = vmatpush3.bf16.msra.mxu1 (!%p113_p2), %v482_v0 }
   0x8   : > { %452 = vmatprep.subr.bf16.mxu0 (!%p113_p2), %v483_v1  ;;  %467 = vmatprep.subr.bf16.mxu1 (!%p113_p2), %v483_v1 }
   0xb   : > { %453 = vmatpush3.bf16.msra.mxu0 (!%p113_p2), %v483_v1  ;;  %471 = vmatpush3.bf16.msra.mxu1 (!%p113_p2), %v483_v1 }
   0xc   : > { %454 = vmatprep.subr.bf16.mxu0 (!%p113_p2), %v484_v2  ;;  %468 = vmatprep.subr.bf16.mxu1 (!%p113_p2), %v484_v2 }
   0xd   : > { %s553_s10 = smov (!%p134_p3, %s378_s10), 1 }
   0xe   : > { %s409_s17 = sshll.u32 %s553_s10, 5 }
   0xf   : > { %s138_s20 = scalar_lea.vmem %s549_s0, %s409_s17  ;;  %455 = vmatpush3.bf16.msra.mxu0 %v484_v2  ;;  %472 = vmatpush3.bf16.msra.mxu1 %v484_v2  ;;  %s143_s25 = scalar_lea.vmem %s551_s2, %s409_s17 }
  0x10   : > { %v486_v3 = vld [vmem:[%s138_s20] sm:$0xff]   ;;  %v487_v4 = vld [vmem:[%s138_s20 + $0x10] sm:$0xff]   ;;  %456 = vmatprep.subr.bf16.mxu0 %v485_v5  ;;  %469 = vmatprep.subr.bf16.mxu1 %v485_v5  ;;  %v488_v6 = vld [vmem:[%s138_s20 + $0x8] sm:$0xff]  }
  0x11   : > { %458 = vmatprep.mubr.msk.bf16.mxu0 %vm205_vm0, %v486_v3  ;;  %462 = vmatprep.mubr.msk.bf16.mxu1 %vm205_vm0, %v487_v4  ;;  %v489_v7 = vld [vmem:[%s138_s20 + $0x18] sm:$0xff]  }
  0x13   : > { %457 = vmatpush3.bf16.msra.mxu0 %v485_v5  ;;  %473 = vmatpush3.bf16.msra.mxu1 %v485_v5 }
  0x16   : > { %459 = vmatmul.mubr.msk.bf16.vlgmr.msra.gmra.mrb[0].mxu0 %vm205_vm0, %v488_v6  ;;  %463 = vmatmul.mubr.msk.bf16.vlgmr.msra.gmra.mrb[0].mxu1 %vm205_vm0, %v489_v7 }
  0xe9   : > { %v460_v8 = vpop.f32.mrb[0].mxu0  ;;  %v464_v9 = vpop.f32.mrb[0].mxu1 }
  0xea   : > { %v252_v10 = vpop.f32.mrb[1].mxu0  ;;  %v268_v11 = vpop.f32.mrb[1].mxu1 }
  0xeb   : > { %v461_v12 = vpop.f32.mrb[2].mxu0  ;;  %v465_v13 = vpop.f32.mrb[2].mxu1 }
  0xec   : > { %v427_v14 = vpack.c.bf16 %v461_v12, %v460_v8  ;;  %v437_v15 = vpack.c.bf16 %v465_v13, %v464_v9  ;;  %v255_v16 = vpop.f32.mrb[3].mxu0  ;;  %v271_v17 = vpop.f32.mrb[3].mxu1 }
  0xed   : > { %v422_v18 = vpack.c.bf16 %v255_v16, %v252_v10  ;;  %v432_v19 = vpack.c.bf16 %v271_v17, %v268_v11 }
  0xee   : > { %439 = vst [vmem:[%s143_s25 + $0x8] sm:$0xff] %v427_v14   ;;  %441 = vst [vmem:[%s143_s25 + $0x18] sm:$0xff] %v437_v15  }
  0xef   : > { %423 = vst [vmem:[%s143_s25] sm:$0xff] %v422_v18   ;;  %440 = vst [vmem:[%s143_s25 + $0x10] sm:$0xff] %v432_v19  }
  0xf0 PF: > { %s12_s9 = sadd.s32 1, %s496_s9  }
  0xf1   : > { %p9_p4 = scmp.ge.s32.totalorder %s12_s9, 4  }
  0xf3   :  { %11 = sbr.rel (!%p9_p4) target bundleno = 1 (0x1), region = 58 }

// kernel: model_forward.17
= control target key start
LH: loop header
LB: loop body
LE: loop exit
PB: predicated region body
PF: predicated region fallthrough
CT: control target
= control target key end

     0   :  { %v3542_v36 = vmov 1983009808   ;;  %v37_v38 = vlaneseq  ;;  %vm2646_vm6 = vcmask 1024   ;;  %s4681_s1 = inlined_call_operand.vmem [shape: bf16[1024,512], index: 1, kind: input, shape index: {}]   ;;  %s4682_s0 = inlined_call_operand.vmem [shape: f32[2,1024], index: 0, kind: input, shape index: {}]   ;;  %s4683_s3 = inlined_call_operand.vmem [shape: bf16[512,256], index: 3, kind: input, shape index: {}]   ;;  %s4684_s2 = inlined_call_operand.vmem [shape: f32[1,512], index: 2, kind: input, shape index: {}]   ;;  %s4685_s5 = inlined_call_operand.vmem [shape: bf16[256,1], index: 5, kind: input, shape index: {}]   ;;  %s4686_s4 = inlined_call_operand.vmem [shape: f32[1,256], index: 4, kind: input, shape index: {}]   ;;  %s4687_s6 = inlined_call_operand.<no memory space> [shape: f32[1,1], index: 6, kind: input, shape index: {}]   ;;  %s4688_s7 = inlined_call_operand.vmem [shape: f32[2,1], index: 7, kind: output, shape index: {}]  }
   0x1   :  { %v3044_v0 = vld [vmem:[%s4681_s1 + $0x4] ss:$16 sps:$4 sm:$0xff]   ;;  %v3048_v2 = vld [vmem:[%s4681_s1] ss:$16 sps:$4 sm:$0xff]   ;;  %v35_v37 = vunpack.c.l.s4 %v3542_v36 }
   0x2   :  { %v3046_v1 = vld [vmem:[%s4681_s1 + $0x204] ss:$16 sps:$4 sm:$0xff]   ;;  %1641 = vmatprep.subr.bf16.mxu1 %v3044_v0  ;;  %v3049_v3 = vld [vmem:[%s4681_s1 + $0x200] ss:$16 sps:$4 sm:$0xff]   ;;  %v3700_v43 = vshrl.u32 %v37_v38, 7 }
   0x3   :  { %1682 = vmatprep.subr.bf16.mxu0 %v3046_v1  ;;  %v3050_v4 = vld [vmem:[%s4681_s1 + $0x24] ss:$16 sps:$4 sm:$0xff]   ;;  %1642 = vmatpush1.bf16.msra.mxu1 %v3048_v2  ;;  %v3054_v6 = vld [vmem:[%s4681_s1 + $0x20] ss:$16 sps:$4 sm:$0xff]   ;;  %v36_v42 = vunpack.c.0.s8 %v35_v37  ;;  %v3171_v37 = vld [vmem:[%s4681_s1 + $0x8c] ss:$16 sps:$4 sm:$0xff]  }
   0x4   :  { %1683 = vmatpush1.bf16.msra.mxu0 %v3049_v3  ;;  %v3052_v5 = vld [vmem:[%s4681_s1 + $0x224] ss:$16 sps:$4 sm:$0xff]   ;;  %1643 = vmatprep.subr.bf16.mxu1 %v3050_v4  ;;  %v3055_v7 = vld [vmem:[%s4681_s1 + $0x220] ss:$16 sps:$4 sm:$0xff]  }
   0x5   :  { %1684 = vmatprep.subr.bf16.mxu0 %v3052_v5  ;;  %v3056_v8 = vld [vmem:[%s4681_s1 + $0x44] ss:$16 sps:$4 sm:$0xff]   ;;  %v3060_v10 = vld [vmem:[%s4681_s1 + $0x40] ss:$16 sps:$4 sm:$0xff]   ;;  %v3718_v49 = vsub.s32 %v36_v42, %v3700_v43 }
   0x6   :  { %v3058_v9 = vld [vmem:[%s4681_s1 + $0x244] ss:$16 sps:$4 sm:$0xff]   ;;  %v3061_v11 = vld [vmem:[%s4681_s1 + $0x240] ss:$16 sps:$4 sm:$0xff]  }
   0x7   :  { %1644 = vmatpush1.bf16.msra.mxu1 %v3054_v6  ;;  %v3062_v12 = vld [vmem:[%s4681_s1 + $0x64] ss:$16 sps:$4 sm:$0xff]   ;;  %v3066_v14 = vld [vmem:[%s4681_s1 + $0x60] ss:$16 sps:$4 sm:$0xff]  }
   0x8   :  { %1685 = vmatpush1.bf16.msra.mxu0 %v3055_v7  ;;  %1645 = vmatprep.subr.bf16.mxu1 %v3056_v8  ;;  %v3064_v13 = vld [vmem:[%s4681_s1 + $0x264] ss:$16 sps:$4 sm:$0xff]   ;;  %v3067_v15 = vld [vmem:[%s4681_s1 + $0x260] ss:$16 sps:$4 sm:$0xff]   ;;  %v3773_v8 = vld [vmem:[%s4682_s0 + $0x8] sm:$0xff] }
   0x9   :  { %1686 = vmatprep.subr.bf16.mxu0 %v3058_v9  ;;  %v3068_v16 = vld [vmem:[%s4681_s1 + $0x84] ss:$16 sps:$4 sm:$0xff]   ;;  %v3072_v18 = vld [vmem:[%s4681_s1 + $0x80] ss:$16 sps:$4 sm:$0xff]  }
   0xa   :  { %v3070_v17 = vld [vmem:[%s4681_s1 + $0x284] ss:$16 sps:$4 sm:$0xff]   ;;  %v3073_v19 = vld [vmem:[%s4681_s1 + $0x280] ss:$16 sps:$4 sm:$0xff]  }
   0xb   :  { %1646 = vmatpush1.bf16.msra.mxu1 %v3060_v10  ;;  %v3074_v20 = vld [vmem:[%s4681_s1 + $0xa4] ss:$16 sps:$4 sm:$0xff]   ;;  %v3078_v22 = vld [vmem:[%s4681_s1 + $0xa0] ss:$16 sps:$4 sm:$0xff]  }
   0xc   :  { %1687 = vmatpush1.bf16.msra.mxu0 %v3061_v11  ;;  %1647 = vmatprep.subr.bf16.mxu1 %v3062_v12  ;;  %v3076_v21 = vld [vmem:[%s4681_s1 + $0x2a4] ss:$16 sps:$4 sm:$0xff]   ;;  %v3079_v23 = vld [vmem:[%s4681_s1 + $0x2a0] ss:$16 sps:$4 sm:$0xff]  }
   0xd   :  { %1688 = vmatprep.subr.bf16.mxu0 %v3064_v13  ;;  %v3080_v24 = vld [vmem:[%s4681_s1 + $0xc4] ss:$16 sps:$4 sm:$0xff]   ;;  %v3084_v26 = vld [vmem:[%s4681_s1 + $0xc0] ss:$16 sps:$4 sm:$0xff]   ;;  %v3789_v13 = vrot.slane %v3773_v8, %v3718_v49 }
   0xe   :  { %v3082_v25 = vld [vmem:[%s4681_s1 + $0x2c4] ss:$16 sps:$4 sm:$0xff]   ;;  %v3085_v27 = vld [vmem:[%s4681_s1 + $0x2c0] ss:$16 sps:$4 sm:$0xff]  }
   0xf   :  { %1648 = vmatpush1.bf16.msra.mxu1 %v3066_v14  ;;  %v3086_v28 = vld [vmem:[%s4681_s1 + $0xe4] ss:$16 sps:$4 sm:$0xff]   ;;  %v3090_v30 = vld [vmem:[%s4681_s1 + $0xe0] ss:$16 sps:$4 sm:$0xff]  }
  0x10   :  { %1689 = vmatpush1.bf16.msra.mxu0 %v3067_v15  ;;  %1649 = vmatprep.subr.bf16.mxu1 %v3068_v16  ;;  %v3088_v29 = vld [vmem:[%s4681_s1 + $0x2e4] ss:$16 sps:$4 sm:$0xff]   ;;  %v3091_v31 = vld [vmem:[%s4681_s1 + $0x2e0] ss:$16 sps:$4 sm:$0xff]  }
  0x11   :  { %1690 = vmatprep.subr.bf16.mxu0 %v3070_v17  ;;  %v3092_v32 = vld [vmem:[%s4681_s1 + $0x104] ss:$16 sps:$4 sm:$0xff]   ;;  %v3096_v34 = vld [vmem:[%s4681_s1 + $0x100] ss:$16 sps:$4 sm:$0xff]   ;;  %v3147_v17 = vld [vmem:[%s4681_s1 + $0xc] ss:$16 sps:$4 sm:$0xff]  }
  0x12   :  { %v3094_v33 = vld [vmem:[%s4681_s1 + $0x304] ss:$16 sps:$4 sm:$0xff]   ;;  %v3097_v35 = vld [vmem:[%s4681_s1 + $0x300] ss:$16 sps:$4 sm:$0xff]  }
  0x13   :  { %1650 = vmatpush1.bf16.msra.mxu1 %v3072_v18  ;;  %v3098_v39 = vld [vmem:[%s4681_s1 + $0x124] ss:$16 sps:$4 sm:$0xff]   ;;  %v3102_v41 = vld [vmem:[%s4681_s1 + $0x120] ss:$16 sps:$4 sm:$0xff]   ;;  %v65_v18 = vcombine.high %v3789_v13, %v3789_v13 }
  0x14   :  { %1691 = vmatpush1.bf16.msra.mxu0 %v3073_v19  ;;  %1651 = vmatprep.subr.bf16.mxu1 %v3074_v20  ;;  %v3100_v40 = vld [vmem:[%s4681_s1 + $0x324] ss:$16 sps:$4 sm:$0xff]   ;;  %v3103_v44 = vld [vmem:[%s4681_s1 + $0x320] ss:$16 sps:$4 sm:$0xff]  }
  0x15   :  { %1692 = vmatprep.subr.bf16.mxu0 %v3076_v21  ;;  %v3104_v45 = vld [vmem:[%s4681_s1 + $0x144] ss:$16 sps:$4 sm:$0xff]   ;;  %v3108_v47 = vld [vmem:[%s4681_s1 + $0x140] ss:$16 sps:$4 sm:$0xff]  }
  0x16   :  { %v3106_v46 = vld [vmem:[%s4681_s1 + $0x344] ss:$16 sps:$4 sm:$0xff]   ;;  %v3109_v48 = vld [vmem:[%s4681_s1 + $0x340] ss:$16 sps:$4 sm:$0xff]  }
  0x17   :  { %1652 = vmatpush1.bf16.msra.mxu1 %v3078_v22  ;;  %v3110_v50 = vld [vmem:[%s4681_s1 + $0x164] ss:$16 sps:$4 sm:$0xff]   ;;  %v3114_v55 = vld [vmem:[%s4681_s1 + $0x160] ss:$16 sps:$4 sm:$0xff]   ;;  %v3145_v22 = vld [vmem:[%s4681_s1 + $0x8] ss:$16 sps:$4 sm:$0xff]  }
  0x18   :  { %1693 = vmatpush1.bf16.msra.mxu0 %v3079_v23  ;;  %1653 = vmatprep.subr.bf16.mxu1 %v3080_v24  ;;  %v3112_v51 = vld [vmem:[%s4681_s1 + $0x364] ss:$16 sps:$4 sm:$0xff]   ;;  %v3115_v56 = vld [vmem:[%s4681_s1 + $0x360] ss:$16 sps:$4 sm:$0xff]   ;;  %v3153_v24 = vld [vmem:[%s4681_s1 + $0x2c] ss:$16 sps:$4 sm:$0xff]  }
  0x19   :  { %1694 = vmatprep.subr.bf16.mxu0 %v3082_v25  ;;  %v29_v52 = vld [vmem:[%s4682_s0] sm:$0xff]  ;;  %v3821_v25 = vpack.c.bf16 %v65_v18, %v65_v18  ;;  %v3231_v18 = vld [vmem:[%s4681_s1 + $0x1cc] ss:$16 sps:$4 sm:$0xff]  }
  0x1a   :  { %v40_v53 = vrot.slane %v29_v52, %v3718_v49  ;;  %v33_v54 = vcombine.high %v29_v52, %v29_v52  ;;  %v3116_v57 = vld [vmem:[%s4681_s1 + $0x184] ss:$16 sps:$4 sm:$0xff]   ;;  %v3120_v63 = vld [vmem:[%s4681_s1 + $0x180] ss:$16 sps:$4 sm:$0xff]  }
  0x1b   :  { %1654 = vmatpush1.bf16.msra.mxu1 %v3084_v26  ;;  %v3118_v58 = vld [vmem:[%s4681_s1 + $0x384] ss:$16 sps:$4 sm:$0xff]   ;;  %v3121_v0 = vld [vmem:[%s4681_s1 + $0x380] ss:$16 sps:$4 sm:$0xff]  }
  0x1c   :  { %1695 = vmatpush1.bf16.msra.mxu0 %v3085_v27  ;;  %1655 = vmatprep.subr.bf16.mxu1 %v3086_v28  ;;  %v48_v59 = vcombine.high %v40_v53, %v40_v53  ;;  %v47_v60 = vrot.slane %v33_v54, %v3718_v49  ;;  %v3122_v1 = vld [vmem:[%s4681_s1 + $0x1a4] ss:$16 sps:$4 sm:$0xff]   ;;  %v3126_v4 = vld [vmem:[%s4681_s1 + $0x1a0] ss:$16 sps:$4 sm:$0xff]   ;;  %v3805_v19 = vpack.c.bf16 %v40_v53, %v40_v53  ;;  %v3151_v27 = vld [vmem:[%s4681_s1 + $0x28] ss:$16 sps:$4 sm:$0xff]  }
  0x1d   :  { %1696 = vmatprep.subr.bf16.mxu0 %v3088_v29  ;;  %v3124_v2 = vld [vmem:[%s4681_s1 + $0x3a4] ss:$16 sps:$4 sm:$0xff]   ;;  %v3127_v5 = vld [vmem:[%s4681_s1 + $0x3a0] ss:$16 sps:$4 sm:$0xff]   ;;  %v3159_v29 = vld [vmem:[%s4681_s1 + $0x4c] ss:$16 sps:$4 sm:$0xff]  }
  0x1e   :  { %v76_v61 = vpack.c.bf16 %v48_v59, %v48_v59  ;;  %v49_v62 = vcombine.high %v47_v60, %v47_v60  ;;  %v3128_v6 = vld [vmem:[%s4681_s1 + $0x1c4] ss:$16 sps:$4 sm:$0xff]   ;;  %v3132_v9 = vld [vmem:[%s4681_s1 + $0x1c0] ss:$16 sps:$4 sm:$0xff]   ;;  %v3807_v20 = vpack.c.bf16 %v47_v60, %v47_v60  ;;  %v3187_v53 = vld [vmem:[%s4681_s1 + $0xe8] ss:$16 sps:$4 sm:$0xff]  }
  0x1f   :  { %1656 = vmatpush1.bf16.msra.mxu1 %v3090_v30  ;;  %v3130_v7 = vld [vmem:[%s4681_s1 + $0x3c4] ss:$16 sps:$4 sm:$0xff]   ;;  %v3133_v10 = vld [vmem:[%s4681_s1 + $0x3c0] ss:$16 sps:$4 sm:$0xff]   ;;  %v3201_v59 = vld [vmem:[%s4681_s1 + $0x12c] ss:$16 sps:$4 sm:$0xff]  }
  0x20   :  { %1697 = vmatpush1.bf16.msra.mxu0 %v3091_v31  ;;  %1657 = vmatprep.subr.bf16.mxu1 %v3092_v32  ;;  %v3755_v3 = vpack.c.bf16 %v49_v62, %v49_v62  ;;  %v3134_v11 = vld [vmem:[%s4681_s1 + $0x1e4] ss:$16 sps:$4 sm:$0xff]   ;;  %v3138_v14 = vld [vmem:[%s4681_s1 + $0x1e0] ss:$16 sps:$4 sm:$0xff]   ;;  %v3157_v31 = vld [vmem:[%s4681_s1 + $0x48] ss:$16 sps:$4 sm:$0xff]  }
  0x21   :  { %1698 = vmatprep.subr.bf16.mxu0 %v3094_v33  ;;  %1673 = vmatprep.mubr.bf16.mxu1 %v76_v61  ;;  %v3136_v12 = vld [vmem:[%s4681_s1 + $0x3e4] ss:$16 sps:$4 sm:$0xff]   ;;  %v3139_v15 = vld [vmem:[%s4681_s1 + $0x3e0] ss:$16 sps:$4 sm:$0xff]   ;;  %v3165_v33 = vld [vmem:[%s4681_s1 + $0x6c] ss:$16 sps:$4 sm:$0xff]  }
  0x22   :  { %1714 = vmatprep.mubr.bf16.mxu0 %v3755_v3  ;;  %v3144_v16 = vld [vmem:[%s4681_s1 + $0x404] ss:$16 sps:$4 sm:$0xff]   ;;  %v3142_v21 = vld [vmem:[%s4681_s1 + $0x400] ss:$16 sps:$4 sm:$0xff]  }
  0x23   :  { %1658 = vmatpush1.bf16.msra.mxu1 %v3096_v34  ;;  %v3150_v23 = vld [vmem:[%s4681_s1 + $0x424] ss:$16 sps:$4 sm:$0xff]   ;;  %v3148_v26 = vld [vmem:[%s4681_s1 + $0x420] ss:$16 sps:$4 sm:$0xff]  }
  0x24   :  { %1699 = vmatpush1.bf16.msra.mxu0 %v3097_v35  ;;  %1659 = vmatprep.subr.bf16.mxu1 %v3098_v39  ;;  %v3156_v28 = vld [vmem:[%s4681_s1 + $0x444] ss:$16 sps:$4 sm:$0xff]   ;;  %v3154_v30 = vld [vmem:[%s4681_s1 + $0x440] ss:$16 sps:$4 sm:$0xff]   ;;  %v3163_v35 = vld [vmem:[%s4681_s1 + $0x68] ss:$16 sps:$4 sm:$0xff]  }
  0x25   :  { %1700 = vmatprep.subr.bf16.mxu0 %v3100_v40  ;;  %v3162_v32 = vld [vmem:[%s4681_s1 + $0x464] ss:$16 sps:$4 sm:$0xff]   ;;  %v3160_v34 = vld [vmem:[%s4681_s1 + $0x460] ss:$16 sps:$4 sm:$0xff]   ;;  %v3169_v39 = vld [vmem:[%s4681_s1 + $0x88] ss:$16 sps:$4 sm:$0xff]  }
  0x26   :  { %v3168_v36 = vld [vmem:[%s4681_s1 + $0x484] ss:$16 sps:$4 sm:$0xff]   ;;  %v3166_v38 = vld [vmem:[%s4681_s1 + $0x480] ss:$16 sps:$4 sm:$0xff]  }
  0x27   :  { %1660 = vmatpush1.bf16.msra.mxu1 %v3102_v41  ;;  %v3174_v40 = vld [vmem:[%s4681_s1 + $0x4a4] ss:$16 sps:$4 sm:$0xff]   ;;  %v3177_v41 = vld [vmem:[%s4681_s1 + $0xac] ss:$16 sps:$4 sm:$0xff]   ;;  %v3172_v42 = vld [vmem:[%s4681_s1 + $0x4a0] ss:$16 sps:$4 sm:$0xff]  }
  0x28   :  { %1701 = vmatpush1.bf16.msra.mxu0 %v3103_v44  ;;  %1661 = vmatprep.subr.bf16.mxu1 %v3104_v45  ;;  %v3175_v44 = vld [vmem:[%s4681_s1 + $0xa8] ss:$16 sps:$4 sm:$0xff]   ;;  %v3180_v45 = vld [vmem:[%s4681_s1 + $0x4c4] ss:$16 sps:$4 sm:$0xff]   ;;  %v3184_v52 = vld [vmem:[%s4681_s1 + $0x4e0] ss:$16 sps:$4 sm:$0xff]  }
  0x29   :  { %1702 = vmatprep.subr.bf16.mxu0 %v3106_v46  ;;  %v3183_v46 = vld [vmem:[%s4681_s1 + $0xcc] ss:$16 sps:$4 sm:$0xff]   ;;  %v3192_v54 = vld [vmem:[%s4681_s1 + $0x504] ss:$16 sps:$4 sm:$0xff]   ;;  %v3196_v60 = vld [vmem:[%s4681_s1 + $0x520] ss:$16 sps:$4 sm:$0xff]  }
  0x2a   :  { %v3204_v62 = vld [vmem:[%s4681_s1 + $0x544] ss:$16 sps:$4 sm:$0xff]  }
  0x2b   :  { %1662 = vmatpush1.bf16.msra.mxu1 %v3108_v47  ;;  %v3178_v47 = vld [vmem:[%s4681_s1 + $0x4c0] ss:$16 sps:$4 sm:$0xff]  }
  0x2c   :  { %1703 = vmatpush1.bf16.msra.mxu0 %v3109_v48  ;;  %1663 = vmatprep.subr.bf16.mxu1 %v3110_v50  ;;  %v3181_v48 = vld [vmem:[%s4681_s1 + $0xc8] ss:$16 sps:$4 sm:$0xff]   ;;  %v3186_v50 = vld [vmem:[%s4681_s1 + $0x4e4] ss:$16 sps:$4 sm:$0xff]  }
  0x2d   :  { %1704 = vmatprep.subr.bf16.mxu0 %v3112_v51  ;;  %v3189_v51 = vld [vmem:[%s4681_s1 + $0xec] ss:$16 sps:$4 sm:$0xff]  }
  0x2f   :  { %1664 = vmatpush1.bf16.msra.mxu1 %v3114_v55  ;;  %v3195_v55 = vld [vmem:[%s4681_s1 + $0x10c] ss:$16 sps:$4 sm:$0xff]  }
  0x30   :  { %1705 = vmatpush1.bf16.msra.mxu0 %v3115_v56  ;;  %1665 = vmatprep.subr.bf16.mxu1 %v3116_v57  ;;  %v3190_v56 = vld [vmem:[%s4681_s1 + $0x500] ss:$16 sps:$4 sm:$0xff]   ;;  %v3193_v57 = vld [vmem:[%s4681_s1 + $0x108] ss:$16 sps:$4 sm:$0xff]  }
  0x31   :  { %1706 = vmatprep.subr.bf16.mxu0 %v3118_v58  ;;  %v3198_v58 = vld [vmem:[%s4681_s1 + $0x524] ss:$16 sps:$4 sm:$0xff]  }
  0x33   :  { %1666 = vmatpush1.bf16.msra.mxu1 %v3120_v63  ;;  %v3207_v63 = vld [vmem:[%s4681_s1 + $0x14c] ss:$16 sps:$4 sm:$0xff]  }
  0x34   :  { %1707 = vmatpush1.bf16.msra.mxu0 %v3121_v0  ;;  %1667 = vmatprep.subr.bf16.mxu1 %v3122_v1  ;;  %v3202_v0 = vld [vmem:[%s4681_s1 + $0x540] ss:$16 sps:$4 sm:$0xff]   ;;  %v3205_v1 = vld [vmem:[%s4681_s1 + $0x148] ss:$16 sps:$4 sm:$0xff]  }
  0x35   :  { %1708 = vmatprep.subr.bf16.mxu0 %v3124_v2  ;;  %v3210_v2 = vld [vmem:[%s4681_s1 + $0x564] ss:$16 sps:$4 sm:$0xff]  }
  0x37   :  { %1668 = vmatpush1.bf16.msra.mxu1 %v3126_v4  ;;  %v3213_v4 = vld [vmem:[%s4681_s1 + $0x16c] ss:$16 sps:$4 sm:$0xff]  }
  0x38   :  { %1709 = vmatpush1.bf16.msra.mxu0 %v3127_v5  ;;  %1669 = vmatprep.subr.bf16.mxu1 %v3128_v6  ;;  %v3208_v5 = vld [vmem:[%s4681_s1 + $0x560] ss:$16 sps:$4 sm:$0xff]   ;;  %v3211_v6 = vld [vmem:[%s4681_s1 + $0x168] ss:$16 sps:$4 sm:$0xff]  }
  0x39   :  { %1710 = vmatprep.subr.bf16.mxu0 %v3130_v7  ;;  %v3216_v7 = vld [vmem:[%s4681_s1 + $0x584] ss:$16 sps:$4 sm:$0xff]  }
  0x3b   :  { %1670 = vmatpush1.bf16.msra.mxu1 %v3132_v9  ;;  %v3219_v9 = vld [vmem:[%s4681_s1 + $0x18c] ss:$16 sps:$4 sm:$0xff]  }
  0x3c   :  { %1711 = vmatpush1.bf16.msra.mxu0 %v3133_v10  ;;  %1671 = vmatprep.subr.bf16.mxu1 %v3134_v11  ;;  %v3214_v10 = vld [vmem:[%s4681_s1 + $0x580] ss:$16 sps:$4 sm:$0xff]   ;;  %v3217_v11 = vld [vmem:[%s4681_s1 + $0x188] ss:$16 sps:$4 sm:$0xff]  }
  0x3d   :  { %1712 = vmatprep.subr.bf16.mxu0 %v3136_v12  ;;  %v3222_v12 = vld [vmem:[%s4681_s1 + $0x5a4] ss:$16 sps:$4 sm:$0xff]  }
  0x3f   :  { %1672 = vmatpush1.bf16.msra.mxu1 %v3138_v14  ;;  %v3225_v14 = vld [vmem:[%s4681_s1 + $0x1ac] ss:$16 sps:$4 sm:$0xff]  }
  0x40   :  { %1713 = vmatpush1.bf16.msra.mxu0 %v3139_v15  ;;  %1805 = vmatprep.subr.bf16.mxu1 %v3147_v17  ;;  %v3220_v15 = vld [vmem:[%s4681_s1 + $0x5a0] ss:$16 sps:$4 sm:$0xff]   ;;  %v3228_v17 = vld [vmem:[%s4681_s1 + $0x5c4] ss:$16 sps:$4 sm:$0xff]  }
  0x41   :  { %1723 = vmatprep.subr.bf16.mxu0 %v3144_v16  ;;  %v3223_v16 = vld [vmem:[%s4681_s1 + $0x1a8] ss:$16 sps:$4 sm:$0xff]  }
  0x42   :  { %1674 = vmatmul.mubr.bf16.vlgmr.msra.gmra.mrb[0].mxu1 %v3805_v19 }
  0x43   :  { %1715 = vmatmul.mubr.bf16.vlgmr.msra.gmra.mrb[0].mxu0 %v3807_v20  ;;  %1806 = vmatpush1.bf16.msra.mxu1 %v3145_v22  ;;  %v3226_v22 = vld [vmem:[%s4681_s1 + $0x5c0] ss:$16 sps:$4 sm:$0xff]  }
  0x44   :  { %1724 = vmatpush1.bf16.msra.mxu0 %v3142_v21  ;;  %1807 = vmatprep.subr.bf16.mxu1 %v3153_v24  ;;  %v50_v21 = vcombine.high %v3773_v8, %v3773_v8  ;;  %v3234_v24 = vld [vmem:[%s4681_s1 + $0x5e4] ss:$16 sps:$4 sm:$0xff]   ;;  %v3237_v8 = vld [vmem:[%s4681_s1 + $0x1ec] ss:$16 sps:$4 sm:$0xff]  }
  0x45   :  { %1725 = vmatprep.subr.bf16.mxu0 %v3150_v23  ;;  %1755 = vmatprep.mubr.bf16.mxu0 %v3821_v25  ;;  %v3229_v23 = vld [vmem:[%s4681_s1 + $0x1c8] ss:$16 sps:$4 sm:$0xff]  }
  0x46   :  { %1837 = vmatprep.mubr.bf16.mxu1 %v76_v61  ;;  %v3199_v61 = vld [vmem:[%s4681_s1 + $0x128] ss:$16 sps:$4 sm:$0xff]  }
  0x47   :  { %1808 = vmatpush1.bf16.msra.mxu1 %v3151_v27  ;;  %v3232_v27 = vld [vmem:[%s4681_s1 + $0x5e0] ss:$16 sps:$4 sm:$0xff]  }
  0x48   :  { %1726 = vmatpush1.bf16.msra.mxu0 %v3148_v26  ;;  %1809 = vmatprep.subr.bf16.mxu1 %v3159_v29  ;;  %v3997_v26 = vrot.slane %v50_v21, %v3718_v49  ;;  %v3240_v29 = vld [vmem:[%s4681_s1 + $0x604] ss:$16 sps:$4 sm:$0xff]   ;;  %v3243_v49 = vld [vmem:[%s4681_s1 + $0x20c] ss:$16 sps:$4 sm:$0xff]   ;;  %v3310_v21 = vld [vmem:[%s4681_s1 + $0x780] ss:$16 sps:$4 sm:$0xff]  }
  0x49   :  { %1727 = vmatprep.subr.bf16.mxu0 %v3156_v28  ;;  %v3235_v28 = vld [vmem:[%s4681_s1 + $0x1e8] ss:$16 sps:$4 sm:$0xff]  }
  0x4b   :  { %1810 = vmatpush1.bf16.msra.mxu1 %v3157_v31  ;;  %v4015_v31 = vpack.c.bf16 %v3789_v13, %v3789_v13  ;;  %v3249_v13 = vld [vmem:[%s4681_s1 + $0x22c] ss:$16 sps:$4 sm:$0xff]  }
  0x4c   :  { %1728 = vmatpush1.bf16.msra.mxu0 %v3154_v30  ;;  %1811 = vmatprep.subr.bf16.mxu1 %v3165_v33  ;;  %v66_v30 = vcombine.high %v3997_v26, %v3997_v26  ;;  %v3241_v33 = vld [vmem:[%s4681_s1 + $0x208] ss:$16 sps:$4 sm:$0xff]  }
  0x4d   :  { %1729 = vmatprep.subr.bf16.mxu0 %v3162_v32  ;;  %v3238_v32 = vld [vmem:[%s4681_s1 + $0x600] ss:$16 sps:$4 sm:$0xff]  }
  0x4f   :  { %1812 = vmatpush1.bf16.msra.mxu1 %v3163_v35  ;;  %v4029_v35 = vpack.c.bf16 %v66_v30, %v66_v30  ;;  %v3325_v30 = vld [vmem:[%s4681_s1 + $0x3c8] ss:$16 sps:$4 sm:$0xff]  }
  0x50   :  { %1730 = vmatpush1.bf16.msra.mxu0 %v3160_v34  ;;  %1813 = vmatprep.subr.bf16.mxu1 %v3171_v37  ;;  %v3246_v34 = vld [vmem:[%s4681_s1 + $0x624] ss:$16 sps:$4 sm:$0xff]   ;;  %v3247_v37 = vld [vmem:[%s4681_s1 + $0x228] ss:$16 sps:$4 sm:$0xff]  }
  0x51   :  { %1731 = vmatprep.subr.bf16.mxu0 %v3168_v36  ;;  %v3244_v36 = vld [vmem:[%s4681_s1 + $0x620] ss:$16 sps:$4 sm:$0xff]  }
  0x53   :  { %1814 = vmatpush1.bf16.msra.mxu1 %v3169_v39  ;;  %v3250_v39 = vld [vmem:[%s4681_s1 + $0x640] ss:$16 sps:$4 sm:$0xff]  }
  0x54   :  { %1732 = vmatpush1.bf16.msra.mxu0 %v3166_v38  ;;  %1815 = vmatprep.subr.bf16.mxu1 %v3177_v41  ;;  %v3252_v38 = vld [vmem:[%s4681_s1 + $0x644] ss:$16 sps:$4 sm:$0xff]  }
  0x55   :  { %1733 = vmatprep.subr.bf16.mxu0 %v3174_v40  ;;  %v3253_v40 = vld [vmem:[%s4681_s1 + $0x248] ss:$16 sps:$4 sm:$0xff]   ;;  %v3258_v41 = vld [vmem:[%s4681_s1 + $0x664] ss:$16 sps:$4 sm:$0xff]  }
  0x57   :  { %1816 = vmatpush1.bf16.msra.mxu1 %v3175_v44  ;;  %v3259_v44 = vld [vmem:[%s4681_s1 + $0x268] ss:$16 sps:$4 sm:$0xff]  }
  0x58   :  { %1734 = vmatpush1.bf16.msra.mxu0 %v3172_v42  ;;  %1817 = vmatprep.subr.bf16.mxu1 %v3183_v46  ;;  %v3256_v42 = vld [vmem:[%s4681_s1 + $0x660] ss:$16 sps:$4 sm:$0xff]   ;;  %v3267_v46 = vld [vmem:[%s4681_s1 + $0x28c] ss:$16 sps:$4 sm:$0xff]  }
  0x59   :  { %1735 = vmatprep.subr.bf16.mxu0 %v3180_v45  ;;  %v3264_v45 = vld [vmem:[%s4681_s1 + $0x684] ss:$16 sps:$4 sm:$0xff]  }
  0x5b   :  { %1818 = vmatpush1.bf16.msra.mxu1 %v3181_v48  ;;  %v3265_v48 = vld [vmem:[%s4681_s1 + $0x288] ss:$16 sps:$4 sm:$0xff]  }
  0x5c   :  { %1736 = vmatpush1.bf16.msra.mxu0 %v3178_v47  ;;  %1819 = vmatprep.subr.bf16.mxu1 %v3189_v51  ;;  %v3262_v47 = vld [vmem:[%s4681_s1 + $0x680] ss:$16 sps:$4 sm:$0xff]   ;;  %v3273_v51 = vld [vmem:[%s4681_s1 + $0x2ac] ss:$16 sps:$4 sm:$0xff]  }
  0x5d   :  { %1737 = vmatprep.subr.bf16.mxu0 %v3186_v50  ;;  %v3270_v50 = vld [vmem:[%s4681_s1 + $0x6a4] ss:$16 sps:$4 sm:$0xff]  }
  0x5f   :  { %1820 = vmatpush1.bf16.msra.mxu1 %v3187_v53  ;;  %v3271_v53 = vld [vmem:[%s4681_s1 + $0x2a8] ss:$16 sps:$4 sm:$0xff]  }
  0x60   :  { %1738 = vmatpush1.bf16.msra.mxu0 %v3184_v52  ;;  %1821 = vmatprep.subr.bf16.mxu1 %v3195_v55  ;;  %v3268_v52 = vld [vmem:[%s4681_s1 + $0x6a0] ss:$16 sps:$4 sm:$0xff]   ;;  %v3279_v55 = vld [vmem:[%s4681_s1 + $0x2cc] ss:$16 sps:$4 sm:$0xff]  }
  0x61   :  { %1739 = vmatprep.subr.bf16.mxu0 %v3192_v54  ;;  %v3276_v54 = vld [vmem:[%s4681_s1 + $0x6c4] ss:$16 sps:$4 sm:$0xff]  }
  0x63   :  { %1822 = vmatpush1.bf16.msra.mxu1 %v3193_v57  ;;  %v3277_v57 = vld [vmem:[%s4681_s1 + $0x2c8] ss:$16 sps:$4 sm:$0xff]  }
  0x64   :  { %1740 = vmatpush1.bf16.msra.mxu0 %v3190_v56  ;;  %1823 = vmatprep.subr.bf16.mxu1 %v3201_v59  ;;  %v3274_v56 = vld [vmem:[%s4681_s1 + $0x6c0] ss:$16 sps:$4 sm:$0xff]   ;;  %v3285_v59 = vld [vmem:[%s4681_s1 + $0x2ec] ss:$16 sps:$4 sm:$0xff]  }
  0x65   :  { %1741 = vmatprep.subr.bf16.mxu0 %v3198_v58  ;;  %v3282_v58 = vld [vmem:[%s4681_s1 + $0x6e4] ss:$16 sps:$4 sm:$0xff]  }
  0x67   :  { %1824 = vmatpush1.bf16.msra.mxu1 %v3199_v61  ;;  %v3283_v61 = vld [vmem:[%s4681_s1 + $0x2e8] ss:$16 sps:$4 sm:$0xff]  }
  0x68   :  { %1742 = vmatpush1.bf16.msra.mxu0 %v3196_v60  ;;  %1825 = vmatprep.subr.bf16.mxu1 %v3207_v63  ;;  %v3280_v60 = vld [vmem:[%s4681_s1 + $0x6e0] ss:$16 sps:$4 sm:$0xff]   ;;  %v3291_v63 = vld [vmem:[%s4681_s1 + $0x30c] ss:$16 sps:$4 sm:$0xff]  }
  0x69   :  { %1743 = vmatprep.subr.bf16.mxu0 %v3204_v62  ;;  %v3288_v62 = vld [vmem:[%s4681_s1 + $0x704] ss:$16 sps:$4 sm:$0xff]  }
  0x6b   :  { %1826 = vmatpush1.bf16.msra.mxu1 %v3205_v1  ;;  %v3289_v1 = vld [vmem:[%s4681_s1 + $0x308] ss:$16 sps:$4 sm:$0xff]  }
  0x6c   :  { %1744 = vmatpush1.bf16.msra.mxu0 %v3202_v0  ;;  %1827 = vmatprep.subr.bf16.mxu1 %v3213_v4  ;;  %v3286_v0 = vld [vmem:[%s4681_s1 + $0x700] ss:$16 sps:$4 sm:$0xff]   ;;  %v3297_v4 = vld [vmem:[%s4681_s1 + $0x32c] ss:$16 sps:$4 sm:$0xff]  }
  0x6d   :  { %1745 = vmatprep.subr.bf16.mxu0 %v3210_v2  ;;  %v3294_v2 = vld [vmem:[%s4681_s1 + $0x724] ss:$16 sps:$4 sm:$0xff]  }
  0x6f   :  { %1828 = vmatpush1.bf16.msra.mxu1 %v3211_v6  ;;  %v3295_v6 = vld [vmem:[%s4681_s1 + $0x328] ss:$16 sps:$4 sm:$0xff]  }
  0x70   :  { %1746 = vmatpush1.bf16.msra.mxu0 %v3208_v5  ;;  %1829 = vmatprep.subr.bf16.mxu1 %v3219_v9  ;;  %v3292_v5 = vld [vmem:[%s4681_s1 + $0x720] ss:$16 sps:$4 sm:$0xff]   ;;  %v3303_v9 = vld [vmem:[%s4681_s1 + $0x34c] ss:$16 sps:$4 sm:$0xff]  }
  0x71   :  { %1747 = vmatprep.subr.bf16.mxu0 %v3216_v7  ;;  %v3300_v7 = vld [vmem:[%s4681_s1 + $0x744] ss:$16 sps:$4 sm:$0xff]  }
  0x73   :  { %1830 = vmatpush1.bf16.msra.mxu1 %v3217_v11  ;;  %v3301_v11 = vld [vmem:[%s4681_s1 + $0x348] ss:$16 sps:$4 sm:$0xff]  }
  0x74   :  { %1748 = vmatpush1.bf16.msra.mxu0 %v3214_v10  ;;  %1831 = vmatprep.subr.bf16.mxu1 %v3225_v14  ;;  %v3298_v10 = vld [vmem:[%s4681_s1 + $0x740] ss:$16 sps:$4 sm:$0xff]   ;;  %v3309_v14 = vld [vmem:[%s4681_s1 + $0x36c] ss:$16 sps:$4 sm:$0xff]  }
  0x75   :  { %1749 = vmatprep.subr.bf16.mxu0 %v3222_v12  ;;  %v3306_v12 = vld [vmem:[%s4681_s1 + $0x764] ss:$16 sps:$4 sm:$0xff]  }
  0x77   :  { %1832 = vmatpush1.bf16.msra.mxu1 %v3223_v16  ;;  %v3307_v16 = vld [vmem:[%s4681_s1 + $0x368] ss:$16 sps:$4 sm:$0xff]  }
  0x78   :  { %1750 = vmatpush1.bf16.msra.mxu0 %v3220_v15  ;;  %1833 = vmatprep.subr.bf16.mxu1 %v3231_v18  ;;  %v3304_v15 = vld [vmem:[%s4681_s1 + $0x760] ss:$16 sps:$4 sm:$0xff]   ;;  %v3315_v18 = vld [vmem:[%s4681_s1 + $0x38c] ss:$16 sps:$4 sm:$0xff]  }
  0x79   :  { %1751 = vmatprep.subr.bf16.mxu0 %v3228_v17  ;;  %v3312_v17 = vld [vmem:[%s4681_s1 + $0x784] ss:$16 sps:$4 sm:$0xff]  }
  0x7b   :  { %1834 = vmatpush1.bf16.msra.mxu1 %v3229_v23  ;;  %v3318_v23 = vld [vmem:[%s4681_s1 + $0x7a4] ss:$16 sps:$4 sm:$0xff]  }
  0x7c   :  { %1752 = vmatpush1.bf16.msra.mxu0 %v3226_v22  ;;  %1835 = vmatprep.subr.bf16.mxu1 %v3237_v8  ;;  %v3313_v22 = vld [vmem:[%s4681_s1 + $0x388] ss:$16 sps:$4 sm:$0xff]   ;;  %v3316_v8 = vld [vmem:[%s4681_s1 + $0x7a0] ss:$16 sps:$4 sm:$0xff]  }
  0x7d   :  { %1753 = vmatprep.subr.bf16.mxu0 %v3234_v24  ;;  %v3321_v24 = vld [vmem:[%s4681_s1 + $0x3ac] ss:$16 sps:$4 sm:$0xff]  }
  0x7f   :  { %1836 = vmatpush1.bf16.msra.mxu1 %v3235_v28  ;;  %v3324_v28 = vld [vmem:[%s4681_s1 + $0x7c4] ss:$16 sps:$4 sm:$0xff]  }
  0x80   :  { %1754 = vmatpush1.bf16.msra.mxu0 %v3232_v27  ;;  %1846 = vmatprep.subr.bf16.mxu1 %v3243_v49  ;;  %v3319_v27 = vld [vmem:[%s4681_s1 + $0x3a8] ss:$16 sps:$4 sm:$0xff]   ;;  %v3322_v49 = vld [vmem:[%s4681_s1 + $0x7c0] ss:$16 sps:$4 sm:$0xff]  }
  0x81   :  { %1764 = vmatprep.subr.bf16.mxu0 %v3240_v29  ;;  %v3327_v29 = vld [vmem:[%s4681_s1 + $0x3cc] ss:$16 sps:$4 sm:$0xff]  }
  0x82   :  { %1838 = vmatmul.mubr.bf16.vlgmr.msra.gmra.mrb[4].mxu1 %v3805_v19  ;;  %v3255_v19 = vld [vmem:[%s4681_s1 + $0x24c] ss:$16 sps:$4 sm:$0xff]  }
  0x83   :  { %1756 = vmatmul.mubr.bf16.vlgmr.msra.gmra.mrb[0].mxu0 %v4015_v31  ;;  %1847 = vmatpush1.bf16.msra.mxu1 %v3241_v33  ;;  %v3333_v33 = vld [vmem:[%s4681_s1 + $0x3ec] ss:$16 sps:$4 sm:$0xff]  }
  0x84   :  { %1765 = vmatpush1.bf16.msra.mxu0 %v3238_v32  ;;  %1848 = vmatprep.subr.bf16.mxu1 %v3249_v13  ;;  %v3330_v32 = vld [vmem:[%s4681_s1 + $0x7e4] ss:$16 sps:$4 sm:$0xff]   ;;  %v3331_v13 = vld [vmem:[%s4681_s1 + $0x3e8] ss:$16 sps:$4 sm:$0xff]  }
  0x85   :  { %1766 = vmatprep.subr.bf16.mxu0 %v3246_v34  ;;  %1796 = vmatprep.mubr.bf16.mxu0 %v4029_v35  ;;  %v3328_v34 = vld [vmem:[%s4681_s1 + $0x7e0] ss:$16 sps:$4 sm:$0xff]  }
  0x86   :  { %1878 = vmatprep.mubr.bf16.mxu1 %v3755_v3  ;;  %v3261_v3 = vld [vmem:[%s4681_s1 + $0x26c] ss:$16 sps:$4 sm:$0xff]  }
  0x87   :  { %1849 = vmatpush1.bf16.msra.mxu1 %v3247_v37  ;;  %v4214_v37 = vpack.c.bf16 %v3997_v26, %v3997_v26  ;;  %v3337_v26 = vld [vmem:[%s4681_s1 + $0x428] ss:$16 sps:$4 sm:$0xff]  }
  0x88   :  { %1767 = vmatpush1.bf16.msra.mxu0 %v3244_v36  ;;  %1850 = vmatprep.subr.bf16.mxu1 %v3255_v19  ;;  %v3336_v36 = vld [vmem:[%s4681_s1 + $0x40c] ss:$16 sps:$4 sm:$0xff]  }
  0x89   :  { %1768 = vmatprep.subr.bf16.mxu0 %v3252_v38  ;;  %v3334_v38 = vld [vmem:[%s4681_s1 + $0x408] ss:$16 sps:$4 sm:$0xff]   ;;  %v3339_v19 = vld [vmem:[%s4681_s1 + $0x42c] ss:$16 sps:$4 sm:$0xff]  }
  0x8b   :  { %1851 = vmatpush1.bf16.msra.mxu1 %v3253_v40  ;;  %v3430_v40 = vld [vmem:[%s4683_s3] ss:$8 sps:$4 sm:$0xff]  }
  0x8c   :  { %1769 = vmatpush1.bf16.msra.mxu0 %v3250_v39  ;;  %1852 = vmatprep.subr.bf16.mxu1 %v3261_v3  ;;  %v3342_v39 = vld [vmem:[%s4681_s1 + $0x44c] ss:$16 sps:$4 sm:$0xff]   ;;  %v3340_v3 = vld [vmem:[%s4681_s1 + $0x448] ss:$16 sps:$4 sm:$0xff]  }
  0x8d   :  { %1770 = vmatprep.subr.bf16.mxu0 %v3258_v41  ;;  %v3435_v41 = vld [vmem:[%s4683_s3 + $0x14] ss:$8 sps:$4 sm:$0xff]  }
  0x8f   :  { %1853 = vmatpush1.bf16.msra.mxu1 %v3259_v44  ;;  %v3438_v44 = vld [vmem:[%s4683_s3 + $0x24] ss:$8 sps:$4 sm:$0xff]  }
  0x90   :  { %1771 = vmatpush1.bf16.msra.mxu0 %v3256_v42  ;;  %1854 = vmatprep.subr.bf16.mxu1 %v3267_v46  ;;  %v3433_v42 = vld [vmem:[%s4683_s3 + $0x10] ss:$8 sps:$4 sm:$0xff]   ;;  %v3348_v46 = vld [vmem:[%s4681_s1 + $0x48c] ss:$16 sps:$4 sm:$0xff]  }
  0x91   :  { %1772 = vmatprep.subr.bf16.mxu0 %v3264_v45  ;;  %v3343_v45 = vld [vmem:[%s4681_s1 + $0x468] ss:$16 sps:$4 sm:$0xff]  }
  0x93   :  { %1855 = vmatpush1.bf16.msra.mxu1 %v3265_v48  ;;  %v3441_v48 = vld [vmem:[%s4683_s3 + $0x34] ss:$8 sps:$4 sm:$0xff]  }
  0x94   :  { %1773 = vmatpush1.bf16.msra.mxu0 %v3262_v47  ;;  %1856 = vmatprep.subr.bf16.mxu1 %v3273_v51  ;;  %v3436_v47 = vld [vmem:[%s4683_s3 + $0x20] ss:$8 sps:$4 sm:$0xff]   ;;  %v3351_v51 = vld [vmem:[%s4681_s1 + $0x4ac] ss:$16 sps:$4 sm:$0xff]  }
  0x95   :  { %1774 = vmatprep.subr.bf16.mxu0 %v3270_v50  ;;  %v3346_v50 = vld [vmem:[%s4681_s1 + $0x488] ss:$16 sps:$4 sm:$0xff]  }
  0x97   :  { %1857 = vmatpush1.bf16.msra.mxu1 %v3271_v53  ;;  %v3444_v53 = vld [vmem:[%s4683_s3 + $0x44] ss:$8 sps:$4 sm:$0xff]  }
  0x98   :  { %1775 = vmatpush1.bf16.msra.mxu0 %v3268_v52  ;;  %1858 = vmatprep.subr.bf16.mxu1 %v3279_v55  ;;  %v3439_v52 = vld [vmem:[%s4683_s3 + $0x30] ss:$8 sps:$4 sm:$0xff]   ;;  %v3354_v55 = vld [vmem:[%s4681_s1 + $0x4cc] ss:$16 sps:$4 sm:$0xff]  }
  0x99   :  { %1776 = vmatprep.subr.bf16.mxu0 %v3276_v54  ;;  %v3349_v54 = vld [vmem:[%s4681_s1 + $0x4a8] ss:$16 sps:$4 sm:$0xff]  }
  0x9b   :  { %1859 = vmatpush1.bf16.msra.mxu1 %v3277_v57  ;;  %v3447_v57 = vld [vmem:[%s4683_s3 + $0x54] ss:$8 sps:$4 sm:$0xff]  }
  0x9c   :  { %1777 = vmatpush1.bf16.msra.mxu0 %v3274_v56  ;;  %1860 = vmatprep.subr.bf16.mxu1 %v3285_v59  ;;  %v3442_v56 = vld [vmem:[%s4683_s3 + $0x40] ss:$8 sps:$4 sm:$0xff]   ;;  %v3445_v59 = vld [vmem:[%s4683_s3 + $0x50] ss:$8 sps:$4 sm:$0xff]  }
  0x9d   :  { %1778 = vmatprep.subr.bf16.mxu0 %v3282_v58  ;;  %v3352_v58 = vld [vmem:[%s4681_s1 + $0x4c8] ss:$16 sps:$4 sm:$0xff]  }
  0x9f   :  { %1861 = vmatpush1.bf16.msra.mxu1 %v3283_v61  ;;  %v3450_v61 = vld [vmem:[%s4683_s3 + $0x64] ss:$8 sps:$4 sm:$0xff]  }
  0xa0   :  { %1779 = vmatpush1.bf16.msra.mxu0 %v3280_v60  ;;  %1862 = vmatprep.subr.bf16.mxu1 %v3291_v63  ;;  %v3357_v60 = vld [vmem:[%s4681_s1 + $0x4ec] ss:$16 sps:$4 sm:$0xff]   ;;  %v3448_v63 = vld [vmem:[%s4683_s3 + $0x60] ss:$8 sps:$4 sm:$0xff]  }
  0xa1   :  { %1780 = vmatprep.subr.bf16.mxu0 %v3288_v62  ;;  %v3355_v62 = vld [vmem:[%s4681_s1 + $0x4e8] ss:$16 sps:$4 sm:$0xff]  }
  0xa3   :  { %1863 = vmatpush1.bf16.msra.mxu1 %v3289_v1  ;;  %v3453_v1 = vld [vmem:[%s4683_s3 + $0x74] ss:$8 sps:$4 sm:$0xff]  }
  0xa4   :  { %1781 = vmatpush1.bf16.msra.mxu0 %v3286_v0  ;;  %1864 = vmatprep.subr.bf16.mxu1 %v3297_v4  ;;  %v3360_v0 = vld [vmem:[%s4681_s1 + $0x50c] ss:$16 sps:$4 sm:$0xff]   ;;  %v3451_v4 = vld [vmem:[%s4683_s3 + $0x70] ss:$8 sps:$4 sm:$0xff]  }
  0xa5   :  { %1782 = vmatprep.subr.bf16.mxu0 %v3294_v2  ;;  %v3358_v2 = vld [vmem:[%s4681_s1 + $0x508] ss:$16 sps:$4 sm:$0xff]  }
  0xa7   :  { %1865 = vmatpush1.bf16.msra.mxu1 %v3295_v6  ;;  %v3456_v6 = vld [vmem:[%s4683_s3 + $0x84] ss:$8 sps:$4 sm:$0xff]  }
  0xa8   :  { %1783 = vmatpush1.bf16.msra.mxu0 %v3292_v5  ;;  %1866 = vmatprep.subr.bf16.mxu1 %v3303_v9  ;;  %v3363_v5 = vld [vmem:[%s4681_s1 + $0x52c] ss:$16 sps:$4 sm:$0xff]   ;;  %v3454_v9 = vld [vmem:[%s4683_s3 + $0x80] ss:$8 sps:$4 sm:$0xff]  }
  0xa9   :  { %1784 = vmatprep.subr.bf16.mxu0 %v3300_v7  ;;  %v3361_v7 = vld [vmem:[%s4681_s1 + $0x528] ss:$16 sps:$4 sm:$0xff]  }
  0xab   :  { %1867 = vmatpush1.bf16.msra.mxu1 %v3301_v11  ;;  %v3459_v11 = vld [vmem:[%s4683_s3 + $0x94] ss:$8 sps:$4 sm:$0xff]  }
  0xac   :  { %1785 = vmatpush1.bf16.msra.mxu0 %v3298_v10  ;;  %1868 = vmatprep.subr.bf16.mxu1 %v3309_v14  ;;  %v3366_v10 = vld [vmem:[%s4681_s1 + $0x54c] ss:$16 sps:$4 sm:$0xff]   ;;  %v3457_v14 = vld [vmem:[%s4683_s3 + $0x90] ss:$8 sps:$4 sm:$0xff]  }
  0xad   :  { %1786 = vmatprep.subr.bf16.mxu0 %v3306_v12  ;;  %v3364_v12 = vld [vmem:[%s4681_s1 + $0x548] ss:$16 sps:$4 sm:$0xff]  }
  0xaf   :  { %1869 = vmatpush1.bf16.msra.mxu1 %v3307_v16  ;;  %v3462_v16 = vld [vmem:[%s4683_s3 + $0xa4] ss:$8 sps:$4 sm:$0xff]  }
  0xb0   :  { %1787 = vmatpush1.bf16.msra.mxu0 %v3304_v15  ;;  %1870 = vmatprep.subr.bf16.mxu1 %v3315_v18  ;;  %v3369_v15 = vld [vmem:[%s4681_s1 + $0x56c] ss:$16 sps:$4 sm:$0xff]   ;;  %v3460_v18 = vld [vmem:[%s4683_s3 + $0xa0] ss:$8 sps:$4 sm:$0xff]  }
  0xb1   :  { %1788 = vmatprep.subr.bf16.mxu0 %v3312_v17  ;;  %v3367_v17 = vld [vmem:[%s4681_s1 + $0x568] ss:$16 sps:$4 sm:$0xff]  }
  0xb3   :  { %1871 = vmatpush1.bf16.msra.mxu1 %v3313_v22  ;;  %v3465_v22 = vld [vmem:[%s4683_s3 + $0xb4] ss:$8 sps:$4 sm:$0xff]  }
  0xb4   :  { %1789 = vmatpush1.bf16.msra.mxu0 %v3310_v21  ;;  %1872 = vmatprep.subr.bf16.mxu1 %v3321_v24  ;;  %v3372_v21 = vld [vmem:[%s4681_s1 + $0x58c] ss:$16 sps:$4 sm:$0xff]   ;;  %v3463_v24 = vld [vmem:[%s4683_s3 + $0xb0] ss:$8 sps:$4 sm:$0xff]  }
  0xb5   :  { %1790 = vmatprep.subr.bf16.mxu0 %v3318_v23  ;;  %v3370_v23 = vld [vmem:[%s4681_s1 + $0x588] ss:$16 sps:$4 sm:$0xff]  }
  0xb7   :  { %1873 = vmatpush1.bf16.msra.mxu1 %v3319_v27  ;;  %v3468_v27 = vld [vmem:[%s4683_s3 + $0xc4] ss:$8 sps:$4 sm:$0xff]  }
  0xb8   :  { %1791 = vmatpush1.bf16.msra.mxu0 %v3316_v8  ;;  %1874 = vmatprep.subr.bf16.mxu1 %v3327_v29  ;;  %v3375_v8 = vld [vmem:[%s4681_s1 + $0x5ac] ss:$16 sps:$4 sm:$0xff]   ;;  %v3466_v29 = vld [vmem:[%s4683_s3 + $0xc0] ss:$8 sps:$4 sm:$0xff]  }
  0xb9   :  { %1792 = vmatprep.subr.bf16.mxu0 %v3324_v28  ;;  %v3373_v28 = vld [vmem:[%s4681_s1 + $0x5a8] ss:$16 sps:$4 sm:$0xff]  }
  0xbb   :  { %1875 = vmatpush1.bf16.msra.mxu1 %v3325_v30  ;;  %v3471_v30 = vld [vmem:[%s4683_s3 + $0xd4] ss:$8 sps:$4 sm:$0xff]  }
  0xbc   :  { %1793 = vmatpush1.bf16.msra.mxu0 %v3322_v49  ;;  %1876 = vmatprep.subr.bf16.mxu1 %v3333_v33  ;;  %v3378_v49 = vld [vmem:[%s4681_s1 + $0x5cc] ss:$16 sps:$4 sm:$0xff]   ;;  %v3469_v33 = vld [vmem:[%s4683_s3 + $0xd0] ss:$8 sps:$4 sm:$0xff]  }
  0xbd   :  { %1794 = vmatprep.subr.bf16.mxu0 %v3330_v32  ;;  %v3376_v32 = vld [vmem:[%s4681_s1 + $0x5c8] ss:$16 sps:$4 sm:$0xff]  }
  0xbf   :  { %1877 = vmatpush1.bf16.msra.mxu1 %v3331_v13  ;;  %v3379_v13 = vld [vmem:[%s4681_s1 + $0x5e8] ss:$16 sps:$4 sm:$0xff]  }
  0xc0   :  { %1795 = vmatpush1.bf16.msra.mxu0 %v3328_v34  ;;  %1887 = vmatprep.subr.bf16.mxu1 %v3336_v36  ;;  %v3381_v34 = vld [vmem:[%s4681_s1 + $0x5ec] ss:$16 sps:$4 sm:$0xff]  }
  0xc1   :  { %v3384_v36 = vld [vmem:[%s4681_s1 + $0x60c] ss:$16 sps:$4 sm:$0xff]  }
  0xc2   :  { %1879 = vmatmul.mubr.bf16.vlgmr.msra.gmra.mrb[4].mxu1 %v3807_v20  ;;  %v3432_v20 = vld [vmem:[%s4683_s3 + $0x4] ss:$8 sps:$4 sm:$0xff]  }
  0xc3   :  { %1797 = vmatmul.mubr.bf16.vlgmr.msra.gmra.mrb[0].mxu0 %v4214_v37  ;;  %1888 = vmatpush1.bf16.msra.mxu1 %v3334_v38  ;;  %v3382_v38 = vld [vmem:[%s4681_s1 + $0x608] ss:$16 sps:$4 sm:$0xff]  }
  0xc4   :  { %1919 = vmatprep.mubr.bf16.mxu1 %v3821_v25  ;;  %1889 = vmatprep.subr.bf16.mxu1 %v3339_v19  ;;  %v3345_v25 = vld [vmem:[%s4681_s1 + $0x46c] ss:$16 sps:$4 sm:$0xff]  }
  0xc5   :  { %2381 = vmatprep.subr.bf16.mxu0 %v3432_v20  ;;  %v3387_v19 = vld [vmem:[%s4681_s1 + $0x62c] ss:$16 sps:$4 sm:$0xff]  }
  0xc6   :  { %2382 = vmatpush1.bf16.msra.mxu0 %v3430_v40  ;;  %v3388_v40 = vld [vmem:[%s4681_s1 + $0x648] ss:$16 sps:$4 sm:$0xff]   ;;  %v3396_v20 = vld [vmem:[%s4681_s1 + $0x68c] ss:$16 sps:$4 sm:$0xff]  }
  0xc7   :  { %1890 = vmatpush1.bf16.msra.mxu1 %v3337_v26  ;;  %2383 = vmatprep.subr.bf16.mxu0 %v3435_v41  ;;  %v3385_v26 = vld [vmem:[%s4681_s1 + $0x628] ss:$16 sps:$4 sm:$0xff]  }
  0xc8   :  { %1891 = vmatprep.subr.bf16.mxu1 %v3342_v39  ;;  %v3390_v39 = vld [vmem:[%s4681_s1 + $0x64c] ss:$16 sps:$4 sm:$0xff]   ;;  %v3394_v41 = vld [vmem:[%s4681_s1 + $0x688] ss:$16 sps:$4 sm:$0xff]  }
  0xca   :  { %2384 = vmatpush1.bf16.msra.mxu0 %v3433_v42  ;;  %v3402_v42 = vld [vmem:[%s4681_s1 + $0x6cc] ss:$16 sps:$4 sm:$0xff]  }
  0xcb   :  { %1892 = vmatpush1.bf16.msra.mxu1 %v3340_v3  ;;  %2385 = vmatprep.subr.bf16.mxu0 %v3438_v44  ;;  %v3399_v3 = vld [vmem:[%s4681_s1 + $0x6ac] ss:$16 sps:$4 sm:$0xff]  }
  0xcc   :  { %1893 = vmatprep.subr.bf16.mxu1 %v3345_v25  ;;  %v3397_v25 = vld [vmem:[%s4681_s1 + $0x6a8] ss:$16 sps:$4 sm:$0xff]  }
  0xce   :  { %2386 = vmatpush1.bf16.msra.mxu0 %v3436_v47  ;;  %v3472_v47 = vld [vmem:[%s4683_s3 + $0xe0] ss:$8 sps:$4 sm:$0xff]  }
  0xcf   :  { %1894 = vmatpush1.bf16.msra.mxu1 %v3343_v45  ;;  %2387 = vmatprep.subr.bf16.mxu0 %v3441_v48  ;;  %v3474_v45 = vld [vmem:[%s4683_s3 + $0xe4] ss:$8 sps:$4 sm:$0xff]  }
  0xd0   :  { %1895 = vmatprep.subr.bf16.mxu1 %v3348_v46 }
  0xd2   :  { %2388 = vmatpush1.bf16.msra.mxu0 %v3439_v52  ;;  %v3405_v52 = vld [vmem:[%s4681_s1 + $0x6ec] ss:$16 sps:$4 sm:$0xff]  }
  0xd3   :  { %1896 = vmatpush1.bf16.msra.mxu1 %v3346_v50  ;;  %2389 = vmatprep.subr.bf16.mxu0 %v3444_v53  ;;  %v3400_v50 = vld [vmem:[%s4681_s1 + $0x6c8] ss:$16 sps:$4 sm:$0xff]   ;;  %v3477_v53 = vld [vmem:[%s4683_s3 + $0xf4] ss:$8 sps:$4 sm:$0xff]  }
  0xd4   :  { %1897 = vmatprep.subr.bf16.mxu1 %v3351_v51 }
  0xd6   :  { %2390 = vmatpush1.bf16.msra.mxu0 %v3442_v56  ;;  %v3408_v56 = vld [vmem:[%s4681_s1 + $0x70c] ss:$16 sps:$4 sm:$0xff]  }
  0xd7   :  { %1898 = vmatpush1.bf16.msra.mxu1 %v3349_v54  ;;  %2391 = vmatprep.subr.bf16.mxu0 %v3447_v57  ;;  %v3475_v54 = vld [vmem:[%s4683_s3 + $0xf0] ss:$8 sps:$4 sm:$0xff]  }
  0xd8   :  { %1899 = vmatprep.subr.bf16.mxu1 %v3354_v55  ;;  %v3403_v55 = vld [vmem:[%s4681_s1 + $0x6e8] ss:$16 sps:$4 sm:$0xff]  }
  0xd9   :  { %v3406_v57 = vld [vmem:[%s4681_s1 + $0x708] ss:$16 sps:$4 sm:$0xff]  }
  0xda   :  { %2392 = vmatpush1.bf16.msra.mxu0 %v3445_v59  ;;  %v3411_v59 = vld [vmem:[%s4681_s1 + $0x72c] ss:$16 sps:$4 sm:$0xff]  }
  0xdb   :  { %1900 = vmatpush1.bf16.msra.mxu1 %v3352_v58  ;;  %2393 = vmatprep.subr.bf16.mxu0 %v3450_v61  ;;  %v3480_v58 = vld [vmem:[%s4683_s3 + $0x104] ss:$8 sps:$4 sm:$0xff]  }
  0xdc   :  { %1901 = vmatprep.subr.bf16.mxu1 %v3357_v60  ;;  %v3409_v60 = vld [vmem:[%s4681_s1 + $0x728] ss:$16 sps:$4 sm:$0xff]   ;;  %v3414_v61 = vld [vmem:[%s4681_s1 + $0x74c] ss:$16 sps:$4 sm:$0xff]  }
  0xde   :  { %2394 = vmatpush1.bf16.msra.mxu0 %v3448_v63  ;;  %v3417_v63 = vld [vmem:[%s4681_s1 + $0x76c] ss:$16 sps:$4 sm:$0xff]  }
  0xdf   :  { %1902 = vmatpush1.bf16.msra.mxu1 %v3355_v62  ;;  %2395 = vmatprep.subr.bf16.mxu0 %v3453_v1  ;;  %v3412_v62 = vld [vmem:[%s4681_s1 + $0x748] ss:$16 sps:$4 sm:$0xff]   ;;  %v3420_v1 = vld [vmem:[%s4681_s1 + $0x78c] ss:$16 sps:$4 sm:$0xff]  }
  0xe0   :  { %1903 = vmatprep.subr.bf16.mxu1 %v3360_v0  ;;  %v3415_v0 = vld [vmem:[%s4681_s1 + $0x768] ss:$16 sps:$4 sm:$0xff]  }
  0xe2   :  { %2396 = vmatpush1.bf16.msra.mxu0 %v3451_v4  ;;  %v3423_v4 = vld [vmem:[%s4681_s1 + $0x7ac] ss:$16 sps:$4 sm:$0xff]  }
  0xe3   :  { %1904 = vmatpush1.bf16.msra.mxu1 %v3358_v2  ;;  %2397 = vmatprep.subr.bf16.mxu0 %v3456_v6  ;;  %v3418_v2 = vld [vmem:[%s4681_s1 + $0x788] ss:$16 sps:$4 sm:$0xff]   ;;  %v3426_v6 = vld [vmem:[%s4681_s1 + $0x7cc] ss:$16 sps:$4 sm:$0xff]  }
  0xe4   :  { %1905 = vmatprep.subr.bf16.mxu1 %v3363_v5  ;;  %v3421_v5 = vld [vmem:[%s4681_s1 + $0x7a8] ss:$16 sps:$4 sm:$0xff]  }
  0xe6   :  { %2398 = vmatpush1.bf16.msra.mxu0 %v3454_v9  ;;  %v3429_v9 = vld [vmem:[%s4681_s1 + $0x7ec] ss:$16 sps:$4 sm:$0xff]  }
  0xe7   :  { %1906 = vmatpush1.bf16.msra.mxu1 %v3361_v7  ;;  %2399 = vmatprep.subr.bf16.mxu0 %v3459_v11  ;;  %v3424_v7 = vld [vmem:[%s4681_s1 + $0x7c8] ss:$16 sps:$4 sm:$0xff]   ;;  %v343_v11 = vsub.s32 0, %v3700_v43 }
  0xe8   :  { %1907 = vmatprep.subr.bf16.mxu1 %v3366_v10  ;;  %v3427_v10 = vld [vmem:[%s4681_s1 + $0x7e8] ss:$16 sps:$4 sm:$0xff]  }
  0xea   :  { %2400 = vmatpush1.bf16.msra.mxu0 %v3457_v14  ;;  %v347_v14 = vsub.s32 1, %v3700_v43 }
  0xeb   :  { %1908 = vmatpush1.bf16.msra.mxu1 %v3364_v12  ;;  %2401 = vmatprep.subr.bf16.mxu0 %v3462_v16  ;;  %v4514_v12 = vld [vmem:[%s4684_s2] sm:$0xf] }
  0xec   :  { %1909 = vmatprep.subr.bf16.mxu1 %v3369_v15  ;;  %v344_v15 = vrot.slane %v4514_v12, %v343_v11  ;;  %v348_v16 = vrot.slane %v4514_v12, %v347_v14 }
  0xee   :  { %2402 = vmatpush1.bf16.msra.mxu0 %v3460_v18 }
  0xef   :  { %1910 = vmatpush1.bf16.msra.mxu1 %v3367_v17  ;;  %2403 = vmatprep.subr.bf16.mxu0 %v3465_v22 }
  0xf0   :  { %1911 = vmatprep.subr.bf16.mxu1 %v3372_v21 }
  0xf2   :  { %2404 = vmatpush1.bf16.msra.mxu0 %v3463_v24 }
  0xf3   :  { %1912 = vmatpush1.bf16.msra.mxu1 %v3370_v23  ;;  %2405 = vmatprep.subr.bf16.mxu0 %v3468_v27 }
  0xf4   :  { %1913 = vmatprep.subr.bf16.mxu1 %v3375_v8 }
  0xf6   :  { %2406 = vmatpush1.bf16.msra.mxu0 %v3466_v29 }
  0xf7   :  { %1914 = vmatpush1.bf16.msra.mxu1 %v3373_v28  ;;  %2407 = vmatprep.subr.bf16.mxu0 %v3471_v30 }
  0xf8   :  { %1915 = vmatprep.subr.bf16.mxu1 %v3378_v49 }
  0xfa   :  { %2408 = vmatpush1.bf16.msra.mxu0 %v3469_v33 }
  0xfb   :  { %1916 = vmatpush1.bf16.msra.mxu1 %v3376_v32  ;;  %2409 = vmatprep.subr.bf16.mxu0 %v3474_v45  ;;  %v3478_v32 = vld [vmem:[%s4683_s3 + $0x100] ss:$8 sps:$4 sm:$0xff]   ;;  %v3533_v45 = vld [vmem:[%s4685_s5 + $0x18] sm:$0xff]  }
  0xfc   :  { %1917 = vmatprep.subr.bf16.mxu1 %v3381_v34  ;;  %v3483_v34 = vld [vmem:[%s4683_s3 + $0x114] ss:$8 sps:$4 sm:$0xff]  }
  0xfe   :  { %2410 = vmatpush1.bf16.msra.mxu0 %v3472_v47  ;;  %v3535_v47 = vld [vmem:[%s4685_s5 + $0x20] sm:$0xff]  }
  0xff   :  { %1918 = vmatpush1.bf16.msra.mxu1 %v3379_v13  ;;  %2411 = vmatprep.subr.bf16.mxu0 %v3477_v53  ;;  %v3481_v13 = vld [vmem:[%s4683_s3 + $0x110] ss:$8 sps:$4 sm:$0xff]   ;;  %v3496_v53 = vld [vmem:[%s4683_s3 + $0x160] ss:$8 sps:$4 sm:$0xff]  }
 0x100   :  { %1928 = vmatprep.subr.bf16.mxu1 %v3384_v36  ;;  %v3486_v36 = vld [vmem:[%s4683_s3 + $0x124] ss:$8 sps:$4 sm:$0xff]  }
 0x102   :  { %1920 = vmatmul.mubr.bf16.vlgmr.msra.gmra.mrb[4].mxu1 %v4015_v31  ;;  %v3393_v31 = vld [vmem:[%s4681_s1 + $0x66c] ss:$16 sps:$4 sm:$0xff]   ;;  %2412 = vmatpush1.bf16.msra.mxu0 %v3475_v54 }
 0x103   :  { %1929 = vmatpush1.bf16.msra.mxu1 %v3382_v38  ;;  %1960 = vmatprep.mubr.bf16.mxu1 %v4029_v35  ;;  %v3391_v35 = vld [vmem:[%s4681_s1 + $0x668] ss:$16 sps:$4 sm:$0xff]   ;;  %v3526_v38 = vld [vmem:[%s4685_s5 + $0x40] sm:$0xff]   ;;  %v3501_v54 = vld [vmem:[%s4683_s3 + $0x174] ss:$8 sps:$4 sm:$0xff]  }
 0x104   :  { %1930 = vmatprep.subr.bf16.mxu1 %v3387_v19  ;;  %2422 = vmatprep.subr.bf16.mxu0 %v3480_v58  ;;  %v3527_v19 = vld [vmem:[%s4685_s5] sm:$0xff]   ;;  %v3507_v58 = vld [vmem:[%s4683_s3 + $0x194] ss:$8 sps:$4 sm:$0xff]  }
 0x107   :  { %1931 = vmatpush1.bf16.msra.mxu1 %v3385_v26  ;;  %v3484_v26 = vld [vmem:[%s4683_s3 + $0x120] ss:$8 sps:$4 sm:$0xff]  }
 0x108   :  { %1932 = vmatprep.subr.bf16.mxu1 %v3390_v39  ;;  %v3528_v39 = vld [vmem:[%s4685_s5 + $0x48] sm:$0xff]  }
 0x10b   :  { %1933 = vmatpush1.bf16.msra.mxu1 %v3388_v40  ;;  %v3529_v40 = vld [vmem:[%s4685_s5 + $0x8] sm:$0xff]  }
 0x10c   :  { %1934 = vmatprep.subr.bf16.mxu1 %v3393_v31  ;;  %v3530_v31 = vld [vmem:[%s4685_s5 + $0x50] sm:$0xff]  }
 0x10f   :  { %1935 = vmatpush1.bf16.msra.mxu1 %v3391_v35  ;;  %v3489_v35 = vld [vmem:[%s4683_s3 + $0x134] ss:$8 sps:$4 sm:$0xff]  }
 0x110   :  { %1936 = vmatprep.subr.bf16.mxu1 %v3396_v20  ;;  %v3487_v20 = vld [vmem:[%s4683_s3 + $0x130] ss:$8 sps:$4 sm:$0xff]  }
 0x113   :  { %1937 = vmatpush1.bf16.msra.mxu1 %v3394_v41  ;;  %v3531_v41 = vld [vmem:[%s4685_s5 + $0x10] sm:$0xff]  }
 0x114   :  { %1938 = vmatprep.subr.bf16.mxu1 %v3399_v3  ;;  %v3532_v3 = vld [vmem:[%s4685_s5 + $0x58] sm:$0xff]  }
 0x115   :  { %v1675_v44 = vpop.f32.mrb[0].mxu1 }
 0x116   :  { %v1677_v46 = vpop.f32.mrb[1].mxu1  ;;  %v1676_v17 = vadd.f32 %v1675_v44, %v344_v15  ;;  %v3495_v44 = vld [vmem:[%s4683_s3 + $0x154] ss:$8 sps:$4 sm:$0xff]   ;;  %v355_v15 = vsub.s32 3, %v3700_v43 }
 0x117   :  { %v1679_v48 = vpop.f32.mrb[2].mxu1  ;;  %1939 = vmatpush1.bf16.msra.mxu1 %v3397_v25  ;;  %v1678_v18 = vadd.f32 %v1677_v46, %v348_v16  ;;  %v3492_v25 = vld [vmem:[%s4683_s3 + $0x144] ss:$8 sps:$4 sm:$0xff]  }
 0x118   :  { %v1680_v51 = vpop.f32.mrb[3].mxu1  ;;  %1940 = vmatprep.subr.bf16.mxu1 %v3402_v42  ;;  %v3490_v42 = vld [vmem:[%s4683_s3 + $0x140] ss:$8 sps:$4 sm:$0xff]   ;;  %v3493_v48 = vld [vmem:[%s4683_s3 + $0x150] ss:$8 sps:$4 sm:$0xff]  }
 0x119   :  { %v3534_v46 = vld [vmem:[%s4685_s5 + $0x60] sm:$0xff]  }
 0x11a   :  { %v3498_v51 = vld [vmem:[%s4683_s3 + $0x164] ss:$8 sps:$4 sm:$0xff]  }
 0x11b   :  { %1941 = vmatpush1.bf16.msra.mxu1 %v3400_v50  ;;  %v3536_v50 = vld [vmem:[%s4685_s5 + $0x68] sm:$0xff]  }
 0x11c   :  { %1942 = vmatprep.subr.bf16.mxu1 %v3405_v52  ;;  %v3537_v52 = vld [vmem:[%s4685_s5 + $0x28] sm:$0xff]  }
 0x11f   :  { %1943 = vmatpush1.bf16.msra.mxu1 %v3403_v55  ;;  %v3499_v55 = vld [vmem:[%s4683_s3 + $0x170] ss:$8 sps:$4 sm:$0xff]  }
 0x120   :  { %1944 = vmatprep.subr.bf16.mxu1 %v3408_v56  ;;  %v3504_v56 = vld [vmem:[%s4683_s3 + $0x184] ss:$8 sps:$4 sm:$0xff]  }
 0x123   :  { %1945 = vmatpush1.bf16.msra.mxu1 %v3406_v57  ;;  %v3502_v57 = vld [vmem:[%s4683_s3 + $0x180] ss:$8 sps:$4 sm:$0xff]  }
 0x124   :  { %1946 = vmatprep.subr.bf16.mxu1 %v3411_v59  ;;  %v3505_v59 = vld [vmem:[%s4683_s3 + $0x190] ss:$8 sps:$4 sm:$0xff]  }
 0x127   :  { %1947 = vmatpush1.bf16.msra.mxu1 %v3409_v60  ;;  %v3510_v60 = vld [vmem:[%s4683_s3 + $0x1a4] ss:$8 sps:$4 sm:$0xff]  }
 0x128   :  { %1948 = vmatprep.subr.bf16.mxu1 %v3414_v61  ;;  %v3508_v61 = vld [vmem:[%s4683_s3 + $0x1a0] ss:$8 sps:$4 sm:$0xff]  }
 0x12b   :  { %1949 = vmatpush1.bf16.msra.mxu1 %v3412_v62  ;;  %v3513_v62 = vld [vmem:[%s4683_s3 + $0x1b4] ss:$8 sps:$4 sm:$0xff]  }
 0x12c   :  { %1950 = vmatprep.subr.bf16.mxu1 %v3417_v63  ;;  %v3511_v63 = vld [vmem:[%s4683_s3 + $0x1b0] ss:$8 sps:$4 sm:$0xff]  }
 0x12f   :  { %1951 = vmatpush1.bf16.msra.mxu1 %v3415_v0  ;;  %v3516_v0 = vld [vmem:[%s4683_s3 + $0x1c4] ss:$8 sps:$4 sm:$0xff]  }
 0x130   :  { %1952 = vmatprep.subr.bf16.mxu1 %v3420_v1  ;;  %v3514_v1 = vld [vmem:[%s4683_s3 + $0x1c0] ss:$8 sps:$4 sm:$0xff]  }
 0x133   :  { %1953 = vmatpush1.bf16.msra.mxu1 %v3418_v2  ;;  %v3519_v2 = vld [vmem:[%s4683_s3 + $0x1d4] ss:$8 sps:$4 sm:$0xff]  }
 0x134   :  { %1954 = vmatprep.subr.bf16.mxu1 %v3423_v4  ;;  %v3517_v4 = vld [vmem:[%s4683_s3 + $0x1d0] ss:$8 sps:$4 sm:$0xff]  }
 0x137   :  { %1955 = vmatpush1.bf16.msra.mxu1 %v3421_v5  ;;  %v3522_v5 = vld [vmem:[%s4683_s3 + $0x1e4] ss:$8 sps:$4 sm:$0xff]  }
 0x138   :  { %1956 = vmatprep.subr.bf16.mxu1 %v3426_v6  ;;  %v3520_v6 = vld [vmem:[%s4683_s3 + $0x1e0] ss:$8 sps:$4 sm:$0xff]  }
 0x13b   :  { %1957 = vmatpush1.bf16.msra.mxu1 %v3424_v7  ;;  %v3525_v7 = vld [vmem:[%s4683_s3 + $0x1f4] ss:$8 sps:$4 sm:$0xff]  }
 0x13c   :  { %1958 = vmatprep.subr.bf16.mxu1 %v3429_v9  ;;  %v3523_v9 = vld [vmem:[%s4683_s3 + $0x1f0] ss:$8 sps:$4 sm:$0xff]  }
 0x13f   :  { %1959 = vmatpush1.bf16.msra.mxu1 %v3427_v10  ;;  %v351_v10 = vsub.s32 2, %v3700_v43  ;;  %v12_v43 = vstv %s4687_s6 }
 0x140   :  { %2989 = vmatprep.subr.bf16.mxu1 %v3526_v38  ;;  %13 = vst [vmem:[#allocation2] sm:$0x1] %v12_v43 }
 0x141   :  { %v352_v16 = vrot.slane %v4514_v12, %v351_v10 }
 0x142   :  { %1961 = vmatmul.mubr.bf16.vlgmr.msra.gmra.mrb[4].mxu1 %v4214_v37 }
 0x143   :  { %2990 = vmatpush3.bf16.msra.mxu1 %v3527_v19 }
 0x144   :  { %2991 = vmatprep.subr.bf16.mxu1 %v3528_v39 }
 0x147   :  { %2992 = vmatpush3.bf16.msra.mxu1 %v3529_v40 }
 0x148   :  { %2993 = vmatprep.subr.bf16.mxu1 %v3530_v31 }
 0x14b   :  { %2994 = vmatpush3.bf16.msra.mxu1 %v3531_v41 }
 0x14c   :  { %2995 = vmatprep.subr.bf16.mxu1 %v3532_v3 }
 0x14f   :  { %2996 = vmatpush3.bf16.msra.mxu1 %v3533_v45 }
 0x150   :  { %2997 = vmatprep.subr.bf16.mxu1 %v3534_v46 }
 0x153   :  { %2998 = vmatpush3.bf16.msra.mxu1 %v3535_v47 }
 0x154   :  { %2999 = vmatprep.subr.bf16.mxu1 %v3536_v50 }
 0x157   :  { %3000 = vmatpush3.bf16.msra.mxu1 %v3537_v52 }
 0x196   :  { %v1798_v37 = vpop.f32.mrb[0].mxu0 }
 0x197   :  { %v3012_v21 = vadd.f32 %v1798_v37, %v1676_v17  ;;  %v1800_v22 = vpop.f32.mrb[1].mxu0  ;;  %v356_v17 = vrot.slane %v4514_v12, %v355_v15  ;;  %v3538_v12 = vld [vmem:[%s4685_s5 + $0x70] sm:$0xff]  }
 0x198   :  { %v3014_v23 = vadd.f32 %v1800_v22, %v1678_v18  ;;  %v1802_v24 = vpop.f32.mrb[2].mxu0  ;;  %3001 = vmatprep.subr.bf16.mxu1 %v3538_v12 }
 0x199   :  { %vm1969_vm0 = vcmp.gt.f32.partialorder %v3012_v21, 0.0  ;;  %v1973_v8 = vmul.f32 0.2, %v3012_v21  ;;  %v1803_v27 = vpop.f32.mrb[3].mxu0 }
 0x19a   :  { %vm1970_vm1 = vcmp.gt.f32.partialorder %v3014_v23, 0.0  ;;  %v1974_v28 = vmul.f32 0.2, %v3014_v23 }
 0x19b   :  { %v1977_v29 = vsel %vm1969_vm0, %v3012_v21, %v1973_v8 }
 0x19c   :  { %v1978_v49 = vsel %vm1970_vm1, %v3014_v23, %v1974_v28  ;;  %v1981_v33 = vpack.c.bf16 %v1977_v29, %v1977_v29 }
 0x19d   :  { %v1982_v30 = vpack.c.bf16 %v1978_v49, %v1978_v49 }
 0x19f   :  { %2413 = vmatprep.mubr.bf16.mxu0 %v1982_v30 }
 0x1a0   :  { %2414 = vmatmul.mubr.bf16.vlgmr.msra.gmra.mrb[4].mxu0 %v1981_v33  ;;  %v3540_v33 = vld [vmem:[%s4685_s5 + $0x78] sm:$0xff]  }
 0x1a1   :  { %2423 = vmatpush1.bf16.msra.mxu0 %v3478_v32  ;;  %v3539_v32 = vld [vmem:[%s4685_s5 + $0x30] sm:$0xff]  }
 0x1a2   :  { %2424 = vmatprep.subr.bf16.mxu0 %v3483_v34  ;;  %3002 = vmatpush3.bf16.msra.mxu1 %v3539_v32  ;;  %v3541_v34 = vld [vmem:[%s4685_s5 + $0x38] sm:$0xff]  }
 0x1a3   :  { %3003 = vmatprep.subr.bf16.mxu1 %v3540_v33 }
 0x1a5   :  { %2425 = vmatpush1.bf16.msra.mxu0 %v3481_v13  ;;  %v2049_v13 = vld [vmem:[%s4686_s4] sm:$0x3] }
 0x1a6   :  { %2426 = vmatprep.subr.bf16.mxu0 %v3486_v36  ;;  %3004 = vmatpush3.bf16.msra.mxu1 %v3541_v34  ;;  %v2054_v36 = vrot.slane %v2049_v13, %v343_v11  ;;  %v2058_v38 = vrot.slane %v2049_v13, %v347_v14  ;;  %v2972_v14 = vld [vmem:[#allocation2] ss:$0 sm:$0xff] }
 0x1a9   :  { %2427 = vmatpush1.bf16.msra.mxu0 %v3484_v26 }
 0x1aa   :  { %2428 = vmatprep.subr.bf16.mxu0 %v3489_v35 }
 0x1ad   :  { %2429 = vmatpush1.bf16.msra.mxu0 %v3487_v20 }
 0x1ae   :  { %2430 = vmatprep.subr.bf16.mxu0 %v3492_v25 }
 0x1b1   :  { %2431 = vmatpush1.bf16.msra.mxu0 %v3490_v42 }
 0x1b2   :  { %2432 = vmatprep.subr.bf16.mxu0 %v3495_v44 }
 0x1b5   :  { %2433 = vmatpush1.bf16.msra.mxu0 %v3493_v48 }
 0x1b6   :  { %2434 = vmatprep.subr.bf16.mxu0 %v3498_v51 }
 0x1b9   :  { %2435 = vmatpush1.bf16.msra.mxu0 %v3496_v53 }
 0x1ba   :  { %2436 = vmatprep.subr.bf16.mxu0 %v3501_v54 }
 0x1bd   :  { %2437 = vmatpush1.bf16.msra.mxu0 %v3499_v55 }
 0x1be   :  { %2438 = vmatprep.subr.bf16.mxu0 %v3504_v56 }
 0x1c1   :  { %2439 = vmatpush1.bf16.msra.mxu0 %v3502_v57 }
 0x1c2   :  { %2440 = vmatprep.subr.bf16.mxu0 %v3507_v58 }
 0x1c5   :  { %2441 = vmatpush1.bf16.msra.mxu0 %v3505_v59 }
 0x1c6   :  { %2442 = vmatprep.subr.bf16.mxu0 %v3510_v60 }
 0x1c9   :  { %2443 = vmatpush1.bf16.msra.mxu0 %v3508_v61 }
 0x1ca   :  { %2444 = vmatprep.subr.bf16.mxu0 %v3513_v62 }
 0x1cd   :  { %2445 = vmatpush1.bf16.msra.mxu0 %v3511_v63 }
 0x1ce   :  { %2446 = vmatprep.subr.bf16.mxu0 %v3516_v0 }
 0x1d1   :  { %2447 = vmatpush1.bf16.msra.mxu0 %v3514_v1 }
 0x1d2   :  { %2448 = vmatprep.subr.bf16.mxu0 %v3519_v2 }
 0x1d5   :  { %2449 = vmatpush1.bf16.msra.mxu0 %v3517_v4 }
 0x1d6   :  { %2450 = vmatprep.subr.bf16.mxu0 %v3522_v5 }
 0x1d9   :  { %2451 = vmatpush1.bf16.msra.mxu0 %v3520_v6 }
 0x1da   :  { %2452 = vmatprep.subr.bf16.mxu0 %v3525_v7 }
 0x1dd   :  { %2453 = vmatpush1.bf16.msra.mxu0 %v3523_v9 }
 0x215   :  { %v1962_v18 = vpop.f32.mrb[4].mxu1 }
 0x216   :  { %v3015_v37 = vadd.f32 %v1962_v18, %v352_v16  ;;  %v1964_v21 = vpop.f32.mrb[5].mxu1 }
 0x217   :  { %v3016_v22 = vadd.f32 %v1964_v21, %v356_v17  ;;  %v1966_v23 = vpop.f32.mrb[6].mxu1 }
 0x218   :  { %vm1971_vm2 = vcmp.gt.f32.partialorder %v3015_v37, 0.0  ;;  %v1975_v24 = vmul.f32 0.2, %v3015_v37  ;;  %v1967_v8 = vpop.f32.mrb[7].mxu1 }
 0x219   :  { %vm1972_vm3 = vcmp.gt.f32.partialorder %v3016_v22, 0.0  ;;  %v1976_v27 = vmul.f32 0.2, %v3016_v22 }
 0x21a   :  { %v1979_v28 = vsel %vm1971_vm2, %v3015_v37, %v1975_v24 }
 0x21b   :  { %v1980_v29 = vsel %vm1972_vm3, %v3016_v22, %v1976_v27  ;;  %v1983_v30 = vpack.c.bf16 %v1979_v28, %v1979_v28 }
 0x21c   :  { %v1984_v49 = vpack.c.bf16 %v1980_v29, %v1980_v29 }
 0x21e   :  { %2454 = vmatprep.mubr.bf16.mxu0 %v1984_v49 }
 0x21f   :  { %2455 = vmatmul.mubr.bf16.vlgmr.msra.gmra.mrb[4].mxu0 %v1983_v30 }
 0x2f2   :  { %v2456_v19 = vpop.f32.mrb[4].mxu0 }
 0x2f3   :  { %v3017_v26 = vadd.f32 %v2456_v19, %v2054_v36  ;;  %v2458_v39 = vpop.f32.mrb[5].mxu0 }
 0x2f4   :  { %v3018_v40 = vadd.f32 %v2458_v39, %v2058_v38  ;;  %v2460_v31 = vpop.f32.mrb[6].mxu0 }
 0x2f5   :  { %vm2463_vm4 = vcmp.gt.f32.partialorder %v3017_v26, 0.0  ;;  %v2465_v35 = vmul.f32 0.2, %v3017_v26  ;;  %v2461_v20 = vpop.f32.mrb[7].mxu0 }
 0x2f6   :  { %vm2464_vm5 = vcmp.gt.f32.partialorder %v3018_v40, 0.0  ;;  %v2466_v41 = vmul.f32 0.2, %v3018_v40 }
 0x2f7   :  { %v2467_v3 = vsel %vm2463_vm4, %v3017_v26, %v2465_v35 }
 0x2f8   :  { %v2468_v25 = vsel %vm2464_vm5, %v3018_v40, %v2466_v41  ;;  %v2469_v44 = vpack.c.bf16 %v2467_v3, %v2467_v3 }
 0x2f9   :  { %v2470_v42 = vpack.c.bf16 %v2468_v25, %v2468_v25 }
 0x2fb   :  { %2638 = vmatprep.mubr.bf16.mxu1 %v2470_v42 }
 0x2fc   :  { %2639 = vmatmul.mubr.bf16.vlgmr.msra.gmra.mrb[8].mxu1 %v2469_v44 }
 0x3cf   :  { %v3005_v11 = vpop.f32.mrb[8].mxu1 }
 0x3d0   :  { %v3006_v45 = vpop.f32.mrb[9].mxu1 }
 0x3d1   :  { %v3007_v46 = vadd.f32 %v3006_v45, %v3005_v11  ;;  %v3008_v47 = vpop.f32.mrb[10].mxu1 }
 0x3d2   :  { %v3009_v48 = vpop.f32.mrb[11].mxu1 }
 0x3d3   :  { %v2641_v50 = vadd.f32 %v3007_v46, %v2972_v14 }
 0x3d5   :  { %2647 = vst.msk [vmem:[%s4688_s7] sm:$0x3] %vm2646_vm6, %v2641_v50 }

// kernel: model_forward.14
= control target key start
LH: loop header
LB: loop body
LE: loop exit
PB: predicated region body
PF: predicated region fallthrough
CT: control target
= control target key end

     0   :  { %12 = vsyncpa [#allocation3], 0  ;;  %s9891_s0 = inlined_call_operand.vmem [shape: f32[2,1024], index: 0, kind: input, shape index: {}]   ;;  %s9892_s1 = inlined_call_operand.hbm [shape: bf16[1024,512], index: 1, kind: input, shape index: {}]   ;;  %s9893_s2 = inlined_call_operand.vmem [shape: f32[1,512], index: 2, kind: input, shape index: {}]   ;;  %s9894_s3 = inlined_call_operand.hbm [shape: bf16[512,256], index: 3, kind: input, shape index: {}]   ;;  %s9895_s4 = inlined_call_operand.vmem [shape: f32[1,256], index: 4, kind: input, shape index: {}]   ;;  %s9896_s5 = inlined_call_operand.vmem [shape: bf16[256,4096], index: 5, kind: input, shape index: {}]   ;;  %s9897_s6 = inlined_call_operand.vmem [shape: f32[1,4096], index: 6, kind: input, shape index: {}]   ;;  %s9898_s7 = inlined_call_operand.vmem [shape: f32[2,4096], index: 7, kind: output, shape index: {}]  }
   0x1   :  { %13 = vsyncpa [#allocation5], 0  ;;  %s7986_s24 = smov [#allocation2]   ;;  %s7938_s28 = scalar_lea.hbm %s9892_s1, 32768 }
   0x2   :  { %s21_s25 = sshll.u32 %s7986_s24, 4  ;;  %p7939_p0 = scmp.ne.s32.totalorder %s9892_s1, %s7938_s28  ;;  %s22_s25 = int_to_ptr.vmem [resolvable:$true] %s21_s25 }
   0x3   :  { %p7942_p1 = scmp.lt.u32.totalorder %s7938_s28, %s9892_s1 }
   0x5   :  { %p7944_p2 = pnand %p7942_p1, %p7939_p0 }
   0x7   :  { %7947 = shalt.err (!%p7944_p2)
}
   0x8   :  { %s7948_s10 = scalar_lea.vmem %s22_s25, 32768  ;;  %p7953_p4 = scmp.lt.s32.totalorder %s22_s25, %s22_s25 }
   0x9   :  { %p7949_p3 = scmp.ne.s32.totalorder %s22_s25, %s7948_s10  ;;  %p7954_p5 = scmp.lt.s32.totalorder %s7948_s10, %s7948_s10 }
   0xb   :  { %p7955_p6 = por %p7954_p5, %p7953_p4 }
   0xd   :  { %p7956_p7 = pnand %p7955_p6, %p7949_p3 }
   0xf   :  { %7959 = shalt.err (!%p7956_p7)
}
  0x10   :  { %s7987_s11 = smov 256   ;;  %s7988_s12 = smov 16  }
  0x11   :  { %27 = dma.hbm_to_vmem [thread:$0]  %s9892_s1, 32768, %s22_s25, [#allocation3], %s7987_s11, %s7987_s11, %s7988_s12  }
  0x12   :  { %s7989_s15 = smov [#allocation4]   ;;  %s7960_s19 = scalar_lea.hbm %s9894_s3, 8192 }
  0x13   :  { %s35_s16 = sshll.u32 %s7989_s15, 4  ;;  %p7961_p8 = scmp.ne.s32.totalorder %s9894_s3, %s7960_s19  ;;  %s36_s16 = int_to_ptr.vmem [resolvable:$true] %s35_s16 }
  0x14   :  { %p7964_p9 = scmp.lt.u32.totalorder %s7960_s19, %s9894_s3 }
  0x16   :  { %p7966_p10 = pnand %p7964_p9, %p7961_p8 }
  0x18   :  { %7969 = shalt.err (!%p7966_p10)
}
  0x19   :  { %s7970_s24 = scalar_lea.vmem %s36_s16, 8192  ;;  %p7975_p12 = scmp.lt.s32.totalorder %s36_s16, %s36_s16 }
  0x1a   :  { %p7971_p11 = scmp.ne.s32.totalorder %s36_s16, %s7970_s24  ;;  %p7976_p13 = scmp.lt.s32.totalorder %s7970_s24, %s7970_s24 }
  0x1c   :  { %p7977_p0 = por %p7976_p13, %p7975_p12 }
  0x1e   :  { %p7978_p1 = pnand %p7977_p0, %p7971_p11 }
  0x20   :  { %7981 = shalt.err (!%p7978_p1)
}
  0x21   :  { %s7990_s1 = smov 128   ;;  %s7991_s25 = smov 8  }
  0x22   :  { %41 = dma.hbm_to_vmem [thread:$0]  %s9894_s3, 8192, %s36_s16, [#allocation5], %s7990_s1, %s7990_s1, %s7991_s25  }
  0x23   :  { %7982 = dma.done.wait [#allocation3], 32768  }
  0x24   :  { %7983 = vsyncadd [#allocation3], 4294934528 }
  0x25   :  { %7984 = dma.done.wait [#allocation5], 8192  }
  0x26   :  { %7985 = vsyncadd [#allocation5], 4294959104  ;;  %v7455_v0 = vld [vmem:[#allocation2 + $0x4] ss:$16 sps:$4 sm:$0xff]   ;;  %v7457_v1 = vld [vmem:[#allocation2 + $0xc] ss:$16 sps:$4 sm:$0xff]   ;;  %v62_v38 = vlaneseq }
  0x27   :  { %1666 = vmatprep.subr.bf16.mxu0 %v7455_v0  ;;  %v7459_v2 = vld [vmem:[#allocation2] ss:$16 sps:$4 sm:$0xff]   ;;  %v7460_v3 = vld [vmem:[#allocation2 + $0x8] ss:$16 sps:$4 sm:$0xff]   ;;  %1830 = vmatprep.subr.bf16.mxu1 %v7457_v1  ;;  %v7461_v4 = vld [vmem:[#allocation2 + $0x24] ss:$16 sps:$4 sm:$0xff]  }
  0x28   :  { %1667 = vmatpush1.bf16.msra.mxu0 %v7459_v2  ;;  %1831 = vmatpush1.bf16.msra.mxu1 %v7460_v3  ;;  %v7463_v5 = vld [vmem:[#allocation2 + $0x2c] ss:$16 sps:$4 sm:$0xff]   ;;  %v7465_v6 = vld [vmem:[#allocation2 + $0x20] ss:$16 sps:$4 sm:$0xff]   ;;  %v7466_v7 = vld [vmem:[#allocation2 + $0x28] ss:$16 sps:$4 sm:$0xff]  }
  0x29   :  { %1668 = vmatprep.subr.bf16.mxu0 %v7461_v4  ;;  %1832 = vmatprep.subr.bf16.mxu1 %v7463_v5  ;;  %v7467_v8 = vld [vmem:[#allocation2 + $0x44] ss:$16 sps:$4 sm:$0xff]   ;;  %v7469_v9 = vld [vmem:[#allocation2 + $0x4c] ss:$16 sps:$4 sm:$0xff]   ;;  %v7471_v10 = vld [vmem:[#allocation2 + $0x40] ss:$16 sps:$4 sm:$0xff]  }
  0x2a   :  { %v7472_v11 = vld [vmem:[#allocation2 + $0x48] ss:$16 sps:$4 sm:$0xff]   ;;  %v7473_v12 = vld [vmem:[#allocation2 + $0x64] ss:$16 sps:$4 sm:$0xff]   ;;  %v7475_v13 = vld [vmem:[#allocation2 + $0x6c] ss:$16 sps:$4 sm:$0xff]  }
  0x2b   :  { %v7477_v14 = vld [vmem:[#allocation2 + $0x60] ss:$16 sps:$4 sm:$0xff]   ;;  %v7478_v15 = vld [vmem:[#allocation2 + $0x68] ss:$16 sps:$4 sm:$0xff]   ;;  %v7479_v16 = vld [vmem:[#allocation2 + $0x84] ss:$16 sps:$4 sm:$0xff]  }
  0x2c   :  { %1669 = vmatpush1.bf16.msra.mxu0 %v7465_v6  ;;  %1833 = vmatpush1.bf16.msra.mxu1 %v7466_v7  ;;  %v7481_v17 = vld [vmem:[#allocation2 + $0x8c] ss:$16 sps:$4 sm:$0xff]   ;;  %v7483_v18 = vld [vmem:[#allocation2 + $0x80] ss:$16 sps:$4 sm:$0xff]   ;;  %v7484_v19 = vld [vmem:[#allocation2 + $0x88] ss:$16 sps:$4 sm:$0xff]  }
  0x2d   :  { %1670 = vmatprep.subr.bf16.mxu0 %v7467_v8  ;;  %1834 = vmatprep.subr.bf16.mxu1 %v7469_v9  ;;  %v7485_v20 = vld [vmem:[#allocation2 + $0xa4] ss:$16 sps:$4 sm:$0xff]   ;;  %v7487_v21 = vld [vmem:[#allocation2 + $0xac] ss:$16 sps:$4 sm:$0xff]   ;;  %v7489_v22 = vld [vmem:[#allocation2 + $0xa0] ss:$16 sps:$4 sm:$0xff]  }
  0x2e   :  { %v7490_v23 = vld [vmem:[#allocation2 + $0xa8] ss:$16 sps:$4 sm:$0xff]   ;;  %v7491_v24 = vld [vmem:[#allocation2 + $0xc4] ss:$16 sps:$4 sm:$0xff]   ;;  %v7493_v25 = vld [vmem:[#allocation2 + $0xcc] ss:$16 sps:$4 sm:$0xff]  }
  0x2f   :  { %v7495_v26 = vld [vmem:[#allocation2 + $0xc0] ss:$16 sps:$4 sm:$0xff]   ;;  %v7496_v27 = vld [vmem:[#allocation2 + $0xc8] ss:$16 sps:$4 sm:$0xff]   ;;  %v7497_v28 = vld [vmem:[#allocation2 + $0xe4] ss:$16 sps:$4 sm:$0xff]  }
  0x30   :  { %1671 = vmatpush1.bf16.msra.mxu0 %v7471_v10  ;;  %1835 = vmatpush1.bf16.msra.mxu1 %v7472_v11  ;;  %v7499_v29 = vld [vmem:[#allocation2 + $0xec] ss:$16 sps:$4 sm:$0xff]   ;;  %v7501_v30 = vld [vmem:[#allocation2 + $0xe0] ss:$16 sps:$4 sm:$0xff]   ;;  %v7502_v31 = vld [vmem:[#allocation2 + $0xe8] ss:$16 sps:$4 sm:$0xff]  }
  0x31   :  { %1672 = vmatprep.subr.bf16.mxu0 %v7473_v12  ;;  %1836 = vmatprep.subr.bf16.mxu1 %v7475_v13  ;;  %v7503_v32 = vld [vmem:[#allocation2 + $0x104] ss:$16 sps:$4 sm:$0xff]   ;;  %v7505_v33 = vld [vmem:[#allocation2 + $0x10c] ss:$16 sps:$4 sm:$0xff]   ;;  %v7507_v34 = vld [vmem:[#allocation2 + $0x100] ss:$16 sps:$4 sm:$0xff]  }
  0x32   :  { %v7508_v35 = vld [vmem:[#allocation2 + $0x108] ss:$16 sps:$4 sm:$0xff]   ;;  %v7992_v36 = vmov 1983009808   ;;  %v7509_v39 = vld [vmem:[#allocation2 + $0x124] ss:$16 sps:$4 sm:$0xff]  }
  0x33   :  { %v60_v37 = vunpack.c.l.s4 %v7992_v36  ;;  %v7511_v40 = vld [vmem:[#allocation2 + $0x12c] ss:$16 sps:$4 sm:$0xff]   ;;  %v7513_v41 = vld [vmem:[#allocation2 + $0x120] ss:$16 sps:$4 sm:$0xff]   ;;  %v8057_v43 = vshrl.u32 %v62_v38, 7 }
  0x34   :  { %1673 = vmatpush1.bf16.msra.mxu0 %v7477_v14  ;;  %1837 = vmatpush1.bf16.msra.mxu1 %v7478_v15  ;;  %v7514_v44 = vld [vmem:[#allocation2 + $0x128] ss:$16 sps:$4 sm:$0xff]   ;;  %v7515_v45 = vld [vmem:[#allocation2 + $0x144] ss:$16 sps:$4 sm:$0xff]   ;;  %v7517_v46 = vld [vmem:[#allocation2 + $0x14c] ss:$16 sps:$4 sm:$0xff]  }
  0x35   :  { %1674 = vmatprep.subr.bf16.mxu0 %v7479_v16  ;;  %1838 = vmatprep.subr.bf16.mxu1 %v7481_v17  ;;  %v61_v42 = vunpack.c.0.s8 %v60_v37  ;;  %v7519_v47 = vld [vmem:[#allocation2 + $0x140] ss:$16 sps:$4 sm:$0xff]   ;;  %v7520_v48 = vld [vmem:[#allocation2 + $0x148] ss:$16 sps:$4 sm:$0xff]   ;;  %v7521_v50 = vld [vmem:[#allocation2 + $0x164] ss:$16 sps:$4 sm:$0xff]  }
  0x36   :  { %v7523_v51 = vld [vmem:[#allocation2 + $0x16c] ss:$16 sps:$4 sm:$0xff]   ;;  %v54_v52 = vld [vmem:[%s9891_s0] sm:$0xff]  ;;  %v7526_v55 = vld [vmem:[#allocation2 + $0x168] ss:$16 sps:$4 sm:$0xff]  }
  0x37   :  { %v8060_v49 = vsub.s32 %v61_v42, %v8057_v43  ;;  %v7525_v53 = vld [vmem:[#allocation2 + $0x160] ss:$16 sps:$4 sm:$0xff]   ;;  %v7527_v56 = vld [vmem:[#allocation2 + $0x184] ss:$16 sps:$4 sm:$0xff]   ;;  %v7529_v57 = vld [vmem:[#allocation2 + $0x18c] ss:$16 sps:$4 sm:$0xff]   ;;  %v58_v4 = vcombine.high %v54_v52, %v54_v52 }
  0x38   :  { %1675 = vmatpush1.bf16.msra.mxu0 %v7483_v18  ;;  %1839 = vmatpush1.bf16.msra.mxu1 %v7484_v19  ;;  %v7531_v59 = vld [vmem:[#allocation2 + $0x180] ss:$16 sps:$4 sm:$0xff]   ;;  %v7532_v61 = vld [vmem:[#allocation2 + $0x188] ss:$16 sps:$4 sm:$0xff]   ;;  %v7533_v62 = vld [vmem:[#allocation2 + $0x1a4] ss:$16 sps:$4 sm:$0xff]  }
  0x39   :  { %1676 = vmatprep.subr.bf16.mxu0 %v7485_v20  ;;  %1840 = vmatprep.subr.bf16.mxu1 %v7487_v21  ;;  %v65_v54 = vrot.slane %v54_v52, %v8060_v49  ;;  %v7535_v63 = vld [vmem:[#allocation2 + $0x1ac] ss:$16 sps:$4 sm:$0xff]   ;;  %v7537_v0 = vld [vmem:[#allocation2 + $0x1a0] ss:$16 sps:$4 sm:$0xff]   ;;  %v7538_v1 = vld [vmem:[#allocation2 + $0x1a8] ss:$16 sps:$4 sm:$0xff]   ;;  %v8067_v9 = vrot.slane %v58_v4, %v8060_v49 }
  0x3a   :  { %v7539_v2 = vld [vmem:[#allocation2 + $0x1c4] ss:$16 sps:$4 sm:$0xff]   ;;  %v7541_v3 = vld [vmem:[#allocation2 + $0x1cc] ss:$16 sps:$4 sm:$0xff]   ;;  %v7543_v5 = vld [vmem:[#allocation2 + $0x1c0] ss:$16 sps:$4 sm:$0xff]  }
  0x3b   :  { %v73_v58 = vcombine.high %v65_v54, %v65_v54  ;;  %v7544_v6 = vld [vmem:[#allocation2 + $0x1c8] ss:$16 sps:$4 sm:$0xff]   ;;  %v7545_v7 = vld [vmem:[#allocation2 + $0x1e4] ss:$16 sps:$4 sm:$0xff]   ;;  %v7547_v8 = vld [vmem:[#allocation2 + $0x1ec] ss:$16 sps:$4 sm:$0xff]   ;;  %v74_v14 = vcombine.high %v8067_v9, %v8067_v9  ;;  %v100_v16 = vpack.c.bf16 %v65_v54, %v65_v54 }
  0x3c   :  { %1677 = vmatpush1.bf16.msra.mxu0 %v7489_v22  ;;  %1841 = vmatpush1.bf16.msra.mxu1 %v7490_v23  ;;  %v7549_v10 = vld [vmem:[#allocation2 + $0x1e0] ss:$16 sps:$4 sm:$0xff]   ;;  %v7550_v11 = vld [vmem:[#allocation2 + $0x1e8] ss:$16 sps:$4 sm:$0xff]   ;;  %v7554_v12 = vld [vmem:[#allocation2 + $0x204] ss:$16 sps:$4 sm:$0xff]  }
  0x3d   :  { %1678 = vmatprep.subr.bf16.mxu0 %v7491_v24  ;;  %1842 = vmatprep.subr.bf16.mxu1 %v7493_v25  ;;  %v101_v60 = vpack.c.bf16 %v73_v58, %v73_v58  ;;  %v7557_v13 = vld [vmem:[#allocation2 + $0x20c] ss:$16 sps:$4 sm:$0xff]   ;;  %v7552_v15 = vld [vmem:[#allocation2 + $0x200] ss:$16 sps:$4 sm:$0xff]   ;;  %v7555_v17 = vld [vmem:[#allocation2 + $0x208] ss:$16 sps:$4 sm:$0xff]   ;;  %v103_v20 = vpack.c.bf16 %v74_v14, %v74_v14 }
  0x3e   :  { %v7560_v18 = vld [vmem:[#allocation2 + $0x224] ss:$16 sps:$4 sm:$0xff]   ;;  %v7563_v19 = vld [vmem:[#allocation2 + $0x22c] ss:$16 sps:$4 sm:$0xff]   ;;  %v7558_v21 = vld [vmem:[#allocation2 + $0x220] ss:$16 sps:$4 sm:$0xff]  }
  0x3f   :  { %1698 = vmatprep.mubr.bf16.mxu0 %v101_v60  ;;  %1862 = vmatprep.mubr.bf16.mxu1 %v101_v60  ;;  %v7561_v22 = vld [vmem:[#allocation2 + $0x228] ss:$16 sps:$4 sm:$0xff]   ;;  %v7566_v23 = vld [vmem:[#allocation2 + $0x244] ss:$16 sps:$4 sm:$0xff]   ;;  %v7569_v24 = vld [vmem:[#allocation2 + $0x24c] ss:$16 sps:$4 sm:$0xff]  }
  0x40   :  { %1679 = vmatpush1.bf16.msra.mxu0 %v7495_v26  ;;  %1843 = vmatpush1.bf16.msra.mxu1 %v7496_v27  ;;  %v7564_v25 = vld [vmem:[#allocation2 + $0x240] ss:$16 sps:$4 sm:$0xff]   ;;  %v7567_v26 = vld [vmem:[#allocation2 + $0x248] ss:$16 sps:$4 sm:$0xff]   ;;  %v7572_v27 = vld [vmem:[#allocation2 + $0x264] ss:$16 sps:$4 sm:$0xff]  }
  0x41   :  { %1680 = vmatprep.subr.bf16.mxu0 %v7497_v28  ;;  %1844 = vmatprep.subr.bf16.mxu1 %v7499_v29  ;;  %v7575_v28 = vld [vmem:[#allocation2 + $0x26c] ss:$16 sps:$4 sm:$0xff]   ;;  %v7570_v29 = vld [vmem:[#allocation2 + $0x260] ss:$16 sps:$4 sm:$0xff]   ;;  %v7585_v38 = vld [vmem:[#allocation2 + $0x2a8] ss:$16 sps:$4 sm:$0xff]  }
  0x42   :  { %v7587_v36 = vld [vmem:[#allocation2 + $0x2ac] ss:$16 sps:$4 sm:$0xff]   ;;  %v7582_v37 = vld [vmem:[#allocation2 + $0x2a0] ss:$16 sps:$4 sm:$0xff]   ;;  %v7591_v42 = vld [vmem:[#allocation2 + $0x2c8] ss:$16 sps:$4 sm:$0xff]  }
  0x43   :  { %v7603_v52 = vld [vmem:[#allocation2 + $0x308] ss:$16 sps:$4 sm:$0xff]   ;;  %v7611_v54 = vld [vmem:[#allocation2 + $0x32c] ss:$16 sps:$4 sm:$0xff]   ;;  %v7644_v14 = vld [vmem:[#allocation2 + $0x3e4] ss:$16 sps:$4 sm:$0xff]  }
  0x44   :  { %1681 = vmatpush1.bf16.msra.mxu0 %v7501_v30  ;;  %1845 = vmatpush1.bf16.msra.mxu1 %v7502_v31  ;;  %v7573_v30 = vld [vmem:[#allocation2 + $0x268] ss:$16 sps:$4 sm:$0xff]   ;;  %v7578_v31 = vld [vmem:[#allocation2 + $0x284] ss:$16 sps:$4 sm:$0xff]   ;;  %v7617_v58 = vld [vmem:[#allocation2 + $0x34c] ss:$16 sps:$4 sm:$0xff]  }
  0x45   :  { %1682 = vmatprep.subr.bf16.mxu0 %v7503_v32  ;;  %1846 = vmatprep.subr.bf16.mxu1 %v7505_v33  ;;  %v7581_v32 = vld [vmem:[#allocation2 + $0x28c] ss:$16 sps:$4 sm:$0xff]   ;;  %v7576_v33 = vld [vmem:[#allocation2 + $0x280] ss:$16 sps:$4 sm:$0xff]   ;;  %v7615_v60 = vld [vmem:[#allocation2 + $0x348] ss:$16 sps:$4 sm:$0xff]  }
  0x46   :  { %v7627_v4 = vld [vmem:[#allocation2 + $0x388] ss:$16 sps:$4 sm:$0xff]  }
  0x48   :  { %1683 = vmatpush1.bf16.msra.mxu0 %v7507_v34  ;;  %1847 = vmatpush1.bf16.msra.mxu1 %v7508_v35  ;;  %v7579_v34 = vld [vmem:[#allocation2 + $0x288] ss:$16 sps:$4 sm:$0xff]   ;;  %v7584_v35 = vld [vmem:[#allocation2 + $0x2a4] ss:$16 sps:$4 sm:$0xff]  }
  0x49   :  { %1684 = vmatprep.subr.bf16.mxu0 %v7509_v39  ;;  %1848 = vmatprep.subr.bf16.mxu1 %v7511_v40  ;;  %v7590_v39 = vld [vmem:[#allocation2 + $0x2c4] ss:$16 sps:$4 sm:$0xff]   ;;  %v7593_v40 = vld [vmem:[#allocation2 + $0x2cc] ss:$16 sps:$4 sm:$0xff]  }
  0x4c   :  { %1685 = vmatpush1.bf16.msra.mxu0 %v7513_v41  ;;  %1849 = vmatpush1.bf16.msra.mxu1 %v7514_v44  ;;  %v7588_v41 = vld [vmem:[#allocation2 + $0x2c0] ss:$16 sps:$4 sm:$0xff]   ;;  %v7596_v44 = vld [vmem:[#allocation2 + $0x2e4] ss:$16 sps:$4 sm:$0xff]  }
  0x4d   :  { %1686 = vmatprep.subr.bf16.mxu0 %v7515_v45  ;;  %1850 = vmatprep.subr.bf16.mxu1 %v7517_v46  ;;  %v7599_v45 = vld [vmem:[#allocation2 + $0x2ec] ss:$16 sps:$4 sm:$0xff]   ;;  %v7594_v46 = vld [vmem:[#allocation2 + $0x2e0] ss:$16 sps:$4 sm:$0xff]  }
  0x50   :  { %1687 = vmatpush1.bf16.msra.mxu0 %v7519_v47  ;;  %1851 = vmatpush1.bf16.msra.mxu1 %v7520_v48  ;;  %v7597_v47 = vld [vmem:[#allocation2 + $0x2e8] ss:$16 sps:$4 sm:$0xff]   ;;  %v7602_v48 = vld [vmem:[#allocation2 + $0x304] ss:$16 sps:$4 sm:$0xff]  }
  0x51   :  { %1688 = vmatprep.subr.bf16.mxu0 %v7521_v50  ;;  %1852 = vmatprep.subr.bf16.mxu1 %v7523_v51  ;;  %v7605_v50 = vld [vmem:[#allocation2 + $0x30c] ss:$16 sps:$4 sm:$0xff]   ;;  %v7600_v51 = vld [vmem:[#allocation2 + $0x300] ss:$16 sps:$4 sm:$0xff]  }
  0x54   :  { %1689 = vmatpush1.bf16.msra.mxu0 %v7525_v53  ;;  %1853 = vmatpush1.bf16.msra.mxu1 %v7526_v55  ;;  %v7608_v53 = vld [vmem:[#allocation2 + $0x324] ss:$16 sps:$4 sm:$0xff]   ;;  %v7606_v55 = vld [vmem:[#allocation2 + $0x320] ss:$16 sps:$4 sm:$0xff]  }
  0x55   :  { %1690 = vmatprep.subr.bf16.mxu0 %v7527_v56  ;;  %1854 = vmatprep.subr.bf16.mxu1 %v7529_v57  ;;  %v7609_v56 = vld [vmem:[#allocation2 + $0x328] ss:$16 sps:$4 sm:$0xff]   ;;  %v7614_v57 = vld [vmem:[#allocation2 + $0x344] ss:$16 sps:$4 sm:$0xff]  }
  0x58   :  { %1691 = vmatpush1.bf16.msra.mxu0 %v7531_v59  ;;  %1855 = vmatpush1.bf16.msra.mxu1 %v7532_v61  ;;  %v7612_v59 = vld [vmem:[#allocation2 + $0x340] ss:$16 sps:$4 sm:$0xff]   ;;  %v7620_v61 = vld [vmem:[#allocation2 + $0x364] ss:$16 sps:$4 sm:$0xff]  }
  0x59   :  { %1692 = vmatprep.subr.bf16.mxu0 %v7533_v62  ;;  %1856 = vmatprep.subr.bf16.mxu1 %v7535_v63  ;;  %v7623_v62 = vld [vmem:[#allocation2 + $0x36c] ss:$16 sps:$4 sm:$0xff]   ;;  %v7618_v63 = vld [vmem:[#allocation2 + $0x360] ss:$16 sps:$4 sm:$0xff]  }
  0x5c   :  { %1693 = vmatpush1.bf16.msra.mxu0 %v7537_v0  ;;  %1857 = vmatpush1.bf16.msra.mxu1 %v7538_v1  ;;  %v7621_v0 = vld [vmem:[#allocation2 + $0x368] ss:$16 sps:$4 sm:$0xff]   ;;  %v7626_v1 = vld [vmem:[#allocation2 + $0x384] ss:$16 sps:$4 sm:$0xff]  }
  0x5d   :  { %1694 = vmatprep.subr.bf16.mxu0 %v7539_v2  ;;  %1858 = vmatprep.subr.bf16.mxu1 %v7541_v3  ;;  %v7629_v2 = vld [vmem:[#allocation2 + $0x38c] ss:$16 sps:$4 sm:$0xff]   ;;  %v7624_v3 = vld [vmem:[#allocation2 + $0x380] ss:$16 sps:$4 sm:$0xff]  }
  0x60   :  { %1695 = vmatpush1.bf16.msra.mxu0 %v7543_v5  ;;  %1859 = vmatpush1.bf16.msra.mxu1 %v7544_v6  ;;  %v7632_v5 = vld [vmem:[#allocation2 + $0x3a4] ss:$16 sps:$4 sm:$0xff]   ;;  %v7635_v6 = vld [vmem:[#allocation2 + $0x3ac] ss:$16 sps:$4 sm:$0xff]  }
  0x61   :  { %1696 = vmatprep.subr.bf16.mxu0 %v7545_v7  ;;  %1860 = vmatprep.subr.bf16.mxu1 %v7547_v8  ;;  %v7630_v7 = vld [vmem:[#allocation2 + $0x3a0] ss:$16 sps:$4 sm:$0xff]   ;;  %v7633_v8 = vld [vmem:[#allocation2 + $0x3a8] ss:$16 sps:$4 sm:$0xff]  }
  0x64   :  { %1697 = vmatpush1.bf16.msra.mxu0 %v7549_v10  ;;  %1861 = vmatpush1.bf16.msra.mxu1 %v7550_v11  ;;  %v7638_v10 = vld [vmem:[#allocation2 + $0x3c4] ss:$16 sps:$4 sm:$0xff]   ;;  %v7641_v11 = vld [vmem:[#allocation2 + $0x3cc] ss:$16 sps:$4 sm:$0xff]  }
  0x65   :  { %1707 = vmatprep.subr.bf16.mxu0 %v7554_v12  ;;  %1871 = vmatprep.subr.bf16.mxu1 %v7557_v13  ;;  %v7636_v12 = vld [vmem:[#allocation2 + $0x3c0] ss:$16 sps:$4 sm:$0xff]   ;;  %v7639_v13 = vld [vmem:[#allocation2 + $0x3c8] ss:$16 sps:$4 sm:$0xff]  }
  0x67   :  { %1699 = vmatmul.mubr.bf16.vlgmr.msra.gmra.mrb[0].mxu0 %v100_v16  ;;  %1863 = vmatmul.mubr.bf16.vlgmr.msra.gmra.mrb[0].mxu1 %v100_v16  ;;  %v7642_v16 = vld [vmem:[#allocation2 + $0x3e0] ss:$16 sps:$4 sm:$0xff]  }
  0x68   :  { %1708 = vmatpush1.bf16.msra.mxu0 %v7552_v15  ;;  %1872 = vmatpush1.bf16.msra.mxu1 %v7555_v17  ;;  %v7647_v15 = vld [vmem:[#allocation2 + $0x3ec] ss:$16 sps:$4 sm:$0xff]   ;;  %v7645_v17 = vld [vmem:[#allocation2 + $0x3e8] ss:$16 sps:$4 sm:$0xff]  }
  0x69   :  { %1709 = vmatprep.subr.bf16.mxu0 %v7560_v18  ;;  %1873 = vmatprep.subr.bf16.mxu1 %v7563_v19  ;;  %v7650_v18 = vld [vmem:[#allocation2 + $0x404] ss:$16 sps:$4 sm:$0xff]   ;;  %v7653_v19 = vld [vmem:[#allocation2 + $0x40c] ss:$16 sps:$4 sm:$0xff]  }
  0x6a   :  { %1739 = vmatprep.mubr.bf16.mxu0 %v103_v20  ;;  %1903 = vmatprep.mubr.bf16.mxu1 %v103_v20  ;;  %v7648_v20 = vld [vmem:[#allocation2 + $0x400] ss:$16 sps:$4 sm:$0xff]  }
  0x6c   :  { %1710 = vmatpush1.bf16.msra.mxu0 %v7558_v21  ;;  %1874 = vmatpush1.bf16.msra.mxu1 %v7561_v22  ;;  %v102_v21 = vpack.c.bf16 %v8067_v9, %v8067_v9  ;;  %v7651_v22 = vld [vmem:[#allocation2 + $0x408] ss:$16 sps:$4 sm:$0xff]  }
  0x6d   :  { %1711 = vmatprep.subr.bf16.mxu0 %v7566_v23  ;;  %1875 = vmatprep.subr.bf16.mxu1 %v7569_v24  ;;  %v8076_v23 = vld [vmem:[%s9891_s0 + $0x8] sm:$0xff]  ;;  %v7656_v24 = vld [vmem:[#allocation2 + $0x424] ss:$16 sps:$4 sm:$0xff]  }
  0x70   :  { %1712 = vmatpush1.bf16.msra.mxu0 %v7564_v25  ;;  %1876 = vmatpush1.bf16.msra.mxu1 %v7567_v26  ;;  %v7659_v25 = vld [vmem:[#allocation2 + $0x42c] ss:$16 sps:$4 sm:$0xff]   ;;  %v8080_v26 = vrot.slane %v8076_v23, %v8060_v49 }
  0x71   :  { %1713 = vmatprep.subr.bf16.mxu0 %v7572_v27  ;;  %1877 = vmatprep.subr.bf16.mxu1 %v7575_v28  ;;  %v7654_v27 = vld [vmem:[#allocation2 + $0x420] ss:$16 sps:$4 sm:$0xff]   ;;  %v7657_v28 = vld [vmem:[#allocation2 + $0x428] ss:$16 sps:$4 sm:$0xff]  }
  0x72   :  { %v90_v9 = vcombine.high %v8080_v26, %v8080_v26 }
  0x74   :  { %1714 = vmatpush1.bf16.msra.mxu0 %v7570_v29  ;;  %1878 = vmatpush1.bf16.msra.mxu1 %v7573_v30  ;;  %v7662_v29 = vld [vmem:[#allocation2 + $0x444] ss:$16 sps:$4 sm:$0xff]   ;;  %v7665_v30 = vld [vmem:[#allocation2 + $0x44c] ss:$16 sps:$4 sm:$0xff]  }
  0x75   :  { %1715 = vmatprep.subr.bf16.mxu0 %v7578_v31  ;;  %1879 = vmatprep.subr.bf16.mxu1 %v7581_v32  ;;  %v105_v31 = vpack.c.bf16 %v90_v9, %v90_v9  ;;  %v7660_v32 = vld [vmem:[#allocation2 + $0x440] ss:$16 sps:$4 sm:$0xff]  }
  0x76   :  { %v7738_v9 = vld [vmem:[#allocation2 + $0x5e0] ss:$16 sps:$4 sm:$0xff]  }
  0x78   :  { %1716 = vmatpush1.bf16.msra.mxu0 %v7576_v33  ;;  %1880 = vmatpush1.bf16.msra.mxu1 %v7579_v34  ;;  %v7663_v33 = vld [vmem:[#allocation2 + $0x448] ss:$16 sps:$4 sm:$0xff]   ;;  %v7668_v34 = vld [vmem:[#allocation2 + $0x464] ss:$16 sps:$4 sm:$0xff]  }
  0x79   :  { %1717 = vmatprep.subr.bf16.mxu0 %v7584_v35  ;;  %1881 = vmatprep.subr.bf16.mxu1 %v7587_v36  ;;  %v7671_v35 = vld [vmem:[#allocation2 + $0x46c] ss:$16 sps:$4 sm:$0xff]   ;;  %v7666_v36 = vld [vmem:[#allocation2 + $0x460] ss:$16 sps:$4 sm:$0xff]  }
  0x7c   :  { %1718 = vmatpush1.bf16.msra.mxu0 %v7582_v37  ;;  %1882 = vmatpush1.bf16.msra.mxu1 %v7585_v38  ;;  %v7669_v37 = vld [vmem:[#allocation2 + $0x468] ss:$16 sps:$4 sm:$0xff]   ;;  %v7674_v38 = vld [vmem:[#allocation2 + $0x484] ss:$16 sps:$4 sm:$0xff]  }
  0x7d   :  { %1719 = vmatprep.subr.bf16.mxu0 %v7590_v39  ;;  %1883 = vmatprep.subr.bf16.mxu1 %v7593_v40  ;;  %v7677_v39 = vld [vmem:[#allocation2 + $0x48c] ss:$16 sps:$4 sm:$0xff]   ;;  %v7672_v40 = vld [vmem:[#allocation2 + $0x480] ss:$16 sps:$4 sm:$0xff]  }
  0x80   :  { %1720 = vmatpush1.bf16.msra.mxu0 %v7588_v41  ;;  %1884 = vmatpush1.bf16.msra.mxu1 %v7591_v42  ;;  %v7675_v41 = vld [vmem:[#allocation2 + $0x488] ss:$16 sps:$4 sm:$0xff]   ;;  %v7680_v42 = vld [vmem:[#allocation2 + $0x4a4] ss:$16 sps:$4 sm:$0xff]  }
  0x81   :  { %1721 = vmatprep.subr.bf16.mxu0 %v7596_v44  ;;  %1885 = vmatprep.subr.bf16.mxu1 %v7599_v45  ;;  %v7683_v44 = vld [vmem:[#allocation2 + $0x4ac] ss:$16 sps:$4 sm:$0xff]   ;;  %v7678_v45 = vld [vmem:[#allocation2 + $0x4a0] ss:$16 sps:$4 sm:$0xff]  }
  0x84   :  { %1722 = vmatpush1.bf16.msra.mxu0 %v7594_v46  ;;  %1886 = vmatpush1.bf16.msra.mxu1 %v7597_v47  ;;  %v7681_v46 = vld [vmem:[#allocation2 + $0x4a8] ss:$16 sps:$4 sm:$0xff]   ;;  %v7686_v47 = vld [vmem:[#allocation2 + $0x4c4] ss:$16 sps:$4 sm:$0xff]  }
  0x85   :  { %1723 = vmatprep.subr.bf16.mxu0 %v7602_v48  ;;  %1887 = vmatprep.subr.bf16.mxu1 %v7605_v50  ;;  %v7689_v48 = vld [vmem:[#allocation2 + $0x4cc] ss:$16 sps:$4 sm:$0xff]   ;;  %v7684_v50 = vld [vmem:[#allocation2 + $0x4c0] ss:$16 sps:$4 sm:$0xff]  }
  0x88   :  { %1724 = vmatpush1.bf16.msra.mxu0 %v7600_v51  ;;  %1888 = vmatpush1.bf16.msra.mxu1 %v7603_v52  ;;  %v7687_v51 = vld [vmem:[#allocation2 + $0x4c8] ss:$16 sps:$4 sm:$0xff]   ;;  %v7692_v52 = vld [vmem:[#allocation2 + $0x4e4] ss:$16 sps:$4 sm:$0xff]  }
  0x89   :  { %1725 = vmatprep.subr.bf16.mxu0 %v7608_v53  ;;  %1889 = vmatprep.subr.bf16.mxu1 %v7611_v54  ;;  %v7695_v53 = vld [vmem:[#allocation2 + $0x4ec] ss:$16 sps:$4 sm:$0xff]   ;;  %v7690_v54 = vld [vmem:[#allocation2 + $0x4e0] ss:$16 sps:$4 sm:$0xff]  }
  0x8c   :  { %1726 = vmatpush1.bf16.msra.mxu0 %v7606_v55  ;;  %1890 = vmatpush1.bf16.msra.mxu1 %v7609_v56  ;;  %v7693_v55 = vld [vmem:[#allocation2 + $0x4e8] ss:$16 sps:$4 sm:$0xff]   ;;  %v7698_v56 = vld [vmem:[#allocation2 + $0x504] ss:$16 sps:$4 sm:$0xff]  }
  0x8d   :  { %1727 = vmatprep.subr.bf16.mxu0 %v7614_v57  ;;  %1891 = vmatprep.subr.bf16.mxu1 %v7617_v58  ;;  %v7701_v57 = vld [vmem:[#allocation2 + $0x50c] ss:$16 sps:$4 sm:$0xff]   ;;  %v7696_v58 = vld [vmem:[#allocation2 + $0x500] ss:$16 sps:$4 sm:$0xff]  }
  0x90   :  { %1728 = vmatpush1.bf16.msra.mxu0 %v7612_v59  ;;  %1892 = vmatpush1.bf16.msra.mxu1 %v7615_v60  ;;  %v7699_v59 = vld [vmem:[#allocation2 + $0x508] ss:$16 sps:$4 sm:$0xff]   ;;  %v7704_v60 = vld [vmem:[#allocation2 + $0x524] ss:$16 sps:$4 sm:$0xff]  }
  0x91   :  { %1729 = vmatprep.subr.bf16.mxu0 %v7620_v61  ;;  %1893 = vmatprep.subr.bf16.mxu1 %v7623_v62  ;;  %v7707_v61 = vld [vmem:[#allocation2 + $0x52c] ss:$16 sps:$4 sm:$0xff]   ;;  %v7702_v62 = vld [vmem:[#allocation2 + $0x520] ss:$16 sps:$4 sm:$0xff]  }
  0x94   :  { %1730 = vmatpush1.bf16.msra.mxu0 %v7618_v63  ;;  %1894 = vmatpush1.bf16.msra.mxu1 %v7621_v0  ;;  %v7705_v63 = vld [vmem:[#allocation2 + $0x528] ss:$16 sps:$4 sm:$0xff]   ;;  %v7710_v0 = vld [vmem:[#allocation2 + $0x544] ss:$16 sps:$4 sm:$0xff]  }
  0x95   :  { %1731 = vmatprep.subr.bf16.mxu0 %v7626_v1  ;;  %1895 = vmatprep.subr.bf16.mxu1 %v7629_v2  ;;  %v7713_v1 = vld [vmem:[#allocation2 + $0x54c] ss:$16 sps:$4 sm:$0xff]   ;;  %v7708_v2 = vld [vmem:[#allocation2 + $0x540] ss:$16 sps:$4 sm:$0xff]  }
  0x98   :  { %1732 = vmatpush1.bf16.msra.mxu0 %v7624_v3  ;;  %1896 = vmatpush1.bf16.msra.mxu1 %v7627_v4  ;;  %v7711_v3 = vld [vmem:[#allocation2 + $0x548] ss:$16 sps:$4 sm:$0xff]   ;;  %v7716_v4 = vld [vmem:[#allocation2 + $0x564] ss:$16 sps:$4 sm:$0xff]  }
  0x99   :  { %1733 = vmatprep.subr.bf16.mxu0 %v7632_v5  ;;  %1897 = vmatprep.subr.bf16.mxu1 %v7635_v6  ;;  %v7719_v5 = vld [vmem:[#allocation2 + $0x56c] ss:$16 sps:$4 sm:$0xff]   ;;  %v7714_v6 = vld [vmem:[#allocation2 + $0x560] ss:$16 sps:$4 sm:$0xff]  }
  0x9c   :  { %1734 = vmatpush1.bf16.msra.mxu0 %v7630_v7  ;;  %1898 = vmatpush1.bf16.msra.mxu1 %v7633_v8  ;;  %v7717_v7 = vld [vmem:[#allocation2 + $0x568] ss:$16 sps:$4 sm:$0xff]   ;;  %v7722_v8 = vld [vmem:[#allocation2 + $0x584] ss:$16 sps:$4 sm:$0xff]  }
  0x9d   :  { %1735 = vmatprep.subr.bf16.mxu0 %v7638_v10  ;;  %1899 = vmatprep.subr.bf16.mxu1 %v7641_v11  ;;  %v7725_v10 = vld [vmem:[#allocation2 + $0x58c] ss:$16 sps:$4 sm:$0xff]   ;;  %v7720_v11 = vld [vmem:[#allocation2 + $0x580] ss:$16 sps:$4 sm:$0xff]  }
  0xa0   :  { %1736 = vmatpush1.bf16.msra.mxu0 %v7636_v12  ;;  %1900 = vmatpush1.bf16.msra.mxu1 %v7639_v13  ;;  %v7723_v12 = vld [vmem:[#allocation2 + $0x588] ss:$16 sps:$4 sm:$0xff]   ;;  %v7728_v13 = vld [vmem:[#allocation2 + $0x5a4] ss:$16 sps:$4 sm:$0xff]  }
  0xa1   :  { %1737 = vmatprep.subr.bf16.mxu0 %v7644_v14  ;;  %1901 = vmatprep.subr.bf16.mxu1 %v7647_v15  ;;  %v7731_v14 = vld [vmem:[#allocation2 + $0x5ac] ss:$16 sps:$4 sm:$0xff]   ;;  %v7726_v15 = vld [vmem:[#allocation2 + $0x5a0] ss:$16 sps:$4 sm:$0xff]  }
  0xa4   :  { %1738 = vmatpush1.bf16.msra.mxu0 %v7642_v16  ;;  %1902 = vmatpush1.bf16.msra.mxu1 %v7645_v17  ;;  %v7729_v16 = vld [vmem:[#allocation2 + $0x5a8] ss:$16 sps:$4 sm:$0xff]   ;;  %v7734_v17 = vld [vmem:[#allocation2 + $0x5c4] ss:$16 sps:$4 sm:$0xff]  }
  0xa5   :  { %1748 = vmatprep.subr.bf16.mxu0 %v7650_v18  ;;  %1912 = vmatprep.subr.bf16.mxu1 %v7653_v19  ;;  %v7737_v18 = vld [vmem:[#allocation2 + $0x5cc] ss:$16 sps:$4 sm:$0xff]   ;;  %v75_v19 = vcombine.high %v8076_v23, %v8076_v23  ;;  %v7744_v23 = vld [vmem:[#allocation2 + $0x600] ss:$16 sps:$4 sm:$0xff]  }
  0xa7   :  { %1740 = vmatmul.mubr.bf16.vlgmr.msra.gmra.mrb[0].mxu0 %v102_v21  ;;  %1904 = vmatmul.mubr.bf16.vlgmr.msra.gmra.mrb[0].mxu1 %v102_v21  ;;  %v7735_v21 = vld [vmem:[#allocation2 + $0x5c8] ss:$16 sps:$4 sm:$0xff]  }
  0xa8   :  { %1749 = vmatpush1.bf16.msra.mxu0 %v7648_v20  ;;  %1913 = vmatpush1.bf16.msra.mxu1 %v7651_v22  ;;  %v7732_v20 = vld [vmem:[#allocation2 + $0x5c0] ss:$16 sps:$4 sm:$0xff]   ;;  %v7740_v22 = vld [vmem:[#allocation2 + $0x5e4] ss:$16 sps:$4 sm:$0xff]  }
  0xa9   :  { %1750 = vmatprep.subr.bf16.mxu0 %v7656_v24  ;;  %1914 = vmatprep.subr.bf16.mxu1 %v7659_v25  ;;  %v7743_v24 = vld [vmem:[#allocation2 + $0x5ec] ss:$16 sps:$4 sm:$0xff]   ;;  %v8087_v25 = vrot.slane %v75_v19, %v8060_v49  ;;  %v7819_v19 = vld [vmem:[#allocation2 + $0x788] ss:$16 sps:$4 sm:$0xff]  }
  0xaa   :  { %1780 = vmatprep.mubr.bf16.mxu0 %v105_v31  ;;  %1944 = vmatprep.mubr.bf16.mxu1 %v105_v31 }
  0xab   :  { %v91_v31 = vcombine.high %v8087_v25, %v8087_v25 }
  0xac   :  { %1751 = vmatpush1.bf16.msra.mxu0 %v7654_v27  ;;  %1915 = vmatpush1.bf16.msra.mxu1 %v7657_v28  ;;  %v7741_v27 = vld [vmem:[#allocation2 + $0x5e8] ss:$16 sps:$4 sm:$0xff]   ;;  %v7746_v28 = vld [vmem:[#allocation2 + $0x604] ss:$16 sps:$4 sm:$0xff]  }
  0xad   :  { %1752 = vmatprep.subr.bf16.mxu0 %v7662_v29  ;;  %1916 = vmatprep.subr.bf16.mxu1 %v7665_v30  ;;  %v7749_v29 = vld [vmem:[#allocation2 + $0x60c] ss:$16 sps:$4 sm:$0xff]   ;;  %v7747_v30 = vld [vmem:[#allocation2 + $0x608] ss:$16 sps:$4 sm:$0xff]  }
  0xb0   :  { %1753 = vmatpush1.bf16.msra.mxu0 %v7660_v32  ;;  %1917 = vmatpush1.bf16.msra.mxu1 %v7663_v33  ;;  %v104_v32 = vpack.c.bf16 %v8080_v26, %v8080_v26  ;;  %v7752_v33 = vld [vmem:[#allocation2 + $0x624] ss:$16 sps:$4 sm:$0xff]  }
  0xb1   :  { %1754 = vmatprep.subr.bf16.mxu0 %v7668_v34  ;;  %1918 = vmatprep.subr.bf16.mxu1 %v7671_v35  ;;  %v7755_v34 = vld [vmem:[#allocation2 + $0x62c] ss:$16 sps:$4 sm:$0xff]   ;;  %v7750_v35 = vld [vmem:[#allocation2 + $0x620] ss:$16 sps:$4 sm:$0xff]   ;;  %v7764_v26 = vld [vmem:[#allocation2 + $0x664] ss:$16 sps:$4 sm:$0xff]  }
  0xb4   :  { %1755 = vmatpush1.bf16.msra.mxu0 %v7666_v36  ;;  %1919 = vmatpush1.bf16.msra.mxu1 %v7669_v37  ;;  %v7753_v36 = vld [vmem:[#allocation2 + $0x628] ss:$16 sps:$4 sm:$0xff]   ;;  %v107_v37 = vpack.c.bf16 %v91_v31, %v91_v31  ;;  %v7834_v31 = vld [vmem:[#allocation2 + $0x7e0] ss:$16 sps:$4 sm:$0xff]  }
  0xb5   :  { %1756 = vmatprep.subr.bf16.mxu0 %v7674_v38  ;;  %1920 = vmatprep.subr.bf16.mxu1 %v7677_v39  ;;  %v7758_v38 = vld [vmem:[#allocation2 + $0x644] ss:$16 sps:$4 sm:$0xff]   ;;  %v7761_v39 = vld [vmem:[#allocation2 + $0x64c] ss:$16 sps:$4 sm:$0xff]  }
  0xb8   :  { %1757 = vmatpush1.bf16.msra.mxu0 %v7672_v40  ;;  %1921 = vmatpush1.bf16.msra.mxu1 %v7675_v41  ;;  %v7756_v40 = vld [vmem:[#allocation2 + $0x640] ss:$16 sps:$4 sm:$0xff]   ;;  %v7759_v41 = vld [vmem:[#allocation2 + $0x648] ss:$16 sps:$4 sm:$0xff]  }
  0xb9   :  { %1758 = vmatprep.subr.bf16.mxu0 %v7680_v42  ;;  %1922 = vmatprep.subr.bf16.mxu1 %v7683_v44  ;;  %v7767_v42 = vld [vmem:[#allocation2 + $0x66c] ss:$16 sps:$4 sm:$0xff]   ;;  %v7762_v44 = vld [vmem:[#allocation2 + $0x660] ss:$16 sps:$4 sm:$0xff]  }
  0xbc   :  { %1759 = vmatpush1.bf16.msra.mxu0 %v7678_v45  ;;  %1923 = vmatpush1.bf16.msra.mxu1 %v7681_v46  ;;  %v7765_v45 = vld [vmem:[#allocation2 + $0x668] ss:$16 sps:$4 sm:$0xff]   ;;  %v7770_v46 = vld [vmem:[#allocation2 + $0x684] ss:$16 sps:$4 sm:$0xff]  }
  0xbd   :  { %1760 = vmatprep.subr.bf16.mxu0 %v7686_v47  ;;  %1924 = vmatprep.subr.bf16.mxu1 %v7689_v48  ;;  %v7773_v47 = vld [vmem:[#allocation2 + $0x68c] ss:$16 sps:$4 sm:$0xff]   ;;  %v7768_v48 = vld [vmem:[#allocation2 + $0x680] ss:$16 sps:$4 sm:$0xff]  }
  0xc0   :  { %1761 = vmatpush1.bf16.msra.mxu0 %v7684_v50  ;;  %1925 = vmatpush1.bf16.msra.mxu1 %v7687_v51  ;;  %v7771_v50 = vld [vmem:[#allocation2 + $0x688] ss:$16 sps:$4 sm:$0xff]   ;;  %v7776_v51 = vld [vmem:[#allocation2 + $0x6a4] ss:$16 sps:$4 sm:$0xff]  }
  0xc1   :  { %1762 = vmatprep.subr.bf16.mxu0 %v7692_v52  ;;  %1926 = vmatprep.subr.bf16.mxu1 %v7695_v53  ;;  %v7779_v52 = vld [vmem:[#allocation2 + $0x6ac] ss:$16 sps:$4 sm:$0xff]   ;;  %v7774_v53 = vld [vmem:[#allocation2 + $0x6a0] ss:$16 sps:$4 sm:$0xff]  }
  0xc4   :  { %1763 = vmatpush1.bf16.msra.mxu0 %v7690_v54  ;;  %1927 = vmatpush1.bf16.msra.mxu1 %v7693_v55  ;;  %v7777_v54 = vld [vmem:[#allocation2 + $0x6a8] ss:$16 sps:$4 sm:$0xff]   ;;  %v7782_v55 = vld [vmem:[#allocation2 + $0x6c4] ss:$16 sps:$4 sm:$0xff]  }
  0xc5   :  { %1764 = vmatprep.subr.bf16.mxu0 %v7698_v56  ;;  %1928 = vmatprep.subr.bf16.mxu1 %v7701_v57  ;;  %v7785_v56 = vld [vmem:[#allocation2 + $0x6cc] ss:$16 sps:$4 sm:$0xff]   ;;  %v7780_v57 = vld [vmem:[#allocation2 + $0x6c0] ss:$16 sps:$4 sm:$0xff]  }
  0xc8   :  { %1765 = vmatpush1.bf16.msra.mxu0 %v7696_v58  ;;  %1929 = vmatpush1.bf16.msra.mxu1 %v7699_v59  ;;  %v7783_v58 = vld [vmem:[#allocation2 + $0x6c8] ss:$16 sps:$4 sm:$0xff]   ;;  %v7788_v59 = vld [vmem:[#allocation2 + $0x6e4] ss:$16 sps:$4 sm:$0xff]  }
  0xc9   :  { %1766 = vmatprep.subr.bf16.mxu0 %v7704_v60  ;;  %1930 = vmatprep.subr.bf16.mxu1 %v7707_v61  ;;  %v7791_v60 = vld [vmem:[#allocation2 + $0x6ec] ss:$16 sps:$4 sm:$0xff]   ;;  %v7786_v61 = vld [vmem:[#allocation2 + $0x6e0] ss:$16 sps:$4 sm:$0xff]  }
  0xcc   :  { %1767 = vmatpush1.bf16.msra.mxu0 %v7702_v62  ;;  %1931 = vmatpush1.bf16.msra.mxu1 %v7705_v63  ;;  %v7789_v62 = vld [vmem:[#allocation2 + $0x6e8] ss:$16 sps:$4 sm:$0xff]   ;;  %v7794_v63 = vld [vmem:[#allocation2 + $0x704] ss:$16 sps:$4 sm:$0xff]  }
  0xcd   :  { %1768 = vmatprep.subr.bf16.mxu0 %v7710_v0  ;;  %1932 = vmatprep.subr.bf16.mxu1 %v7713_v1  ;;  %v7797_v0 = vld [vmem:[#allocation2 + $0x70c] ss:$16 sps:$4 sm:$0xff]   ;;  %v7792_v1 = vld [vmem:[#allocation2 + $0x700] ss:$16 sps:$4 sm:$0xff]  }
  0xd0   :  { %1769 = vmatpush1.bf16.msra.mxu0 %v7708_v2  ;;  %1933 = vmatpush1.bf16.msra.mxu1 %v7711_v3  ;;  %v7795_v2 = vld [vmem:[#allocation2 + $0x708] ss:$16 sps:$4 sm:$0xff]   ;;  %v7800_v3 = vld [vmem:[#allocation2 + $0x724] ss:$16 sps:$4 sm:$0xff]  }
  0xd1   :  { %1770 = vmatprep.subr.bf16.mxu0 %v7716_v4  ;;  %1934 = vmatprep.subr.bf16.mxu1 %v7719_v5  ;;  %v7803_v4 = vld [vmem:[#allocation2 + $0x72c] ss:$16 sps:$4 sm:$0xff]   ;;  %v7798_v5 = vld [vmem:[#allocation2 + $0x720] ss:$16 sps:$4 sm:$0xff]  }
  0xd4   :  { %1771 = vmatpush1.bf16.msra.mxu0 %v7714_v6  ;;  %1935 = vmatpush1.bf16.msra.mxu1 %v7717_v7  ;;  %v7801_v6 = vld [vmem:[#allocation2 + $0x728] ss:$16 sps:$4 sm:$0xff]   ;;  %v7806_v7 = vld [vmem:[#allocation2 + $0x744] ss:$16 sps:$4 sm:$0xff]  }
  0xd5   :  { %1772 = vmatprep.subr.bf16.mxu0 %v7722_v8  ;;  %1936 = vmatprep.subr.bf16.mxu1 %v7725_v10  ;;  %v7809_v8 = vld [vmem:[#allocation2 + $0x74c] ss:$16 sps:$4 sm:$0xff]   ;;  %v7804_v10 = vld [vmem:[#allocation2 + $0x740] ss:$16 sps:$4 sm:$0xff]  }
  0xd8   :  { %1773 = vmatpush1.bf16.msra.mxu0 %v7720_v11  ;;  %1937 = vmatpush1.bf16.msra.mxu1 %v7723_v12  ;;  %v7807_v11 = vld [vmem:[#allocation2 + $0x748] ss:$16 sps:$4 sm:$0xff]   ;;  %v7812_v12 = vld [vmem:[#allocation2 + $0x764] ss:$16 sps:$4 sm:$0xff]  }
  0xd9   :  { %1774 = vmatprep.subr.bf16.mxu0 %v7728_v13  ;;  %1938 = vmatprep.subr.bf16.mxu1 %v7731_v14  ;;  %v7815_v13 = vld [vmem:[#allocation2 + $0x76c] ss:$16 sps:$4 sm:$0xff]   ;;  %v7810_v14 = vld [vmem:[#allocation2 + $0x760] ss:$16 sps:$4 sm:$0xff]  }
  0xdc   :  { %1775 = vmatpush1.bf16.msra.mxu0 %v7726_v15  ;;  %1939 = vmatpush1.bf16.msra.mxu1 %v7729_v16  ;;  %v7813_v15 = vld [vmem:[#allocation2 + $0x768] ss:$16 sps:$4 sm:$0xff]   ;;  %v7818_v16 = vld [vmem:[#allocation2 + $0x784] ss:$16 sps:$4 sm:$0xff]  }
  0xdd   :  { %1776 = vmatprep.subr.bf16.mxu0 %v7734_v17  ;;  %1940 = vmatprep.subr.bf16.mxu1 %v7737_v18  ;;  %v7821_v17 = vld [vmem:[#allocation2 + $0x78c] ss:$16 sps:$4 sm:$0xff]   ;;  %v7816_v18 = vld [vmem:[#allocation2 + $0x780] ss:$16 sps:$4 sm:$0xff]  }
  0xe0   :  { %1777 = vmatpush1.bf16.msra.mxu0 %v7732_v20  ;;  %1941 = vmatpush1.bf16.msra.mxu1 %v7735_v21  ;;  %v7824_v20 = vld [vmem:[#allocation2 + $0x7a4] ss:$16 sps:$4 sm:$0xff]   ;;  %v7827_v21 = vld [vmem:[#allocation2 + $0x7ac] ss:$16 sps:$4 sm:$0xff]  }
  0xe1   :  { %1778 = vmatprep.subr.bf16.mxu0 %v7740_v22  ;;  %1942 = vmatprep.subr.bf16.mxu1 %v7743_v24  ;;  %v7822_v22 = vld [vmem:[#allocation2 + $0x7a0] ss:$16 sps:$4 sm:$0xff]   ;;  %v7825_v24 = vld [vmem:[#allocation2 + $0x7a8] ss:$16 sps:$4 sm:$0xff]  }
  0xe4   :  { %1779 = vmatpush1.bf16.msra.mxu0 %v7738_v9  ;;  %1943 = vmatpush1.bf16.msra.mxu1 %v7741_v27  ;;  %v7830_v9 = vld [vmem:[#allocation2 + $0x7c4] ss:$16 sps:$4 sm:$0xff]   ;;  %v7833_v27 = vld [vmem:[#allocation2 + $0x7cc] ss:$16 sps:$4 sm:$0xff]  }
  0xe5   :  { %1789 = vmatprep.subr.bf16.mxu0 %v7746_v28  ;;  %1953 = vmatprep.subr.bf16.mxu1 %v7749_v29  ;;  %v7828_v28 = vld [vmem:[#allocation2 + $0x7c0] ss:$16 sps:$4 sm:$0xff]   ;;  %v7831_v29 = vld [vmem:[#allocation2 + $0x7c8] ss:$16 sps:$4 sm:$0xff]  }
  0xe7   :  { %1781 = vmatmul.mubr.bf16.vlgmr.msra.gmra.mrb[0].mxu0 %v104_v32  ;;  %1945 = vmatmul.mubr.bf16.vlgmr.msra.gmra.mrb[0].mxu1 %v104_v32  ;;  %v7837_v32 = vld [vmem:[#allocation2 + $0x7e8] ss:$16 sps:$4 sm:$0xff]  }
  0xe8   :  { %1790 = vmatpush1.bf16.msra.mxu0 %v7744_v23  ;;  %1954 = vmatpush1.bf16.msra.mxu1 %v7747_v30  ;;  %v7836_v23 = vld [vmem:[#allocation2 + $0x7e4] ss:$16 sps:$4 sm:$0xff]   ;;  %v7839_v30 = vld [vmem:[#allocation2 + $0x7ec] ss:$16 sps:$4 sm:$0xff]  }
  0xe9   :  { %1791 = vmatprep.subr.bf16.mxu0 %v7752_v33  ;;  %1955 = vmatprep.subr.bf16.mxu1 %v7755_v34  ;;  %v7843_v33 = vld [vmem:[#allocation4 + $0x4] ss:$8 sps:$4 sm:$0xff]   ;;  %v106_v34 = vpack.c.bf16 %v8087_v25, %v8087_v25  ;;  %v7853_v25 = vld [vmem:[#allocation4 + $0x40] ss:$8 sps:$4 sm:$0xff]  }
  0xea   :  { %1821 = vmatprep.mubr.bf16.mxu0 %v107_v37  ;;  %1985 = vmatprep.mubr.bf16.mxu1 %v107_v37  ;;  %v7844_v37 = vld [vmem:[#allocation4 + $0x10] ss:$8 sps:$4 sm:$0xff]  }
  0xec   :  { %1792 = vmatpush1.bf16.msra.mxu0 %v7750_v35  ;;  %1956 = vmatpush1.bf16.msra.mxu1 %v7753_v36  ;;  %v7841_v35 = vld [vmem:[#allocation4] ss:$8 sps:$4 sm:$0xff]   ;;  %v7846_v36 = vld [vmem:[#allocation4 + $0x14] ss:$8 sps:$4 sm:$0xff]  }
  0xed   :  { %1793 = vmatprep.subr.bf16.mxu0 %v7758_v38  ;;  %1957 = vmatprep.subr.bf16.mxu1 %v7761_v39  ;;  %v7849_v38 = vld [vmem:[#allocation4 + $0x24] ss:$8 sps:$4 sm:$0xff]   ;;  %v7847_v39 = vld [vmem:[#allocation4 + $0x20] ss:$8 sps:$4 sm:$0xff]  }
  0xf0   :  { %1794 = vmatpush1.bf16.msra.mxu0 %v7756_v40  ;;  %1958 = vmatpush1.bf16.msra.mxu1 %v7759_v41  ;;  %v7852_v40 = vld [vmem:[#allocation4 + $0x34] ss:$8 sps:$4 sm:$0xff]   ;;  %v7850_v41 = vld [vmem:[#allocation4 + $0x30] ss:$8 sps:$4 sm:$0xff]  }
  0xf1   :  { %1795 = vmatprep.subr.bf16.mxu0 %v7764_v26  ;;  %1959 = vmatprep.subr.bf16.mxu1 %v7767_v42  ;;  %v7855_v26 = vld [vmem:[#allocation4 + $0x44] ss:$8 sps:$4 sm:$0xff]   ;;  %v7858_v42 = vld [vmem:[#allocation4 + $0x54] ss:$8 sps:$4 sm:$0xff]  }
  0xf4   :  { %1796 = vmatpush1.bf16.msra.mxu0 %v7762_v44  ;;  %1960 = vmatpush1.bf16.msra.mxu1 %v7765_v45  ;;  %v7856_v44 = vld [vmem:[#allocation4 + $0x50] ss:$8 sps:$4 sm:$0xff]   ;;  %v7861_v45 = vld [vmem:[#allocation4 + $0x64] ss:$8 sps:$4 sm:$0xff]  }
  0xf5   :  { %1797 = vmatprep.subr.bf16.mxu0 %v7770_v46  ;;  %1961 = vmatprep.subr.bf16.mxu1 %v7773_v47  ;;  %v7859_v46 = vld [vmem:[#allocation4 + $0x60] ss:$8 sps:$4 sm:$0xff]   ;;  %v7864_v47 = vld [vmem:[#allocation4 + $0x74] ss:$8 sps:$4 sm:$0xff]  }
  0xf8   :  { %1798 = vmatpush1.bf16.msra.mxu0 %v7768_v48  ;;  %1962 = vmatpush1.bf16.msra.mxu1 %v7771_v50  ;;  %v7862_v48 = vld [vmem:[#allocation4 + $0x70] ss:$8 sps:$4 sm:$0xff]   ;;  %v7867_v50 = vld [vmem:[#allocation4 + $0x84] ss:$8 sps:$4 sm:$0xff]  }
  0xf9   :  { %1799 = vmatprep.subr.bf16.mxu0 %v7776_v51  ;;  %1963 = vmatprep.subr.bf16.mxu1 %v7779_v52  ;;  %v7865_v51 = vld [vmem:[#allocation4 + $0x80] ss:$8 sps:$4 sm:$0xff]   ;;  %v7870_v52 = vld [vmem:[#allocation4 + $0x94] ss:$8 sps:$4 sm:$0xff]  }
  0xfc   :  { %1800 = vmatpush1.bf16.msra.mxu0 %v7774_v53  ;;  %1964 = vmatpush1.bf16.msra.mxu1 %v7777_v54  ;;  %v7868_v53 = vld [vmem:[#allocation4 + $0x90] ss:$8 sps:$4 sm:$0xff]   ;;  %v7873_v54 = vld [vmem:[#allocation4 + $0xa4] ss:$8 sps:$4 sm:$0xff]  }
  0xfd   :  { %1801 = vmatprep.subr.bf16.mxu0 %v7782_v55  ;;  %1965 = vmatprep.subr.bf16.mxu1 %v7785_v56  ;;  %v7871_v55 = vld [vmem:[#allocation4 + $0xa0] ss:$8 sps:$4 sm:$0xff]   ;;  %v7876_v56 = vld [vmem:[#allocation4 + $0xb4] ss:$8 sps:$4 sm:$0xff]  }
 0x100   :  { %1802 = vmatpush1.bf16.msra.mxu0 %v7780_v57  ;;  %1966 = vmatpush1.bf16.msra.mxu1 %v7783_v58  ;;  %v7874_v57 = vld [vmem:[#allocation4 + $0xb0] ss:$8 sps:$4 sm:$0xff]   ;;  %v7879_v58 = vld [vmem:[#allocation4 + $0xc4] ss:$8 sps:$4 sm:$0xff]  }
 0x101   :  { %1803 = vmatprep.subr.bf16.mxu0 %v7788_v59  ;;  %1967 = vmatprep.subr.bf16.mxu1 %v7791_v60  ;;  %v7877_v59 = vld [vmem:[#allocation4 + $0xc0] ss:$8 sps:$4 sm:$0xff]   ;;  %v7882_v60 = vld [vmem:[#allocation4 + $0xd4] ss:$8 sps:$4 sm:$0xff]  }
 0x104   :  { %1804 = vmatpush1.bf16.msra.mxu0 %v7786_v61  ;;  %1968 = vmatpush1.bf16.msra.mxu1 %v7789_v62  ;;  %v7880_v61 = vld [vmem:[#allocation4 + $0xd0] ss:$8 sps:$4 sm:$0xff]   ;;  %v7885_v62 = vld [vmem:[#allocation4 + $0xe4] ss:$8 sps:$4 sm:$0xff]  }
 0x105   :  { %1805 = vmatprep.subr.bf16.mxu0 %v7794_v63  ;;  %1969 = vmatprep.subr.bf16.mxu1 %v7797_v0  ;;  %v7883_v63 = vld [vmem:[#allocation4 + $0xe0] ss:$8 sps:$4 sm:$0xff]   ;;  %v7888_v0 = vld [vmem:[#allocation4 + $0xf4] ss:$8 sps:$4 sm:$0xff]  }
 0x108   :  { %1806 = vmatpush1.bf16.msra.mxu0 %v7792_v1  ;;  %1970 = vmatpush1.bf16.msra.mxu1 %v7795_v2  ;;  %v7886_v1 = vld [vmem:[#allocation4 + $0xf0] ss:$8 sps:$4 sm:$0xff]   ;;  %v7891_v2 = vld [vmem:[#allocation4 + $0x104] ss:$8 sps:$4 sm:$0xff]  }
 0x109   :  { %1807 = vmatprep.subr.bf16.mxu0 %v7800_v3  ;;  %1971 = vmatprep.subr.bf16.mxu1 %v7803_v4  ;;  %v2496_v3 = vld [vmem:[%s9896_s5] sm:$0xff] }
 0x10a   :  { %v2512_v4 = vld [vmem:[%s9896_s5 + $0x80] sm:$0xff] }
 0x10c   :  { %1808 = vmatpush1.bf16.msra.mxu0 %v7798_v5  ;;  %1972 = vmatpush1.bf16.msra.mxu1 %v7801_v6  ;;  %v6902_v5 = vcombine.low %v2496_v3, %v2512_v4  ;;  %v6903_v6 = vcombine.high %v2496_v3, %v2512_v4 }
 0x10d   :  { %1809 = vmatprep.subr.bf16.mxu0 %v7806_v7  ;;  %1973 = vmatprep.subr.bf16.mxu1 %v7809_v8  ;;  %v2528_v7 = vld [vmem:[%s9896_s5 + $0x100] sm:$0xff] }
 0x10e   :  { %v2544_v8 = vld [vmem:[%s9896_s5 + $0x180] sm:$0xff] }
 0x110   :  { %1810 = vmatpush1.bf16.msra.mxu0 %v7804_v10  ;;  %1974 = vmatpush1.bf16.msra.mxu1 %v7807_v11  ;;  %v6935_v10 = vcombine.high %v2528_v7, %v2544_v8  ;;  %v6934_v11 = vcombine.low %v2528_v7, %v2544_v8 }
 0x111   :  { %1811 = vmatprep.subr.bf16.mxu0 %v7812_v12  ;;  %1975 = vmatprep.subr.bf16.mxu1 %v7815_v13  ;;  %v2560_v12 = vld [vmem:[%s9896_s5 + $0x200] sm:$0xff] }
 0x112   :  { %v2576_v13 = vld [vmem:[%s9896_s5 + $0x280] sm:$0xff] }
 0x114   :  { %1812 = vmatpush1.bf16.msra.mxu0 %v7810_v14  ;;  %1976 = vmatpush1.bf16.msra.mxu1 %v7813_v15  ;;  %v6967_v14 = vcombine.high %v2560_v12, %v2576_v13  ;;  %v6966_v15 = vcombine.low %v2560_v12, %v2576_v13 }
 0x115   :  { %1813 = vmatprep.subr.bf16.mxu0 %v7818_v16  ;;  %1977 = vmatprep.subr.bf16.mxu1 %v7821_v17  ;;  %v2592_v16 = vld [vmem:[%s9896_s5 + $0x300] sm:$0xff] }
 0x116   :  { %v2608_v17 = vld [vmem:[%s9896_s5 + $0x380] sm:$0xff] }
 0x118   :  { %1814 = vmatpush1.bf16.msra.mxu0 %v7816_v18  ;;  %1978 = vmatpush1.bf16.msra.mxu1 %v7819_v19  ;;  %v6999_v18 = vcombine.high %v2592_v16, %v2608_v17  ;;  %v6998_v19 = vcombine.low %v2592_v16, %v2608_v17 }
 0x119   :  { %1815 = vmatprep.subr.bf16.mxu0 %v7824_v20  ;;  %1979 = vmatprep.subr.bf16.mxu1 %v7827_v21  ;;  %v2624_v20 = vld [vmem:[%s9896_s5 + $0x400] sm:$0xff] }
 0x11a   :  { %v2640_v21 = vld [vmem:[%s9896_s5 + $0x480] sm:$0xff] }
 0x11c   :  { %1816 = vmatpush1.bf16.msra.mxu0 %v7822_v22  ;;  %1980 = vmatpush1.bf16.msra.mxu1 %v7825_v24  ;;  %v7031_v22 = vcombine.high %v2624_v20, %v2640_v21  ;;  %v7030_v24 = vcombine.low %v2624_v20, %v2640_v21 }
 0x11d   :  { %1817 = vmatprep.subr.bf16.mxu0 %v7830_v9  ;;  %1981 = vmatprep.subr.bf16.mxu1 %v7833_v27  ;;  %v2656_v9 = vld [vmem:[%s9896_s5 + $0x500] sm:$0xff] }
 0x11e   :  { %v2672_v27 = vld [vmem:[%s9896_s5 + $0x580] sm:$0xff] }
 0x120   :  { %1818 = vmatpush1.bf16.msra.mxu0 %v7828_v28  ;;  %1982 = vmatpush1.bf16.msra.mxu1 %v7831_v29  ;;  %v7063_v28 = vcombine.high %v2656_v9, %v2672_v27  ;;  %v7062_v29 = vcombine.low %v2656_v9, %v2672_v27  ;;  %v7894_v27 = vld [vmem:[#allocation4 + $0x114] ss:$8 sps:$4 sm:$0xff]  }
 0x121   :  { %1819 = vmatprep.subr.bf16.mxu0 %v7836_v23  ;;  %1983 = vmatprep.subr.bf16.mxu1 %v7839_v30  ;;  %v2688_v23 = vld [vmem:[%s9896_s5 + $0x600] sm:$0xff] }
 0x122   :  { %v2704_v30 = vld [vmem:[%s9896_s5 + $0x680] sm:$0xff] }
 0x124   :  { %1820 = vmatpush1.bf16.msra.mxu0 %v7834_v31  ;;  %1984 = vmatpush1.bf16.msra.mxu1 %v7837_v32  ;;  %v7095_v31 = vcombine.high %v2688_v23, %v2704_v30  ;;  %v7094_v32 = vcombine.low %v2688_v23, %v2704_v30  ;;  %v7897_v23 = vld [vmem:[#allocation4 + $0x124] ss:$8 sps:$4 sm:$0xff]   ;;  %v7895_v30 = vld [vmem:[#allocation4 + $0x120] ss:$8 sps:$4 sm:$0xff]  }
 0x125   :  { %2406 = vmatprep.subr.bf16.mxu0 %v7843_v33  ;;  %5736 = vmatprep.subr.bf16.mxu1 %v6903_v6  ;;  %v2720_v33 = vld [vmem:[%s9896_s5 + $0x700] sm:$0xff] }
 0x127   :  { %1822 = vmatmul.mubr.bf16.vlgmr.msra.gmra.mrb[0].mxu0 %v106_v34  ;;  %1986 = vmatmul.mubr.bf16.vlgmr.msra.gmra.mrb[0].mxu1 %v106_v34  ;;  %v2736_v34 = vld [vmem:[%s9896_s5 + $0x780] sm:$0xff] }
 0x128   :  { %2407 = vmatpush1.bf16.msra.mxu0 %v7841_v35  ;;  %5737 = vmatpush1.bf16.msra.mxu1 %v6902_v5  ;;  %v7127_v35 = vcombine.high %v2720_v33, %v2736_v34 }
 0x129   :  { %2408 = vmatprep.subr.bf16.mxu0 %v7846_v36  ;;  %5738 = vmatprep.subr.bf16.mxu1 %v6935_v10  ;;  %v7126_v36 = vcombine.low %v2720_v33, %v2736_v34  ;;  %v7903_v33 = vld [vmem:[#allocation4 + $0x144] ss:$8 sps:$4 sm:$0xff]   ;;  %v7901_v34 = vld [vmem:[#allocation4 + $0x140] ss:$8 sps:$4 sm:$0xff]  }
 0x12c   :  { %2409 = vmatpush1.bf16.msra.mxu0 %v7844_v37  ;;  %5739 = vmatpush1.bf16.msra.mxu1 %v6934_v11  ;;  %v2752_v37 = vld [vmem:[%s9896_s5 + $0x800] sm:$0xff] }
 0x12d   :  { %2410 = vmatprep.subr.bf16.mxu0 %v7849_v38  ;;  %5740 = vmatprep.subr.bf16.mxu1 %v6967_v14  ;;  %v2768_v38 = vld [vmem:[%s9896_s5 + $0x880] sm:$0xff] }
 0x130   :  { %2411 = vmatpush1.bf16.msra.mxu0 %v7847_v39  ;;  %5741 = vmatpush1.bf16.msra.mxu1 %v6966_v15  ;;  %v7159_v39 = vcombine.high %v2752_v37, %v2768_v38 }
 0x131   :  { %2412 = vmatprep.subr.bf16.mxu0 %v7852_v40  ;;  %5742 = vmatprep.subr.bf16.mxu1 %v6999_v18  ;;  %v7158_v40 = vcombine.low %v2752_v37, %v2768_v38  ;;  %v7909_v37 = vld [vmem:[#allocation4 + $0x164] ss:$8 sps:$4 sm:$0xff]   ;;  %v7907_v38 = vld [vmem:[#allocation4 + $0x160] ss:$8 sps:$4 sm:$0xff]  }
 0x134   :  { %2413 = vmatpush1.bf16.msra.mxu0 %v7850_v41  ;;  %5743 = vmatpush1.bf16.msra.mxu1 %v6998_v19  ;;  %v2784_v41 = vld [vmem:[%s9896_s5 + $0x900] sm:$0xff] }
 0x135   :  { %2414 = vmatprep.subr.bf16.mxu0 %v7855_v26  ;;  %5744 = vmatprep.subr.bf16.mxu1 %v7031_v22  ;;  %v2800_v26 = vld [vmem:[%s9896_s5 + $0x980] sm:$0xff] }
 0x138   :  { %2415 = vmatpush1.bf16.msra.mxu0 %v7853_v25  ;;  %5745 = vmatpush1.bf16.msra.mxu1 %v7030_v24  ;;  %v7191_v25 = vcombine.high %v2784_v41, %v2800_v26  ;;  %v7889_v24 = vld [vmem:[#allocation4 + $0x100] ss:$8 sps:$4 sm:$0xff]  }
 0x139   :  { %2416 = vmatprep.subr.bf16.mxu0 %v7858_v42  ;;  %5746 = vmatprep.subr.bf16.mxu1 %v7063_v28  ;;  %v7190_v42 = vcombine.low %v2784_v41, %v2800_v26  ;;  %v7915_v41 = vld [vmem:[#allocation4 + $0x184] ss:$8 sps:$4 sm:$0xff]   ;;  %v7913_v26 = vld [vmem:[#allocation4 + $0x180] ss:$8 sps:$4 sm:$0xff]  }
 0x13c   :  { %2417 = vmatpush1.bf16.msra.mxu0 %v7856_v44  ;;  %5747 = vmatpush1.bf16.msra.mxu1 %v7062_v29  ;;  %v2816_v44 = vld [vmem:[%s9896_s5 + $0xa00] sm:$0xff]  ;;  %v7892_v29 = vld [vmem:[#allocation4 + $0x110] ss:$8 sps:$4 sm:$0xff]  }
 0x13d   :  { %2418 = vmatprep.subr.bf16.mxu0 %v7861_v45  ;;  %5748 = vmatprep.subr.bf16.mxu1 %v7095_v31  ;;  %v2832_v45 = vld [vmem:[%s9896_s5 + $0xa80] sm:$0xff]  ;;  %v7900_v31 = vld [vmem:[#allocation4 + $0x134] ss:$8 sps:$4 sm:$0xff]  }
 0x140   :  { %2419 = vmatpush1.bf16.msra.mxu0 %v7859_v46  ;;  %5749 = vmatpush1.bf16.msra.mxu1 %v7094_v32  ;;  %v7223_v46 = vcombine.high %v2816_v44, %v2832_v45  ;;  %v7898_v32 = vld [vmem:[#allocation4 + $0x130] ss:$8 sps:$4 sm:$0xff]  }
 0x141   :  { %2420 = vmatprep.subr.bf16.mxu0 %v7864_v47  ;;  %5750 = vmatprep.subr.bf16.mxu1 %v7127_v35  ;;  %v7222_v47 = vcombine.low %v2816_v44, %v2832_v45  ;;  %v7906_v35 = vld [vmem:[#allocation4 + $0x154] ss:$8 sps:$4 sm:$0xff]   ;;  %v7921_v44 = vld [vmem:[#allocation4 + $0x1a4] ss:$8 sps:$4 sm:$0xff]   ;;  %v7919_v45 = vld [vmem:[#allocation4 + $0x1a0] ss:$8 sps:$4 sm:$0xff]  }
 0x144   :  { %2421 = vmatpush1.bf16.msra.mxu0 %v7862_v48  ;;  %5751 = vmatpush1.bf16.msra.mxu1 %v7126_v36  ;;  %v2848_v48 = vld [vmem:[%s9896_s5 + $0xb00] sm:$0xff]  ;;  %v7904_v36 = vld [vmem:[#allocation4 + $0x150] ss:$8 sps:$4 sm:$0xff]  }
 0x145   :  { %2422 = vmatprep.subr.bf16.mxu0 %v7867_v50  ;;  %5752 = vmatprep.subr.bf16.mxu1 %v7159_v39  ;;  %v2864_v50 = vld [vmem:[%s9896_s5 + $0xb80] sm:$0xff]  ;;  %v7912_v39 = vld [vmem:[#allocation4 + $0x174] ss:$8 sps:$4 sm:$0xff]  }
 0x148   :  { %2423 = vmatpush1.bf16.msra.mxu0 %v7865_v51  ;;  %5753 = vmatpush1.bf16.msra.mxu1 %v7158_v40  ;;  %v7255_v51 = vcombine.high %v2848_v48, %v2864_v50  ;;  %v7910_v40 = vld [vmem:[#allocation4 + $0x170] ss:$8 sps:$4 sm:$0xff]  }
 0x149   :  { %2424 = vmatprep.subr.bf16.mxu0 %v7870_v52  ;;  %5754 = vmatprep.subr.bf16.mxu1 %v7191_v25  ;;  %v7254_v52 = vcombine.low %v2848_v48, %v2864_v50  ;;  %v7918_v25 = vld [vmem:[#allocation4 + $0x194] ss:$8 sps:$4 sm:$0xff]   ;;  %v7927_v48 = vld [vmem:[#allocation4 + $0x1c4] ss:$8 sps:$4 sm:$0xff]   ;;  %v8202_v50 = vsub.s32 2, %v8057_v43 }
 0x14c   :  { %2425 = vmatpush1.bf16.msra.mxu0 %v7868_v53  ;;  %5755 = vmatpush1.bf16.msra.mxu1 %v7190_v42  ;;  %v2880_v53 = vld [vmem:[%s9896_s5 + $0xc00] sm:$0xff]  ;;  %v7916_v42 = vld [vmem:[#allocation4 + $0x190] ss:$8 sps:$4 sm:$0xff]  }
 0x14d   :  { %2426 = vmatprep.subr.bf16.mxu0 %v7873_v54  ;;  %5756 = vmatprep.subr.bf16.mxu1 %v7223_v46  ;;  %v2896_v54 = vld [vmem:[%s9896_s5 + $0xc80] sm:$0xff]  ;;  %v7924_v46 = vld [vmem:[#allocation4 + $0x1b4] ss:$8 sps:$4 sm:$0xff]  }
 0x150   :  { %2427 = vmatpush1.bf16.msra.mxu0 %v7871_v55  ;;  %5757 = vmatpush1.bf16.msra.mxu1 %v7222_v47  ;;  %v7287_v55 = vcombine.high %v2880_v53, %v2896_v54  ;;  %v7922_v47 = vld [vmem:[#allocation4 + $0x1b0] ss:$8 sps:$4 sm:$0xff]  }
 0x151   :  { %2428 = vmatprep.subr.bf16.mxu0 %v7876_v56  ;;  %5758 = vmatprep.subr.bf16.mxu1 %v7255_v51  ;;  %v8174_v56 = vsub.s32 0, %v8057_v43  ;;  %v7925_v51 = vld [vmem:[#allocation4 + $0x1c0] ss:$8 sps:$4 sm:$0xff]  }
 0x154   :  { %2429 = vmatpush1.bf16.msra.mxu0 %v7874_v57  ;;  %v8179_v57 = vld [vmem:[%s9893_s2] sm:$0xf]  ;;  %5759 = vmatpush1.bf16.msra.mxu1 %v7254_v52  ;;  %v7930_v52 = vld [vmem:[#allocation4 + $0x1d4] ss:$8 sps:$4 sm:$0xff]  }
 0x155   :  { %2430 = vmatprep.subr.bf16.mxu0 %v7879_v58  ;;  %v8182_v58 = vsub.s32 1, %v8057_v43  ;;  %5760 = vmatprep.subr.bf16.mxu1 %v7287_v55  ;;  %v7933_v55 = vld [vmem:[#allocation4 + $0x1e4] ss:$8 sps:$4 sm:$0xff]  }
 0x158   :  { %2431 = vmatpush1.bf16.msra.mxu0 %v7877_v59  ;;  %v8185_v59 = vsub.s32 3, %v8057_v43 }
 0x159   :  { %2432 = vmatprep.subr.bf16.mxu0 %v7882_v60  ;;  %v7286_v60 = vcombine.low %v2880_v53, %v2896_v54  ;;  %v377_v53 = vrot.slane %v8179_v57, %v8202_v50  ;;  %v7928_v54 = vld [vmem:[#allocation4 + $0x1d0] ss:$8 sps:$4 sm:$0xff]  }
 0x15b   :  { %5761 = vmatpush1.bf16.msra.mxu1 %v7286_v60 }
 0x15c   :  { %2433 = vmatpush1.bf16.msra.mxu0 %v7880_v61  ;;  %v2912_v61 = vld [vmem:[%s9896_s5 + $0xd00] sm:$0xff] }
 0x15d   :  { %2434 = vmatprep.subr.bf16.mxu0 %v7885_v62  ;;  %v2928_v62 = vld [vmem:[%s9896_s5 + $0xd80] sm:$0xff] }
 0x15e   :  { %v7318_v3 = vcombine.low %v2912_v61, %v2928_v62 }
 0x160   :  { %2435 = vmatpush1.bf16.msra.mxu0 %v7883_v63  ;;  %v7319_v63 = vcombine.high %v2912_v61, %v2928_v62  ;;  %v7931_v61 = vld [vmem:[#allocation4 + $0x1e0] ss:$8 sps:$4 sm:$0xff]   ;;  %v7936_v62 = vld [vmem:[#allocation4 + $0x1f4] ss:$8 sps:$4 sm:$0xff]  }
 0x161   :  { %2436 = vmatprep.subr.bf16.mxu0 %v7888_v0  ;;  %v369_v0 = vrot.slane %v8179_v57, %v8174_v56 }
 0x162   :  { %5762 = vmatprep.subr.bf16.mxu1 %v7319_v63 }
 0x163   :  { %5763 = vmatpush1.bf16.msra.mxu1 %v7318_v3 }
 0x164   :  { %2437 = vmatpush1.bf16.msra.mxu0 %v7886_v1  ;;  %v373_v1 = vrot.slane %v8179_v57, %v8182_v58 }
 0x165   :  { %2447 = vmatprep.subr.bf16.mxu0 %v7891_v2  ;;  %v381_v2 = vrot.slane %v8179_v57, %v8185_v59  ;;  %v7934_v57 = vld [vmem:[#allocation4 + $0x1f0] ss:$8 sps:$4 sm:$0xff]  }
 0x1fa   :  { %v1823_v4 = vpop.f32.mrb[0].mxu0  ;;  %v8199_v5 = vpop.f32.mrb[0].mxu1 }
 0x1fb   :  { %v7414_v6 = vadd.f32 %v1823_v4, %v369_v0  ;;  %v1825_v7 = vpop.f32.mrb[1].mxu0  ;;  %v1989_v8 = vpop.f32.mrb[1].mxu1  ;;  %v7416_v60 = vadd.f32 %v8199_v5, %v377_v53  ;;  %v2498_v0 = vld [vmem:[%s9896_s5 + $0x10] sm:$0xff] }
 0x1fc   :  { %v7415_v10 = vadd.f32 %v1825_v7, %v373_v1  ;;  %v7417_v11 = vadd.f32 %v1989_v8, %v381_v2  ;;  %v1827_v12 = vpop.f32.mrb[2].mxu0  ;;  %v1991_v13 = vpop.f32.mrb[2].mxu1  ;;  %v2514_v1 = vld [vmem:[%s9896_s5 + $0x90] sm:$0xff] }
 0x1fd   :  { %vm1994_vm0 = vcmp.gt.f32.partialorder %v7414_v6, 0.0  ;;  %v1998_v14 = vmul.f32 0.2, %v7414_v6  ;;  %v1828_v18 = vpop.f32.mrb[3].mxu0  ;;  %v1992_v19 = vpop.f32.mrb[3].mxu1  ;;  %vm1996_vm3 = vcmp.gt.f32.partialorder %v7416_v60, 0.0  ;;  %v6907_v2 = vcombine.high %v2498_v0, %v2514_v1 }
 0x1fe   :  { %vm1995_vm1 = vcmp.gt.f32.partialorder %v7415_v10, 0.0  ;;  %v1999_v15 = vmul.f32 0.2, %v7415_v10  ;;  %vm1997_vm2 = vcmp.gt.f32.partialorder %v7417_v11, 0.0  ;;  %v2001_v16 = vmul.f32 0.2, %v7417_v11 }
 0x1ff   :  { %v2002_v17 = vsel %vm1994_vm0, %v7414_v6, %v1998_v14  ;;  %v2000_v63 = vmul.f32 0.2, %v7416_v60  ;;  %v2530_v4 = vld [vmem:[%s9896_s5 + $0x110] sm:$0xff]  ;;  %v6906_v6 = vcombine.low %v2498_v0, %v2514_v1  ;;  %v2944_v1 = vld [vmem:[%s9896_s5 + $0xe00] sm:$0xff] }
 0x200   :  { %v2003_v20 = vsel %vm1995_vm1, %v7415_v10, %v1999_v15  ;;  %v2005_v21 = vsel %vm1997_vm2, %v7417_v11, %v2001_v16  ;;  %v2006_v9 = vpack.c.bf16 %v2002_v17, %v2002_v17  ;;  %v2546_v5 = vld [vmem:[%s9896_s5 + $0x190] sm:$0xff] }
 0x201   :  { %v2007_v22 = vpack.c.bf16 %v2003_v20, %v2003_v20  ;;  %v2009_v28 = vpack.c.bf16 %v2005_v21, %v2005_v21  ;;  %v2004_v3 = vsel %vm1996_vm3, %v7416_v60, %v2000_v63  ;;  %v6939_v8 = vcombine.high %v2530_v4, %v2546_v5  ;;  %v2562_v10 = vld [vmem:[%s9896_s5 + $0x210] sm:$0xff] }
 0x202   :  { %v2008_v7 = vpack.c.bf16 %v2004_v3, %v2004_v3  ;;  %v2578_v11 = vld [vmem:[%s9896_s5 + $0x290] sm:$0xff]  ;;  %v6938_v12 = vcombine.low %v2530_v4, %v2546_v5 }
 0x203   :  { %2438 = vmatprep.mubr.bf16.mxu0 %v2007_v22  ;;  %v6971_v13 = vcombine.high %v2562_v10, %v2578_v11  ;;  %v2594_v14 = vld [vmem:[%s9896_s5 + $0x310] sm:$0xff]  ;;  %v6970_v16 = vcombine.low %v2562_v10, %v2578_v11  ;;  %v2992_v10 = vld [vmem:[%s9896_s5 + $0xf80] sm:$0xff] }
 0x204   :  { %2439 = vmatmul.mubr.bf16.vlgmr.msra.gmra.mrb[4].mxu0 %v2006_v9  ;;  %v2610_v15 = vld [vmem:[%s9896_s5 + $0x390] sm:$0xff] }
 0x205   :  { %2448 = vmatpush1.bf16.msra.mxu0 %v7889_v24  ;;  %2479 = vmatprep.mubr.bf16.mxu0 %v2009_v28  ;;  %v7003_v17 = vcombine.high %v2594_v14, %v2610_v15  ;;  %v2626_v18 = vld [vmem:[%s9896_s5 + $0x410] sm:$0xff]  ;;  %v7002_v20 = vcombine.low %v2594_v14, %v2610_v15 }
 0x206   :  { %2449 = vmatprep.subr.bf16.mxu0 %v7894_v27  ;;  %v2642_v19 = vld [vmem:[%s9896_s5 + $0x490] sm:$0xff] }
 0x207   :  { %v7035_v21 = vcombine.high %v2626_v18, %v2642_v19  ;;  %v2658_v22 = vld [vmem:[%s9896_s5 + $0x510] sm:$0xff]  ;;  %v7034_v9 = vcombine.low %v2626_v18, %v2642_v19  ;;  %v2513_v18 = vld [vmem:[%s9896_s5 + $0x88] sm:$0xff]  ;;  %v2500_v19 = vld [vmem:[%s9896_s5 + $0x20] sm:$0xff] }
 0x208   :  { %v2674_v24 = vld [vmem:[%s9896_s5 + $0x590] sm:$0xff] }
 0x209   :  { %2450 = vmatpush1.bf16.msra.mxu0 %v7892_v29  ;;  %v7067_v27 = vcombine.high %v2658_v22, %v2674_v24  ;;  %v2690_v28 = vld [vmem:[%s9896_s5 + $0x610] sm:$0xff] }
 0x20a   :  { %2451 = vmatprep.subr.bf16.mxu0 %v7897_v23  ;;  %v2706_v29 = vld [vmem:[%s9896_s5 + $0x690] sm:$0xff]  ;;  %v7066_v23 = vcombine.low %v2658_v22, %v2674_v24 }
 0x20b   :  { %v2898_v53 = vld [vmem:[%s9896_s5 + $0xc90] sm:$0xff] }
 0x20c   :  { %v2914_v60 = vld [vmem:[%s9896_s5 + $0xd10] sm:$0xff] }
 0x20d   :  { %2452 = vmatpush1.bf16.msra.mxu0 %v7895_v30  ;;  %v7099_v30 = vcombine.high %v2690_v28, %v2706_v29  ;;  %v2962_v4 = vld [vmem:[%s9896_s5 + $0xe90] sm:$0xff] }
 0x20e   :  { %2453 = vmatprep.subr.bf16.mxu0 %v7900_v31  ;;  %v2722_v31 = vld [vmem:[%s9896_s5 + $0x710] sm:$0xff] }
 0x20f   :  { %v2978_v11 = vld [vmem:[%s9896_s5 + $0xf10] sm:$0xff] }
 0x211   :  { %2454 = vmatpush1.bf16.msra.mxu0 %v7898_v32  ;;  %v2738_v32 = vld [vmem:[%s9896_s5 + $0x790] sm:$0xff] }
 0x212   :  { %2455 = vmatprep.subr.bf16.mxu0 %v7903_v33  ;;  %v7098_v33 = vcombine.low %v2690_v28, %v2706_v29 }
 0x215   :  { %2456 = vmatpush1.bf16.msra.mxu0 %v7901_v34  ;;  %v7131_v34 = vcombine.high %v2722_v31, %v2738_v32 }
 0x216   :  { %2457 = vmatprep.subr.bf16.mxu0 %v7906_v35  ;;  %v2754_v35 = vld [vmem:[%s9896_s5 + $0x810] sm:$0xff] }
 0x219   :  { %2458 = vmatpush1.bf16.msra.mxu0 %v7904_v36  ;;  %v2770_v36 = vld [vmem:[%s9896_s5 + $0x890] sm:$0xff] }
 0x21a   :  { %2459 = vmatprep.subr.bf16.mxu0 %v7909_v37  ;;  %v7130_v37 = vcombine.low %v2722_v31, %v2738_v32 }
 0x21d   :  { %2460 = vmatpush1.bf16.msra.mxu0 %v7907_v38  ;;  %v7163_v38 = vcombine.high %v2754_v35, %v2770_v36 }
 0x21e   :  { %2461 = vmatprep.subr.bf16.mxu0 %v7912_v39  ;;  %v2786_v39 = vld [vmem:[%s9896_s5 + $0x910] sm:$0xff] }
 0x221   :  { %2462 = vmatpush1.bf16.msra.mxu0 %v7910_v40  ;;  %v2802_v40 = vld [vmem:[%s9896_s5 + $0x990] sm:$0xff] }
 0x222   :  { %2463 = vmatprep.subr.bf16.mxu0 %v7915_v41  ;;  %v7162_v41 = vcombine.low %v2754_v35, %v2770_v36 }
 0x225   :  { %2464 = vmatpush1.bf16.msra.mxu0 %v7913_v26  ;;  %v7195_v26 = vcombine.high %v2786_v39, %v2802_v40 }
 0x226   :  { %2465 = vmatprep.subr.bf16.mxu0 %v7918_v25  ;;  %v2818_v25 = vld [vmem:[%s9896_s5 + $0xa10] sm:$0xff] }
 0x229   :  { %2466 = vmatpush1.bf16.msra.mxu0 %v7916_v42  ;;  %v2834_v42 = vld [vmem:[%s9896_s5 + $0xa90] sm:$0xff] }
 0x22a   :  { %2467 = vmatprep.subr.bf16.mxu0 %v7921_v44  ;;  %v7194_v44 = vcombine.low %v2786_v39, %v2802_v40  ;;  %v2545_v40 = vld [vmem:[%s9896_s5 + $0x188] sm:$0xff] }
 0x22d   :  { %2468 = vmatpush1.bf16.msra.mxu0 %v7919_v45  ;;  %v7227_v45 = vcombine.high %v2818_v25, %v2834_v42 }
 0x22e   :  { %2469 = vmatprep.subr.bf16.mxu0 %v7924_v46  ;;  %v2850_v46 = vld [vmem:[%s9896_s5 + $0xb10] sm:$0xff] }
 0x231   :  { %2470 = vmatpush1.bf16.msra.mxu0 %v7922_v47  ;;  %v2866_v47 = vld [vmem:[%s9896_s5 + $0xb90] sm:$0xff] }
 0x232   :  { %2471 = vmatprep.subr.bf16.mxu0 %v7927_v48  ;;  %v7226_v48 = vcombine.low %v2818_v25, %v2834_v42 }
 0x235   :  { %2472 = vmatpush1.bf16.msra.mxu0 %v7925_v51  ;;  %v7259_v51 = vcombine.high %v2850_v46, %v2866_v47 }
 0x236   :  { %2473 = vmatprep.subr.bf16.mxu0 %v7930_v52  ;;  %v2882_v52 = vld [vmem:[%s9896_s5 + $0xc10] sm:$0xff] }
 0x239   :  { %2474 = vmatpush1.bf16.msra.mxu0 %v7928_v54  ;;  %v7258_v54 = vcombine.low %v2850_v46, %v2866_v47  ;;  %v2577_v47 = vld [vmem:[%s9896_s5 + $0x288] sm:$0xff] }
 0x23a   :  { %2475 = vmatprep.subr.bf16.mxu0 %v7933_v55  ;;  %v7291_v55 = vcombine.high %v2882_v52, %v2898_v53 }
 0x23d   :  { %2476 = vmatpush1.bf16.msra.mxu0 %v7931_v61  ;;  %v2930_v61 = vld [vmem:[%s9896_s5 + $0xd90] sm:$0xff] }
 0x23e   :  { %2477 = vmatprep.subr.bf16.mxu0 %v7936_v62  ;;  %v7290_v62 = vcombine.low %v2882_v52, %v2898_v53  ;;  %v7323_v63 = vcombine.high %v2914_v60, %v2930_v61  ;;  %v7322_v0 = vcombine.low %v2914_v60, %v2930_v61  ;;  %v2593_v60 = vld [vmem:[%s9896_s5 + $0x308] sm:$0xff] }
 0x23f   :  { %v2609_v61 = vld [vmem:[%s9896_s5 + $0x388] sm:$0xff] }
 0x241   :  { %2478 = vmatpush1.bf16.msra.mxu0 %v7934_v57  ;;  %v2960_v57 = vld [vmem:[%s9896_s5 + $0xe80] sm:$0xff] }
 0x242   :  { %5818 = vmatprep.subr.bf16.mxu0 %v6907_v2  ;;  %v2946_v2 = vld [vmem:[%s9896_s5 + $0xe10] sm:$0xff]  ;;  %v7351_v3 = vcombine.high %v2944_v1, %v2960_v57  ;;  %v7350_v5 = vcombine.low %v2944_v1, %v2960_v57  ;;  %v7001_v57 = vcombine.high %v2593_v60, %v2609_v61 }
 0x244   :  { %2480 = vmatmul.mubr.bf16.vlgmr.msra.gmra.mrb[4].mxu0 %v2008_v7  ;;  %v7355_v7 = vcombine.high %v2946_v2, %v2962_v4  ;;  %5764 = vmatprep.subr.bf16.mxu1 %v7351_v3  ;;  %v2625_v3 = vld [vmem:[%s9896_s5 + $0x408] sm:$0xff] }
 0x245   :  { %5819 = vmatpush1.bf16.msra.mxu0 %v6906_v6  ;;  %v7354_v6 = vcombine.low %v2946_v2, %v2962_v4  ;;  %5765 = vmatpush1.bf16.msra.mxu1 %v7350_v5  ;;  %v2641_v4 = vld [vmem:[%s9896_s5 + $0x488] sm:$0xff]  ;;  %v2628_v5 = vld [vmem:[%s9896_s5 + $0x420] sm:$0xff] }
 0x246   :  { %5820 = vmatprep.subr.bf16.mxu0 %v6939_v8  ;;  %v2976_v8 = vld [vmem:[%s9896_s5 + $0xf00] sm:$0xff] }
 0x247   :  { %v7382_v14 = vcombine.low %v2976_v8, %v2992_v10 }
 0x249   :  { %5821 = vmatpush1.bf16.msra.mxu0 %v6938_v12  ;;  %v7383_v12 = vcombine.high %v2976_v8, %v2992_v10  ;;  %v7033_v10 = vcombine.high %v2625_v3, %v2641_v4 }
 0x24a   :  { %5822 = vmatprep.subr.bf16.mxu0 %v6971_v13  ;;  %v2994_v13 = vld [vmem:[%s9896_s5 + $0xf90] sm:$0xff] }
 0x24b   :  { %v7386_v15 = vcombine.low %v2978_v11, %v2994_v13  ;;  %5766 = vmatprep.subr.bf16.mxu1 %v7383_v12  ;;  %v2657_v12 = vld [vmem:[%s9896_s5 + $0x508] sm:$0xff] }
 0x24c   :  { %5767 = vmatpush1.bf16.msra.mxu1 %v7382_v14  ;;  %v2660_v14 = vld [vmem:[%s9896_s5 + $0x520] sm:$0xff] }
 0x24d   :  { %5823 = vmatpush1.bf16.msra.mxu0 %v6970_v16  ;;  %v7387_v16 = vcombine.high %v2978_v11, %v2994_v13  ;;  %v2673_v13 = vld [vmem:[%s9896_s5 + $0x588] sm:$0xff] }
 0x24e   :  { %5824 = vmatprep.subr.bf16.mxu0 %v7003_v17  ;;  %v2497_v17 = vld [vmem:[%s9896_s5 + $0x8] sm:$0xff] }
 0x24f   :  { %v6904_v22 = vcombine.low %v2497_v17, %v2513_v18 }
 0x251   :  { %5825 = vmatpush1.bf16.msra.mxu0 %v7002_v20  ;;  %v6905_v20 = vcombine.high %v2497_v17, %v2513_v18  ;;  %v7065_v18 = vcombine.high %v2657_v12, %v2673_v13 }
 0x252   :  { %5826 = vmatprep.subr.bf16.mxu0 %v7035_v21  ;;  %v2516_v21 = vld [vmem:[%s9896_s5 + $0xa0] sm:$0xff] }
 0x253   :  { %v6910_v24 = vcombine.low %v2500_v19, %v2516_v21  ;;  %5777 = vmatprep.subr.bf16.mxu1 %v6905_v20  ;;  %v2689_v20 = vld [vmem:[%s9896_s5 + $0x608] sm:$0xff] }
 0x255   :  { %5827 = vmatpush1.bf16.msra.mxu0 %v7034_v9  ;;  %v6911_v9 = vcombine.high %v2500_v19, %v2516_v21  ;;  %v2705_v21 = vld [vmem:[%s9896_s5 + $0x688] sm:$0xff] }
 0x256   :  { %5828 = vmatprep.subr.bf16.mxu0 %v7067_v27  ;;  %v2074_v27 = vld [vmem:[%s9895_s4] sm:$0x3] }
 0x257   :  { %v2079_v28 = vrot.slane %v2074_v27, %v8174_v56  ;;  %v2083_v29 = vrot.slane %v2074_v27, %v8182_v58 }
 0x259   :  { %5829 = vmatpush1.bf16.msra.mxu0 %v7066_v23 }
 0x25a   :  { %5830 = vmatprep.subr.bf16.mxu0 %v7099_v30 }
 0x25d   :  { %5831 = vmatpush1.bf16.msra.mxu0 %v7098_v33 }
 0x25e   :  { %5832 = vmatprep.subr.bf16.mxu0 %v7131_v34 }
 0x261   :  { %5833 = vmatpush1.bf16.msra.mxu0 %v7130_v37 }
 0x262   :  { %5834 = vmatprep.subr.bf16.mxu0 %v7163_v38  ;;  %v2529_v38 = vld [vmem:[%s9896_s5 + $0x108] sm:$0xff] }
 0x263   :  { %v6936_v52 = vcombine.low %v2529_v38, %v2545_v40 }
 0x265   :  { %5835 = vmatpush1.bf16.msra.mxu0 %v7162_v41  ;;  %v2532_v41 = vld [vmem:[%s9896_s5 + $0x120] sm:$0xff] }
 0x266   :  { %5836 = vmatprep.subr.bf16.mxu0 %v7195_v26  ;;  %v2548_v26 = vld [vmem:[%s9896_s5 + $0x1a0] sm:$0xff] }
 0x267   :  { %v6943_v46 = vcombine.high %v2532_v41, %v2548_v26  ;;  %v6942_v53 = vcombine.low %v2532_v41, %v2548_v26 }
 0x269   :  { %5837 = vmatpush1.bf16.msra.mxu0 %v7194_v44  ;;  %v2561_v44 = vld [vmem:[%s9896_s5 + $0x208] sm:$0xff] }
 0x26a   :  { %5838 = vmatprep.subr.bf16.mxu0 %v7227_v45  ;;  %v6937_v45 = vcombine.high %v2529_v38, %v2545_v40  ;;  %v2769_v38 = vld [vmem:[%s9896_s5 + $0x888] sm:$0xff]  ;;  %v2772_v40 = vld [vmem:[%s9896_s5 + $0x8a0] sm:$0xff] }
 0x26d   :  { %5839 = vmatpush1.bf16.msra.mxu0 %v7226_v48  ;;  %v2564_v48 = vld [vmem:[%s9896_s5 + $0x220] sm:$0xff] }
 0x26e   :  { %5840 = vmatprep.subr.bf16.mxu0 %v7259_v51  ;;  %v2580_v51 = vld [vmem:[%s9896_s5 + $0x2a0] sm:$0xff] }
 0x26f   :  { %v6974_v1 = vcombine.low %v2564_v48, %v2580_v51 }
 0x271   :  { %5841 = vmatpush1.bf16.msra.mxu0 %v7258_v54  ;;  %v6969_v54 = vcombine.high %v2561_v44, %v2577_v47 }
 0x272   :  { %5842 = vmatprep.subr.bf16.mxu0 %v7291_v55  ;;  %v6975_v55 = vcombine.high %v2564_v48, %v2580_v51  ;;  %v2788_v48 = vld [vmem:[%s9896_s5 + $0x920] sm:$0xff] }
 0x273   :  { %v2804_v51 = vld [vmem:[%s9896_s5 + $0x9a0] sm:$0xff] }
 0x275   :  { %5843 = vmatpush1.bf16.msra.mxu0 %v7290_v62  ;;  %v2596_v62 = vld [vmem:[%s9896_s5 + $0x320] sm:$0xff] }
 0x276   :  { %5844 = vmatprep.subr.bf16.mxu0 %v7323_v63  ;;  %v2612_v63 = vld [vmem:[%s9896_s5 + $0x3a0] sm:$0xff] }
 0x277   :  { %v7007_v2 = vcombine.high %v2596_v62, %v2612_v63  ;;  %v7006_v8 = vcombine.low %v2596_v62, %v2612_v63  ;;  %v2820_v62 = vld [vmem:[%s9896_s5 + $0xa20] sm:$0xff] }
 0x278   :  { %v2836_v63 = vld [vmem:[%s9896_s5 + $0xaa0] sm:$0xff] }
 0x279   :  { %5845 = vmatpush1.bf16.msra.mxu0 %v7322_v0  ;;  %v6968_v0 = vcombine.low %v2561_v44, %v2577_v47  ;;  %v2801_v47 = vld [vmem:[%s9896_s5 + $0x988] sm:$0xff] }
 0x27a   :  { %5846 = vmatprep.subr.bf16.mxu0 %v7355_v7  ;;  %v7000_v7 = vcombine.low %v2593_v60, %v2609_v61  ;;  %v2817_v60 = vld [vmem:[%s9896_s5 + $0xa08] sm:$0xff] }
 0x27b   :  { %v2833_v61 = vld [vmem:[%s9896_s5 + $0xa88] sm:$0xff] }
 0x27d   :  { %5847 = vmatpush1.bf16.msra.mxu0 %v7354_v6  ;;  %v2644_v6 = vld [vmem:[%s9896_s5 + $0x4a0] sm:$0xff] }
 0x27e   :  { %5848 = vmatprep.subr.bf16.mxu0 %v7387_v16  ;;  %v7039_v11 = vcombine.high %v2628_v5, %v2644_v6  ;;  %v7032_v16 = vcombine.low %v2625_v3, %v2641_v4  ;;  %v7038_v17 = vcombine.low %v2628_v5, %v2644_v6  ;;  %v2849_v3 = vld [vmem:[%s9896_s5 + $0xb08] sm:$0xff]  ;;  %v2852_v5 = vld [vmem:[%s9896_s5 + $0xb20] sm:$0xff] }
 0x27f   :  { %v2865_v4 = vld [vmem:[%s9896_s5 + $0xb88] sm:$0xff]  ;;  %v2868_v6 = vld [vmem:[%s9896_s5 + $0xba0] sm:$0xff] }
 0x281   :  { %5849 = vmatpush1.bf16.msra.mxu0 %v7386_v15  ;;  %v2676_v15 = vld [vmem:[%s9896_s5 + $0x5a0] sm:$0xff] }
 0x282   :  { %5900 = vmatprep.subr.bf16.mxu0 %v6911_v9  ;;  %v7071_v19 = vcombine.high %v2660_v14, %v2676_v15  ;;  %v7064_v9 = vcombine.low %v2657_v12, %v2673_v13  ;;  %v7070_v27 = vcombine.low %v2660_v14, %v2676_v15  ;;  %v2881_v12 = vld [vmem:[%s9896_s5 + $0xc08] sm:$0xff]  ;;  %v2884_v14 = vld [vmem:[%s9896_s5 + $0xc20] sm:$0xff] }
 0x283   :  { %v2897_v13 = vld [vmem:[%s9896_s5 + $0xc88] sm:$0xff]  ;;  %v2900_v15 = vld [vmem:[%s9896_s5 + $0xca0] sm:$0xff] }
 0x317   :  { %v2481_v23 = vpop.f32.mrb[4].mxu0 }
 0x318   :  { %v7418_v30 = vadd.f32 %v2481_v23, %v2079_v28  ;;  %v2483_v31 = vpop.f32.mrb[5].mxu0  ;;  %v7097_v28 = vcombine.high %v2689_v20, %v2705_v21  ;;  %v2721_v23 = vld [vmem:[%s9896_s5 + $0x708] sm:$0xff] }
 0x319   :  { %v7419_v32 = vadd.f32 %v2483_v31, %v2083_v29  ;;  %v2485_v33 = vpop.f32.mrb[6].mxu0  ;;  %v2724_v31 = vld [vmem:[%s9896_s5 + $0x720] sm:$0xff] }
 0x31a   :  { %vm2488_vm4 = vcmp.gt.f32.partialorder %v7418_v30, 0.0  ;;  %v2490_v34 = vmul.f32 0.2, %v7418_v30  ;;  %v2486_v35 = vpop.f32.mrb[7].mxu0  ;;  %v7096_v33 = vcombine.low %v2689_v20, %v2705_v21  ;;  %v2913_v20 = vld [vmem:[%s9896_s5 + $0xd08] sm:$0xff] }
 0x31b   :  { %vm2489_vm5 = vcmp.gt.f32.partialorder %v7419_v32, 0.0  ;;  %v2491_v36 = vmul.f32 0.2, %v7419_v32  ;;  %v2929_v21 = vld [vmem:[%s9896_s5 + $0xd88] sm:$0xff] }
 0x31c   :  { %v2492_v37 = vsel %vm2488_vm4, %v7418_v30, %v2490_v34  ;;  %v2737_v30 = vld [vmem:[%s9896_s5 + $0x788] sm:$0xff] }
 0x31d   :  { %v2493_v39 = vsel %vm2489_vm5, %v7419_v32, %v2491_v36  ;;  %v8346_v42 = vpack.c.bf16 %v2492_v37, %v2492_v37  ;;  %v2740_v32 = vld [vmem:[%s9896_s5 + $0x7a0] sm:$0xff]  ;;  %v7129_v35 = vcombine.high %v2721_v23, %v2737_v30  ;;  %v2753_v37 = vld [vmem:[%s9896_s5 + $0x808] sm:$0xff]  ;;  %v7128_v41 = vcombine.low %v2721_v23, %v2737_v30 }
 0x31e   :  { %v8344_v25 = vpack.c.bf16 %v2493_v39, %v2493_v39  ;;  %v7135_v36 = vcombine.high %v2724_v31, %v2740_v32  ;;  %v2756_v39 = vld [vmem:[%s9896_s5 + $0x820] sm:$0xff]  ;;  %v7134_v26 = vcombine.low %v2724_v31, %v2740_v32  ;;  %v7161_v44 = vcombine.high %v2753_v37, %v2769_v38  ;;  %v2945_v23 = vld [vmem:[%s9896_s5 + $0xe08] sm:$0xff] }
 0x31f   :  { %v2961_v30 = vld [vmem:[%s9896_s5 + $0xe88] sm:$0xff]  ;;  %v2948_v31 = vld [vmem:[%s9896_s5 + $0xe20] sm:$0xff] }
 0x320   :  { %5768 = vmatprep.mubr.bf16.mxu1 %v8344_v25  ;;  %5850 = vmatprep.mubr.bf16.mxu0 %v8344_v25  ;;  %v2964_v32 = vld [vmem:[%s9896_s5 + $0xea0] sm:$0xff] }
 0x321   :  { %5769 = vmatmul.mubr.bf16.vlgmr.msra.gmra.mrb[4].mxu1 %v8346_v42  ;;  %5851 = vmatmul.mubr.bf16.vlgmr.msra.gmra.mrb[8].mxu0 %v8346_v42 }
 0x322   :  { %5778 = vmatpush1.bf16.msra.mxu1 %v6904_v22  ;;  %5901 = vmatpush1.bf16.msra.mxu0 %v6910_v24  ;;  %v2692_v22 = vld [vmem:[%s9896_s5 + $0x620] sm:$0xff] }
 0x323   :  { %5809 = vmatprep.mubr.bf16.mxu1 %v8344_v25  ;;  %5932 = vmatprep.mubr.bf16.mxu0 %v8344_v25  ;;  %v2708_v24 = vld [vmem:[%s9896_s5 + $0x6a0] sm:$0xff] }
 0x324   :  { %5779 = vmatprep.subr.bf16.mxu1 %v6937_v45  ;;  %5902 = vmatprep.subr.bf16.mxu0 %v6943_v46  ;;  %v7103_v29 = vcombine.high %v2692_v22, %v2708_v24  ;;  %v7102_v34 = vcombine.low %v2692_v22, %v2708_v24  ;;  %v7167_v45 = vcombine.high %v2756_v39, %v2772_v40  ;;  %v2785_v46 = vld [vmem:[%s9896_s5 + $0x908] sm:$0xff]  ;;  %v2916_v22 = vld [vmem:[%s9896_s5 + $0xd20] sm:$0xff] }
 0x325   :  { %v2932_v24 = vld [vmem:[%s9896_s5 + $0xda0] sm:$0xff] }
 0x326   :  { %5780 = vmatpush1.bf16.msra.mxu1 %v6936_v52  ;;  %5903 = vmatpush1.bf16.msra.mxu0 %v6942_v53  ;;  %v7160_v52 = vcombine.low %v2753_v37, %v2769_v38  ;;  %v7166_v53 = vcombine.low %v2756_v39, %v2772_v40  ;;  %v2977_v37 = vld [vmem:[%s9896_s5 + $0xf08] sm:$0xff]  ;;  %v2980_v39 = vld [vmem:[%s9896_s5 + $0xf20] sm:$0xff] }
 0x327   :  { %5781 = vmatprep.subr.bf16.mxu1 %v6969_v54  ;;  %5904 = vmatprep.subr.bf16.mxu0 %v6975_v55  ;;  %v7193_v54 = vcombine.high %v2785_v46, %v2801_v47  ;;  %v7199_v55 = vcombine.high %v2788_v48, %v2804_v51  ;;  %v2993_v38 = vld [vmem:[%s9896_s5 + $0xf88] sm:$0xff]  ;;  %v2996_v40 = vld [vmem:[%s9896_s5 + $0xfa0] sm:$0xff] }
 0x32a   :  { %5782 = vmatpush1.bf16.msra.mxu1 %v6968_v0  ;;  %5905 = vmatpush1.bf16.msra.mxu0 %v6974_v1  ;;  %v7192_v0 = vcombine.low %v2785_v46, %v2801_v47  ;;  %v7198_v1 = vcombine.low %v2788_v48, %v2804_v51  ;;  %v2499_v46 = vld [vmem:[%s9896_s5 + $0x18] sm:$0xff]  ;;  %v2502_v48 = vld [vmem:[%s9896_s5 + $0x30] sm:$0xff] }
 0x32b   :  { %5783 = vmatprep.subr.bf16.mxu1 %v7001_v57  ;;  %5906 = vmatprep.subr.bf16.mxu0 %v7007_v2  ;;  %v7225_v57 = vcombine.high %v2817_v60, %v2833_v61  ;;  %v7231_v2 = vcombine.high %v2820_v62, %v2836_v63  ;;  %v2515_v47 = vld [vmem:[%s9896_s5 + $0x98] sm:$0xff]  ;;  %v2518_v51 = vld [vmem:[%s9896_s5 + $0xb0] sm:$0xff] }
 0x32e   :  { %5784 = vmatpush1.bf16.msra.mxu1 %v7000_v7  ;;  %5907 = vmatpush1.bf16.msra.mxu0 %v7006_v8  ;;  %v7224_v7 = vcombine.low %v2817_v60, %v2833_v61  ;;  %v7230_v8 = vcombine.low %v2820_v62, %v2836_v63  ;;  %v2531_v60 = vld [vmem:[%s9896_s5 + $0x118] sm:$0xff]  ;;  %v2534_v62 = vld [vmem:[%s9896_s5 + $0x130] sm:$0xff] }
 0x32f   :  { %5785 = vmatprep.subr.bf16.mxu1 %v7033_v10  ;;  %5908 = vmatprep.subr.bf16.mxu0 %v7039_v11  ;;  %v7257_v10 = vcombine.high %v2849_v3, %v2865_v4  ;;  %v7263_v11 = vcombine.high %v2852_v5, %v2868_v6  ;;  %v2547_v61 = vld [vmem:[%s9896_s5 + $0x198] sm:$0xff]  ;;  %v2550_v63 = vld [vmem:[%s9896_s5 + $0x1b0] sm:$0xff] }
 0x332   :  { %5786 = vmatpush1.bf16.msra.mxu1 %v7032_v16  ;;  %5909 = vmatpush1.bf16.msra.mxu0 %v7038_v17  ;;  %v7256_v16 = vcombine.low %v2849_v3, %v2865_v4  ;;  %v7262_v17 = vcombine.low %v2852_v5, %v2868_v6  ;;  %v2563_v3 = vld [vmem:[%s9896_s5 + $0x218] sm:$0xff]  ;;  %v2566_v5 = vld [vmem:[%s9896_s5 + $0x230] sm:$0xff] }
 0x333   :  { %5787 = vmatprep.subr.bf16.mxu1 %v7065_v18  ;;  %5910 = vmatprep.subr.bf16.mxu0 %v7071_v19  ;;  %v7289_v18 = vcombine.high %v2881_v12, %v2897_v13  ;;  %v7295_v19 = vcombine.high %v2884_v14, %v2900_v15  ;;  %v2579_v4 = vld [vmem:[%s9896_s5 + $0x298] sm:$0xff]  ;;  %v2582_v6 = vld [vmem:[%s9896_s5 + $0x2b0] sm:$0xff] }
 0x336   :  { %5788 = vmatpush1.bf16.msra.mxu1 %v7064_v9  ;;  %5911 = vmatpush1.bf16.msra.mxu0 %v7070_v27  ;;  %v7288_v9 = vcombine.low %v2881_v12, %v2897_v13  ;;  %v7294_v27 = vcombine.low %v2884_v14, %v2900_v15  ;;  %v2595_v12 = vld [vmem:[%s9896_s5 + $0x318] sm:$0xff]  ;;  %v2598_v14 = vld [vmem:[%s9896_s5 + $0x330] sm:$0xff] }
 0x337   :  { %5789 = vmatprep.subr.bf16.mxu1 %v7097_v28  ;;  %5912 = vmatprep.subr.bf16.mxu0 %v7103_v29  ;;  %v7321_v28 = vcombine.high %v2913_v20, %v2929_v21  ;;  %v7327_v29 = vcombine.high %v2916_v22, %v2932_v24  ;;  %v2611_v13 = vld [vmem:[%s9896_s5 + $0x398] sm:$0xff]  ;;  %v2614_v15 = vld [vmem:[%s9896_s5 + $0x3b0] sm:$0xff] }
 0x33a   :  { %5790 = vmatpush1.bf16.msra.mxu1 %v7096_v33  ;;  %5913 = vmatpush1.bf16.msra.mxu0 %v7102_v34  ;;  %v7320_v33 = vcombine.low %v2913_v20, %v2929_v21  ;;  %v7326_v34 = vcombine.low %v2916_v22, %v2932_v24  ;;  %v2627_v20 = vld [vmem:[%s9896_s5 + $0x418] sm:$0xff]  ;;  %v2630_v22 = vld [vmem:[%s9896_s5 + $0x430] sm:$0xff] }
 0x33b   :  { %5791 = vmatprep.subr.bf16.mxu1 %v7129_v35  ;;  %5914 = vmatprep.subr.bf16.mxu0 %v7135_v36  ;;  %v7353_v35 = vcombine.high %v2945_v23, %v2961_v30  ;;  %v7359_v36 = vcombine.high %v2948_v31, %v2964_v32  ;;  %v2643_v21 = vld [vmem:[%s9896_s5 + $0x498] sm:$0xff]  ;;  %v2646_v24 = vld [vmem:[%s9896_s5 + $0x4b0] sm:$0xff] }
 0x33e   :  { %5792 = vmatpush1.bf16.msra.mxu1 %v7128_v41  ;;  %5915 = vmatpush1.bf16.msra.mxu0 %v7134_v26  ;;  %v7352_v41 = vcombine.low %v2945_v23, %v2961_v30  ;;  %v7358_v26 = vcombine.low %v2948_v31, %v2964_v32  ;;  %v2659_v23 = vld [vmem:[%s9896_s5 + $0x518] sm:$0xff]  ;;  %v2662_v31 = vld [vmem:[%s9896_s5 + $0x530] sm:$0xff] }
 0x33f   :  { %5793 = vmatprep.subr.bf16.mxu1 %v7161_v44  ;;  %5916 = vmatprep.subr.bf16.mxu0 %v7167_v45  ;;  %v7385_v44 = vcombine.high %v2977_v37, %v2993_v38  ;;  %v7391_v45 = vcombine.high %v2980_v39, %v2996_v40  ;;  %v2675_v30 = vld [vmem:[%s9896_s5 + $0x598] sm:$0xff]  ;;  %v2678_v32 = vld [vmem:[%s9896_s5 + $0x5b0] sm:$0xff] }
 0x342   :  { %5794 = vmatpush1.bf16.msra.mxu1 %v7160_v52  ;;  %5917 = vmatpush1.bf16.msra.mxu0 %v7166_v53  ;;  %v7384_v52 = vcombine.low %v2977_v37, %v2993_v38  ;;  %v7390_v53 = vcombine.low %v2980_v39, %v2996_v40  ;;  %v2691_v37 = vld [vmem:[%s9896_s5 + $0x618] sm:$0xff]  ;;  %v2694_v39 = vld [vmem:[%s9896_s5 + $0x630] sm:$0xff] }
 0x343   :  { %5795 = vmatprep.subr.bf16.mxu1 %v7193_v54  ;;  %5918 = vmatprep.subr.bf16.mxu0 %v7199_v55  ;;  %v6909_v54 = vcombine.high %v2499_v46, %v2515_v47  ;;  %v6915_v55 = vcombine.high %v2502_v48, %v2518_v51  ;;  %v2707_v38 = vld [vmem:[%s9896_s5 + $0x698] sm:$0xff]  ;;  %v2710_v40 = vld [vmem:[%s9896_s5 + $0x6b0] sm:$0xff] }
 0x346   :  { %5796 = vmatpush1.bf16.msra.mxu1 %v7192_v0  ;;  %5919 = vmatpush1.bf16.msra.mxu0 %v7198_v1  ;;  %v6908_v0 = vcombine.low %v2499_v46, %v2515_v47  ;;  %v6914_v1 = vcombine.low %v2502_v48, %v2518_v51  ;;  %v2723_v46 = vld [vmem:[%s9896_s5 + $0x718] sm:$0xff]  ;;  %v2726_v48 = vld [vmem:[%s9896_s5 + $0x730] sm:$0xff] }
 0x347   :  { %5797 = vmatprep.subr.bf16.mxu1 %v7225_v57  ;;  %5920 = vmatprep.subr.bf16.mxu0 %v7231_v2  ;;  %v6941_v57 = vcombine.high %v2531_v60, %v2547_v61  ;;  %v6947_v2 = vcombine.high %v2534_v62, %v2550_v63  ;;  %v2739_v47 = vld [vmem:[%s9896_s5 + $0x798] sm:$0xff]  ;;  %v2742_v51 = vld [vmem:[%s9896_s5 + $0x7b0] sm:$0xff] }
 0x34a   :  { %5798 = vmatpush1.bf16.msra.mxu1 %v7224_v7  ;;  %5921 = vmatpush1.bf16.msra.mxu0 %v7230_v8  ;;  %v6940_v7 = vcombine.low %v2531_v60, %v2547_v61  ;;  %v6946_v8 = vcombine.low %v2534_v62, %v2550_v63  ;;  %v2755_v60 = vld [vmem:[%s9896_s5 + $0x818] sm:$0xff]  ;;  %v2758_v62 = vld [vmem:[%s9896_s5 + $0x830] sm:$0xff] }
 0x34b   :  { %5799 = vmatprep.subr.bf16.mxu1 %v7257_v10  ;;  %5922 = vmatprep.subr.bf16.mxu0 %v7263_v11  ;;  %v6973_v10 = vcombine.high %v2563_v3, %v2579_v4  ;;  %v6979_v11 = vcombine.high %v2566_v5, %v2582_v6  ;;  %v2771_v61 = vld [vmem:[%s9896_s5 + $0x898] sm:$0xff]  ;;  %v2774_v63 = vld [vmem:[%s9896_s5 + $0x8b0] sm:$0xff] }
 0x34e   :  { %5800 = vmatpush1.bf16.msra.mxu1 %v7256_v16  ;;  %5923 = vmatpush1.bf16.msra.mxu0 %v7262_v17  ;;  %v6972_v16 = vcombine.low %v2563_v3, %v2579_v4  ;;  %v6978_v17 = vcombine.low %v2566_v5, %v2582_v6  ;;  %v2787_v3 = vld [vmem:[%s9896_s5 + $0x918] sm:$0xff]  ;;  %v2790_v5 = vld [vmem:[%s9896_s5 + $0x930] sm:$0xff] }
 0x34f   :  { %5801 = vmatprep.subr.bf16.mxu1 %v7289_v18  ;;  %5924 = vmatprep.subr.bf16.mxu0 %v7295_v19  ;;  %v7005_v18 = vcombine.high %v2595_v12, %v2611_v13  ;;  %v7011_v19 = vcombine.high %v2598_v14, %v2614_v15  ;;  %v2803_v4 = vld [vmem:[%s9896_s5 + $0x998] sm:$0xff]  ;;  %v2806_v6 = vld [vmem:[%s9896_s5 + $0x9b0] sm:$0xff] }
 0x352   :  { %5802 = vmatpush1.bf16.msra.mxu1 %v7288_v9  ;;  %5925 = vmatpush1.bf16.msra.mxu0 %v7294_v27  ;;  %v7004_v9 = vcombine.low %v2595_v12, %v2611_v13  ;;  %v7010_v27 = vcombine.low %v2598_v14, %v2614_v15  ;;  %v2819_v12 = vld [vmem:[%s9896_s5 + $0xa18] sm:$0xff]  ;;  %v2822_v14 = vld [vmem:[%s9896_s5 + $0xa30] sm:$0xff] }
 0x353   :  { %5803 = vmatprep.subr.bf16.mxu1 %v7321_v28  ;;  %5926 = vmatprep.subr.bf16.mxu0 %v7327_v29  ;;  %v7037_v28 = vcombine.high %v2627_v20, %v2643_v21  ;;  %v7043_v29 = vcombine.high %v2630_v22, %v2646_v24  ;;  %v2835_v13 = vld [vmem:[%s9896_s5 + $0xa98] sm:$0xff]  ;;  %v2838_v15 = vld [vmem:[%s9896_s5 + $0xab0] sm:$0xff] }
 0x356   :  { %5804 = vmatpush1.bf16.msra.mxu1 %v7320_v33  ;;  %5927 = vmatpush1.bf16.msra.mxu0 %v7326_v34  ;;  %v7036_v33 = vcombine.low %v2627_v20, %v2643_v21  ;;  %v7042_v34 = vcombine.low %v2630_v22, %v2646_v24  ;;  %v2851_v20 = vld [vmem:[%s9896_s5 + $0xb18] sm:$0xff]  ;;  %v2854_v22 = vld [vmem:[%s9896_s5 + $0xb30] sm:$0xff] }
 0x357   :  { %5805 = vmatprep.subr.bf16.mxu1 %v7353_v35  ;;  %5928 = vmatprep.subr.bf16.mxu0 %v7359_v36  ;;  %v7069_v35 = vcombine.high %v2659_v23, %v2675_v30  ;;  %v7075_v36 = vcombine.high %v2662_v31, %v2678_v32  ;;  %v2867_v21 = vld [vmem:[%s9896_s5 + $0xb98] sm:$0xff]  ;;  %v2870_v24 = vld [vmem:[%s9896_s5 + $0xbb0] sm:$0xff] }
 0x35a   :  { %5806 = vmatpush1.bf16.msra.mxu1 %v7352_v41  ;;  %5929 = vmatpush1.bf16.msra.mxu0 %v7358_v26  ;;  %v7068_v41 = vcombine.low %v2659_v23, %v2675_v30  ;;  %v7074_v26 = vcombine.low %v2662_v31, %v2678_v32  ;;  %v2883_v23 = vld [vmem:[%s9896_s5 + $0xc18] sm:$0xff]  ;;  %v2886_v31 = vld [vmem:[%s9896_s5 + $0xc30] sm:$0xff] }
 0x35b   :  { %5807 = vmatprep.subr.bf16.mxu1 %v7385_v44  ;;  %5930 = vmatprep.subr.bf16.mxu0 %v7391_v45  ;;  %v7101_v44 = vcombine.high %v2691_v37, %v2707_v38  ;;  %v7107_v45 = vcombine.high %v2694_v39, %v2710_v40  ;;  %v2899_v30 = vld [vmem:[%s9896_s5 + $0xc98] sm:$0xff]  ;;  %v2902_v32 = vld [vmem:[%s9896_s5 + $0xcb0] sm:$0xff] }
 0x35e   :  { %5808 = vmatpush1.bf16.msra.mxu1 %v7384_v52  ;;  %5931 = vmatpush1.bf16.msra.mxu0 %v7390_v53  ;;  %v7100_v52 = vcombine.low %v2691_v37, %v2707_v38  ;;  %v7106_v53 = vcombine.low %v2694_v39, %v2710_v40  ;;  %v2915_v37 = vld [vmem:[%s9896_s5 + $0xd18] sm:$0xff]  ;;  %v2918_v39 = vld [vmem:[%s9896_s5 + $0xd30] sm:$0xff] }
 0x35f   :  { %5859 = vmatprep.subr.bf16.mxu1 %v6909_v54  ;;  %5982 = vmatprep.subr.bf16.mxu0 %v6915_v55  ;;  %v7133_v54 = vcombine.high %v2723_v46, %v2739_v47  ;;  %v7139_v55 = vcombine.high %v2726_v48, %v2742_v51  ;;  %v2931_v38 = vld [vmem:[%s9896_s5 + $0xd98] sm:$0xff]  ;;  %v2934_v40 = vld [vmem:[%s9896_s5 + $0xdb0] sm:$0xff] }
 0x361   :  { %5810 = vmatmul.mubr.bf16.vlgmr.msra.gmra.mrb[8].mxu1 %v8346_v42  ;;  %5933 = vmatmul.mubr.bf16.vlgmr.msra.gmra.mrb[12].mxu0 %v8346_v42 }
 0x362   :  { %5860 = vmatpush1.bf16.msra.mxu1 %v6908_v0  ;;  %5891 = vmatprep.mubr.bf16.mxu1 %v8344_v25  ;;  %v7132_v0 = vcombine.low %v2723_v46, %v2739_v47  ;;  %v2947_v46 = vld [vmem:[%s9896_s5 + $0xe18] sm:$0xff] }
 0x363   :  { %5983 = vmatpush1.bf16.msra.mxu0 %v6914_v1  ;;  %6014 = vmatprep.mubr.bf16.mxu0 %v8344_v25  ;;  %v7138_v1 = vcombine.low %v2726_v48, %v2742_v51  ;;  %v2963_v47 = vld [vmem:[%s9896_s5 + $0xe98] sm:$0xff]  ;;  %v2950_v48 = vld [vmem:[%s9896_s5 + $0xe30] sm:$0xff] }
 0x364   :  { %5861 = vmatprep.subr.bf16.mxu1 %v6941_v57  ;;  %5984 = vmatprep.subr.bf16.mxu0 %v6947_v2  ;;  %v7165_v57 = vcombine.high %v2755_v60, %v2771_v61  ;;  %v7171_v2 = vcombine.high %v2758_v62, %v2774_v63  ;;  %v2966_v51 = vld [vmem:[%s9896_s5 + $0xeb0] sm:$0xff] }
 0x366   :  { %5862 = vmatpush1.bf16.msra.mxu1 %v6940_v7  ;;  %v7164_v7 = vcombine.low %v2755_v60, %v2771_v61  ;;  %v2979_v60 = vld [vmem:[%s9896_s5 + $0xf18] sm:$0xff] }
 0x367   :  { %5985 = vmatpush1.bf16.msra.mxu0 %v6946_v8  ;;  %5863 = vmatprep.subr.bf16.mxu1 %v6973_v10  ;;  %v7170_v8 = vcombine.low %v2758_v62, %v2774_v63  ;;  %v7197_v10 = vcombine.high %v2787_v3, %v2803_v4  ;;  %v2995_v61 = vld [vmem:[%s9896_s5 + $0xf98] sm:$0xff]  ;;  %v2982_v62 = vld [vmem:[%s9896_s5 + $0xf30] sm:$0xff] }
 0x368   :  { %5986 = vmatprep.subr.bf16.mxu0 %v6979_v11  ;;  %v7203_v11 = vcombine.high %v2790_v5, %v2806_v6  ;;  %v2998_v63 = vld [vmem:[%s9896_s5 + $0xfb0] sm:$0xff] }
 0x36a   :  { %5864 = vmatpush1.bf16.msra.mxu1 %v6972_v16  ;;  %v7196_v16 = vcombine.low %v2787_v3, %v2803_v4  ;;  %v2501_v3 = vld [vmem:[%s9896_s5 + $0x28] sm:$0xff] }
 0x36b   :  { %5987 = vmatpush1.bf16.msra.mxu0 %v6978_v17  ;;  %5865 = vmatprep.subr.bf16.mxu1 %v7005_v18  ;;  %v7202_v17 = vcombine.low %v2790_v5, %v2806_v6  ;;  %v7229_v18 = vcombine.high %v2819_v12, %v2835_v13  ;;  %v2517_v4 = vld [vmem:[%s9896_s5 + $0xa8] sm:$0xff]  ;;  %v2504_v5 = vld [vmem:[%s9896_s5 + $0x40] sm:$0xff] }
 0x36c   :  { %5988 = vmatprep.subr.bf16.mxu0 %v7011_v19  ;;  %v7235_v19 = vcombine.high %v2822_v14, %v2838_v15  ;;  %v2520_v6 = vld [vmem:[%s9896_s5 + $0xc0] sm:$0xff] }
 0x36e   :  { %5866 = vmatpush1.bf16.msra.mxu1 %v7004_v9  ;;  %v7228_v9 = vcombine.low %v2819_v12, %v2835_v13  ;;  %v2533_v12 = vld [vmem:[%s9896_s5 + $0x128] sm:$0xff] }
 0x36f   :  { %5989 = vmatpush1.bf16.msra.mxu0 %v7010_v27  ;;  %5867 = vmatprep.subr.bf16.mxu1 %v7037_v28  ;;  %v7234_v27 = vcombine.low %v2822_v14, %v2838_v15  ;;  %v7261_v28 = vcombine.high %v2851_v20, %v2867_v21  ;;  %v2549_v13 = vld [vmem:[%s9896_s5 + $0x1a8] sm:$0xff]  ;;  %v6912_v14 = vcombine.low %v2501_v3, %v2517_v4  ;;  %v2536_v15 = vld [vmem:[%s9896_s5 + $0x140] sm:$0xff] }
 0x370   :  { %5990 = vmatprep.subr.bf16.mxu0 %v7043_v29  ;;  %v7267_v29 = vcombine.high %v2854_v22, %v2870_v24 }
 0x372   :  { %5868 = vmatpush1.bf16.msra.mxu1 %v7036_v33  ;;  %v7260_v33 = vcombine.low %v2851_v20, %v2867_v21  ;;  %v2581_v20 = vld [vmem:[%s9896_s5 + $0x2a8] sm:$0xff] }
 0x373   :  { %5991 = vmatpush1.bf16.msra.mxu0 %v7042_v34  ;;  %5869 = vmatprep.subr.bf16.mxu1 %v7069_v35  ;;  %v7266_v34 = vcombine.low %v2854_v22, %v2870_v24  ;;  %v7293_v35 = vcombine.high %v2883_v23, %v2899_v30  ;;  %v2568_v22 = vld [vmem:[%s9896_s5 + $0x240] sm:$0xff] }
 0x374   :  { %5992 = vmatprep.subr.bf16.mxu0 %v7075_v36  ;;  %v7299_v36 = vcombine.high %v2886_v31, %v2902_v32  ;;  %v2584_v24 = vld [vmem:[%s9896_s5 + $0x2c0] sm:$0xff] }
 0x376   :  { %5870 = vmatpush1.bf16.msra.mxu1 %v7068_v41  ;;  %v7292_v41 = vcombine.low %v2883_v23, %v2899_v30  ;;  %v2597_v23 = vld [vmem:[%s9896_s5 + $0x328] sm:$0xff] }
 0x377   :  { %5993 = vmatpush1.bf16.msra.mxu0 %v7074_v26  ;;  %5871 = vmatprep.subr.bf16.mxu1 %v7101_v44  ;;  %v7298_v26 = vcombine.low %v2886_v31, %v2902_v32  ;;  %v7325_v44 = vcombine.high %v2915_v37, %v2931_v38  ;;  %v2613_v30 = vld [vmem:[%s9896_s5 + $0x3a8] sm:$0xff]  ;;  %v2600_v31 = vld [vmem:[%s9896_s5 + $0x340] sm:$0xff] }
 0x378   :  { %5994 = vmatprep.subr.bf16.mxu0 %v7107_v45  ;;  %v7331_v45 = vcombine.high %v2918_v39, %v2934_v40  ;;  %v2616_v32 = vld [vmem:[%s9896_s5 + $0x3c0] sm:$0xff] }
 0x37a   :  { %5872 = vmatpush1.bf16.msra.mxu1 %v7100_v52  ;;  %v7324_v52 = vcombine.low %v2915_v37, %v2931_v38  ;;  %v2629_v37 = vld [vmem:[%s9896_s5 + $0x428] sm:$0xff] }
 0x37b   :  { %5995 = vmatpush1.bf16.msra.mxu0 %v7106_v53  ;;  %5873 = vmatprep.subr.bf16.mxu1 %v7133_v54  ;;  %v7330_v53 = vcombine.low %v2918_v39, %v2934_v40  ;;  %v7357_v54 = vcombine.high %v2947_v46, %v2963_v47  ;;  %v2645_v38 = vld [vmem:[%s9896_s5 + $0x4a8] sm:$0xff]  ;;  %v2632_v39 = vld [vmem:[%s9896_s5 + $0x440] sm:$0xff] }
 0x37c   :  { %5996 = vmatprep.subr.bf16.mxu0 %v7139_v55  ;;  %v7363_v55 = vcombine.high %v2950_v48, %v2966_v51  ;;  %v2648_v40 = vld [vmem:[%s9896_s5 + $0x4c0] sm:$0xff] }
 0x37e   :  { %5874 = vmatpush1.bf16.msra.mxu1 %v7132_v0  ;;  %v7356_v0 = vcombine.low %v2947_v46, %v2963_v47  ;;  %v2661_v46 = vld [vmem:[%s9896_s5 + $0x528] sm:$0xff] }
 0x37f   :  { %5997 = vmatpush1.bf16.msra.mxu0 %v7138_v1  ;;  %5875 = vmatprep.subr.bf16.mxu1 %v7165_v57  ;;  %v7362_v1 = vcombine.low %v2950_v48, %v2966_v51  ;;  %v7389_v57 = vcombine.high %v2979_v60, %v2995_v61  ;;  %v2677_v47 = vld [vmem:[%s9896_s5 + $0x5a8] sm:$0xff]  ;;  %v2664_v48 = vld [vmem:[%s9896_s5 + $0x540] sm:$0xff] }
 0x380   :  { %5998 = vmatprep.subr.bf16.mxu0 %v7171_v2  ;;  %v7395_v2 = vcombine.high %v2982_v62, %v2998_v63  ;;  %v2680_v51 = vld [vmem:[%s9896_s5 + $0x5c0] sm:$0xff] }
 0x382   :  { %5876 = vmatpush1.bf16.msra.mxu1 %v7164_v7  ;;  %v7388_v7 = vcombine.low %v2979_v60, %v2995_v61  ;;  %v2693_v60 = vld [vmem:[%s9896_s5 + $0x628] sm:$0xff] }
 0x383   :  { %5999 = vmatpush1.bf16.msra.mxu0 %v7170_v8  ;;  %5877 = vmatprep.subr.bf16.mxu1 %v7197_v10  ;;  %v7394_v8 = vcombine.low %v2982_v62, %v2998_v63  ;;  %v6913_v10 = vcombine.high %v2501_v3, %v2517_v4  ;;  %v2709_v61 = vld [vmem:[%s9896_s5 + $0x6a8] sm:$0xff]  ;;  %v2696_v62 = vld [vmem:[%s9896_s5 + $0x640] sm:$0xff] }
 0x384   :  { %6000 = vmatprep.subr.bf16.mxu0 %v7203_v11  ;;  %v6919_v11 = vcombine.high %v2504_v5, %v2520_v6  ;;  %v2712_v63 = vld [vmem:[%s9896_s5 + $0x6c0] sm:$0xff]  ;;  %v2725_v3 = vld [vmem:[%s9896_s5 + $0x728] sm:$0xff] }
 0x385   :  { %v2741_v4 = vld [vmem:[%s9896_s5 + $0x7a8] sm:$0xff] }
 0x386   :  { %5878 = vmatpush1.bf16.msra.mxu1 %v7196_v16  ;;  %v2552_v16 = vld [vmem:[%s9896_s5 + $0x1c0] sm:$0xff] }
 0x387   :  { %6001 = vmatpush1.bf16.msra.mxu0 %v7202_v17  ;;  %5879 = vmatprep.subr.bf16.mxu1 %v7229_v18  ;;  %v6918_v17 = vcombine.low %v2504_v5, %v2520_v6  ;;  %v6945_v18 = vcombine.high %v2533_v12, %v2549_v13  ;;  %v6951_v21 = vcombine.high %v2536_v15, %v2552_v16  ;;  %v2728_v5 = vld [vmem:[%s9896_s5 + $0x740] sm:$0xff] }
 0x388   :  { %6002 = vmatprep.subr.bf16.mxu0 %v7235_v19  ;;  %v2565_v19 = vld [vmem:[%s9896_s5 + $0x228] sm:$0xff]  ;;  %v2744_v6 = vld [vmem:[%s9896_s5 + $0x7c0] sm:$0xff] }
 0x38a   :  { %5880 = vmatpush1.bf16.msra.mxu1 %v7228_v9  ;;  %v6944_v9 = vcombine.low %v2533_v12, %v2549_v13  ;;  %v2757_v12 = vld [vmem:[%s9896_s5 + $0x828] sm:$0xff] }
 0x38b   :  { %6003 = vmatpush1.bf16.msra.mxu0 %v7234_v27  ;;  %5881 = vmatprep.subr.bf16.mxu1 %v7261_v28  ;;  %v6950_v27 = vcombine.low %v2536_v15, %v2552_v16  ;;  %v6977_v28 = vcombine.high %v2565_v19, %v2581_v20  ;;  %v2773_v13 = vld [vmem:[%s9896_s5 + $0x8a8] sm:$0xff]  ;;  %v2776_v15 = vld [vmem:[%s9896_s5 + $0x8c0] sm:$0xff]  ;;  %v7136_v16 = vcombine.low %v2725_v3, %v2741_v4 }
 0x38c   :  { %6004 = vmatprep.subr.bf16.mxu0 %v7267_v29  ;;  %v6983_v29 = vcombine.high %v2568_v22, %v2584_v24 }
 0x38e   :  { %5882 = vmatpush1.bf16.msra.mxu1 %v7260_v33  ;;  %v6976_v33 = vcombine.low %v2565_v19, %v2581_v20  ;;  %v2789_v20 = vld [vmem:[%s9896_s5 + $0x928] sm:$0xff] }
 0x38f   :  { %6005 = vmatpush1.bf16.msra.mxu0 %v7266_v34  ;;  %5883 = vmatprep.subr.bf16.mxu1 %v7293_v35  ;;  %v6982_v34 = vcombine.low %v2568_v22, %v2584_v24  ;;  %v7009_v35 = vcombine.high %v2597_v23, %v2613_v30  ;;  %v2792_v22 = vld [vmem:[%s9896_s5 + $0x940] sm:$0xff] }
 0x390   :  { %6006 = vmatprep.subr.bf16.mxu0 %v7299_v36  ;;  %v7015_v36 = vcombine.high %v2600_v31, %v2616_v32  ;;  %v2808_v24 = vld [vmem:[%s9896_s5 + $0x9c0] sm:$0xff] }
 0x392   :  { %5884 = vmatpush1.bf16.msra.mxu1 %v7292_v41  ;;  %v7008_v41 = vcombine.low %v2597_v23, %v2613_v30  ;;  %v2821_v23 = vld [vmem:[%s9896_s5 + $0xa28] sm:$0xff] }
 0x393   :  { %6007 = vmatpush1.bf16.msra.mxu0 %v7298_v26  ;;  %5885 = vmatprep.subr.bf16.mxu1 %v7325_v44  ;;  %v7014_v26 = vcombine.low %v2600_v31, %v2616_v32  ;;  %v7041_v44 = vcombine.high %v2629_v37, %v2645_v38  ;;  %v2837_v30 = vld [vmem:[%s9896_s5 + $0xaa8] sm:$0xff]  ;;  %v2824_v31 = vld [vmem:[%s9896_s5 + $0xa40] sm:$0xff] }
 0x394   :  { %6008 = vmatprep.subr.bf16.mxu0 %v7331_v45  ;;  %v7047_v45 = vcombine.high %v2632_v39, %v2648_v40  ;;  %v2840_v32 = vld [vmem:[%s9896_s5 + $0xac0] sm:$0xff] }
 0x396   :  { %5886 = vmatpush1.bf16.msra.mxu1 %v7324_v52  ;;  %v7040_v52 = vcombine.low %v2629_v37, %v2645_v38  ;;  %v2853_v37 = vld [vmem:[%s9896_s5 + $0xb28] sm:$0xff] }
 0x397   :  { %6009 = vmatpush1.bf16.msra.mxu0 %v7330_v53  ;;  %5887 = vmatprep.subr.bf16.mxu1 %v7357_v54  ;;  %v7046_v53 = vcombine.low %v2632_v39, %v2648_v40  ;;  %v7073_v54 = vcombine.high %v2661_v46, %v2677_v47  ;;  %v2869_v38 = vld [vmem:[%s9896_s5 + $0xba8] sm:$0xff]  ;;  %v2856_v39 = vld [vmem:[%s9896_s5 + $0xb40] sm:$0xff] }
 0x398   :  { %6010 = vmatprep.subr.bf16.mxu0 %v7363_v55  ;;  %v7079_v55 = vcombine.high %v2664_v48, %v2680_v51  ;;  %v2872_v40 = vld [vmem:[%s9896_s5 + $0xbc0] sm:$0xff] }
 0x39a   :  { %5888 = vmatpush1.bf16.msra.mxu1 %v7356_v0  ;;  %v7072_v0 = vcombine.low %v2661_v46, %v2677_v47  ;;  %v2885_v46 = vld [vmem:[%s9896_s5 + $0xc28] sm:$0xff] }
 0x39b   :  { %6011 = vmatpush1.bf16.msra.mxu0 %v7362_v1  ;;  %5889 = vmatprep.subr.bf16.mxu1 %v7389_v57  ;;  %v7078_v1 = vcombine.low %v2664_v48, %v2680_v51  ;;  %v7105_v57 = vcombine.high %v2693_v60, %v2709_v61  ;;  %v2901_v47 = vld [vmem:[%s9896_s5 + $0xca8] sm:$0xff]  ;;  %v2888_v48 = vld [vmem:[%s9896_s5 + $0xc40] sm:$0xff] }
 0x39c   :  { %6012 = vmatprep.subr.bf16.mxu0 %v7395_v2  ;;  %v7111_v2 = vcombine.high %v2696_v62, %v2712_v63  ;;  %v2904_v51 = vld [vmem:[%s9896_s5 + $0xcc0] sm:$0xff] }
 0x39e   :  { %5890 = vmatpush1.bf16.msra.mxu1 %v7388_v7  ;;  %v7104_v7 = vcombine.low %v2693_v60, %v2709_v61  ;;  %v2917_v60 = vld [vmem:[%s9896_s5 + $0xd28] sm:$0xff] }
 0x39f   :  { %6013 = vmatpush1.bf16.msra.mxu0 %v7394_v8  ;;  %5941 = vmatprep.subr.bf16.mxu1 %v6913_v10  ;;  %v7110_v8 = vcombine.low %v2696_v62, %v2712_v63  ;;  %v7137_v10 = vcombine.high %v2725_v3, %v2741_v4  ;;  %v2933_v61 = vld [vmem:[%s9896_s5 + $0xda8] sm:$0xff]  ;;  %v2920_v62 = vld [vmem:[%s9896_s5 + $0xd40] sm:$0xff] }
 0x3a0   :  { %6064 = vmatprep.subr.bf16.mxu0 %v6919_v11  ;;  %v7143_v11 = vcombine.high %v2728_v5, %v2744_v6  ;;  %v2936_v63 = vld [vmem:[%s9896_s5 + $0xdc0] sm:$0xff]  ;;  %v2949_v3 = vld [vmem:[%s9896_s5 + $0xe28] sm:$0xff] }
 0x3a1   :  { %5892 = vmatmul.mubr.bf16.vlgmr.msra.gmra.mrb[12].mxu1 %v8346_v42  ;;  %v2965_v4 = vld [vmem:[%s9896_s5 + $0xea8] sm:$0xff] }
 0x3a2   :  { %6015 = vmatmul.mubr.bf16.vlgmr.msra.gmra.mrb[16].mxu0 %v8346_v42  ;;  %5942 = vmatpush1.bf16.msra.mxu1 %v6912_v14  ;;  %v2760_v14 = vld [vmem:[%s9896_s5 + $0x840] sm:$0xff] }
 0x3a3   :  { %5973 = vmatprep.mubr.bf16.mxu1 %v8344_v25  ;;  %6065 = vmatpush1.bf16.msra.mxu0 %v6918_v17  ;;  %v7142_v17 = vcombine.low %v2728_v5, %v2744_v6  ;;  %v7175_v19 = vcombine.high %v2760_v14, %v2776_v15  ;;  %v2952_v5 = vld [vmem:[%s9896_s5 + $0xe40] sm:$0xff] }
 0x3a4   :  { %6096 = vmatprep.mubr.bf16.mxu0 %v8344_v25  ;;  %5943 = vmatprep.subr.bf16.mxu1 %v6945_v18  ;;  %v7169_v18 = vcombine.high %v2757_v12, %v2773_v13  ;;  %v2968_v6 = vld [vmem:[%s9896_s5 + $0xec0] sm:$0xff] }
 0x3a5   :  { %6066 = vmatprep.subr.bf16.mxu0 %v6951_v21  ;;  %v2805_v21 = vld [vmem:[%s9896_s5 + $0x9a8] sm:$0xff] }
 0x3a6   :  { %5944 = vmatpush1.bf16.msra.mxu1 %v6944_v9  ;;  %v7168_v9 = vcombine.low %v2757_v12, %v2773_v13  ;;  %v2981_v12 = vld [vmem:[%s9896_s5 + $0xf28] sm:$0xff] }
 0x3a7   :  { %6067 = vmatpush1.bf16.msra.mxu0 %v6950_v27  ;;  %5945 = vmatprep.subr.bf16.mxu1 %v6977_v28  ;;  %v7174_v27 = vcombine.low %v2760_v14, %v2776_v15  ;;  %v7201_v28 = vcombine.high %v2789_v20, %v2805_v21  ;;  %v2997_v13 = vld [vmem:[%s9896_s5 + $0xfa8] sm:$0xff]  ;;  %v2984_v14 = vld [vmem:[%s9896_s5 + $0xf40] sm:$0xff] }
 0x3a8   :  { %6068 = vmatprep.subr.bf16.mxu0 %v6983_v29  ;;  %v7207_v29 = vcombine.high %v2792_v22, %v2808_v24  ;;  %v3000_v15 = vld [vmem:[%s9896_s5 + $0xfc0] sm:$0xff] }
 0x3aa   :  { %5946 = vmatpush1.bf16.msra.mxu1 %v6976_v33  ;;  %v7200_v33 = vcombine.low %v2789_v20, %v2805_v21  ;;  %v2503_v20 = vld [vmem:[%s9896_s5 + $0x38] sm:$0xff] }
 0x3ab   :  { %6069 = vmatpush1.bf16.msra.mxu0 %v6982_v34  ;;  %5947 = vmatprep.subr.bf16.mxu1 %v7009_v35  ;;  %v7206_v34 = vcombine.low %v2792_v22, %v2808_v24  ;;  %v7233_v35 = vcombine.high %v2821_v23, %v2837_v30  ;;  %v2519_v21 = vld [vmem:[%s9896_s5 + $0xb8] sm:$0xff]  ;;  %v2506_v22 = vld [vmem:[%s9896_s5 + $0x50] sm:$0xff] }
 0x3ac   :  { %6070 = vmatprep.subr.bf16.mxu0 %v7015_v36  ;;  %v7239_v36 = vcombine.high %v2824_v31, %v2840_v32  ;;  %v2522_v24 = vld [vmem:[%s9896_s5 + $0xd0] sm:$0xff] }
 0x3ae   :  { %5948 = vmatpush1.bf16.msra.mxu1 %v7008_v41  ;;  %v7232_v41 = vcombine.low %v2821_v23, %v2837_v30  ;;  %v2535_v23 = vld [vmem:[%s9896_s5 + $0x138] sm:$0xff] }
 0x3af   :  { %6071 = vmatpush1.bf16.msra.mxu0 %v7014_v26  ;;  %5949 = vmatprep.subr.bf16.mxu1 %v7041_v44  ;;  %v7238_v26 = vcombine.low %v2824_v31, %v2840_v32  ;;  %v7265_v44 = vcombine.high %v2853_v37, %v2869_v38  ;;  %v2551_v30 = vld [vmem:[%s9896_s5 + $0x1b8] sm:$0xff]  ;;  %v6916_v31 = vcombine.low %v2503_v20, %v2519_v21  ;;  %v2538_v32 = vld [vmem:[%s9896_s5 + $0x150] sm:$0xff] }
 0x3b0   :  { %6072 = vmatprep.subr.bf16.mxu0 %v7047_v45  ;;  %v7271_v45 = vcombine.high %v2856_v39, %v2872_v40 }
 0x3b2   :  { %5950 = vmatpush1.bf16.msra.mxu1 %v7040_v52  ;;  %v7264_v52 = vcombine.low %v2853_v37, %v2869_v38  ;;  %v2583_v37 = vld [vmem:[%s9896_s5 + $0x2b8] sm:$0xff] }
 0x3b3   :  { %6073 = vmatpush1.bf16.msra.mxu0 %v7046_v53  ;;  %5951 = vmatprep.subr.bf16.mxu1 %v7073_v54  ;;  %v7270_v53 = vcombine.low %v2856_v39, %v2872_v40  ;;  %v7297_v54 = vcombine.high %v2885_v46, %v2901_v47  ;;  %v2570_v39 = vld [vmem:[%s9896_s5 + $0x250] sm:$0xff] }
 0x3b4   :  { %6074 = vmatprep.subr.bf16.mxu0 %v7079_v55  ;;  %v7303_v55 = vcombine.high %v2888_v48, %v2904_v51  ;;  %v2586_v40 = vld [vmem:[%s9896_s5 + $0x2d0] sm:$0xff] }
 0x3b6   :  { %5952 = vmatpush1.bf16.msra.mxu1 %v7072_v0  ;;  %v7296_v0 = vcombine.low %v2885_v46, %v2901_v47  ;;  %v2599_v46 = vld [vmem:[%s9896_s5 + $0x338] sm:$0xff] }
 0x3b7   :  { %6075 = vmatpush1.bf16.msra.mxu0 %v7078_v1  ;;  %5953 = vmatprep.subr.bf16.mxu1 %v7105_v57  ;;  %v7302_v1 = vcombine.low %v2888_v48, %v2904_v51  ;;  %v7329_v57 = vcombine.high %v2917_v60, %v2933_v61  ;;  %v2615_v47 = vld [vmem:[%s9896_s5 + $0x3b8] sm:$0xff]  ;;  %v2602_v48 = vld [vmem:[%s9896_s5 + $0x350] sm:$0xff] }
 0x3b8   :  { %6076 = vmatprep.subr.bf16.mxu0 %v7111_v2  ;;  %v7335_v2 = vcombine.high %v2920_v62, %v2936_v63  ;;  %v2618_v51 = vld [vmem:[%s9896_s5 + $0x3d0] sm:$0xff] }
 0x3ba   :  { %5954 = vmatpush1.bf16.msra.mxu1 %v7104_v7  ;;  %v7328_v7 = vcombine.low %v2917_v60, %v2933_v61  ;;  %v2631_v60 = vld [vmem:[%s9896_s5 + $0x438] sm:$0xff] }
 0x3bb   :  { %6077 = vmatpush1.bf16.msra.mxu0 %v7110_v8  ;;  %5955 = vmatprep.subr.bf16.mxu1 %v7137_v10  ;;  %v7334_v8 = vcombine.low %v2920_v62, %v2936_v63  ;;  %v7361_v10 = vcombine.high %v2949_v3, %v2965_v4  ;;  %v2647_v61 = vld [vmem:[%s9896_s5 + $0x4b8] sm:$0xff]  ;;  %v2634_v62 = vld [vmem:[%s9896_s5 + $0x450] sm:$0xff] }
 0x3bc   :  { %6078 = vmatprep.subr.bf16.mxu0 %v7143_v11  ;;  %v7367_v11 = vcombine.high %v2952_v5, %v2968_v6  ;;  %v2650_v63 = vld [vmem:[%s9896_s5 + $0x4d0] sm:$0xff] }
 0x3be   :  { %5956 = vmatpush1.bf16.msra.mxu1 %v7136_v16  ;;  %v7360_v16 = vcombine.low %v2949_v3, %v2965_v4  ;;  %v2663_v3 = vld [vmem:[%s9896_s5 + $0x538] sm:$0xff] }
 0x3bf   :  { %6079 = vmatpush1.bf16.msra.mxu0 %v7142_v17  ;;  %5957 = vmatprep.subr.bf16.mxu1 %v7169_v18  ;;  %v7366_v17 = vcombine.low %v2952_v5, %v2968_v6  ;;  %v7393_v18 = vcombine.high %v2981_v12, %v2997_v13  ;;  %v2679_v4 = vld [vmem:[%s9896_s5 + $0x5b8] sm:$0xff]  ;;  %v8985_v5 = vsub.s32 4, %v8057_v43  ;;  %v2666_v6 = vld [vmem:[%s9896_s5 + $0x550] sm:$0xff] }
 0x3c0   :  { %6080 = vmatprep.subr.bf16.mxu0 %v7175_v19  ;;  %v7399_v19 = vcombine.high %v2984_v14, %v3000_v15 }
 0x3c2   :  { %5958 = vmatpush1.bf16.msra.mxu1 %v7168_v9  ;;  %v7392_v9 = vcombine.low %v2981_v12, %v2997_v13  ;;  %v7050_v12 = vcombine.low %v2634_v62, %v2650_v63  ;;  %v7077_v13 = vcombine.high %v2663_v3, %v2679_v4 }
 0x3c3   :  { %6081 = vmatpush1.bf16.msra.mxu0 %v7174_v27  ;;  %5959 = vmatprep.subr.bf16.mxu1 %v7201_v28  ;;  %v7398_v27 = vcombine.low %v2984_v14, %v3000_v15  ;;  %v6917_v28 = vcombine.high %v2503_v20, %v2519_v21  ;;  %v2695_v15 = vld [vmem:[%s9896_s5 + $0x638] sm:$0xff]  ;;  %v2714_v20 = vld [vmem:[%s9896_s5 + $0x6d0] sm:$0xff]  ;;  %v7076_v21 = vcombine.low %v2663_v3, %v2679_v4 }
 0x3c4   :  { %6082 = vmatprep.subr.bf16.mxu0 %v7207_v29  ;;  %v6923_v29 = vcombine.high %v2506_v22, %v2522_v24  ;;  %v2810_v3 = vld [vmem:[%s9896_s5 + $0x9d0] sm:$0xff] }
 0x3c6   :  { %5960 = vmatpush1.bf16.msra.mxu1 %v7200_v33  ;;  %v2554_v33 = vld [vmem:[%s9896_s5 + $0x1d0] sm:$0xff] }
 0x3c7   :  { %6083 = vmatpush1.bf16.msra.mxu0 %v7206_v34  ;;  %5961 = vmatprep.subr.bf16.mxu1 %v7233_v35  ;;  %v6922_v34 = vcombine.low %v2506_v22, %v2522_v24  ;;  %v6949_v35 = vcombine.high %v2535_v23, %v2551_v30  ;;  %v6955_v38 = vcombine.high %v2538_v32, %v2554_v33 }
 0x3c8   :  { %6084 = vmatprep.subr.bf16.mxu0 %v7239_v36  ;;  %v2567_v36 = vld [vmem:[%s9896_s5 + $0x238] sm:$0xff] }
 0x3ca   :  { %5962 = vmatpush1.bf16.msra.mxu1 %v7232_v41  ;;  %v6948_v41 = vcombine.low %v2535_v23, %v2551_v30  ;;  %v2727_v30 = vld [vmem:[%s9896_s5 + $0x738] sm:$0xff] }
 0x3cb   :  { %6085 = vmatpush1.bf16.msra.mxu0 %v7238_v26  ;;  %5963 = vmatprep.subr.bf16.mxu1 %v7265_v44  ;;  %v6954_v26 = vcombine.low %v2538_v32, %v2554_v33  ;;  %v6981_v44 = vcombine.high %v2567_v36, %v2583_v37 }
 0x3cc   :  { %6086 = vmatprep.subr.bf16.mxu0 %v7271_v45  ;;  %v6987_v45 = vcombine.high %v2570_v39, %v2586_v40 }
 0x3ce   :  { %5964 = vmatpush1.bf16.msra.mxu1 %v7264_v52  ;;  %v6980_v52 = vcombine.low %v2567_v36, %v2583_v37  ;;  %v2730_v36 = vld [vmem:[%s9896_s5 + $0x750] sm:$0xff] }
 0x3cf   :  { %6087 = vmatpush1.bf16.msra.mxu0 %v7270_v53  ;;  %5965 = vmatprep.subr.bf16.mxu1 %v7297_v54  ;;  %v6986_v53 = vcombine.low %v2570_v39, %v2586_v40  ;;  %v7013_v54 = vcombine.high %v2599_v46, %v2615_v47  ;;  %v2746_v37 = vld [vmem:[%s9896_s5 + $0x7d0] sm:$0xff] }
 0x3d0   :  { %6088 = vmatprep.subr.bf16.mxu0 %v7303_v55  ;;  %v7019_v55 = vcombine.high %v2602_v48, %v2618_v51 }
 0x3d2   :  { %5966 = vmatpush1.bf16.msra.mxu1 %v7296_v0  ;;  %v7012_v0 = vcombine.low %v2599_v46, %v2615_v47 }
 0x3d3   :  { %6089 = vmatpush1.bf16.msra.mxu0 %v7302_v1  ;;  %5967 = vmatprep.subr.bf16.mxu1 %v7329_v57  ;;  %v7018_v1 = vcombine.low %v2602_v48, %v2618_v51  ;;  %v7045_v57 = vcombine.high %v2631_v60, %v2647_v61 }
 0x3d4   :  { %6090 = vmatprep.subr.bf16.mxu0 %v7335_v2  ;;  %v7051_v2 = vcombine.high %v2634_v62, %v2650_v63  ;;  %v7146_v62 = vcombine.low %v2730_v36, %v2746_v37 }
 0x3d6   :  { %5968 = vmatpush1.bf16.msra.mxu1 %v7328_v7  ;;  %v2682_v7 = vld [vmem:[%s9896_s5 + $0x5d0] sm:$0xff] }
 0x3d7   :  { %6091 = vmatpush1.bf16.msra.mxu0 %v7334_v8  ;;  %5969 = vmatprep.subr.bf16.mxu1 %v7361_v10  ;;  %v7044_v8 = vcombine.low %v2631_v60, %v2647_v61  ;;  %v8996_v10 = vld [vmem:[%s9897_s6] sm:$0xff]  ;;  %v7083_v14 = vcombine.high %v2666_v6, %v2682_v7  ;;  %v2778_v60 = vld [vmem:[%s9896_s5 + $0x8d0] sm:$0xff] }
 0x3d8   :  { %6092 = vmatprep.subr.bf16.mxu0 %v7367_v11  ;;  %v8999_v11 = vsub.s32 5, %v8057_v43  ;;  %v3023_v22 = vrot.slane %v8996_v10, %v8182_v58 }
 0x3da   :  { %5970 = vmatpush1.bf16.msra.mxu1 %v7360_v16  ;;  %v2711_v16 = vld [vmem:[%s9896_s5 + $0x6b8] sm:$0xff]  ;;  %v3039_v24 = vrot.slane %v8996_v10, %v8999_v11 }
 0x3db   :  { %6093 = vmatpush1.bf16.msra.mxu0 %v7366_v17  ;;  %5971 = vmatprep.subr.bf16.mxu1 %v7393_v18  ;;  %v3019_v17 = vrot.slane %v8996_v10, %v8174_v56  ;;  %v3035_v18 = vrot.slane %v8996_v10, %v8985_v5 }
 0x3dc   :  { %6094 = vmatprep.subr.bf16.mxu0 %v7399_v19  ;;  %v2698_v19 = vld [vmem:[%s9896_s5 + $0x650] sm:$0xff] }
 0x3dd   :  { %v7115_v23 = vcombine.high %v2698_v19, %v2714_v20  ;;  %v7114_v46 = vcombine.low %v2698_v19, %v2714_v20  ;;  %v2855_v20 = vld [vmem:[%s9896_s5 + $0xb38] sm:$0xff] }
 0x3de   :  { %5972 = vmatpush1.bf16.msra.mxu1 %v7392_v9  ;;  %v7082_v9 = vcombine.low %v2666_v6, %v2682_v7 }
 0x3df   :  { %6095 = vmatpush1.bf16.msra.mxu0 %v7398_v27  ;;  %6023 = vmatprep.subr.bf16.mxu1 %v6917_v28  ;;  %v7109_v27 = vcombine.high %v2695_v15, %v2711_v16 }
 0x3e0   :  { %6146 = vmatprep.subr.bf16.mxu0 %v6923_v29 }
 0x3e1   :  { %5974 = vmatmul.mubr.bf16.vlgmr.msra.gmra.mrb[16].mxu1 %v8346_v42 }
 0x3e2   :  { %6097 = vmatmul.mubr.bf16.vlgmr.msra.gmra.mrb[20].mxu0 %v8346_v42  ;;  %6024 = vmatpush1.bf16.msra.mxu1 %v6916_v31  ;;  %v2743_v31 = vld [vmem:[%s9896_s5 + $0x7b8] sm:$0xff] }
 0x3e3   :  { %6055 = vmatprep.mubr.bf16.mxu1 %v8344_v25  ;;  %6147 = vmatpush1.bf16.msra.mxu0 %v6922_v34  ;;  %v7141_v47 = vcombine.high %v2727_v30, %v2743_v31  ;;  %v7140_v61 = vcombine.low %v2727_v30, %v2743_v31  ;;  %v2903_v30 = vld [vmem:[%s9896_s5 + $0xcb8] sm:$0xff]  ;;  %v2890_v31 = vld [vmem:[%s9896_s5 + $0xc50] sm:$0xff] }
 0x3e4   :  { %6178 = vmatprep.mubr.bf16.mxu0 %v8344_v25  ;;  %6025 = vmatprep.subr.bf16.mxu1 %v6949_v35 }
 0x3e5   :  { %6148 = vmatprep.subr.bf16.mxu0 %v6955_v38 }
 0x3e6   :  { %6026 = vmatpush1.bf16.msra.mxu1 %v6948_v41 }
 0x3e7   :  { %6149 = vmatpush1.bf16.msra.mxu0 %v6954_v26  ;;  %6027 = vmatprep.subr.bf16.mxu1 %v6981_v44  ;;  %v7108_v26 = vcombine.low %v2695_v15, %v2711_v16  ;;  %v2842_v15 = vld [vmem:[%s9896_s5 + $0xad0] sm:$0xff] }
 0x3e8   :  { %6150 = vmatprep.subr.bf16.mxu0 %v6987_v45 }
 0x3ea   :  { %6028 = vmatpush1.bf16.msra.mxu1 %v6980_v52  ;;  %v7147_v52 = vcombine.high %v2730_v36, %v2746_v37 }
 0x3eb   :  { %6151 = vmatpush1.bf16.msra.mxu0 %v6986_v53  ;;  %6029 = vmatprep.subr.bf16.mxu1 %v7013_v54  ;;  %v2759_v53 = vld [vmem:[%s9896_s5 + $0x838] sm:$0xff] }
 0x3ec   :  { %6152 = vmatprep.subr.bf16.mxu0 %v7019_v55  ;;  %v2775_v54 = vld [vmem:[%s9896_s5 + $0x8b8] sm:$0xff]  ;;  %v2762_v55 = vld [vmem:[%s9896_s5 + $0x850] sm:$0xff] }
 0x3ed   :  { %v7173_v63 = vcombine.high %v2759_v53, %v2775_v54  ;;  %v7172_v4 = vcombine.low %v2759_v53, %v2775_v54  ;;  %v7178_v6 = vcombine.low %v2762_v55, %v2778_v60  ;;  %v2951_v54 = vld [vmem:[%s9896_s5 + $0xe38] sm:$0xff] }
 0x3ee   :  { %6030 = vmatpush1.bf16.msra.mxu1 %v7012_v0  ;;  %v7179_v0 = vcombine.high %v2762_v55, %v2778_v60  ;;  %v2967_v55 = vld [vmem:[%s9896_s5 + $0xeb8] sm:$0xff]  ;;  %v2954_v60 = vld [vmem:[%s9896_s5 + $0xe50] sm:$0xff] }
 0x3ef   :  { %6153 = vmatpush1.bf16.msra.mxu0 %v7018_v1  ;;  %6031 = vmatprep.subr.bf16.mxu1 %v7045_v57  ;;  %v2791_v1 = vld [vmem:[%s9896_s5 + $0x938] sm:$0xff] }
 0x3f0   :  { %6154 = vmatprep.subr.bf16.mxu0 %v7051_v2  ;;  %v2807_v57 = vld [vmem:[%s9896_s5 + $0x9b8] sm:$0xff]  ;;  %v2794_v2 = vld [vmem:[%s9896_s5 + $0x950] sm:$0xff] }
 0x3f1   :  { %v7205_v7 = vcombine.high %v2791_v1, %v2807_v57  ;;  %v7204_v16 = vcombine.low %v2791_v1, %v2807_v57  ;;  %v2983_v57 = vld [vmem:[%s9896_s5 + $0xf38] sm:$0xff] }
 0x3f2   :  { %6032 = vmatpush1.bf16.msra.mxu1 %v7044_v8  ;;  %v7211_v8 = vcombine.high %v2794_v2, %v2810_v3 }
 0x3f3   :  { %6155 = vmatpush1.bf16.msra.mxu0 %v7050_v12  ;;  %6033 = vmatprep.subr.bf16.mxu1 %v7077_v13  ;;  %v2823_v12 = vld [vmem:[%s9896_s5 + $0xa38] sm:$0xff] }
 0x3f4   :  { %v5770_v28 = vpop.f32.mrb[4].mxu1  ;;  %v5852_v29 = vpop.f32.mrb[8].mxu0  ;;  %6156 = vmatprep.subr.bf16.mxu0 %v7083_v14  ;;  %v2839_v13 = vld [vmem:[%s9896_s5 + $0xab8] sm:$0xff]  ;;  %v2826_v14 = vld [vmem:[%s9896_s5 + $0xa50] sm:$0xff] }
 0x3f5   :  { %v9027_v32 = vadd.f32 %v5770_v28, %v3019_v17  ;;  %v9029_v33 = vadd.f32 %v5852_v29, %v3035_v18  ;;  %v5772_v34 = vpop.f32.mrb[5].mxu1  ;;  %v5854_v35 = vpop.f32.mrb[9].mxu0  ;;  %v7210_v17 = vcombine.low %v2794_v2, %v2810_v3  ;;  %v7237_v18 = vcombine.high %v2823_v12, %v2839_v13  ;;  %v2999_v2 = vld [vmem:[%s9896_s5 + $0xfb8] sm:$0xff]  ;;  %v2986_v3 = vld [vmem:[%s9896_s5 + $0xf50] sm:$0xff] }
 0x3f6   :  { %v9037_v38 = vadd.f32 %v5772_v34, %v3023_v22  ;;  %v9039_v39 = vadd.f32 %v5854_v35, %v3039_v24  ;;  %6034 = vmatpush1.bf16.msra.mxu1 %v7076_v21  ;;  %v5774_v40 = vpop.f32.mrb[6].mxu1  ;;  %v5856_v41 = vpop.f32.mrb[10].mxu0  ;;  %v7243_v19 = vcombine.high %v2826_v14, %v2842_v15  ;;  %v2871_v21 = vld [vmem:[%s9896_s5 + $0xbb8] sm:$0xff]  ;;  %v2858_v22 = vld [vmem:[%s9896_s5 + $0xb50] sm:$0xff] }
 0x3f7   :  { %6157 = vmatpush1.bf16.msra.mxu0 %v7082_v9  ;;  %v5775_v44 = vpop.f32.mrb[7].mxu1  ;;  %v5857_v45 = vpop.f32.mrb[11].mxu0  ;;  %6035 = vmatprep.subr.bf16.mxu1 %v7109_v27  ;;  %v2874_v24 = vld [vmem:[%s9896_s5 + $0xbd0] sm:$0xff]  ;;  %v7236_v9 = vcombine.low %v2823_v12, %v2839_v13  ;;  %v7242_v27 = vcombine.low %v2826_v14, %v2842_v15  ;;  %v7269_v28 = vcombine.high %v2855_v20, %v2871_v21  ;;  %v2919_v41 = vld [vmem:[%s9896_s5 + $0xd38] sm:$0xff]  ;;  %v2505_v13 = vld [vmem:[%s9896_s5 + $0x48] sm:$0xff] }
 0x3f8   :  { %v6424_v48 = vcombine.low %v9027_v32, %v9037_v38  ;;  %v6441_v51 = vcombine.low %v9029_v33, %v9039_v39  ;;  %6158 = vmatprep.subr.bf16.mxu0 %v7115_v23  ;;  %v7275_v29 = vcombine.high %v2858_v22, %v2874_v24  ;;  %v2887_v23 = vld [vmem:[%s9896_s5 + $0xc38] sm:$0xff]  ;;  %v2906_v34 = vld [vmem:[%s9896_s5 + $0xcd0] sm:$0xff]  ;;  %v7268_v35 = vcombine.low %v2855_v20, %v2871_v21  ;;  %v2521_v14 = vld [vmem:[%s9896_s5 + $0xc8] sm:$0xff] }
 0x3f9   :  { %v7274_v36 = vcombine.low %v2858_v22, %v2874_v24  ;;  %v7301_v37 = vcombine.high %v2887_v23, %v2903_v30  ;;  %v7307_v40 = vcombine.high %v2890_v31, %v2906_v34  ;;  %v2922_v44 = vld [vmem:[%s9896_s5 + $0xd50] sm:$0xff]  ;;  %v2508_v15 = vld [vmem:[%s9896_s5 + $0x60] sm:$0xff]  ;;  %v2537_v21 = vld [vmem:[%s9896_s5 + $0x148] sm:$0xff]  ;;  %v6920_v24 = vcombine.low %v2505_v13, %v2521_v14 }
 0x3fa   :  { %6036 = vmatpush1.bf16.msra.mxu1 %v7108_v26  ;;  %v2935_v26 = vld [vmem:[%s9896_s5 + $0xdb8] sm:$0xff]  ;;  %v2938_v45 = vld [vmem:[%s9896_s5 + $0xdd0] sm:$0xff]  ;;  %v2553_v22 = vld [vmem:[%s9896_s5 + $0x1c8] sm:$0xff] }
 0x3fb   :  { %6159 = vmatpush1.bf16.msra.mxu0 %v7114_v46  ;;  %6037 = vmatprep.subr.bf16.mxu1 %v7141_v47  ;;  %v7300_v46 = vcombine.low %v2887_v23, %v2903_v30  ;;  %v7306_v47 = vcombine.low %v2890_v31, %v2906_v34  ;;  %v7339_v53 = vcombine.high %v2922_v44, %v2938_v45  ;;  %v2569_v23 = vld [vmem:[%s9896_s5 + $0x248] sm:$0xff]  ;;  %v2572_v34 = vld [vmem:[%s9896_s5 + $0x260] sm:$0xff]  ;;  %v2811_v33 = vld [vmem:[%s9896_s5 + $0x9d8] sm:$0xff] }
 0x3fc   :  { %6160 = vmatprep.subr.bf16.mxu0 %v7147_v52  ;;  %v7333_v52 = vcombine.high %v2919_v41, %v2935_v26  ;;  %v2585_v30 = vld [vmem:[%s9896_s5 + $0x2c8] sm:$0xff]  ;;  %v2796_v38 = vld [vmem:[%s9896_s5 + $0x960] sm:$0xff]  ;;  %v2798_v39 = vld [vmem:[%s9896_s5 + $0x970] sm:$0xff] }
 0x3fd   :  { %v2809_v32 = vld [vmem:[%s9896_s5 + $0x9c8] sm:$0xff] }
 0x3fe   :  { %6038 = vmatpush1.bf16.msra.mxu1 %v7140_v61  ;;  %v2970_v61 = vld [vmem:[%s9896_s5 + $0xed0] sm:$0xff] }
 0x3ff   :  { %6161 = vmatpush1.bf16.msra.mxu0 %v7146_v62  ;;  %6039 = vmatprep.subr.bf16.mxu1 %v7173_v63  ;;  %v7332_v62 = vcombine.low %v2919_v41, %v2935_v26  ;;  %v7338_v63 = vcombine.low %v2922_v44, %v2938_v45  ;;  %v7371_v1 = vcombine.high %v2954_v60, %v2970_v61  ;;  %v2601_v26 = vld [vmem:[%s9896_s5 + $0x348] sm:$0xff]  ;;  %v2604_v45 = vld [vmem:[%s9896_s5 + $0x360] sm:$0xff] }
 0x400   :  { %6162 = vmatprep.subr.bf16.mxu0 %v7179_v0  ;;  %v7365_v0 = vcombine.high %v2951_v54, %v2967_v55  ;;  %v2617_v44 = vld [vmem:[%s9896_s5 + $0x3c8] sm:$0xff] }
 0x402   :  { %6040 = vmatpush1.bf16.msra.mxu1 %v7172_v4  ;;  %v3002_v4 = vld [vmem:[%s9896_s5 + $0xfd0] sm:$0xff] }
 0x403   :  { %6163 = vmatpush1.bf16.msra.mxu0 %v7178_v6  ;;  %6041 = vmatprep.subr.bf16.mxu1 %v7205_v7  ;;  %v7364_v6 = vcombine.low %v2951_v54, %v2967_v55  ;;  %v7370_v7 = vcombine.low %v2954_v60, %v2970_v61  ;;  %v7403_v12 = vcombine.high %v2986_v3, %v3002_v4  ;;  %v2633_v55 = vld [vmem:[%s9896_s5 + $0x448] sm:$0xff]  ;;  %v2636_v61 = vld [vmem:[%s9896_s5 + $0x460] sm:$0xff] }
 0x404   :  { %6164 = vmatprep.subr.bf16.mxu0 %v7211_v8  ;;  %v7397_v8 = vcombine.high %v2983_v57, %v2999_v2  ;;  %v2649_v60 = vld [vmem:[%s9896_s5 + $0x4c8] sm:$0xff] }
 0x406   :  { %6042 = vmatpush1.bf16.msra.mxu1 %v7204_v16  ;;  %v2524_v16 = vld [vmem:[%s9896_s5 + $0xe0] sm:$0xff] }
 0x407   :  { %6165 = vmatpush1.bf16.msra.mxu0 %v7210_v17  ;;  %6043 = vmatprep.subr.bf16.mxu1 %v7237_v18  ;;  %v7396_v17 = vcombine.low %v2983_v57, %v2999_v2  ;;  %v7402_v18 = vcombine.low %v2986_v3, %v3002_v4  ;;  %v6927_v20 = vcombine.high %v2508_v15, %v2524_v16  ;;  %v2665_v2 = vld [vmem:[%s9896_s5 + $0x548] sm:$0xff]  ;;  %v2668_v4 = vld [vmem:[%s9896_s5 + $0x560] sm:$0xff] }
 0x408   :  { %6166 = vmatprep.subr.bf16.mxu0 %v7243_v19  ;;  %v6921_v19 = vcombine.high %v2505_v13, %v2521_v14  ;;  %v2681_v3 = vld [vmem:[%s9896_s5 + $0x5c8] sm:$0xff] }
 0x409   :  { %v7081_v13 = vcombine.high %v2665_v2, %v2681_v3 }
 0x40a   :  { %6044 = vmatpush1.bf16.msra.mxu1 %v7236_v9  ;;  %v2540_v9 = vld [vmem:[%s9896_s5 + $0x160] sm:$0xff] }
 0x40b   :  { %6167 = vmatpush1.bf16.msra.mxu0 %v7242_v27  ;;  %6045 = vmatprep.subr.bf16.mxu1 %v7269_v28  ;;  %v2556_v27 = vld [vmem:[%s9896_s5 + $0x1e0] sm:$0xff]  ;;  %v6926_v28 = vcombine.low %v2508_v15, %v2524_v16  ;;  %v2697_v15 = vld [vmem:[%s9896_s5 + $0x648] sm:$0xff] }
 0x40c   :  { %6168 = vmatprep.subr.bf16.mxu0 %v7275_v29  ;;  %v6953_v29 = vcombine.high %v2537_v21, %v2553_v22  ;;  %v6959_v31 = vcombine.high %v2540_v9, %v2556_v27  ;;  %v2713_v16 = vld [vmem:[%s9896_s5 + $0x6c8] sm:$0xff] }
 0x40e   :  { %6046 = vmatpush1.bf16.msra.mxu1 %v7268_v35  ;;  %v2588_v35 = vld [vmem:[%s9896_s5 + $0x2e0] sm:$0xff] }
 0x40f   :  { %6169 = vmatpush1.bf16.msra.mxu0 %v7274_v36  ;;  %6047 = vmatprep.subr.bf16.mxu1 %v7301_v37  ;;  %v6952_v36 = vcombine.low %v2537_v21, %v2553_v22  ;;  %v6958_v37 = vcombine.low %v2540_v9, %v2556_v27  ;;  %v6991_v41 = vcombine.high %v2572_v34, %v2588_v35 }
 0x410   :  { %6170 = vmatprep.subr.bf16.mxu0 %v7307_v40  ;;  %v6985_v40 = vcombine.high %v2569_v23, %v2585_v30  ;;  %v3031_v21 = vrot.slane %v8996_v10, %v8185_v59  ;;  %v7113_v27 = vcombine.high %v2697_v15, %v2713_v16 }
 0x412   :  { %6048 = vmatpush1.bf16.msra.mxu1 %v7300_v46  ;;  %v2620_v46 = vld [vmem:[%s9896_s5 + $0x3e0] sm:$0xff] }
 0x413   :  { %6171 = vmatpush1.bf16.msra.mxu0 %v7306_v47  ;;  %6049 = vmatprep.subr.bf16.mxu1 %v7333_v52  ;;  %v6984_v47 = vcombine.low %v2569_v23, %v2585_v30  ;;  %v6990_v52 = vcombine.low %v2572_v34, %v2588_v35  ;;  %v7023_v54 = vcombine.high %v2604_v45, %v2620_v46  ;;  %v2729_v30 = vld [vmem:[%s9896_s5 + $0x748] sm:$0xff] }
 0x414   :  { %6172 = vmatprep.subr.bf16.mxu0 %v7339_v53  ;;  %v7017_v53 = vcombine.high %v2601_v26, %v2617_v44 }
 0x416   :  { %6050 = vmatpush1.bf16.msra.mxu1 %v7332_v62  ;;  %v2652_v62 = vld [vmem:[%s9896_s5 + $0x4e0] sm:$0xff] }
 0x417   :  { %6173 = vmatpush1.bf16.msra.mxu0 %v7338_v63  ;;  %6051 = vmatprep.subr.bf16.mxu1 %v7365_v0  ;;  %v7016_v63 = vcombine.low %v2601_v26, %v2617_v44  ;;  %v7022_v0 = vcombine.low %v2604_v45, %v2620_v46  ;;  %v7055_v57 = vcombine.high %v2636_v61, %v2652_v62 }
 0x418   :  { %6174 = vmatprep.subr.bf16.mxu0 %v7371_v1  ;;  %v7049_v1 = vcombine.high %v2633_v55, %v2649_v60 }
 0x41a   :  { %6052 = vmatpush1.bf16.msra.mxu1 %v7364_v6  ;;  %v2684_v6 = vld [vmem:[%s9896_s5 + $0x5e0] sm:$0xff] }
 0x41b   :  { %6175 = vmatpush1.bf16.msra.mxu0 %v7370_v7  ;;  %6053 = vmatprep.subr.bf16.mxu1 %v7397_v8  ;;  %v7048_v7 = vcombine.low %v2633_v55, %v2649_v60  ;;  %v9220_v8 = vld [vmem:[%s9897_s6 + $0x8] sm:$0xff]  ;;  %v7087_v14 = vcombine.high %v2668_v4, %v2684_v6  ;;  %v7086_v9 = vcombine.low %v2668_v4, %v2684_v6 }
 0x41c   :  { %6176 = vmatprep.subr.bf16.mxu0 %v7403_v12  ;;  %v7054_v12 = vcombine.low %v2636_v61, %v2652_v62  ;;  %v3055_v22 = vrot.slane %v9220_v8, %v8182_v58 }
 0x41e   :  { %6054 = vmatpush1.bf16.msra.mxu1 %v7396_v17  ;;  %v3027_v17 = vrot.slane %v8996_v10, %v8202_v50 }
 0x41f   :  { %6177 = vmatpush1.bf16.msra.mxu0 %v7402_v18  ;;  %6105 = vmatprep.subr.bf16.mxu1 %v6921_v19  ;;  %v3051_v18 = vrot.slane %v9220_v8, %v8174_v56  ;;  %v2700_v19 = vld [vmem:[%s9896_s5 + $0x660] sm:$0xff] }
 0x420   :  { %6228 = vmatprep.subr.bf16.mxu0 %v6927_v20  ;;  %v2716_v20 = vld [vmem:[%s9896_s5 + $0x6e0] sm:$0xff] }
 0x421   :  { %6056 = vmatmul.mubr.bf16.vlgmr.msra.gmra.mrb[20].mxu1 %v8346_v42  ;;  %v7119_v23 = vcombine.high %v2700_v19, %v2716_v20 }
 0x422   :  { %6179 = vmatmul.mubr.bf16.vlgmr.msra.gmra.mrb[24].mxu0 %v8346_v42  ;;  %6106 = vmatpush1.bf16.msra.mxu1 %v6920_v24  ;;  %v7080_v24 = vcombine.low %v2665_v2, %v2681_v3  ;;  %v6432_v2 = vrot.slane %v6424_v48, %v8060_v49  ;;  %v2812_v48 = vld [vmem:[%s9896_s5 + $0x9e0] sm:$0xff] }
 0x423   :  { %6137 = vmatprep.mubr.bf16.mxu1 %v8344_v25  ;;  %6229 = vmatpush1.bf16.msra.mxu0 %v6926_v28 }
 0x424   :  { %6260 = vmatprep.mubr.bf16.mxu0 %v8344_v25  ;;  %6107 = vmatprep.subr.bf16.mxu1 %v6953_v29 }
 0x425   :  { %6230 = vmatprep.subr.bf16.mxu0 %v6959_v31  ;;  %v2745_v31 = vld [vmem:[%s9896_s5 + $0x7c8] sm:$0xff] }
 0x426   :  { %6108 = vmatpush1.bf16.msra.mxu1 %v6952_v36  ;;  %v7145_v55 = vcombine.high %v2729_v30, %v2745_v31  ;;  %v7144_v4 = vcombine.low %v2729_v30, %v2745_v31  ;;  %v2860_v30 = vld [vmem:[%s9896_s5 + $0xb60] sm:$0xff] }
 0x427   :  { %6231 = vmatpush1.bf16.msra.mxu0 %v6958_v37  ;;  %6109 = vmatprep.subr.bf16.mxu1 %v6985_v40  ;;  %v2732_v40 = vld [vmem:[%s9896_s5 + $0x760] sm:$0xff] }
 0x428   :  { %6232 = vmatprep.subr.bf16.mxu0 %v6991_v41  ;;  %v2748_v41 = vld [vmem:[%s9896_s5 + $0x7e0] sm:$0xff] }
 0x429   :  { %v7151_v62 = vcombine.high %v2732_v40, %v2748_v41  ;;  %v7150_v6 = vcombine.low %v2732_v40, %v2748_v41  ;;  %v2876_v31 = vld [vmem:[%s9896_s5 + $0xbe0] sm:$0xff]  ;;  %v2889_v41 = vld [vmem:[%s9896_s5 + $0xc48] sm:$0xff] }
 0x42a   :  { %6110 = vmatpush1.bf16.msra.mxu1 %v6984_v47  ;;  %v7112_v47 = vcombine.low %v2697_v15, %v2713_v16  ;;  %v7279_v40 = vcombine.high %v2860_v30, %v2876_v31 }
 0x42b   :  { %6233 = vmatpush1.bf16.msra.mxu0 %v6990_v52  ;;  %6111 = vmatprep.subr.bf16.mxu1 %v7017_v53 }
 0x42c   :  { %6234 = vmatprep.subr.bf16.mxu0 %v7023_v54  ;;  %v7118_v54 = vcombine.low %v2700_v19, %v2716_v20  ;;  %v2825_v19 = vld [vmem:[%s9896_s5 + $0xa48] sm:$0xff] }
 0x42d   :  { %v2841_v20 = vld [vmem:[%s9896_s5 + $0xac8] sm:$0xff] }
 0x42e   :  { %6112 = vmatpush1.bf16.msra.mxu1 %v7016_v63  ;;  %v2761_v63 = vld [vmem:[%s9896_s5 + $0x848] sm:$0xff] }
 0x42f   :  { %6235 = vmatpush1.bf16.msra.mxu0 %v7022_v0  ;;  %6113 = vmatprep.subr.bf16.mxu1 %v7049_v1  ;;  %v2777_v0 = vld [vmem:[%s9896_s5 + $0x8c8] sm:$0xff]  ;;  %v2764_v1 = vld [vmem:[%s9896_s5 + $0x860] sm:$0xff] }
 0x430   :  { %6236 = vmatprep.subr.bf16.mxu0 %v7055_v57  ;;  %v2780_v57 = vld [vmem:[%s9896_s5 + $0x8e0] sm:$0xff]  ;;  %v7176_v15 = vcombine.low %v2761_v63, %v2777_v0 }
 0x431   :  { %v7182_v16 = vcombine.low %v2764_v1, %v2780_v57 }
 0x432   :  { %6114 = vmatpush1.bf16.msra.mxu1 %v7048_v7  ;;  %v7177_v7 = vcombine.high %v2761_v63, %v2777_v0  ;;  %v2940_v63 = vld [vmem:[%s9896_s5 + $0xde0] sm:$0xff] }
 0x433   :  { %6237 = vmatpush1.bf16.msra.mxu0 %v7054_v12  ;;  %6115 = vmatprep.subr.bf16.mxu1 %v7081_v13  ;;  %v7183_v13 = vcombine.high %v2764_v1, %v2780_v57 }
 0x434   :  { %v5811_v28 = vpop.f32.mrb[8].mxu1  ;;  %v5934_v29 = vpop.f32.mrb[12].mxu0  ;;  %6238 = vmatprep.subr.bf16.mxu0 %v7087_v14  ;;  %v2793_v14 = vld [vmem:[%s9896_s5 + $0x948] sm:$0xff] }
 0x435   :  { %v5812_v34 = vadd.f32 %v5811_v28, %v3027_v17  ;;  %v9248_v35 = vadd.f32 %v5934_v29, %v3051_v18  ;;  %v5813_v36 = vpop.f32.mrb[9].mxu1  ;;  %v5936_v37 = vpop.f32.mrb[13].mxu0  ;;  %v7209_v17 = vcombine.high %v2793_v14, %v2809_v32  ;;  %v7215_v18 = vcombine.high %v2796_v38, %v2812_v48  ;;  %v2857_v29 = vld [vmem:[%s9896_s5 + $0xb48] sm:$0xff] }
 0x436   :  { %v5814_v26 = vadd.f32 %v5813_v36, %v3031_v21  ;;  %v9256_v44 = vadd.f32 %v5936_v37, %v3055_v22  ;;  %v5815_v45 = vpop.f32.mrb[10].mxu1  ;;  %v5938_v46 = vpop.f32.mrb[14].mxu0  ;;  %6116 = vmatpush1.bf16.msra.mxu1 %v7080_v24  ;;  %v2828_v21 = vld [vmem:[%s9896_s5 + $0xa60] sm:$0xff]  ;;  %v7208_v24 = vcombine.low %v2793_v14, %v2809_v32 }
 0x437   :  { %6239 = vmatpush1.bf16.msra.mxu0 %v7086_v9  ;;  %v5816_v52 = vpop.f32.mrb[11].mxu1  ;;  %v5939_v53 = vpop.f32.mrb[15].mxu0  ;;  %6117 = vmatprep.subr.bf16.mxu1 %v7113_v27  ;;  %v2844_v22 = vld [vmem:[%s9896_s5 + $0xae0] sm:$0xff]  ;;  %v7214_v9 = vcombine.low %v2796_v38, %v2812_v48  ;;  %v7241_v27 = vcombine.high %v2825_v19, %v2841_v20  ;;  %v2985_v38 = vld [vmem:[%s9896_s5 + $0xf48] sm:$0xff] }
 0x438   :  { %v6425_v60 = vcombine.low %v5812_v34, %v5814_v26  ;;  %v6458_v61 = vcombine.low %v9248_v35, %v9256_v44  ;;  %6240 = vmatprep.subr.bf16.mxu0 %v7119_v23  ;;  %v7247_v28 = vcombine.high %v2828_v21, %v2844_v22  ;;  %v2873_v23 = vld [vmem:[%s9896_s5 + $0xbc8] sm:$0xff]  ;;  %v7240_v34 = vcombine.low %v2825_v19, %v2841_v20  ;;  %v2892_v45 = vld [vmem:[%s9896_s5 + $0xc60] sm:$0xff] }
 0x439   :  { %v7246_v36 = vcombine.low %v2828_v21, %v2844_v22  ;;  %v7273_v37 = vcombine.high %v2857_v29, %v2873_v23  ;;  %v2905_v26 = vld [vmem:[%s9896_s5 + $0xcc8] sm:$0xff]  ;;  %v2908_v46 = vld [vmem:[%s9896_s5 + $0xce0] sm:$0xff]  ;;  %v7278_v52 = vcombine.low %v2860_v30, %v2876_v31  ;;  %v2507_v21 = vld [vmem:[%s9896_s5 + $0x58] sm:$0xff] }
 0x43a   :  { %v6439_v3 = vrot.slane %v6425_v60, %v8060_v49  ;;  %6118 = vmatpush1.bf16.msra.mxu1 %v7112_v47  ;;  %v7272_v47 = vcombine.low %v2857_v29, %v2873_v23  ;;  %v7305_v53 = vcombine.high %v2889_v41, %v2905_v26  ;;  %v2937_v60 = vld [vmem:[%s9896_s5 + $0xdc8] sm:$0xff]  ;;  %v7304_v0 = vcombine.low %v2889_v41, %v2905_v26  ;;  %v2523_v22 = vld [vmem:[%s9896_s5 + $0xd8] sm:$0xff] }
 0x43b   :  { %6241 = vmatpush1.bf16.msra.mxu0 %v7118_v54  ;;  %6119 = vmatprep.subr.bf16.mxu1 %v7145_v55  ;;  %v7311_v54 = vcombine.high %v2892_v45, %v2908_v46  ;;  %v2921_v55 = vld [vmem:[%s9896_s5 + $0xd48] sm:$0xff]  ;;  %v7310_v1 = vcombine.low %v2892_v45, %v2908_v46  ;;  %v6925_v29 = vcombine.high %v2507_v21, %v2523_v22  ;;  %v2539_v30 = vld [vmem:[%s9896_s5 + $0x158] sm:$0xff] }
 0x43c   :  { %v6440_v12 = vcombine.low %v6432_v2, %v6439_v3  ;;  %6242 = vmatprep.subr.bf16.mxu0 %v7151_v62  ;;  %v2924_v62 = vld [vmem:[%s9896_s5 + $0xd60] sm:$0xff]  ;;  %v7337_v57 = vcombine.high %v2921_v55, %v2937_v60  ;;  %v2953_v3 = vld [vmem:[%s9896_s5 + $0xe48] sm:$0xff]  ;;  %v2555_v31 = vld [vmem:[%s9896_s5 + $0x1d8] sm:$0xff] }
 0x43d   :  { %v7343_v2 = vcombine.high %v2924_v62, %v2940_v63  ;;  %v3001_v48 = vld [vmem:[%s9896_s5 + $0xfc8] sm:$0xff]  ;;  %v6957_v41 = vcombine.high %v2539_v30, %v2555_v31  ;;  %v2571_v26 = vld [vmem:[%s9896_s5 + $0x258] sm:$0xff] }
 0x43e   :  { %6568 = vst [vmem:[%s9898_s7] sm:$0xff] %v6440_v12  ;;  %6120 = vmatpush1.bf16.msra.mxu1 %v7144_v4  ;;  %v2969_v4 = vld [vmem:[%s9896_s5 + $0xec8] sm:$0xff]  ;;  %v7336_v12 = vcombine.low %v2921_v55, %v2937_v60  ;;  %v7401_v19 = vcombine.high %v2985_v38, %v3001_v48  ;;  %v2587_v45 = vld [vmem:[%s9896_s5 + $0x2d8] sm:$0xff] }
 0x43f   :  { %6243 = vmatpush1.bf16.msra.mxu0 %v7150_v6  ;;  %6121 = vmatprep.subr.bf16.mxu1 %v7177_v7  ;;  %v2956_v6 = vld [vmem:[%s9896_s5 + $0xe60] sm:$0xff]  ;;  %v7369_v14 = vcombine.high %v2953_v3, %v2969_v4  ;;  %v6989_v55 = vcombine.high %v2571_v26, %v2587_v45 }
 0x440   :  { %6244 = vmatprep.subr.bf16.mxu0 %v7183_v13  ;;  %v2972_v7 = vld [vmem:[%s9896_s5 + $0xee0] sm:$0xff]  ;;  %v7342_v13 = vcombine.low %v2924_v62, %v2940_v63  ;;  %v2603_v62 = vld [vmem:[%s9896_s5 + $0x358] sm:$0xff] }
 0x441   :  { %v7375_v32 = vcombine.high %v2956_v6, %v2972_v7  ;;  %v2619_v63 = vld [vmem:[%s9896_s5 + $0x3d8] sm:$0xff] }
 0x442   :  { %6122 = vmatpush1.bf16.msra.mxu1 %v7176_v15  ;;  %v2988_v15 = vld [vmem:[%s9896_s5 + $0xf60] sm:$0xff] }
 0x443   :  { %6245 = vmatpush1.bf16.msra.mxu0 %v7182_v16  ;;  %6123 = vmatprep.subr.bf16.mxu1 %v7209_v17  ;;  %v3004_v16 = vld [vmem:[%s9896_s5 + $0xfe0] sm:$0xff]  ;;  %v7368_v17 = vcombine.low %v2953_v3, %v2969_v4  ;;  %v7021_v3 = vcombine.high %v2603_v62, %v2619_v63 }
 0x444   :  { %6246 = vmatprep.subr.bf16.mxu0 %v7215_v18  ;;  %v7374_v18 = vcombine.low %v2956_v6, %v2972_v7  ;;  %v7407_v20 = vcombine.high %v2988_v15, %v3004_v16  ;;  %v2635_v6 = vld [vmem:[%s9896_s5 + $0x458] sm:$0xff] }
 0x445   :  { %v2651_v7 = vld [vmem:[%s9896_s5 + $0x4d8] sm:$0xff] }
 0x446   :  { %6124 = vmatpush1.bf16.msra.mxu1 %v7208_v24  ;;  %v2510_v24 = vld [vmem:[%s9896_s5 + $0x70] sm:$0xff] }
 0x447   :  { %6247 = vmatpush1.bf16.msra.mxu0 %v7214_v9  ;;  %6125 = vmatprep.subr.bf16.mxu1 %v7241_v27  ;;  %v2526_v9 = vld [vmem:[%s9896_s5 + $0xf0] sm:$0xff]  ;;  %v7400_v27 = vcombine.low %v2985_v38, %v3001_v48  ;;  %v7053_v38 = vcombine.high %v2635_v6, %v2651_v7 }
 0x448   :  { %6248 = vmatprep.subr.bf16.mxu0 %v7247_v28  ;;  %v7406_v28 = vcombine.low %v2988_v15, %v3004_v16  ;;  %v6931_v23 = vcombine.high %v2510_v24, %v2526_v9  ;;  %v2667_v15 = vld [vmem:[%s9896_s5 + $0x558] sm:$0xff] }
 0x449   :  { %v2683_v16 = vld [vmem:[%s9896_s5 + $0x5d8] sm:$0xff] }
 0x44a   :  { %6126 = vmatpush1.bf16.msra.mxu1 %v7240_v34  ;;  %v6924_v34 = vcombine.low %v2507_v21, %v2523_v22  ;;  %v9444_v21 = vsub.s32 7, %v8057_v43 }
 0x44b   :  { %6249 = vmatpush1.bf16.msra.mxu0 %v7246_v36  ;;  %6127 = vmatprep.subr.bf16.mxu1 %v7273_v37  ;;  %v2542_v36 = vld [vmem:[%s9896_s5 + $0x170] sm:$0xff] }
 0x44c   :  { %6250 = vmatprep.subr.bf16.mxu0 %v7279_v40  ;;  %v2558_v37 = vld [vmem:[%s9896_s5 + $0x1f0] sm:$0xff]  ;;  %v6930_v40 = vcombine.low %v2510_v24, %v2526_v9  ;;  %v7085_v24 = vcombine.high %v2667_v15, %v2683_v16 }
 0x44d   :  { %v6963_v46 = vcombine.high %v2542_v36, %v2558_v37 }
 0x44e   :  { %6128 = vmatpush1.bf16.msra.mxu1 %v7272_v47  ;;  %v2574_v47 = vld [vmem:[%s9896_s5 + $0x270] sm:$0xff] }
 0x44f   :  { %6251 = vmatpush1.bf16.msra.mxu0 %v7278_v52  ;;  %6129 = vmatprep.subr.bf16.mxu1 %v7305_v53  ;;  %v2590_v52 = vld [vmem:[%s9896_s5 + $0x2f0] sm:$0xff]  ;;  %v6956_v53 = vcombine.low %v2539_v30, %v2555_v31  ;;  %v3067_v30 = vrot.slane %v9220_v8, %v8985_v5  ;;  %v3047_v31 = vrot.slane %v8996_v10, %v9444_v21 }
 0x450   :  { %6252 = vmatprep.subr.bf16.mxu0 %v7311_v54  ;;  %v6962_v54 = vcombine.low %v2542_v36, %v2558_v37  ;;  %v6995_v60 = vcombine.high %v2574_v47, %v2590_v52  ;;  %v3071_v36 = vrot.slane %v9220_v8, %v8999_v11 }
 0x452   :  { %6130 = vmatpush1.bf16.msra.mxu1 %v7304_v0  ;;  %v2606_v0 = vld [vmem:[%s9896_s5 + $0x370] sm:$0xff] }
 0x453   :  { %6253 = vmatpush1.bf16.msra.mxu0 %v7310_v1  ;;  %6131 = vmatprep.subr.bf16.mxu1 %v7337_v57  ;;  %v2622_v1 = vld [vmem:[%s9896_s5 + $0x3f0] sm:$0xff]  ;;  %v6988_v57 = vcombine.low %v2571_v26, %v2587_v45  ;;  %v2731_v45 = vld [vmem:[%s9896_s5 + $0x758] sm:$0xff] }
 0x454   :  { %6254 = vmatprep.subr.bf16.mxu0 %v7343_v2  ;;  %v6994_v2 = vcombine.low %v2574_v47, %v2590_v52  ;;  %v7027_v4 = vcombine.high %v2606_v0, %v2622_v1 }
 0x456   :  { %6132 = vmatpush1.bf16.msra.mxu1 %v7336_v12  ;;  %v2638_v12 = vld [vmem:[%s9896_s5 + $0x470] sm:$0xff] }
 0x457   :  { %6255 = vmatpush1.bf16.msra.mxu0 %v7342_v13  ;;  %6133 = vmatprep.subr.bf16.mxu1 %v7369_v14  ;;  %v2654_v13 = vld [vmem:[%s9896_s5 + $0x4f0] sm:$0xff]  ;;  %v7020_v14 = vcombine.low %v2603_v62, %v2619_v63 }
 0x458   :  { %6256 = vmatprep.subr.bf16.mxu0 %v7375_v32  ;;  %v7026_v32 = vcombine.low %v2606_v0, %v2622_v1  ;;  %v7059_v48 = vcombine.high %v2638_v12, %v2654_v13  ;;  %v7058_v22 = vcombine.low %v2638_v12, %v2654_v13  ;;  %v2763_v13 = vld [vmem:[%s9896_s5 + $0x858] sm:$0xff] }
 0x45a   :  { %6134 = vmatpush1.bf16.msra.mxu1 %v7368_v17  ;;  %v9435_v17 = vsub.s32 6, %v8057_v43  ;;  %v2702_v43 = vld [vmem:[%s9896_s5 + $0x670] sm:$0xff] }
 0x45b   :  { %6257 = vmatpush1.bf16.msra.mxu0 %v7374_v18  ;;  %6135 = vmatprep.subr.bf16.mxu1 %v7401_v19  ;;  %v2670_v18 = vld [vmem:[%s9896_s5 + $0x570] sm:$0xff] }
 0x45c   :  { %6258 = vmatprep.subr.bf16.mxu0 %v7407_v20  ;;  %v2686_v19 = vld [vmem:[%s9896_s5 + $0x5f0] sm:$0xff]  ;;  %v7052_v20 = vcombine.low %v2635_v6, %v2651_v7 }
 0x45d   :  { %v7091_v9 = vcombine.high %v2670_v18, %v2686_v19  ;;  %v7090_v37 = vcombine.low %v2670_v18, %v2686_v19 }
 0x45e   :  { %6136 = vmatpush1.bf16.msra.mxu1 %v7400_v27  ;;  %v2699_v27 = vld [vmem:[%s9896_s5 + $0x658] sm:$0xff] }
 0x45f   :  { %6259 = vmatpush1.bf16.msra.mxu0 %v7406_v28  ;;  %6187 = vmatprep.subr.bf16.mxu1 %v6925_v29  ;;  %v2715_v28 = vld [vmem:[%s9896_s5 + $0x6d8] sm:$0xff]  ;;  %v3043_v29 = vrot.slane %v8996_v10, %v9435_v17 }
 0x460   :  { %6310 = vmatprep.subr.bf16.mxu0 %v6931_v23  ;;  %v2718_v23 = vld [vmem:[%s9896_s5 + $0x6f0] sm:$0xff]  ;;  %v7116_v0 = vcombine.low %v2699_v27, %v2715_v28 }
 0x461   :  { %6138 = vmatmul.mubr.bf16.vlgmr.msra.gmra.mrb[24].mxu1 %v8346_v42  ;;  %v7123_v26 = vcombine.high %v2702_v43, %v2718_v23 }
 0x462   :  { %6261 = vmatmul.mubr.bf16.vlgmr.msra.gmra.mrb[28].mxu0 %v8346_v42  ;;  %6188 = vmatpush1.bf16.msra.mxu1 %v6924_v34  ;;  %v7084_v34 = vcombine.low %v2667_v15, %v2683_v16  ;;  %v6449_v15 = vrot.slane %v6441_v51, %v8060_v49  ;;  %v2814_v51 = vld [vmem:[%s9896_s5 + $0x9f0] sm:$0xff] }
 0x463   :  { %6219 = vmatprep.mubr.bf16.mxu1 %v8344_v25  ;;  %6311 = vmatpush1.bf16.msra.mxu0 %v6930_v40  ;;  %v7117_v40 = vcombine.high %v2699_v27, %v2715_v28 }
 0x464   :  { %6342 = vmatprep.mubr.bf16.mxu0 %v8344_v25  ;;  %6189 = vmatprep.subr.bf16.mxu1 %v6957_v41 }
 0x465   :  { %6312 = vmatprep.subr.bf16.mxu0 %v6963_v46  ;;  %v2747_v46 = vld [vmem:[%s9896_s5 + $0x7d8] sm:$0xff] }
 0x466   :  { %6190 = vmatpush1.bf16.msra.mxu1 %v6956_v53  ;;  %v2734_v53 = vld [vmem:[%s9896_s5 + $0x770] sm:$0xff]  ;;  %v7148_v18 = vcombine.low %v2731_v45, %v2747_v46 }
 0x467   :  { %6313 = vmatpush1.bf16.msra.mxu0 %v6962_v54  ;;  %6191 = vmatprep.subr.bf16.mxu1 %v6989_v55  ;;  %v2750_v54 = vld [vmem:[%s9896_s5 + $0x7f0] sm:$0xff] }
 0x468   :  { %6314 = vmatprep.subr.bf16.mxu0 %v6995_v60  ;;  %v7155_v12 = vcombine.high %v2734_v53, %v2750_v54  ;;  %v7154_v19 = vcombine.low %v2734_v53, %v2750_v54 }
 0x46a   :  { %6192 = vmatpush1.bf16.msra.mxu1 %v6988_v57 }
 0x46b   :  { %6315 = vmatpush1.bf16.msra.mxu0 %v6994_v2  ;;  %6193 = vmatprep.subr.bf16.mxu1 %v7021_v3  ;;  %v7122_v3 = vcombine.low %v2702_v43, %v2718_v23  ;;  %v7219_v43 = vcombine.high %v2798_v39, %v2814_v51  ;;  %v2827_v23 = vld [vmem:[%s9896_s5 + $0xa58] sm:$0xff] }
 0x46c   :  { %6316 = vmatprep.subr.bf16.mxu0 %v7027_v4  ;;  %v7149_v4 = vcombine.high %v2731_v45, %v2747_v46  ;;  %v2875_v45 = vld [vmem:[%s9896_s5 + $0xbd8] sm:$0xff]  ;;  %v2862_v46 = vld [vmem:[%s9896_s5 + $0xb70] sm:$0xff] }
 0x46e   :  { %6194 = vmatpush1.bf16.msra.mxu1 %v7020_v14  ;;  %v2779_v14 = vld [vmem:[%s9896_s5 + $0x8d8] sm:$0xff] }
 0x46f   :  { %6317 = vmatpush1.bf16.msra.mxu0 %v7026_v32  ;;  %6195 = vmatprep.subr.bf16.mxu1 %v7053_v38  ;;  %v2766_v38 = vld [vmem:[%s9896_s5 + $0x870] sm:$0xff]  ;;  %v7180_v27 = vcombine.low %v2763_v13, %v2779_v14 }
 0x470   :  { %6318 = vmatprep.subr.bf16.mxu0 %v7059_v48  ;;  %v2782_v48 = vld [vmem:[%s9896_s5 + $0x8f0] sm:$0xff] }
 0x471   :  { %v7186_v28 = vcombine.low %v2766_v38, %v2782_v48 }
 0x472   :  { %6196 = vmatpush1.bf16.msra.mxu1 %v7052_v20  ;;  %v7181_v20 = vcombine.high %v2763_v13, %v2779_v14  ;;  %v2942_v13 = vld [vmem:[%s9896_s5 + $0xdf0] sm:$0xff] }
 0x473   :  { %6319 = vmatpush1.bf16.msra.mxu0 %v7058_v22  ;;  %6197 = vmatprep.subr.bf16.mxu1 %v7085_v24  ;;  %v7187_v24 = vcombine.high %v2766_v38, %v2782_v48 }
 0x474   :  { %v5893_v41 = vpop.f32.mrb[12].mxu1  ;;  %6320 = vmatprep.subr.bf16.mxu0 %v7091_v9  ;;  %v2795_v9 = vld [vmem:[%s9896_s5 + $0x958] sm:$0xff] }
 0x475   :  { %v5894_v10 = vadd.f32 %v5893_v41, %v3043_v29  ;;  %v6016_v47 = vpop.f32.mrb[16].mxu0  ;;  %v5895_v52 = vpop.f32.mrb[13].mxu1  ;;  %v7213_v29 = vcombine.high %v2795_v9, %v2811_v33 }
 0x476   :  { %v9478_v55 = vadd.f32 %v6016_v47, %v3067_v30  ;;  %v5896_v60 = vadd.f32 %v5895_v52, %v3047_v31  ;;  %v6018_v62 = vpop.f32.mrb[17].mxu0  ;;  %v5897_v63 = vpop.f32.mrb[14].mxu1  ;;  %6198 = vmatpush1.bf16.msra.mxu1 %v7084_v34  ;;  %v2843_v30 = vld [vmem:[%s9896_s5 + $0xad8] sm:$0xff]  ;;  %v2830_v31 = vld [vmem:[%s9896_s5 + $0xa70] sm:$0xff] }
 0x477   :  { %v9480_v1 = vadd.f32 %v6018_v62, %v3071_v36  ;;  %v6020_v57 = vpop.f32.mrb[18].mxu0  ;;  %6321 = vmatpush1.bf16.msra.mxu0 %v7090_v37  ;;  %v5898_v2 = vpop.f32.mrb[15].mxu1  ;;  %6199 = vmatprep.subr.bf16.mxu1 %v7117_v40  ;;  %v2846_v34 = vld [vmem:[%s9896_s5 + $0xaf0] sm:$0xff]  ;;  %v7212_v36 = vcombine.low %v2795_v9, %v2811_v33  ;;  %v7218_v37 = vcombine.low %v2798_v39, %v2814_v51  ;;  %v2907_v62 = vld [vmem:[%s9896_s5 + $0xcd8] sm:$0xff] }
 0x478   :  { %v6442_v6 = vcombine.low %v5894_v10, %v5896_v60  ;;  %v6021_v7 = vpop.f32.mrb[19].mxu0  ;;  %6322 = vmatprep.subr.bf16.mxu0 %v7123_v26  ;;  %v7245_v40 = vcombine.high %v2827_v23, %v2843_v30  ;;  %v7251_v41 = vcombine.high %v2830_v31, %v2846_v34  ;;  %v2859_v26 = vld [vmem:[%s9896_s5 + $0xb58] sm:$0xff]  ;;  %v2878_v10 = vld [vmem:[%s9896_s5 + $0xbf0] sm:$0xff]  ;;  %v7244_v47 = vcombine.low %v2827_v23, %v2843_v30 }
 0x479   :  { %v6475_v32 = vcombine.low %v9478_v55, %v9480_v1  ;;  %v7250_v52 = vcombine.low %v2830_v31, %v2846_v34  ;;  %v7277_v53 = vcombine.high %v2859_v26, %v2875_v45  ;;  %v7283_v54 = vcombine.high %v2862_v46, %v2878_v10  ;;  %v2891_v60 = vld [vmem:[%s9896_s5 + $0xc58] sm:$0xff]  ;;  %v2894_v63 = vld [vmem:[%s9896_s5 + $0xc70] sm:$0xff]  ;;  %v2509_v31 = vld [vmem:[%s9896_s5 + $0x68] sm:$0xff] }
 0x47a   :  { %v6456_v16 = vrot.slane %v6442_v6, %v8060_v49  ;;  %6200 = vmatpush1.bf16.msra.mxu1 %v7116_v0  ;;  %v2910_v0 = vld [vmem:[%s9896_s5 + $0xcf0] sm:$0xff]  ;;  %v7276_v57 = vcombine.low %v2859_v26, %v2875_v45  ;;  %v7282_v2 = vcombine.low %v2862_v46, %v2878_v10  ;;  %v2923_v6 = vld [vmem:[%s9896_s5 + $0xd58] sm:$0xff]  ;;  %v7308_v14 = vcombine.low %v2891_v60, %v2907_v62  ;;  %v2525_v34 = vld [vmem:[%s9896_s5 + $0xe8] sm:$0xff] }
 0x47b   :  { %6323 = vmatpush1.bf16.msra.mxu0 %v7122_v3  ;;  %6201 = vmatprep.subr.bf16.mxu1 %v7149_v4  ;;  %v7309_v3 = vcombine.high %v2891_v60, %v2907_v62  ;;  %v7315_v4 = vcombine.high %v2894_v63, %v2910_v0  ;;  %v2939_v7 = vld [vmem:[%s9896_s5 + $0xdd8] sm:$0xff]  ;;  %v7314_v38 = vcombine.low %v2894_v63, %v2910_v0  ;;  %v2557_v26 = vld [vmem:[%s9896_s5 + $0x1e8] sm:$0xff] }
 0x47c   :  { %v6457_v22 = vcombine.low %v6449_v15, %v6456_v16  ;;  %6324 = vmatprep.subr.bf16.mxu0 %v7155_v12  ;;  %v2926_v12 = vld [vmem:[%s9896_s5 + $0xd70] sm:$0xff]  ;;  %v7341_v48 = vcombine.high %v2923_v6, %v2939_v7  ;;  %v2955_v16 = vld [vmem:[%s9896_s5 + $0xe58] sm:$0xff]  ;;  %v6928_v45 = vcombine.low %v2509_v31, %v2525_v34  ;;  %v2573_v10 = vld [vmem:[%s9896_s5 + $0x268] sm:$0xff] }
 0x47d   :  { %v7347_v15 = vcombine.high %v2926_v12, %v2942_v13  ;;  %v2987_v39 = vld [vmem:[%s9896_s5 + $0xf58] sm:$0xff]  ;;  %v2621_v60 = vld [vmem:[%s9896_s5 + $0x3e8] sm:$0xff] }
 0x47e   :  { %6569 = vst [vmem:[%s9898_s7 + $0x8] sm:$0xff] %v6457_v22  ;;  %6202 = vmatpush1.bf16.msra.mxu1 %v7148_v18  ;;  %v2971_v18 = vld [vmem:[%s9896_s5 + $0xed8] sm:$0xff]  ;;  %v7340_v22 = vcombine.low %v2923_v6, %v2939_v7  ;;  %v2637_v0 = vld [vmem:[%s9896_s5 + $0x468] sm:$0xff] }
 0x47f   :  { %6325 = vmatpush1.bf16.msra.mxu0 %v7154_v19  ;;  %6203 = vmatprep.subr.bf16.mxu1 %v7181_v20  ;;  %v2958_v19 = vld [vmem:[%s9896_s5 + $0xe70] sm:$0xff]  ;;  %v7373_v9 = vcombine.high %v2955_v16, %v2971_v18  ;;  %v3003_v51 = vld [vmem:[%s9896_s5 + $0xfd8] sm:$0xff]  ;;  %v2685_v6 = vld [vmem:[%s9896_s5 + $0x5e8] sm:$0xff] }
 0x480   :  { %6326 = vmatprep.subr.bf16.mxu0 %v7187_v24  ;;  %v2974_v20 = vld [vmem:[%s9896_s5 + $0xef0] sm:$0xff]  ;;  %v7346_v24 = vcombine.low %v2926_v12, %v2942_v13  ;;  %v7405_v23 = vcombine.high %v2987_v39, %v3003_v51 }
 0x481   :  { %v7379_v33 = vcombine.high %v2958_v19, %v2974_v20  ;;  %v9630_v12 = vld [vmem:[%s9897_s6 + $0x10] sm:$0xff] }
 0x482   :  { %6204 = vmatpush1.bf16.msra.mxu1 %v7180_v27  ;;  %v2990_v27 = vld [vmem:[%s9896_s5 + $0xf70] sm:$0xff] }
 0x483   :  { %6327 = vmatpush1.bf16.msra.mxu0 %v7186_v28  ;;  %6205 = vmatprep.subr.bf16.mxu1 %v7213_v29  ;;  %v3006_v28 = vld [vmem:[%s9896_s5 + $0xff0] sm:$0xff]  ;;  %v7372_v29 = vcombine.low %v2955_v16, %v2971_v18  ;;  %v3063_v16 = vrot.slane %v9220_v8, %v8185_v59 }
 0x484   :  { %6328 = vmatprep.subr.bf16.mxu0 %v7219_v43  ;;  %v7378_v43 = vcombine.low %v2958_v19, %v2974_v20  ;;  %v7411_v30 = vcombine.high %v2990_v27, %v3006_v28  ;;  %v3087_v19 = vrot.slane %v9630_v12, %v8182_v58 }
 0x486   :  { %6206 = vmatpush1.bf16.msra.mxu1 %v7212_v36  ;;  %v7404_v36 = vcombine.low %v2987_v39, %v3003_v51 }
 0x487   :  { %6329 = vmatpush1.bf16.msra.mxu0 %v7218_v37  ;;  %6207 = vmatprep.subr.bf16.mxu1 %v7245_v40  ;;  %v7410_v37 = vcombine.low %v2990_v27, %v3006_v28  ;;  %v6929_v40 = vcombine.high %v2509_v31, %v2525_v34 }
 0x488   :  { %6330 = vmatprep.subr.bf16.mxu0 %v7251_v41  ;;  %v2541_v41 = vld [vmem:[%s9896_s5 + $0x168] sm:$0xff] }
 0x489   :  { %v6961_v46 = vcombine.high %v2541_v41, %v2557_v26 }
 0x48a   :  { %6208 = vmatpush1.bf16.msra.mxu1 %v7244_v47  ;;  %v2589_v47 = vld [vmem:[%s9896_s5 + $0x2e8] sm:$0xff] }
 0x48b   :  { %6331 = vmatpush1.bf16.msra.mxu0 %v7250_v52  ;;  %6209 = vmatprep.subr.bf16.mxu1 %v7277_v53  ;;  %v6960_v52 = vcombine.low %v2541_v41, %v2557_v26  ;;  %v6993_v53 = vcombine.high %v2573_v10, %v2589_v47  ;;  %v6992_v62 = vcombine.low %v2573_v10, %v2589_v47  ;;  %v2781_v41 = vld [vmem:[%s9896_s5 + $0x8e8] sm:$0xff] }
 0x48c   :  { %6332 = vmatprep.subr.bf16.mxu0 %v7283_v54  ;;  %v2605_v54 = vld [vmem:[%s9896_s5 + $0x368] sm:$0xff] }
 0x48d   :  { %v7025_v63 = vcombine.high %v2605_v54, %v2621_v60 }
 0x48e   :  { %6210 = vmatpush1.bf16.msra.mxu1 %v7276_v57  ;;  %v2653_v57 = vld [vmem:[%s9896_s5 + $0x4e8] sm:$0xff] }
 0x48f   :  { %6333 = vmatpush1.bf16.msra.mxu0 %v7282_v2  ;;  %6211 = vmatprep.subr.bf16.mxu1 %v7309_v3  ;;  %v7024_v2 = vcombine.low %v2605_v54, %v2621_v60  ;;  %v7057_v3 = vcombine.high %v2637_v0, %v2653_v57  ;;  %v7056_v7 = vcombine.low %v2637_v0, %v2653_v57  ;;  %v2813_v54 = vld [vmem:[%s9896_s5 + $0x9e8] sm:$0xff] }
 0x490   :  { %6334 = vmatprep.subr.bf16.mxu0 %v7315_v4  ;;  %v2669_v4 = vld [vmem:[%s9896_s5 + $0x568] sm:$0xff] }
 0x491   :  { %v7089_v13 = vcombine.high %v2669_v4, %v2685_v6  ;;  %v7088_v18 = vcombine.low %v2669_v4, %v2685_v6  ;;  %v2845_v60 = vld [vmem:[%s9896_s5 + $0xae8] sm:$0xff] }
 0x492   :  { %6212 = vmatpush1.bf16.msra.mxu1 %v7308_v14  ;;  %v2701_v14 = vld [vmem:[%s9896_s5 + $0x668] sm:$0xff] }
 0x493   :  { %6335 = vmatpush1.bf16.msra.mxu0 %v7314_v38  ;;  %6213 = vmatprep.subr.bf16.mxu1 %v7341_v48  ;;  %v2717_v38 = vld [vmem:[%s9896_s5 + $0x6e8] sm:$0xff]  ;;  %v3059_v48 = vrot.slane %v9220_v8, %v8202_v50 }
 0x494   :  { %6336 = vmatprep.subr.bf16.mxu0 %v7347_v15  ;;  %v3083_v15 = vrot.slane %v9630_v12, %v8174_v56  ;;  %v7121_v20 = vcombine.high %v2701_v14, %v2717_v38  ;;  %v2861_v0 = vld [vmem:[%s9896_s5 + $0xb68] sm:$0xff] }
 0x495   :  { %v2877_v57 = vld [vmem:[%s9896_s5 + $0xbe8] sm:$0xff] }
 0x496   :  { %6214 = vmatpush1.bf16.msra.mxu1 %v7340_v22  ;;  %v2893_v4 = vld [vmem:[%s9896_s5 + $0xc68] sm:$0xff] }
 0x497   :  { %6337 = vmatpush1.bf16.msra.mxu0 %v7346_v24  ;;  %6215 = vmatprep.subr.bf16.mxu1 %v7373_v9  ;;  %v2733_v24 = vld [vmem:[%s9896_s5 + $0x768] sm:$0xff] }
 0x498   :  { %6338 = vmatprep.subr.bf16.mxu0 %v7379_v33  ;;  %v2749_v9 = vld [vmem:[%s9896_s5 + $0x7e8] sm:$0xff] }
 0x499   :  { %v7153_v34 = vcombine.high %v2733_v24, %v2749_v9  ;;  %v7152_v10 = vcombine.low %v2733_v24, %v2749_v9  ;;  %v2909_v6 = vld [vmem:[%s9896_s5 + $0xce8] sm:$0xff] }
 0x49a   :  { %6216 = vmatpush1.bf16.msra.mxu1 %v7372_v29  ;;  %v3005_v24 = vld [vmem:[%s9896_s5 + $0xfe8] sm:$0xff] }
 0x49b   :  { %6339 = vmatpush1.bf16.msra.mxu0 %v7378_v43  ;;  %6217 = vmatprep.subr.bf16.mxu1 %v7405_v23  ;;  %v7120_v43 = vcombine.low %v2701_v14, %v2717_v38  ;;  %v2925_v14 = vld [vmem:[%s9896_s5 + $0xd68] sm:$0xff] }
 0x49c   :  { %6340 = vmatprep.subr.bf16.mxu0 %v7411_v30  ;;  %v2941_v38 = vld [vmem:[%s9896_s5 + $0xde8] sm:$0xff] }
 0x49e   :  { %6218 = vmatpush1.bf16.msra.mxu1 %v7404_v36 }
 0x49f   :  { %6341 = vmatpush1.bf16.msra.mxu0 %v7410_v37  ;;  %6269 = vmatprep.subr.bf16.mxu1 %v6929_v40  ;;  %v2765_v40 = vld [vmem:[%s9896_s5 + $0x868] sm:$0xff] }
 0x4a0   :  { %v7185_v47 = vcombine.high %v2765_v40, %v2781_v41  ;;  %v7184_v35 = vcombine.low %v2765_v40, %v2781_v41  ;;  %v2607_v41 = vld [vmem:[%s9896_s5 + $0x378] sm:$0xff] }
 0x4a1   :  { %6220 = vmatmul.mubr.bf16.vlgmr.msra.gmra.mrb[28].mxu1 %v8346_v42 }
 0x4a2   :  { %6343 = vmatmul.mubr.bf16.vlgmr.msra.gmra.mrb[32].mxu0 %v8346_v42  ;;  %6270 = vmatpush1.bf16.msra.mxu1 %v6928_v45  ;;  %v6466_v45 = vrot.slane %v6458_v61, %v8060_v49  ;;  %v2829_v61 = vld [vmem:[%s9896_s5 + $0xa68] sm:$0xff] }
 0x4a3   :  { %6301 = vmatprep.mubr.bf16.mxu1 %v8344_v25  ;;  %6271 = vmatprep.subr.bf16.mxu1 %v6961_v46 }
 0x4a6   :  { %6272 = vmatpush1.bf16.msra.mxu1 %v6960_v52 }
 0x4a7   :  { %6273 = vmatprep.subr.bf16.mxu1 %v6993_v53  ;;  %v2797_v53 = vld [vmem:[%s9896_s5 + $0x968] sm:$0xff] }
 0x4a8   :  { %v7217_v44 = vcombine.high %v2797_v53, %v2813_v54 }
 0x4aa   :  { %6274 = vmatpush1.bf16.msra.mxu1 %v6992_v62  ;;  %v7216_v62 = vcombine.low %v2797_v53, %v2813_v54  ;;  %v2671_v54 = vld [vmem:[%s9896_s5 + $0x578] sm:$0xff] }
 0x4ab   :  { %6275 = vmatprep.subr.bf16.mxu1 %v7025_v63  ;;  %v7249_v63 = vcombine.high %v2829_v61, %v2845_v60 }
 0x4ae   :  { %6276 = vmatpush1.bf16.msra.mxu1 %v7024_v2  ;;  %v7248_v2 = vcombine.low %v2829_v61, %v2845_v60  ;;  %v2703_v60 = vld [vmem:[%s9896_s5 + $0x678] sm:$0xff] }
 0x4af   :  { %6277 = vmatprep.subr.bf16.mxu1 %v7057_v3  ;;  %v7281_v3 = vcombine.high %v2861_v0, %v2877_v57 }
 0x4b2   :  { %6278 = vmatpush1.bf16.msra.mxu1 %v7056_v7  ;;  %v7280_v7 = vcombine.low %v2861_v0, %v2877_v57  ;;  %v3099_v57 = vrot.slane %v9630_v12, %v8985_v5 }
 0x4b3   :  { %6279 = vmatprep.subr.bf16.mxu1 %v7089_v13  ;;  %v7313_v13 = vcombine.high %v2893_v4, %v2909_v6 }
 0x4b4   :  { %v5975_v22 = vpop.f32.mrb[16].mxu1 }
 0x4b5   :  { %v5976_v33 = vadd.f32 %v5975_v22, %v3059_v48  ;;  %v6098_v39 = vpop.f32.mrb[20].mxu0  ;;  %v5977_v51 = vpop.f32.mrb[17].mxu1  ;;  %v7312_v48 = vcombine.low %v2893_v4, %v2909_v6  ;;  %v2989_v22 = vld [vmem:[%s9896_s5 + $0xf68] sm:$0xff]  ;;  %v3103_v4 = vrot.slane %v9630_v12, %v8999_v11 }
 0x4b6   :  { %v9652_v27 = vadd.f32 %v6098_v39, %v3083_v15  ;;  %v5978_v8 = vadd.f32 %v5977_v51, %v3063_v16  ;;  %v6100_v28 = vpop.f32.mrb[21].mxu0  ;;  %v5979_v29 = vpop.f32.mrb[18].mxu1  ;;  %6280 = vmatpush1.bf16.msra.mxu1 %v7088_v18  ;;  %v7345_v15 = vcombine.high %v2925_v14, %v2941_v38  ;;  %v2957_v16 = vld [vmem:[%s9896_s5 + $0xe68] sm:$0xff]  ;;  %v2511_v39 = vld [vmem:[%s9896_s5 + $0x78] sm:$0xff] }
 0x4b7   :  { %v9654_v23 = vadd.f32 %v6100_v28, %v3087_v19  ;;  %v6102_v30 = vpop.f32.mrb[22].mxu0  ;;  %v5980_v31 = vpop.f32.mrb[19].mxu1  ;;  %6281 = vmatprep.subr.bf16.mxu1 %v7121_v20  ;;  %v2973_v18 = vld [vmem:[%s9896_s5 + $0xee8] sm:$0xff]  ;;  %v7344_v19 = vcombine.low %v2925_v14, %v2941_v38  ;;  %v2527_v51 = vld [vmem:[%s9896_s5 + $0xf8] sm:$0xff] }
 0x4b8   :  { %v6459_v36 = vcombine.low %v5976_v33, %v5978_v8  ;;  %v6103_v37 = vpop.f32.mrb[23].mxu0  ;;  %v7377_v20 = vcombine.high %v2957_v16, %v2973_v18  ;;  %v7376_v9 = vcombine.low %v2957_v16, %v2973_v18  ;;  %v7409_v33 = vcombine.high %v2989_v22, %v3005_v24  ;;  %v2543_v29 = vld [vmem:[%s9896_s5 + $0x178] sm:$0xff] }
 0x4b9   :  { %v6492_v26 = vcombine.low %v9652_v27, %v9654_v23  ;;  %v7408_v8 = vcombine.low %v2989_v22, %v3005_v24  ;;  %v6933_v28 = vcombine.high %v2511_v39, %v2527_v51  ;;  %v6932_v30 = vcombine.low %v2511_v39, %v2527_v51  ;;  %v2751_v14 = vld [vmem:[%s9896_s5 + $0x7f8] sm:$0xff] }
 0x4ba   :  { %v6473_v46 = vrot.slane %v6459_v36, %v8060_v49  ;;  %6282 = vmatpush1.bf16.msra.mxu1 %v7120_v43  ;;  %v2559_v43 = vld [vmem:[%s9896_s5 + $0x1f8] sm:$0xff] }
 0x4bb   :  { %6283 = vmatprep.subr.bf16.mxu1 %v7153_v34  ;;  %v6965_v31 = vcombine.high %v2543_v29, %v2559_v43  ;;  %v2575_v34 = vld [vmem:[%s9896_s5 + $0x278] sm:$0xff]  ;;  %v6964_v37 = vcombine.low %v2543_v29, %v2559_v43 }
 0x4bc   :  { %v6474_v52 = vcombine.low %v6466_v45, %v6473_v46  ;;  %v2591_v36 = vld [vmem:[%s9896_s5 + $0x2f8] sm:$0xff] }
 0x4bd   :  { %v6997_v40 = vcombine.high %v2575_v34, %v2591_v36  ;;  %v2623_v45 = vld [vmem:[%s9896_s5 + $0x3f8] sm:$0xff]  ;;  %v6996_v46 = vcombine.low %v2575_v34, %v2591_v36 }
 0x4be   :  { %6570 = vst [vmem:[%s9898_s7 + $0x10] sm:$0xff] %v6474_v52  ;;  %6284 = vmatpush1.bf16.msra.mxu1 %v7152_v10  ;;  %v7029_v10 = vcombine.high %v2607_v41, %v2623_v45  ;;  %v7028_v52 = vcombine.low %v2607_v41, %v2623_v45  ;;  %v2783_v29 = vld [vmem:[%s9896_s5 + $0x8f8] sm:$0xff] }
 0x4bf   :  { %6285 = vmatprep.subr.bf16.mxu1 %v7185_v47  ;;  %v2639_v47 = vld [vmem:[%s9896_s5 + $0x478] sm:$0xff] }
 0x4c0   :  { %v2815_v41 = vld [vmem:[%s9896_s5 + $0x9f8] sm:$0xff] }
 0x4c1   :  { %v2847_v45 = vld [vmem:[%s9896_s5 + $0xaf8] sm:$0xff] }
 0x4c2   :  { %6286 = vmatpush1.bf16.msra.mxu1 %v7184_v35  ;;  %v2687_v35 = vld [vmem:[%s9896_s5 + $0x5f8] sm:$0xff] }
 0x4c3   :  { %6287 = vmatprep.subr.bf16.mxu1 %v7217_v44  ;;  %v7093_v61 = vcombine.high %v2671_v54, %v2687_v35 }
 0x4c6   :  { %6288 = vmatpush1.bf16.msra.mxu1 %v7216_v62  ;;  %v2719_v62 = vld [vmem:[%s9896_s5 + $0x6f8] sm:$0xff] }
 0x4c7   :  { %6289 = vmatprep.subr.bf16.mxu1 %v7249_v63  ;;  %v7937_v63 = vld [vmem:[%s9897_s6 + $0x8] sm:$0xff]  ;;  %v7125_v6 = vcombine.high %v2703_v60, %v2719_v62  ;;  %v7124_v22 = vcombine.low %v2703_v60, %v2719_v62  ;;  %v2927_v60 = vld [vmem:[%s9896_s5 + $0xd78] sm:$0xff] }
 0x4c8   :  { %v3075_v0 = vrot.slane %v7937_v63, %v9435_v17  ;;  %v2943_v62 = vld [vmem:[%s9896_s5 + $0xdf8] sm:$0xff] }
 0x4ca   :  { %6290 = vmatpush1.bf16.msra.mxu1 %v7248_v2  ;;  %v3079_v2 = vrot.slane %v7937_v63, %v9444_v21 }
 0x4cb   :  { %6291 = vmatprep.subr.bf16.mxu1 %v7281_v3  ;;  %v7092_v3 = vcombine.low %v2671_v54, %v2687_v35  ;;  %v2895_v54 = vld [vmem:[%s9896_s5 + $0xc78] sm:$0xff] }
 0x4cc   :  { %v2911_v35 = vld [vmem:[%s9896_s5 + $0xcf8] sm:$0xff] }
 0x4cd   :  { %v7316_v63 = vcombine.low %v2895_v54, %v2911_v35 }
 0x4ce   :  { %6292 = vmatpush1.bf16.msra.mxu1 %v7280_v7 }
 0x4cf   :  { %6293 = vmatprep.subr.bf16.mxu1 %v7313_v13  ;;  %v2735_v13 = vld [vmem:[%s9896_s5 + $0x778] sm:$0xff] }
 0x4d0   :  { %v7157_v39 = vcombine.high %v2735_v13, %v2751_v14  ;;  %v7156_v34 = vcombine.low %v2735_v13, %v2751_v14 }
 0x4d2   :  { %6294 = vmatpush1.bf16.msra.mxu1 %v7312_v48 }
 0x4d3   :  { %6295 = vmatprep.subr.bf16.mxu1 %v7345_v15 }
 0x4d6   :  { %6296 = vmatpush1.bf16.msra.mxu1 %v7344_v19 }
 0x4d7   :  { %6297 = vmatprep.subr.bf16.mxu1 %v7377_v20 }
 0x4da   :  { %6298 = vmatpush1.bf16.msra.mxu1 %v7376_v9 }
 0x4db   :  { %6299 = vmatprep.subr.bf16.mxu1 %v7409_v33 }
 0x4de   :  { %6300 = vmatpush1.bf16.msra.mxu1 %v7408_v8 }
 0x4df   :  { %6351 = vmatprep.subr.bf16.mxu1 %v6933_v28  ;;  %v2767_v28 = vld [vmem:[%s9896_s5 + $0x878] sm:$0xff] }
 0x4e0   :  { %v7189_v36 = vcombine.high %v2767_v28, %v2783_v29  ;;  %v7188_v55 = vcombine.low %v2767_v28, %v2783_v29 }
 0x4e1   :  { %6302 = vmatmul.mubr.bf16.vlgmr.msra.gmra.mrb[32].mxu1 %v8346_v42 }
 0x4e2   :  { %6352 = vmatpush1.bf16.msra.mxu1 %v6932_v30  ;;  %6383 = vmatprep.mubr.bf16.mxu1 %v8344_v25  ;;  %v2655_v25 = vld [vmem:[%s9896_s5 + $0x4f8] sm:$0xff]  ;;  %v6483_v30 = vrot.slane %v6475_v32, %v8060_v49 }
 0x4e3   :  { %6353 = vmatprep.subr.bf16.mxu1 %v6965_v31  ;;  %v7061_v53 = vcombine.high %v2639_v47, %v2655_v25  ;;  %v7060_v44 = vcombine.low %v2639_v47, %v2655_v25  ;;  %v2831_v32 = vld [vmem:[%s9896_s5 + $0xa78] sm:$0xff] }
 0x4e4   :  { %v2863_v47 = vld [vmem:[%s9896_s5 + $0xb78] sm:$0xff] }
 0x4e5   :  { %v2879_v25 = vld [vmem:[%s9896_s5 + $0xbf8] sm:$0xff] }
 0x4e6   :  { %6354 = vmatpush1.bf16.msra.mxu1 %v6964_v37 }
 0x4e7   :  { %6355 = vmatprep.subr.bf16.mxu1 %v6997_v40  ;;  %v2799_v40 = vld [vmem:[%s9896_s5 + $0x978] sm:$0xff] }
 0x4e8   :  { %v7221_v1 = vcombine.high %v2799_v40, %v2815_v41 }
 0x4ea   :  { %6356 = vmatpush1.bf16.msra.mxu1 %v6996_v46  ;;  %v7220_v46 = vcombine.low %v2799_v40, %v2815_v41  ;;  %v3107_v41 = vrot.slane %v9630_v12, %v9435_v17 }
 0x4eb   :  { %6357 = vmatprep.subr.bf16.mxu1 %v7029_v10  ;;  %v7253_v10 = vcombine.high %v2831_v32, %v2847_v45 }
 0x4ee   :  { %6358 = vmatpush1.bf16.msra.mxu1 %v7028_v52  ;;  %v7252_v52 = vcombine.low %v2831_v32, %v2847_v45 }
 0x4ef   :  { %6359 = vmatprep.subr.bf16.mxu1 %v7061_v53  ;;  %v7285_v53 = vcombine.high %v2863_v47, %v2879_v25 }
 0x4f2   :  { %6360 = vmatpush1.bf16.msra.mxu1 %v7060_v44  ;;  %v7284_v44 = vcombine.low %v2863_v47, %v2879_v25 }
 0x4f3   :  { %6361 = vmatprep.subr.bf16.mxu1 %v7093_v61  ;;  %v7317_v61 = vcombine.high %v2895_v54, %v2911_v35 }
 0x4f4   :  { %v6057_v7 = vpop.f32.mrb[20].mxu1 }
 0x4f5   :  { %v6058_v38 = vadd.f32 %v6057_v7, %v3075_v0  ;;  %v6180_v48 = vpop.f32.mrb[24].mxu0  ;;  %v6059_v15 = vpop.f32.mrb[21].mxu1  ;;  %v7349_v0 = vcombine.high %v2927_v60, %v2943_v62  ;;  %v3007_v7 = vld [vmem:[%s9896_s5 + $0xff8] sm:$0xff] }
 0x4f6   :  { %v9773_v16 = vadd.f32 %v6180_v48, %v3099_v57  ;;  %v6060_v18 = vadd.f32 %v6059_v15, %v3079_v2  ;;  %v6182_v19 = vpop.f32.mrb[25].mxu0  ;;  %v6061_v20 = vpop.f32.mrb[22].mxu1  ;;  %6362 = vmatpush1.bf16.msra.mxu1 %v7092_v3  ;;  %v2959_v57 = vld [vmem:[%s9896_s5 + $0xe78] sm:$0xff]  ;;  %v7348_v3 = vcombine.low %v2927_v60, %v2943_v62  ;;  %v3091_v15 = vrot.slane %v9630_v12, %v8202_v50 }
 0x4f7   :  { %v9775_v24 = vadd.f32 %v6182_v19, %v3103_v4  ;;  %v6184_v9 = vpop.f32.mrb[26].mxu0  ;;  %v6062_v33 = vpop.f32.mrb[23].mxu1  ;;  %6363 = vmatprep.subr.bf16.mxu1 %v7125_v6  ;;  %v2975_v2 = vld [vmem:[%s9896_s5 + $0xef8] sm:$0xff]  ;;  %v3095_v19 = vrot.slane %v9630_v12, %v8185_v59 }
 0x4f8   :  { %v6476_v51 = vcombine.low %v6058_v38, %v6060_v18  ;;  %v6185_v8 = vpop.f32.mrb[27].mxu0  ;;  %v7381_v4 = vcombine.high %v2959_v57, %v2975_v2  ;;  %v2991_v6 = vld [vmem:[%s9896_s5 + $0xf78] sm:$0xff]  ;;  %v7380_v13 = vcombine.low %v2959_v57, %v2975_v2 }
 0x4f9   :  { %v6509_v43 = vcombine.low %v9773_v16, %v9775_v24  ;;  %v7413_v14 = vcombine.high %v2991_v6, %v3007_v7  ;;  %v7412_v38 = vcombine.low %v2991_v6, %v3007_v7  ;;  %v9839_v48 = vld [vmem:[%s9897_s6 + $0x18] sm:$0xff] }
 0x4fa   :  { %v6490_v31 = vrot.slane %v6476_v51, %v8060_v49  ;;  %6364 = vmatpush1.bf16.msra.mxu1 %v7124_v22  ;;  %v3115_v18 = vrot.slane %v9839_v48, %v8174_v56  ;;  %v3119_v20 = vrot.slane %v9839_v48, %v8182_v58  ;;  %v3135_v27 = vrot.slane %v9839_v48, %v8999_v11 }
 0x4fb   :  { %6365 = vmatprep.subr.bf16.mxu1 %v7157_v39  ;;  %v3123_v60 = vrot.slane %v9839_v48, %v8202_v50  ;;  %v3127_v62 = vrot.slane %v9839_v48, %v8185_v59  ;;  %v3139_v50 = vrot.slane %v9839_v48, %v9435_v17  ;;  %v3143_v59 = vrot.slane %v9839_v48, %v9444_v21 }
 0x4fc   :  { %v6491_v37 = vcombine.low %v6483_v30, %v6490_v31 }
 0x4fe   :  { %6571 = vst [vmem:[%s9898_s7 + $0x18] sm:$0xff] %v6491_v37  ;;  %6366 = vmatpush1.bf16.msra.mxu1 %v7156_v34  ;;  %v6500_v37 = vrot.slane %v6492_v26, %v8060_v49 }
 0x4ff   :  { %6367 = vmatprep.subr.bf16.mxu1 %v7189_v36 }
 0x502   :  { %6368 = vmatpush1.bf16.msra.mxu1 %v7188_v55  ;;  %v3131_v55 = vrot.slane %v9839_v48, %v8985_v5 }
 0x503   :  { %6369 = vmatprep.subr.bf16.mxu1 %v7221_v1  ;;  %v3111_v1 = vrot.slane %v9630_v12, %v9444_v21  ;;  %v6517_v12 = vrot.slane %v6509_v43, %v8060_v49 }
 0x506   :  { %6370 = vmatpush1.bf16.msra.mxu1 %v7220_v46 }
 0x507   :  { %6371 = vmatprep.subr.bf16.mxu1 %v7253_v10 }
 0x50a   :  { %6372 = vmatpush1.bf16.msra.mxu1 %v7252_v52 }
 0x50b   :  { %6373 = vmatprep.subr.bf16.mxu1 %v7285_v53 }
 0x50e   :  { %6374 = vmatpush1.bf16.msra.mxu1 %v7284_v44 }
 0x50f   :  { %6375 = vmatprep.subr.bf16.mxu1 %v7317_v61 }
 0x512   :  { %6376 = vmatpush1.bf16.msra.mxu1 %v7316_v63 }
 0x513   :  { %6377 = vmatprep.subr.bf16.mxu1 %v7349_v0 }
 0x516   :  { %6378 = vmatpush1.bf16.msra.mxu1 %v7348_v3 }
 0x517   :  { %6379 = vmatprep.subr.bf16.mxu1 %v7381_v4 }
 0x51a   :  { %6380 = vmatpush1.bf16.msra.mxu1 %v7380_v13 }
 0x51b   :  { %6381 = vmatprep.subr.bf16.mxu1 %v7413_v14 }
 0x51e   :  { %6382 = vmatpush1.bf16.msra.mxu1 %v7412_v38 }
 0x521   :  { %6384 = vmatmul.mubr.bf16.vlgmr.msra.gmra.mrb[36].mxu1 %v8346_v42 }
 0x534   :  { %v6139_v22 = vpop.f32.mrb[24].mxu1 }
 0x535   :  { %v6140_v9 = vadd.f32 %v6139_v22, %v3091_v15  ;;  %v6262_v42 = vpop.f32.mrb[28].mxu0  ;;  %v6141_v33 = vpop.f32.mrb[25].mxu1 }
 0x536   :  { %v6263_v39 = vadd.f32 %v6262_v42, %v3115_v18  ;;  %v6142_v51 = vadd.f32 %v6141_v33, %v3095_v19  ;;  %v6264_v8 = vpop.f32.mrb[29].mxu0  ;;  %v6143_v28 = vpop.f32.mrb[26].mxu1 }
 0x537   :  { %v6265_v29 = vadd.f32 %v6264_v8, %v3119_v20  ;;  %v6266_v30 = vpop.f32.mrb[30].mxu0  ;;  %v6144_v31 = vpop.f32.mrb[27].mxu1 }
 0x538   :  { %v6493_v34 = vcombine.low %v6140_v9, %v6142_v51  ;;  %v6267_v36 = vpop.f32.mrb[31].mxu0 }
 0x539   :  { %v6526_v56 = vcombine.low %v6263_v39, %v6265_v29 }
 0x53a   :  { %v6507_v58 = vrot.slane %v6493_v34, %v8060_v49 }
 0x53b   :  { %v6534_v43 = vrot.slane %v6526_v56, %v8060_v49 }
 0x53c   :  { %v6508_v40 = vcombine.low %v6500_v37, %v6507_v58 }
 0x53e   :  { %6572 = vst [vmem:[%s9898_s7 + $0x20] sm:$0xff] %v6508_v40 }
 0x574   :  { %v6221_v23 = vpop.f32.mrb[28].mxu1 }
 0x575   :  { %v6222_v26 = vadd.f32 %v6221_v23, %v3107_v41  ;;  %v6344_v32 = vpop.f32.mrb[32].mxu0  ;;  %v6223_v45 = vpop.f32.mrb[29].mxu1 }
 0x576   :  { %v6345_v46 = vadd.f32 %v6344_v32, %v3131_v55  ;;  %v6224_v10 = vadd.f32 %v6223_v45, %v3111_v1  ;;  %v6346_v47 = vpop.f32.mrb[33].mxu0  ;;  %v6225_v25 = vpop.f32.mrb[30].mxu1 }
 0x577   :  { %v6347_v52 = vadd.f32 %v6346_v47, %v3135_v27  ;;  %v6348_v53 = vpop.f32.mrb[34].mxu0  ;;  %v6226_v54 = vpop.f32.mrb[31].mxu1 }
 0x578   :  { %v6510_v35 = vcombine.low %v6222_v26, %v6224_v10  ;;  %v6349_v44 = vpop.f32.mrb[35].mxu0 }
 0x579   :  { %v6543_v5 = vcombine.low %v6345_v46, %v6347_v52 }
 0x57a   :  { %v6524_v11 = vrot.slane %v6510_v35, %v8060_v49 }
 0x57b   :  { %v6551_v20 = vrot.slane %v6543_v5, %v8060_v49 }
 0x57c   :  { %v6525_v61 = vcombine.low %v6517_v12, %v6524_v11 }
 0x57e   :  { %6573 = vst [vmem:[%s9898_s7 + $0x28] sm:$0xff] %v6525_v61 }
 0x5b4   :  { %v6303_v63 = vpop.f32.mrb[32].mxu1 }
 0x5b5   :  { %v6304_v0 = vadd.f32 %v6303_v63, %v3123_v60  ;;  %v6305_v57 = vpop.f32.mrb[33].mxu1 }
 0x5b6   :  { %v6306_v2 = vadd.f32 %v6305_v57, %v3127_v62  ;;  %v6307_v3 = vpop.f32.mrb[34].mxu1 }
 0x5b7   :  { %v6308_v16 = vpop.f32.mrb[35].mxu1 }
 0x5b8   :  { %v6527_v24 = vcombine.low %v6304_v0, %v6306_v2 }
 0x5ba   :  { %v6541_v4 = vrot.slane %v6527_v24, %v8060_v49 }
 0x5bc   :  { %v6542_v6 = vcombine.low %v6534_v43, %v6541_v4 }
 0x5be   :  { %6574 = vst [vmem:[%s9898_s7 + $0x30] sm:$0xff] %v6542_v6 }
 0x5f4   :  { %v6385_v7 = vpop.f32.mrb[36].mxu1 }
 0x5f5   :  { %v6386_v13 = vadd.f32 %v6385_v7, %v3139_v50  ;;  %v6387_v14 = vpop.f32.mrb[37].mxu1 }
 0x5f6   :  { %v6388_v38 = vadd.f32 %v6387_v14, %v3143_v59  ;;  %v6389_v15 = vpop.f32.mrb[38].mxu1 }
 0x5f7   :  { %v6390_v18 = vpop.f32.mrb[39].mxu1 }
 0x5f8   :  { %v6544_v19 = vcombine.low %v6386_v13, %v6388_v38 }
 0x5fa   :  { %v6558_v22 = vrot.slane %v6544_v19, %v8060_v49 }
 0x5fc   :  { %v6559_v9 = vcombine.low %v6551_v20, %v6558_v22 }
 0x5fe   :  { %6575 = vst [vmem:[%s9898_s7 + $0x38] sm:$0xff] %v6559_v9 }
 0x5ff   :  { %6580 = vsyncpa [#allocation3], 1 }
 0x600   :  { %6581 = vsyncpa [#allocation5], 1 }

</bundles_post_ra>
